<compile_context>
chip_gen: v6e
topology: v6e:2x2x1
jax: 0.10.0
libtpu: 0.0.40
codegen_flags: <defaults>
</compile_context>

<pallas_src>
import numpy as np
import jax
import jax.numpy as jnp
from jax import lax
from jax.experimental import pallas as pl
from jax.experimental.pallas import tpu as pltpu

_B = 8  # images per grid step (stacked along the matmul M axis)


# ---------------------------------------------------------------------------
# Fused Pallas kernel: one grid step == 8 images
# ---------------------------------------------------------------------------
def _fused_kernel(x_ref, c1w_ref, b1_ref, s1_ref, c2w_ref, b2_ref,
                  r2_ref, w1s_ref, fc1b_ref, fc2w_ref, fc2b_ref, out_ref):
    f32, bf16 = jnp.float32, jnp.bfloat16

    # ---- Conv2d(1,10,5): ONE matmul for 8 images x 3 row-pool phases --------
    # x_ref rows: phi*160 + b*20 + p  (image row = 3p+phi), cols: kh*64 + w
    y = jnp.dot(x_ref[...], c1w_ref[...], preferred_element_type=f32)   # (480, 600)

    # ---- MaxPool2d(3) rows: max over the three 160-row phase blocks ---------
    rm = jnp.maximum(jnp.maximum(y[0:160], y[160:320]), y[320:480])     # (160, 600)
    # ---- MaxPool2d(3) cols: shifted lane-slices + max (windows stay inside a
    # 60-wide channel band), then gather the 200 surviving columns.
    cm = jnp.maximum(jnp.maximum(rm[:, 0:598], rm[:, 1:599]), rm[:, 2:600])
    p1 = jnp.dot(cm.astype(bf16), s1_ref[...], preferred_element_type=f32)
    p1 = jnp.maximum(p1 + b1_ref[...], 0.0).astype(bf16)                # (160, 200)

    # ---- Conv2d(10,20,5): 5 kh-taps = sublane-shifted slices of p1 ----------
    # output row r = b*20 + h (h < 16 valid), col = co*16 + wo
    c2 = jnp.dot(p1[0:156], c2w_ref[0], preferred_element_type=f32)
    for kh in range(1, 5):
        c2 = c2 + jnp.dot(p1[kh:kh + 156], c2w_ref[kh],
                          preferred_element_type=f32)
    c2 = c2 + b2_ref[...]                                               # (156, 320)

    # ---- MaxPool2d(3) + ReLU: shifted-slice maxes (cols then rows) ----------
    ccm = jnp.maximum(jnp.maximum(c2[:, 0:318], c2[:, 1:319]), c2[:, 2:320])
    rcm = jnp.maximum(jnp.maximum(ccm[0:154], ccm[1:155]), ccm[2:156])
    rcm = jnp.maximum(rcm, 0.0).astype(bf16)                            # (154, 318)
    # Row gather into p2-major blocks of 8 images: rows = p2*8 + b.
    pp = jnp.dot(r2_ref[...], rcm, preferred_element_type=f32)          # (40, 318)

    # ---- Linear(500,100): pool2 column gather folded into w1s ---------------
    h = jnp.dot(pp[0:8].astype(bf16), w1s_ref[0], preferred_element_type=f32)
    for j in range(1, 5):
        h = h + jnp.dot(pp[8 * j:8 * j + 8].astype(bf16), w1s_ref[j],
                        preferred_element_type=f32)
    h = h + fc1b_ref[...]                                               # (8, 100)

    # ---- Linear(100,15) ------------------------------------------------------
    out = jnp.dot(h.astype(bf16), fc2w_ref[...], preferred_element_type=f32)
    out_ref[...] = out + fc2b_ref[...]                                  # (8, 15)


# ---------------------------------------------------------------------------
# Weight-side table preparation (plain JAX, O(weights) only)
# ---------------------------------------------------------------------------
def _prepare_tables(params):
    f32, bf16 = jnp.float32, jnp.bfloat16
    w1 = params["w1"].astype(f32)            # (10, 1, 5, 5)
    w2 = params["w2"].astype(f32)            # (20, 10, 5, 5)

    # Banded conv1 weights (320, 600): row kh*64+w, col ci*60+j
    t1 = (jnp.arange(64)[None, :, None]
          == jnp.arange(60)[None, None, :] + jnp.arange(5)[:, None, None]
          ).astype(f32)                                            # (kw, w, j)
    c1w = jnp.einsum("okq,qwv->kwov", w1[:, 0], t1).reshape(320, 600).astype(bf16)
    b1row = jnp.repeat(params["b1"].astype(f32), 20)[None, :]      # (1, 200)

    # Pool1 column selector (598, 200): picks col ci*60+3q from the col-maxed slab
    cc = jnp.arange(200)
    tgt1 = (cc // 20) * 60 + 3 * (cc % 20)
    s1 = (jnp.arange(598)[:, None] == tgt1[None, :]).astype(bf16)

    # Banded conv2 weights (5, 200, 320): [kh, ci*20+q, co*16+wo]
    t2 = (jnp.arange(20)[None, :, None]
          == jnp.arange(16)[None, None, :] + jnp.arange(5)[:, None, None]
          ).astype(f32)                                            # (kw, q, wo)
    c2w = jnp.einsum("ockq,qwv->kcwov", w2, t2).reshape(5, 200, 320).astype(bf16)
    b2row = jnp.repeat(params["b2"].astype(f32), 16)[None, :]      # (1, 320)

    # Pool2 row selector / p2-major arrangement (40, 154): [p2*8+b, b*20+3p2] = 1
    ridx = jnp.arange(40)
    tgt2 = (ridx % _B) * 20 + 3 * (ridx // _B)
    r2 = (jnp.arange(154)[None, :] == tgt2[:, None]).astype(bf16)

    # fc1 weights with the pool2 column gather folded in: (5, 318, 100)
    w1p = (params["wfc1"].astype(f32).reshape(100, 20, 5, 5)
           .transpose(2, 1, 3, 0).reshape(5, 100, 100))            # [p2, co*5+q2, f]
    cq = jnp.arange(100)
    tgt3 = (cq // 5) * 16 + 3 * (cq % 5)
    sel = (jnp.arange(318)[:, None] == tgt3[None, :]).astype(f32)  # (318, 100)
    w1s = jnp.einsum("rc,pcf->prf", sel, w1p).astype(bf16)         # (5, 318, 100)
    fc1b = params["bfc1"].astype(f32)[None, :]                     # (1, 100)
    fc2w = params["wfc2"].astype(f32).T.astype(bf16)               # (100, 15)
    fc2b = params["bfc2"].astype(f32)[None, :]                     # (1, 15)

    return (c1w, b1row, s1, c2w, b2row, r2, w1s, fc1b, fc2w, fc2b)


# ---------------------------------------------------------------------------
# SimpleNet forward (single fused, batched pallas_call)
# ---------------------------------------------------------------------------
def simple_net_forward(x_nchw, params):
    assert x_nchw.shape[1:] == (1, 64, 64), x_nchw.shape
    N = x_nchw.shape[0]
    n_steps = -(-N // _B)
    N_pad = n_steps * _B

    x = x_nchw.reshape(N, 64, 64).astype(jnp.bfloat16)
    if N_pad != N:
        x = jnp.concatenate(
            [x, jnp.zeros((N_pad - N, 64, 64), jnp.bfloat16)], axis=0)

    # im2row over the 5 conv1 kernel rows: (N_pad, 60, 320), col = kh*64 + w
    slab = jnp.stack([x[:, kh:kh + 60, :] for kh in range(5)], axis=2)
    slab = slab.reshape(N_pad, 60, 320)
    # phase-major rows within each 8-image block: row = phi*160 + b*20 + p
    xk = (slab.reshape(n_steps, _B, 20, 3, 320)
              .transpose(0, 3, 1, 2, 4)
              .reshape(n_steps * 3 * _B * 20, 320))                # (n_steps*480, 320)

    tables = _prepare_tables(params)

    def _full_spec(a):
        nd = a.ndim
        return pl.BlockSpec(a.shape, lambda n, _nd=nd: (0,) * _nd)

    in_specs = [pl.BlockSpec((3 * _B * 20, 320), lambda n: (n, 0))]
    in_specs += [_full_spec(t) for t in tables]

    out = pl.pallas_call(
        _fused_kernel,
        grid=(n_steps,),
        in_specs=in_specs,
        out_specs=pl.BlockSpec((_B, 15), lambda n: (n, 0)),
        out_shape=jax.ShapeDtypeStruct((N_pad, 15), jnp.float32),
        compiler_params=pltpu.CompilerParams(
            dimension_semantics=("parallel",),
            vmem_limit_bytes=32 * 1024 * 1024),
    )(xk, *tables)
    return out[:N]                             # (N, 15) raw scores


# ---------------------------------------------------------------------------
# Pure-JAX reference (correctness check only)
# ---------------------------------------------------------------------------
def _maxpool_nchw(x, k):
    N, C, H, W = x.shape
    Ph, Pw = H // k, W // k
    x = x[:, :, :Ph * k, :Pw * k]
    return x.reshape(N, C, Ph, k, Pw, k).max(axis=(3, 5))


def reference_forward(x_nchw, params):
    dn = ("NCHW", "OIHW", "NCHW")
    y = lax.conv_general_dilated(x_nchw, params["w1"], (1, 1), "VALID",
                                 dimension_numbers=dn)
    y = y + params["b1"][None, :, None, None]
    y = jnp.maximum(_maxpool_nchw(y, 3), 0.0)
    y = lax.conv_general_dilated(y, params["w2"], (1, 1), "VALID",
                                 dimension_numbers=dn)
    y = y + params["b2"][None, :, None, None]
    y = jnp.maximum(_maxpool_nchw(y, 3), 0.0)
    y = y.reshape(y.shape[0], -1)
    y = y @ params["wfc1"].T + params["bfc1"]
    y = y @ params["wfc2"].T + params["bfc2"]
    return y


# ---------------------------------------------------------------------------
# Deterministic synthetic parameters (PyTorch-style shapes)
# ---------------------------------------------------------------------------
def init_params(key):
    ks = jax.random.split(key, 8)

    def u(k, shape, fan_in):
        bound = 1.0 / np.sqrt(fan_in)
        return jax.random.uniform(k, shape, jnp.float32, -bound, bound)

    return {
        "w1": u(ks[0], (10, 1, 5, 5), 25),      # Conv2d(1, 10, 5)
        "b1": u(ks[1], (10,), 25),
        "w2": u(ks[2], (20, 10, 5, 5), 250),    # Conv2d(10, 20, 5)
        "b2": u(ks[3], (20,), 250),
        "wfc1": u(ks[4], (100, 500), 500),      # Linear(500, 100)
        "bfc1": u(ks[5], (100,), 500),
        "wfc2": u(ks[6], (15, 100), 100),       # Linear(100, 15)
        "bfc2": u(ks[7], (15,), 100),
    }
    # TODO(synk): loss_criterion (CrossEntropyLoss, reduction='sum') is not part
    # of forward() and is intentionally not implemented here.


if __name__ == "__main__":
    key = jax.random.PRNGKey(0)
    pkey, xkey = jax.random.split(key)
    params = init_params(pkey)

    # 64x64 single-channel images (the only spatial size consistent with Linear(500,100))
    x = jax.random.normal(xkey, (2, 1, 64, 64), jnp.float32)

    out = jax.jit(simple_net_forward)(x, params)
    out = jax.block_until_ready(out)
    assert out.shape == (2, 15), out.shape

    ref = jax.block_until_ready(jax.jit(reference_forward)(x, params))
    np.testing.assert_allclose(np.asarray(out), np.asarray(ref), rtol=5e-2, atol=5e-2)

    print("KERNEL_OK")
</pallas_src>

<mosaic_0001>
module attributes {stable_mosaic.version = 11 : i64} {
  func.func @_fused_kernel(%arg0: i32, %arg1: memref<480x320xbf16, #tpu.memory_space<vmem>>, %arg2: memref<320x600xbf16, #tpu.memory_space<vmem>>, %arg3: memref<1x200xf32, #tpu.memory_space<vmem>>, %arg4: memref<598x200xbf16, #tpu.memory_space<vmem>>, %arg5: memref<5x200x320xbf16, #tpu.memory_space<vmem>>, %arg6: memref<1x320xf32, #tpu.memory_space<vmem>>, %arg7: memref<40x154xbf16, #tpu.memory_space<vmem>>, %arg8: memref<5x318x100xbf16, #tpu.memory_space<vmem>>, %arg9: memref<1x100xf32, #tpu.memory_space<vmem>>, %arg10: memref<100x15xbf16, #tpu.memory_space<vmem>>, %arg11: memref<1x15xf32, #tpu.memory_space<vmem>>, %arg12: memref<8x15xf32, #tpu.memory_space<vmem>>) attributes {dimension_semantics = [#tpu.dimension_semantics<parallel>], iteration_bounds = array<i64: 1>, scalar_prefetch = 0 : i64, scratch_operands = 0 : i64, tpu.core_type = #tpu.core_type<tc>, window_params = [{transform_indices = @transform_0, window_bounds = array<i64: 480, 320>}, {pipeline_mode = #tpu.pipeline_mode<synchronous>, transform_indices = @transform_1, window_bounds = array<i64: 320, 600>}, {pipeline_mode = #tpu.pipeline_mode<synchronous>, transform_indices = @transform_2, window_bounds = array<i64: 1, 200>}, {pipeline_mode = #tpu.pipeline_mode<synchronous>, transform_indices = @transform_3, window_bounds = array<i64: 598, 200>}, {pipeline_mode = #tpu.pipeline_mode<synchronous>, transform_indices = @transform_4, window_bounds = array<i64: 5, 200, 320>}, {pipeline_mode = #tpu.pipeline_mode<synchronous>, transform_indices = @transform_5, window_bounds = array<i64: 1, 320>}, {pipeline_mode = #tpu.pipeline_mode<synchronous>, transform_indices = @transform_6, window_bounds = array<i64: 40, 154>}, {pipeline_mode = #tpu.pipeline_mode<synchronous>, transform_indices = @transform_7, window_bounds = array<i64: 5, 318, 100>}, {pipeline_mode = #tpu.pipeline_mode<synchronous>, transform_indices = @transform_8, window_bounds = array<i64: 1, 100>}, {pipeline_mode = #tpu.pipeline_mode<synchronous>, transform_indices = @transform_9, window_bounds = array<i64: 100, 15>}, {pipeline_mode = #tpu.pipeline_mode<synchronous>, transform_indices = @transform_10, window_bounds = array<i64: 1, 15>}, {transform_indices = @transform_11, window_bounds = array<i64: 8, 15>}]} {
    %c0 = arith.constant 0 : index
    %c0_0 = arith.constant 0 : index
    %0 = vector.load %arg1[%c0, %c0_0] : memref<480x320xbf16, #tpu.memory_space<vmem>>, vector<480x320xbf16>
    %c0_1 = arith.constant 0 : index
    %c0_2 = arith.constant 0 : index
    %1 = vector.load %arg2[%c0_1, %c0_2] : memref<320x600xbf16, #tpu.memory_space<vmem>>, vector<320x600xbf16>
    %cst = arith.constant dense<0.000000e+00> : vector<480x600xf32>
    %2 = tpu.matmul %0, %1, %cst {dimension_numbers = #tpu.dot_dimension_numbers<[1], [0], [0], [1], [0, 0, 1, 1], [], []>} : vector<480x320xbf16>, vector<320x600xbf16>, vector<480x600xf32> -> vector<480x600xf32>
    %3 = vector.extract_strided_slice %2 {offsets = [0, 0], sizes = [160, 600], strides = [1, 1]} : vector<480x600xf32> to vector<160x600xf32>
    %4 = vector.extract_strided_slice %2 {offsets = [160, 0], sizes = [160, 600], strides = [1, 1]} : vector<480x600xf32> to vector<160x600xf32>
    %5 = arith.maximumf %3, %4 : vector<160x600xf32>
    %6 = vector.extract_strided_slice %2 {offsets = [320, 0], sizes = [160, 600], strides = [1, 1]} : vector<480x600xf32> to vector<160x600xf32>
    %7 = arith.maximumf %5, %6 : vector<160x600xf32>
    %8 = vector.extract_strided_slice %7 {offsets = [0, 0], sizes = [160, 598], strides = [1, 1]} : vector<160x600xf32> to vector<160x598xf32>
    %9 = vector.extract_strided_slice %7 {offsets = [0, 1], sizes = [160, 598], strides = [1, 1]} : vector<160x600xf32> to vector<160x598xf32>
    %10 = arith.maximumf %8, %9 : vector<160x598xf32>
    %11 = vector.extract_strided_slice %7 {offsets = [0, 2], sizes = [160, 598], strides = [1, 1]} : vector<160x600xf32> to vector<160x598xf32>
    %12 = arith.maximumf %10, %11 : vector<160x598xf32>
    %13 = arith.truncf %12 : vector<160x598xf32> to vector<160x598xbf16>
    %c0_3 = arith.constant 0 : index
    %c0_4 = arith.constant 0 : index
    %14 = vector.load %arg4[%c0_3, %c0_4] : memref<598x200xbf16, #tpu.memory_space<vmem>>, vector<598x200xbf16>
    %cst_5 = arith.constant dense<0.000000e+00> : vector<160x200xf32>
    %15 = tpu.matmul %13, %14, %cst_5 {dimension_numbers = #tpu.dot_dimension_numbers<[1], [0], [0], [1], [0, 0, 1, 1], [], []>} : vector<160x598xbf16>, vector<598x200xbf16>, vector<160x200xf32> -> vector<160x200xf32>
    %c0_6 = arith.constant 0 : index
    %c0_7 = arith.constant 0 : index
    %16 = vector.load %arg3[%c0_6, %c0_7] : memref<1x200xf32, #tpu.memory_space<vmem>>, vector<1x200xf32>
    %17 = vector.broadcast %16 : vector<1x200xf32> to vector<160x200xf32>
    %18 = arith.addf %15, %17 : vector<160x200xf32>
    %cst_8 = arith.constant 0.000000e+00 : f32
    %19 = vector.broadcast %cst_8 : f32 to vector<160x200xf32>
    %20 = arith.maximumf %18, %19 : vector<160x200xf32>
    %21 = arith.truncf %20 : vector<160x200xf32> to vector<160x200xbf16>
    %22 = vector.extract_strided_slice %21 {offsets = [0, 0], sizes = [156, 200], strides = [1, 1]} : vector<160x200xbf16> to vector<156x200xbf16>
    %c0_9 = arith.constant 0 : index
    %c0_10 = arith.constant 0 : index
    %c0_11 = arith.constant 0 : index
    %23 = vector.load %arg5[%c0_9, %c0_10, %c0_11] : memref<5x200x320xbf16, #tpu.memory_space<vmem>>, vector<1x200x320xbf16>
    %24 = vector.shape_cast %23 : vector<1x200x320xbf16> to vector<200x320xbf16>
    %cst_12 = arith.constant dense<0.000000e+00> : vector<156x320xf32>
    %25 = tpu.matmul %22, %24, %cst_12 {dimension_numbers = #tpu.dot_dimension_numbers<[1], [0], [0], [1], [0, 0, 1, 1], [], []>} : vector<156x200xbf16>, vector<200x320xbf16>, vector<156x320xf32> -> vector<156x320xf32>
    %26 = vector.extract_strided_slice %21 {offsets = [1, 0], sizes = [156, 200], strides = [1, 1]} : vector<160x200xbf16> to vector<156x200xbf16>
    %c1 = arith.constant 1 : index
    %c0_13 = arith.constant 0 : index
    %c0_14 = arith.constant 0 : index
    %27 = vector.load %arg5[%c1, %c0_13, %c0_14] : memref<5x200x320xbf16, #tpu.memory_space<vmem>>, vector<1x200x320xbf16>
    %28 = vector.shape_cast %27 : vector<1x200x320xbf16> to vector<200x320xbf16>
    %cst_15 = arith.constant dense<0.000000e+00> : vector<156x320xf32>
    %29 = tpu.matmul %26, %28, %cst_15 {dimension_numbers = #tpu.dot_dimension_numbers<[1], [0], [0], [1], [0, 0, 1, 1], [], []>} : vector<156x200xbf16>, vector<200x320xbf16>, vector<156x320xf32> -> vector<156x320xf32>
    %30 = arith.addf %25, %29 : vector<156x320xf32>
    %31 = vector.extract_strided_slice %21 {offsets = [2, 0], sizes = [156, 200], strides = [1, 1]} : vector<160x200xbf16> to vector<156x200xbf16>
    %c2 = arith.constant 2 : index
    %c0_16 = arith.constant 0 : index
    %c0_17 = arith.constant 0 : index
    %32 = vector.load %arg5[%c2, %c0_16, %c0_17] : memref<5x200x320xbf16, #tpu.memory_space<vmem>>, vector<1x200x320xbf16>
    %33 = vector.shape_cast %32 : vector<1x200x320xbf16> to vector<200x320xbf16>
    %cst_18 = arith.constant dense<0.000000e+00> : vector<156x320xf32>
    %34 = tpu.matmul %31, %33, %cst_18 {dimension_numbers = #tpu.dot_dimension_numbers<[1], [0], [0], [1], [0, 0, 1, 1], [], []>} : vector<156x200xbf16>, vector<200x320xbf16>, vector<156x320xf32> -> vector<156x320xf32>
    %35 = arith.addf %30, %34 : vector<156x320xf32>
    %36 = vector.extract_strided_slice %21 {offsets = [3, 0], sizes = [156, 200], strides = [1, 1]} : vector<160x200xbf16> to vector<156x200xbf16>
    %c3 = arith.constant 3 : index
    %c0_19 = arith.constant 0 : index
    %c0_20 = arith.constant 0 : index
    %37 = vector.load %arg5[%c3, %c0_19, %c0_20] : memref<5x200x320xbf16, #tpu.memory_space<vmem>>, vector<1x200x320xbf16>
    %38 = vector.shape_cast %37 : vector<1x200x320xbf16> to vector<200x320xbf16>
    %cst_21 = arith.constant dense<0.000000e+00> : vector<156x320xf32>
    %39 = tpu.matmul %36, %38, %cst_21 {dimension_numbers = #tpu.dot_dimension_numbers<[1], [0], [0], [1], [0, 0, 1, 1], [], []>} : vector<156x200xbf16>, vector<200x320xbf16>, vector<156x320xf32> -> vector<156x320xf32>
    %40 = arith.addf %35, %39 : vector<156x320xf32>
    %41 = vector.extract_strided_slice %21 {offsets = [4, 0], sizes = [156, 200], strides = [1, 1]} : vector<160x200xbf16> to vector<156x200xbf16>
    %c4 = arith.constant 4 : index
    %c0_22 = arith.constant 0 : index
    %c0_23 = arith.constant 0 : index
    %42 = vector.load %arg5[%c4, %c0_22, %c0_23] : memref<5x200x320xbf16, #tpu.memory_space<vmem>>, vector<1x200x320xbf16>
    %43 = vector.shape_cast %42 : vector<1x200x320xbf16> to vector<200x320xbf16>
    %cst_24 = arith.constant dense<0.000000e+00> : vector<156x320xf32>
    %44 = tpu.matmul %41, %43, %cst_24 {dimension_numbers = #tpu.dot_dimension_numbers<[1], [0], [0], [1], [0, 0, 1, 1], [], []>} : vector<156x200xbf16>, vector<200x320xbf16>, vector<156x320xf32> -> vector<156x320xf32>
    %45 = arith.addf %40, %44 : vector<156x320xf32>
    %c0_25 = arith.constant 0 : index
    %c0_26 = arith.constant 0 : index
    %46 = vector.load %arg6[%c0_25, %c0_26] : memref<1x320xf32, #tpu.memory_space<vmem>>, vector<1x320xf32>
    %47 = vector.broadcast %46 : vector<1x320xf32> to vector<156x320xf32>
    %48 = arith.addf %45, %47 : vector<156x320xf32>
    %49 = vector.extract_strided_slice %48 {offsets = [0, 0], sizes = [156, 318], strides = [1, 1]} : vector<156x320xf32> to vector<156x318xf32>
    %50 = vector.extract_strided_slice %48 {offsets = [0, 1], sizes = [156, 318], strides = [1, 1]} : vector<156x320xf32> to vector<156x318xf32>
    %51 = arith.maximumf %49, %50 : vector<156x318xf32>
    %52 = vector.extract_strided_slice %48 {offsets = [0, 2], sizes = [156, 318], strides = [1, 1]} : vector<156x320xf32> to vector<156x318xf32>
    %53 = arith.maximumf %51, %52 : vector<156x318xf32>
    %54 = vector.extract_strided_slice %53 {offsets = [0, 0], sizes = [154, 318], strides = [1, 1]} : vector<156x318xf32> to vector<154x318xf32>
    %55 = vector.extract_strided_slice %53 {offsets = [1, 0], sizes = [154, 318], strides = [1, 1]} : vector<156x318xf32> to vector<154x318xf32>
    %56 = arith.maximumf %54, %55 : vector<154x318xf32>
    %57 = vector.extract_strided_slice %53 {offsets = [2, 0], sizes = [154, 318], strides = [1, 1]} : vector<156x318xf32> to vector<154x318xf32>
    %58 = arith.maximumf %56, %57 : vector<154x318xf32>
    %cst_27 = arith.constant 0.000000e+00 : f32
    %59 = vector.broadcast %cst_27 : f32 to vector<154x318xf32>
    %60 = arith.maximumf %58, %59 : vector<154x318xf32>
    %61 = arith.truncf %60 : vector<154x318xf32> to vector<154x318xbf16>
    %c0_28 = arith.constant 0 : index
    %c0_29 = arith.constant 0 : index
    %62 = vector.load %arg7[%c0_28, %c0_29] : memref<40x154xbf16, #tpu.memory_space<vmem>>, vector<40x154xbf16>
    %cst_30 = arith.constant dense<0.000000e+00> : vector<40x318xf32>
    %63 = tpu.matmul %62, %61, %cst_30 {dimension_numbers = #tpu.dot_dimension_numbers<[1], [0], [0], [1], [0, 0, 1, 1], [], []>} : vector<40x154xbf16>, vector<154x318xbf16>, vector<40x318xf32> -> vector<40x318xf32>
    %64 = vector.extract_strided_slice %63 {offsets = [0, 0], sizes = [8, 318], strides = [1, 1]} : vector<40x318xf32> to vector<8x318xf32>
    %65 = arith.truncf %64 : vector<8x318xf32> to vector<8x318xbf16>
    %c0_31 = arith.constant 0 : index
    %c0_32 = arith.constant 0 : index
    %c0_33 = arith.constant 0 : index
    %66 = vector.load %arg8[%c0_31, %c0_32, %c0_33] : memref<5x318x100xbf16, #tpu.memory_space<vmem>>, vector<1x318x100xbf16>
    %67 = vector.shape_cast %66 : vector<1x318x100xbf16> to vector<318x100xbf16>
    %cst_34 = arith.constant dense<0.000000e+00> : vector<8x100xf32>
    %68 = tpu.matmul %65, %67, %cst_34 {dimension_numbers = #tpu.dot_dimension_numbers<[1], [0], [0], [1], [0, 0, 1, 1], [], []>} : vector<8x318xbf16>, vector<318x100xbf16>, vector<8x100xf32> -> vector<8x100xf32>
    %69 = vector.extract_strided_slice %63 {offsets = [8, 0], sizes = [8, 318], strides = [1, 1]} : vector<40x318xf32> to vector<8x318xf32>
    %70 = arith.truncf %69 : vector<8x318xf32> to vector<8x318xbf16>
    %c1_35 = arith.constant 1 : index
    %c0_36 = arith.constant 0 : index
    %c0_37 = arith.constant 0 : index
    %71 = vector.load %arg8[%c1_35, %c0_36, %c0_37] : memref<5x318x100xbf16, #tpu.memory_space<vmem>>, vector<1x318x100xbf16>
    %72 = vector.shape_cast %71 : vector<1x318x100xbf16> to vector<318x100xbf16>
    %cst_38 = arith.constant dense<0.000000e+00> : vector<8x100xf32>
    %73 = tpu.matmul %70, %72, %cst_38 {dimension_numbers = #tpu.dot_dimension_numbers<[1], [0], [0], [1], [0, 0, 1, 1], [], []>} : vector<8x318xbf16>, vector<318x100xbf16>, vector<8x100xf32> -> vector<8x100xf32>
    %74 = arith.addf %68, %73 : vector<8x100xf32>
    %75 = vector.extract_strided_slice %63 {offsets = [16, 0], sizes = [8, 318], strides = [1, 1]} : vector<40x318xf32> to vector<8x318xf32>
    %76 = arith.truncf %75 : vector<8x318xf32> to vector<8x318xbf16>
    %c2_39 = arith.constant 2 : index
    %c0_40 = arith.constant 0 : index
    %c0_41 = arith.constant 0 : index
    %77 = vector.load %arg8[%c2_39, %c0_40, %c0_41] : memref<5x318x100xbf16, #tpu.memory_space<vmem>>, vector<1x318x100xbf16>
    %78 = vector.shape_cast %77 : vector<1x318x100xbf16> to vector<318x100xbf16>
    %cst_42 = arith.constant dense<0.000000e+00> : vector<8x100xf32>
    %79 = tpu.matmul %76, %78, %cst_42 {dimension_numbers = #tpu.dot_dimension_numbers<[1], [0], [0], [1], [0, 0, 1, 1], [], []>} : vector<8x318xbf16>, vector<318x100xbf16>, vector<8x100xf32> -> vector<8x100xf32>
    %80 = arith.addf %74, %79 : vector<8x100xf32>
    %81 = vector.extract_strided_slice %63 {offsets = [24, 0], sizes = [8, 318], strides = [1, 1]} : vector<40x318xf32> to vector<8x318xf32>
    %82 = arith.truncf %81 : vector<8x318xf32> to vector<8x318xbf16>
    %c3_43 = arith.constant 3 : index
    %c0_44 = arith.constant 0 : index
    %c0_45 = arith.constant 0 : index
    %83 = vector.load %arg8[%c3_43, %c0_44, %c0_45] : memref<5x318x100xbf16, #tpu.memory_space<vmem>>, vector<1x318x100xbf16>
    %84 = vector.shape_cast %83 : vector<1x318x100xbf16> to vector<318x100xbf16>
    %cst_46 = arith.constant dense<0.000000e+00> : vector<8x100xf32>
    %85 = tpu.matmul %82, %84, %cst_46 {dimension_numbers = #tpu.dot_dimension_numbers<[1], [0], [0], [1], [0, 0, 1, 1], [], []>} : vector<8x318xbf16>, vector<318x100xbf16>, vector<8x100xf32> -> vector<8x100xf32>
    %86 = arith.addf %80, %85 : vector<8x100xf32>
    %87 = vector.extract_strided_slice %63 {offsets = [32, 0], sizes = [8, 318], strides = [1, 1]} : vector<40x318xf32> to vector<8x318xf32>
    %88 = arith.truncf %87 : vector<8x318xf32> to vector<8x318xbf16>
    %c4_47 = arith.constant 4 : index
    %c0_48 = arith.constant 0 : index
    %c0_49 = arith.constant 0 : index
    %89 = vector.load %arg8[%c4_47, %c0_48, %c0_49] : memref<5x318x100xbf16, #tpu.memory_space<vmem>>, vector<1x318x100xbf16>
    %90 = vector.shape_cast %89 : vector<1x318x100xbf16> to vector<318x100xbf16>
    %cst_50 = arith.constant dense<0.000000e+00> : vector<8x100xf32>
    %91 = tpu.matmul %88, %90, %cst_50 {dimension_numbers = #tpu.dot_dimension_numbers<[1], [0], [0], [1], [0, 0, 1, 1], [], []>} : vector<8x318xbf16>, vector<318x100xbf16>, vector<8x100xf32> -> vector<8x100xf32>
    %92 = arith.addf %86, %91 : vector<8x100xf32>
    %c0_51 = arith.constant 0 : index
    %c0_52 = arith.constant 0 : index
    %93 = vector.load %arg9[%c0_51, %c0_52] : memref<1x100xf32, #tpu.memory_space<vmem>>, vector<1x100xf32>
    %94 = vector.broadcast %93 : vector<1x100xf32> to vector<8x100xf32>
    %95 = arith.addf %92, %94 : vector<8x100xf32>
    %96 = arith.truncf %95 : vector<8x100xf32> to vector<8x100xbf16>
    %c0_53 = arith.constant 0 : index
    %c0_54 = arith.constant 0 : index
    %97 = vector.load %arg10[%c0_53, %c0_54] : memref<100x15xbf16, #tpu.memory_space<vmem>>, vector<100x15xbf16>
    %cst_55 = arith.constant dense<0.000000e+00> : vector<8x15xf32>
    %98 = tpu.matmul %96, %97, %cst_55 {dimension_numbers = #tpu.dot_dimension_numbers<[1], [0], [0], [1], [0, 0, 1, 1], [], []>} : vector<8x100xbf16>, vector<100x15xbf16>, vector<8x15xf32> -> vector<8x15xf32>
    %c0_56 = arith.constant 0 : index
    %c0_57 = arith.constant 0 : index
    %99 = vector.load %arg11[%c0_56, %c0_57] : memref<1x15xf32, #tpu.memory_space<vmem>>, vector<1x15xf32>
    %100 = vector.broadcast %99 : vector<1x15xf32> to vector<8x15xf32>
    %101 = arith.addf %98, %100 : vector<8x15xf32>
    %c0_58 = arith.constant 0 : index
    %c0_59 = arith.constant 0 : index
    %102 = vector.load %arg12[%c0_58, %c0_59] : memref<8x15xf32, #tpu.memory_space<vmem>>, vector<8x15xf32>
    tpu.vector_store %arg12[%c0_58, %c0_59], %101 {strides = array<i32>} : memref<8x15xf32, #tpu.memory_space<vmem>>, vector<8x15xf32>,
    return
  }
  func.func @transform_0(%arg0: i32) -> (i32, i32) {
    %c0_i32 = arith.constant 0 : i32
    %c0_i32_0 = arith.constant 0 : i32
    return %arg0, %c0_i32 : i32, i32
  }
  func.func @transform_1(%arg0: i32) -> (i32, i32) {
    %c0_i32 = arith.constant 0 : i32
    %c0_i32_0 = arith.constant 0 : i32
    %c0_i32_1 = arith.constant 0 : i32
    return %c0_i32, %c0_i32_0 : i32, i32
  }
  func.func @transform_2(%arg0: i32) -> (i32, i32) {
    %c0_i32 = arith.constant 0 : i32
    %c0_i32_0 = arith.constant 0 : i32
    %c0_i32_1 = arith.constant 0 : i32
    return %c0_i32, %c0_i32_0 : i32, i32
  }
  func.func @transform_3(%arg0: i32) -> (i32, i32) {
    %c0_i32 = arith.constant 0 : i32
    %c0_i32_0 = arith.constant 0 : i32
    %c0_i32_1 = arith.constant 0 : i32
    return %c0_i32, %c0_i32_0 : i32, i32
  }
  func.func @transform_4(%arg0: i32) -> (i32, i32, i32) {
    %c0_i32 = arith.constant 0 : i32
    %c0_i32_0 = arith.constant 0 : i32
    %c0_i32_1 = arith.constant 0 : i32
    %c0_i32_2 = arith.constant 0 : i32
    return %c0_i32, %c0_i32_0, %c0_i32_1 : i32, i32, i32
  }
  func.func @transform_5(%arg0: i32) -> (i32, i32) {
    %c0_i32 = arith.constant 0 : i32
    %c0_i32_0 = arith.constant 0 : i32
    %c0_i32_1 = arith.constant 0 : i32
    return %c0_i32, %c0_i32_0 : i32, i32
  }
  func.func @transform_6(%arg0: i32) -> (i32, i32) {
    %c0_i32 = arith.constant 0 : i32
    %c0_i32_0 = arith.constant 0 : i32
    %c0_i32_1 = arith.constant 0 : i32
    return %c0_i32, %c0_i32_0 : i32, i32
  }
  func.func @transform_7(%arg0: i32) -> (i32, i32, i32) {
    %c0_i32 = arith.constant 0 : i32
    %c0_i32_0 = arith.constant 0 : i32
    %c0_i32_1 = arith.constant 0 : i32
    %c0_i32_2 = arith.constant 0 : i32
    return %c0_i32, %c0_i32_0, %c0_i32_1 : i32, i32, i32
  }
  func.func @transform_8(%arg0: i32) -> (i32, i32) {
    %c0_i32 = arith.constant 0 : i32
    %c0_i32_0 = arith.constant 0 : i32
    %c0_i32_1 = arith.constant 0 : i32
    return %c0_i32, %c0_i32_0 : i32, i32
  }
  func.func @transform_9(%arg0: i32) -> (i32, i32) {
    %c0_i32 = arith.constant 0 : i32
    %c0_i32_0 = arith.constant 0 : i32
    %c0_i32_1 = arith.constant 0 : i32
    return %c0_i32, %c0_i32_0 : i32, i32
  }
  func.func @transform_10(%arg0: i32) -> (i32, i32) {
    %c0_i32 = arith.constant 0 : i32
    %c0_i32_0 = arith.constant 0 : i32
    %c0_i32_1 = arith.constant 0 : i32
    return %c0_i32, %c0_i32_0 : i32, i32
  }
  func.func @transform_11(%arg0: i32) -> (i32, i32) {
    %c0_i32 = arith.constant 0 : i32
    %c0_i32_0 = arith.constant 0 : i32
    return %arg0, %c0_i32 : i32, i32
  }
}

</mosaic_0001>

<bundles_post_ra>
// kernel: simple_net_forward.1
= control target key start
LH: loop header
LB: loop body
LE: loop exit
PB: predicated region body
PF: predicated region fallthrough
CT: control target
= control target key end

     0   :  { %v23613_v1 = vmov 0   ;;  %vm1249_vm0 = vcmask 523264   ;;  %s14714_s29 = smov 127   ;;  %s14715_s30 = smov 126   ;;  %vm3718_vm1 = vcmask 1039360   ;;  %vm4199_vm2 = vcmask 1031168   ;;  %s23600_s1 = inlined_call_operand.vmem [shape: bf16[320,600], index: 1, kind: input, shape index: {}]   ;;  %s23601_s0 = inlined_call_operand.vmem [shape: bf16[480,320], index: 0, kind: input, shape index: {}]   ;;  %s23602_s3 = inlined_call_operand.vmem [shape: bf16[598,200], index: 3, kind: input, shape index: {}]   ;;  %s23603_s4 = inlined_call_operand.vmem [shape: bf16[5,200,320], index: 4, kind: input, shape index: {}]   ;;  %s23604_s2 = inlined_call_operand.vmem [shape: f32[1,200], index: 2, kind: input, shape index: {}]   ;;  %s23605_s5 = inlined_call_operand.vmem [shape: f32[1,320], index: 5, kind: input, shape index: {}]   ;;  %s23606_s6 = inlined_call_operand.vmem [shape: bf16[40,154], index: 6, kind: input, shape index: {}]   ;;  %s23607_s7 = inlined_call_operand.vmem [shape: bf16[5,318,100], index: 7, kind: input, shape index: {}]   ;;  %s23608_s9 = inlined_call_operand.vmem [shape: bf16[100,15], index: 9, kind: input, shape index: {}]   ;;  %s23609_s8 = inlined_call_operand.vmem [shape: f32[1,100], index: 8, kind: input, shape index: {}]   ;;  %s23610_s10 = inlined_call_operand.vmem [shape: f32[1,15], index: 10, kind: input, shape index: {}]   ;;  %s23611_s11 = inlined_call_operand.vmem [shape: f32[8,15], index: 11, kind: output, shape index: {}]  }
   0x1   :  { %v13858_v0 = vld [vmem:[%s23600_s1 + $0x11c] ss:$20 sps:$4 sm:$0xff]   ;;  %1705 = vmatprep.mubr.bf16.mxu1 %v23613_v1  ;;  %v13862_v3 = vld [vmem:[%s23600_s1 + $0x118] ss:$20 sps:$4 sm:$0xff]   ;;  %v13864_v5 = vld [vmem:[%s23600_s1 + $0xf4] ss:$20 sps:$4 sm:$0xff]  }
   0x2   :  { %v13860_v2 = vld [vmem:[%s23600_s1 + $0x2fc] ss:$20 sps:$4 sm:$0xff]   ;;  %1340 = vmatprep.subr.bf16.mxu0 %v13858_v0  ;;  %v13863_v4 = vld [vmem:[%s23600_s1 + $0x2f8] ss:$20 sps:$4 sm:$0xff]   ;;  %v13866_v6 = vld [vmem:[%s23600_s1 + $0x2d4] ss:$20 sps:$4 sm:$0xff]  }
   0x3   :  { %1681 = vmatprep.subr.bf16.mxu1 %v13860_v2  ;;  %1341 = vmatpush1.bf16.msra.mxu0 %v13862_v3  ;;  %v13868_v7 = vld [vmem:[%s23600_s1 + $0xf0] ss:$20 sps:$4 sm:$0xff]   ;;  %v13870_v9 = vld [vmem:[%s23600_s1 + $0xcc] ss:$20 sps:$4 sm:$0xff]   ;;  %v13874_v11 = vld [vmem:[%s23600_s1 + $0xc8] ss:$20 sps:$4 sm:$0xff]  }
   0x4   :  { %1682 = vmatpush1.bf16.msra.mxu1 %v13863_v4  ;;  %1342 = vmatprep.subr.bf16.mxu0 %v13864_v5  ;;  %v13869_v8 = vld [vmem:[%s23600_s1 + $0x2d0] ss:$20 sps:$4 sm:$0xff]   ;;  %v13872_v10 = vld [vmem:[%s23600_s1 + $0x2ac] ss:$20 sps:$4 sm:$0xff]   ;;  %v13875_v12 = vld [vmem:[%s23600_s1 + $0x2a8] ss:$20 sps:$4 sm:$0xff]  }
   0x5   :  { %1683 = vmatprep.subr.bf16.mxu1 %v13866_v6  ;;  %v13876_v13 = vld [vmem:[%s23600_s1 + $0xa4] ss:$20 sps:$4 sm:$0xff]   ;;  %v13880_v15 = vld [vmem:[%s23600_s1 + $0xa0] ss:$20 sps:$4 sm:$0xff]   ;;  %v13882_v17 = vld [vmem:[%s23600_s1 + $0x7c] ss:$20 sps:$4 sm:$0xff]  }
   0x6   :  { %v13878_v14 = vld [vmem:[%s23600_s1 + $0x284] ss:$20 sps:$4 sm:$0xff]   ;;  %v13881_v16 = vld [vmem:[%s23600_s1 + $0x280] ss:$20 sps:$4 sm:$0xff]   ;;  %v13892_v24 = vld [vmem:[%s23600_s1 + $0x28] ss:$20 sps:$4 sm:$0xff]  }
   0x7   :  { %1343 = vmatpush1.bf16.msra.mxu0 %v13868_v7  ;;  %v13884_v18 = vld [vmem:[%s23601_s0 + $0x8] ss:$12 sps:$4 sm:$0xff]   ;;  %v13885_v19 = vld [vmem:[%s23600_s1 + $0x78] ss:$20 sps:$4 sm:$0xff]   ;;  %v13888_v21 = vld [vmem:[%s23600_s1 + $0x50] ss:$20 sps:$4 sm:$0xff]  }
   0x8   :  { %1684 = vmatpush1.bf16.msra.mxu1 %v13869_v8  ;;  %1344 = vmatprep.subr.bf16.mxu0 %v13870_v9  ;;  %v13886_v20 = vld [vmem:[%s23600_s1 + $0x54] ss:$20 sps:$4 sm:$0xff]   ;;  %v13889_v22 = vld [vmem:[%s23600_s1 + $0x2c] ss:$20 sps:$4 sm:$0xff]   ;;  %v13893_v25 = vld [vmem:[%s23600_s1 + $0x4] ss:$20 sps:$4 sm:$0xff]  }
   0x9   :  { %1685 = vmatprep.subr.bf16.mxu1 %v13872_v10  ;;  %v13891_v23 = vld [vmem:[%s23601_s0 + $0x20] ss:$12 sps:$4 sm:$0xff]   ;;  %v13896_v27 = vld [vmem:[%s23600_s1 + $0x25c] ss:$20 sps:$4 sm:$0xff]   ;;  %v13898_v28 = vld [vmem:[%s23601_s0 + $0x38] ss:$12 sps:$4 sm:$0xff]  }
   0xa   :  { %v13895_v26 = vld [vmem:[%s23600_s1] ss:$20 sps:$4 sm:$0xff]   ;;  %v13899_v29 = vld [vmem:[%s23600_s1 + $0x258] ss:$20 sps:$4 sm:$0xff]   ;;  %v14882_v33 = vld [vmem:[%s23601_s0 + $0x4] ss:$12 sps:$4 sm:$0xff]  }
   0xb   :  { %1345 = vmatpush1.bf16.msra.mxu0 %v13874_v11  ;;  %v13922_v30 = vld [vmem:[%s23600_s1 + $0x124] ss:$20 sps:$4 sm:$0xff]   ;;  %v13900_v31 = vld [vmem:[%s23600_s1 + $0x234] ss:$20 sps:$4 sm:$0xff]   ;;  %v13903_v35 = vld [vmem:[%s23600_s1 + $0x20c] ss:$20 sps:$4 sm:$0xff]   ;;  %1372 = vmatprep.mubr.bf16.mxu0 %v14882_v33 }
   0xc   :  { %1686 = vmatpush1.bf16.msra.mxu1 %v13875_v12  ;;  %1346 = vmatprep.subr.bf16.mxu0 %v13876_v13  ;;  %v13920_v32 = vld [vmem:[%s23600_s1 + $0x120] ss:$20 sps:$4 sm:$0xff]   ;;  %v13902_v34 = vld [vmem:[%s23600_s1 + $0x230] ss:$20 sps:$4 sm:$0xff]   ;;  %v13933_v36 = vld [vmem:[%s23600_s1 + $0xf8] ss:$20 sps:$4 sm:$0xff]  }
   0xd   :  { %1687 = vmatprep.subr.bf16.mxu1 %v13878_v14  ;;  %v13935_v37 = vld [vmem:[%s23600_s1 + $0xfc] ss:$20 sps:$4 sm:$0xff]   ;;  %v13907_v40 = vld [vmem:[%s23600_s1 + $0x1e4] ss:$20 sps:$4 sm:$0xff]   ;;  %v13944_v42 = vld [vmem:[%s23600_s1 + $0xd4] ss:$20 sps:$4 sm:$0xff]  }
   0xe   :  { %v13905_v38 = vld [vmem:[%s23601_s0 + $0x50] ss:$12 sps:$4 sm:$0xff]   ;;  %v13909_v43 = vld [vmem:[%s23600_s1 + $0x1e0] ss:$20 sps:$4 sm:$0xff]   ;;  %v13913_v46 = vld [vmem:[%s23600_s1 + $0x1b8] ss:$20 sps:$4 sm:$0xff]  }
   0xf   :  { %1347 = vmatpush1.bf16.msra.mxu0 %v13880_v15  ;;  %v13906_v39 = vld [vmem:[%s23600_s1 + $0x208] ss:$20 sps:$4 sm:$0xff]   ;;  %v13942_v41 = vld [vmem:[%s23600_s1 + $0xd0] ss:$20 sps:$4 sm:$0xff]   ;;  %v13955_v49 = vld [vmem:[%s23600_s1 + $0xac] ss:$20 sps:$4 sm:$0xff]  }
  0x10   :  { %1688 = vmatpush1.bf16.msra.mxu1 %v13881_v16  ;;  %1348 = vmatprep.subr.bf16.mxu0 %v13882_v17  ;;  %v13910_v44 = vld [vmem:[%s23600_s1 + $0x1bc] ss:$20 sps:$4 sm:$0xff]   ;;  %v13912_v45 = vld [vmem:[%s23601_s0 + $0x68] ss:$12 sps:$4 sm:$0xff]   ;;  %v13917_v51 = vld [vmem:[%s23600_s1 + $0x16c] ss:$20 sps:$4 sm:$0xff]  }
  0x11   :  { %2006 = vmatprep.subr.bf16.mxu1 %v13922_v30  ;;  %v13914_v47 = vld [vmem:[%s23600_s1 + $0x194] ss:$20 sps:$4 sm:$0xff]   ;;  %v13916_v50 = vld [vmem:[%s23600_s1 + $0x190] ss:$20 sps:$4 sm:$0xff]   ;;  %v13919_v52 = vld [vmem:[%s23601_s0 + $0x80] ss:$12 sps:$4 sm:$0xff]  }
  0x12   :  { %v13953_v48 = vld [vmem:[%s23600_s1 + $0xa8] ss:$20 sps:$4 sm:$0xff]   ;;  %v13964_v53 = vld [vmem:[%s23600_s1 + $0x80] ss:$20 sps:$4 sm:$0xff]   ;;  %v13966_v54 = vld [vmem:[%s23600_s1 + $0x84] ss:$20 sps:$4 sm:$0xff]  }
  0x13   :  { %11765 = vmatmul.mubr.msk.bf16.vlgmr.msra.gmra.mxu1 %vm1249_vm0, %v13884_v18  ;;  %1349 = vmatpush1.bf16.msra.mxu0 %v13885_v19  ;;  %v13923_v55 = vld [vmem:[%s23600_s1 + $0x168] ss:$20 sps:$4 sm:$0xff]   ;;  %v13924_v56 = vld [vmem:[%s23600_s1 + $0x144] ss:$20 sps:$4 sm:$0xff]   ;;  %v13926_v57 = vld [vmem:[%s23600_s1 + $0x140] ss:$20 sps:$4 sm:$0xff]  }
  0x14   :  { %1715 = vmatprep.mubr.bf16.mxu1 %v23613_v1  ;;  %1350 = vmatprep.subr.bf16.mxu0 %v13886_v20  ;;  %v13975_v58 = vld [vmem:[%s23600_s1 + $0x58] ss:$20 sps:$4 sm:$0xff]   ;;  %v13977_v59 = vld [vmem:[%s23600_s1 + $0x5c] ss:$20 sps:$4 sm:$0xff]   ;;  %v13978_v0 = vld [vmem:[%s23600_s1 + $0x300] ss:$20 sps:$4 sm:$0xff]  }
  0x15   :  { %2007 = vmatpush1.bf16.msra.mxu1 %v13920_v32  ;;  %v14974_v60 = vld [vmem:[%s23601_s0] ss:$12 sps:$4 sm:$0xff]   ;;  %v13980_v61 = vld [vmem:[%s23600_s1 + $0x304] ss:$20 sps:$4 sm:$0xff]   ;;  %v14985_v63 = vld [vmem:[%s23601_s0 + $0x1c] ss:$12 sps:$4 sm:$0xff]  }
  0x16   :  { %2008 = vmatprep.subr.bf16.mxu1 %v13935_v37  ;;  %v13930_v62 = vld [vmem:[%s23601_s0 + $0x98] ss:$12 sps:$4 sm:$0xff]   ;;  %v13991_v3 = vld [vmem:[%s23600_s1 + $0x34] ss:$20 sps:$4 sm:$0xff]   ;;  %v13937_v5 = vld [vmem:[%s23601_s0 + $0xb0] ss:$12 sps:$4 sm:$0xff]  }
  0x17   :  { %1351 = vmatpush1.bf16.msra.mxu0 %v13888_v21  ;;  %v13989_v2 = vld [vmem:[%s23600_s1 + $0x30] ss:$20 sps:$4 sm:$0xff]   ;;  %v15011_v6 = vld [vmem:[%s23601_s0 + $0x34] ss:$12 sps:$4 sm:$0xff]   ;;  %v14000_v7 = vld [vmem:[%s23600_s1 + $0x8] ss:$20 sps:$4 sm:$0xff]  }
  0x18   :  { %1352 = vmatprep.subr.bf16.mxu0 %v13889_v22  ;;  %v15003_v4 = vld [vmem:[%s23601_s0 + $0x18] ss:$12 sps:$4 sm:$0xff]   ;;  %v14002_v8 = vld [vmem:[%s23600_s1 + $0xc] ss:$20 sps:$4 sm:$0xff]   ;;  %v15026_v9 = vld [vmem:[%s23601_s0 + $0x30] ss:$12 sps:$4 sm:$0xff]  }
  0x19   :  { %2009 = vmatpush1.bf16.msra.mxu1 %v13933_v36  ;;  %v13941_v10 = vld [vmem:[%s23601_s0 + $0xc8] ss:$12 sps:$4 sm:$0xff]   ;;  %v15034_v11 = vld [vmem:[%s23601_s0 + $0x4c] ss:$12 sps:$4 sm:$0xff]   ;;  %v14022_v16 = vld [vmem:[%s23600_s1 + $0x23c] ss:$20 sps:$4 sm:$0xff]  }
  0x1a   :  { %2010 = vmatprep.subr.bf16.mxu1 %v13944_v42  ;;  %v14013_v12 = vld [vmem:[%s23600_s1 + $0x264] ss:$20 sps:$4 sm:$0xff]   ;;  %v14011_v13 = vld [vmem:[%s23600_s1 + $0x260] ss:$20 sps:$4 sm:$0xff]   ;;  %v14027_v19 = vld [vmem:[%s23600_s1 + $0x2dc] ss:$20 sps:$4 sm:$0xff]  }
  0x1b   :  { %11766 = vmatmul.mubr.msk.bf16.gmra.mxu1 %vm1249_vm0, %v13891_v23  ;;  %1353 = vmatpush1.bf16.msra.mxu0 %v13892_v24  ;;  %v15049_v14 = vld [vmem:[%s23601_s0 + $0x48] ss:$12 sps:$4 sm:$0xff]   ;;  %v14020_v15 = vld [vmem:[%s23600_s1 + $0x238] ss:$20 sps:$4 sm:$0xff]   ;;  %v15063_v18 = vld [vmem:[%s23601_s0 + $0x64] ss:$12 sps:$4 sm:$0xff]  }
  0x1c   :  { %1725 = vmatprep.mubr.bf16.mxu1 %v23613_v1  ;;  %1354 = vmatprep.subr.bf16.mxu0 %v13893_v25  ;;  %v13948_v17 = vld [vmem:[%s23601_s0 + $0xe0] ss:$12 sps:$4 sm:$0xff]   ;;  %v14032_v21 = vld [vmem:[%s23600_s1 + $0x210] ss:$20 sps:$4 sm:$0xff]   ;;  %v14034_v22 = vld [vmem:[%s23600_s1 + $0x214] ss:$20 sps:$4 sm:$0xff]  }
  0x1d   :  { %2011 = vmatpush1.bf16.msra.mxu1 %v13942_v41  ;;  %v14025_v20 = vld [vmem:[%s23600_s1 + $0x2d8] ss:$20 sps:$4 sm:$0xff]   ;;  %v15092_v25 = vld [vmem:[%s23601_s0 + $0x7c] ss:$12 sps:$4 sm:$0xff]   ;;  %v15115_v30 = vld [vmem:[%s23601_s0 + $0x94] ss:$12 sps:$4 sm:$0xff]  }
  0x1e   :  { %2012 = vmatprep.subr.bf16.mxu1 %v13955_v49  ;;  %v15084_v23 = vld [vmem:[%s23601_s0 + $0x60] ss:$12 sps:$4 sm:$0xff]   ;;  %v13952_v24 = vld [vmem:[%s23601_s0 + $0xf8] ss:$12 sps:$4 sm:$0xff]   ;;  %v13963_v32 = vld [vmem:[%s23601_s0 + $0x128] ss:$12 sps:$4 sm:$0xff]  }
  0x1f   :  { %1355 = vmatpush1.bf16.msra.mxu0 %v13895_v26  ;;  %v14045_v26 = vld [vmem:[%s23600_s1 + $0x1ec] ss:$20 sps:$4 sm:$0xff]   ;;  %v15147_v37 = vld [vmem:[%s23601_s0 + $0xa8] ss:$12 sps:$4 sm:$0xff]   ;;  %v15161_v41 = vld [vmem:[%s23601_s0 + $0xc4] ss:$12 sps:$4 sm:$0xff]  }
  0x20   :  { %1356 = vmatprep.subr.bf16.mxu0 %v13896_v27  ;;  %v14043_v27 = vld [vmem:[%s23600_s1 + $0x1e8] ss:$20 sps:$4 sm:$0xff]   ;;  %v15138_v36 = vld [vmem:[%s23601_s0 + $0xac] ss:$12 sps:$4 sm:$0xff]   ;;  %v14074_v49 = vld [vmem:[%s23600_s1 + $0x2b0] ss:$20 sps:$4 sm:$0xff]  }
  0x21   :  { %2013 = vmatpush1.bf16.msra.mxu1 %v13953_v48  ;;  %v14070_v42 = vld [vmem:[%s23600_s1 + $0x174] ss:$20 sps:$4 sm:$0xff]   ;;  %vm5023_vm3 = vcmask 1042432   ;;  %vm4992_vm4 = vcmask 703488   ;;  %vm5990_vm5 = vcmask 1043456   ;;  %vm5959_vm7 = vcmask 588800  }
  0x22   :  { %2014 = vmatprep.subr.bf16.mxu1 %v13966_v54  ;;  %v15190_v48 = vld [vmem:[%s23601_s0 + $0xdc] ss:$12 sps:$4 sm:$0xff]   ;;  %vm5590_vm6 = vsmask.f32 7424  ;;  %vm7437_vm8 = vsmask.f32 6400 }
  0x23   :  { %11767 = vmatmul.mubr.msk.bf16.gmra.mxu1 %vm1249_vm0, %v13898_v28  ;;  %1357 = vmatpush2.bf16.msra.mxu0 %v13899_v29  ;;  %v15107_v28 = vld [vmem:[%s23601_s0 + $0x78] ss:$12 sps:$4 sm:$0xff]   ;;  %v13959_v29 = vld [vmem:[%s23601_s0 + $0x110] ss:$12 sps:$4 sm:$0xff]   ;;  %vm6792_vm9 = vcmask 1046528   ;;  %vm8122_vm10 = vcmask 1045504  }
  0x24   :  { %1735 = vmatprep.mubr.bf16.mxu1 %v23613_v1  ;;  %1358 = vmatprep.subr.bf16.mxu0 %v13900_v31  ;;  %v15124_v31 = vld [vmem:[%s23601_s0 + $0x90] ss:$12 sps:$4 sm:$0xff]   ;;  %vm10078_vm11 = vcmask 1044480   ;;  %vm10068_vm12 = vcmask 211968   ;;  %vm14717_vm13 = vmmov 0   ;;  %vm10411_vm14 = vcmask 506880  }
  0x25   :  { %2015 = vmatpush1.bf16.msra.mxu1 %v13964_v53  ;;  %v15214_v53 = vld [vmem:[%s23601_s0 + $0xf4] ss:$12 sps:$4 sm:$0xff]   ;;  %v15223_v54 = vld [vmem:[%s23601_s0 + $0xf0] ss:$12 sps:$4 sm:$0xff]   ;;  %vm11525_vm15 = vcmask 1041408  }
  0x26   :  { %2016 = vmatprep.subr.bf16.mxu1 %v13977_v59  ;;  %v15248_v59 = vld [vmem:[%s23601_s0 + $0x124] ss:$12 sps:$4 sm:$0xff]  }
  0x27   :  { %1359 = vmatpush2.bf16.msra.mxu0 %v13902_v34  ;;  %v14054_v34 = vld [vmem:[%s23600_s1 + $0x1c0] ss:$20 sps:$4 sm:$0xff]  }
  0x28   :  { %1360 = vmatprep.subr.bf16.mxu0 %v13903_v35  ;;  %v14056_v35 = vld [vmem:[%s23600_s1 + $0x1c4] ss:$20 sps:$4 sm:$0xff]  }
  0x29   :  { %2017 = vmatpush1.bf16.msra.mxu1 %v13975_v58  ;;  %v13995_v58 = vld [vmem:[%s23601_s0 + $0x1a0] ss:$12 sps:$4 sm:$0xff]  }
  0x2a   :  { %2018 = vmatprep.subr.bf16.mxu1 %v13991_v3  ;;  %v14006_v3 = vld [vmem:[%s23601_s0 + $0x1d0] ss:$12 sps:$4 sm:$0xff]  }
  0x2b   :  { %11768 = vmatmul.mubr.msk.bf16.gmra.mxu1 %vm1249_vm0, %v13905_v38  ;;  %1361 = vmatpush2.bf16.msra.mxu0 %v13906_v39  ;;  %v13970_v38 = vld [vmem:[%s23601_s0 + $0x140] ss:$12 sps:$4 sm:$0xff]   ;;  %v14063_v39 = vld [vmem:[%s23600_s1 + $0x19c] ss:$20 sps:$4 sm:$0xff]  }
  0x2c   :  { %1745 = vmatprep.mubr.bf16.mxu1 %v23613_v1  ;;  %1362 = vmatprep.subr.bf16.mxu0 %v13907_v40  ;;  %v14061_v40 = vld [vmem:[%s23600_s1 + $0x198] ss:$20 sps:$4 sm:$0xff]  }
  0x2d   :  { %2019 = vmatpush1.bf16.msra.mxu1 %v13989_v2  ;;  %v15274_v2 = vld [vmem:[%s23601_s0 + $0x138] ss:$12 sps:$4 sm:$0xff]  }
  0x2e   :  { %2020 = vmatprep.subr.bf16.mxu1 %v14002_v8  ;;  %24045 = vst [vmem:[#allocation4_spill] sm:$0xff] %v15274_v2  ;;  %v14096_v8 = vld [vmem:[%s23600_s1 + $0x288] ss:$20 sps:$4 sm:$0xff]  }
  0x2f   :  { %1363 = vmatpush2.bf16.msra.mxu0 %v13909_v43  ;;  %v14068_v43 = vld [vmem:[%s23600_s1 + $0x170] ss:$20 sps:$4 sm:$0xff]  }
  0x30   :  { %1364 = vmatprep.subr.bf16.mxu0 %v13910_v44  ;;  %v15176_v44 = vld [vmem:[%s23601_s0 + $0xc0] ss:$12 sps:$4 sm:$0xff]  }
  0x31   :  { %2021 = vmatpush1.bf16.msra.mxu1 %v14000_v7  ;;  %v14098_v7 = vld [vmem:[%s23600_s1 + $0x28c] ss:$20 sps:$4 sm:$0xff]  }
  0x32   :  { %2022 = vmatprep.subr.bf16.mxu1 %v14013_v12  ;;  %v14010_v12 = vld [vmem:[%s23601_s0 + $0x1e8] ss:$12 sps:$4 sm:$0xff]  }
  0x33   :  { %11769 = vmatmul.mubr.msk.bf16.gmra.mxu1 %vm1249_vm0, %v13912_v45  ;;  %1365 = vmatpush2.bf16.msra.mxu0 %v13913_v46  ;;  %v13974_v45 = vld [vmem:[%s23601_s0 + $0x158] ss:$12 sps:$4 sm:$0xff]   ;;  %v14073_v46 = vld [vmem:[%s23600_s1 + $0x14c] ss:$20 sps:$4 sm:$0xff]  }
  0x34   :  { %1755 = vmatprep.mubr.bf16.mxu1 %v23613_v1  ;;  %1366 = vmatprep.subr.bf16.mxu0 %v13914_v47  ;;  %v14071_v47 = vld [vmem:[%s23600_s1 + $0x148] ss:$20 sps:$4 sm:$0xff]  }
  0x35   :  { %2023 = vmatpush2.bf16.msra.mxu1 %v14011_v13  ;;  %v15305_v13 = vld [vmem:[%s23601_s0 + $0x16c] ss:$12 sps:$4 sm:$0xff]  }
  0x36   :  { %2024 = vmatprep.subr.bf16.mxu1 %v14022_v16  ;;  %24048 = vst [vmem:[#allocation7_spill] sm:$0xff] %v15305_v13  ;;  %v14017_v16 = vld [vmem:[%s23601_s0 + $0x200] ss:$12 sps:$4 sm:$0xff]  }
  0x37   :  { %1367 = vmatpush2.bf16.msra.mxu0 %v13916_v50  ;;  %v14076_v50 = vld [vmem:[%s23600_s1 + $0x2b4] ss:$20 sps:$4 sm:$0xff]  }
  0x38   :  { %1368 = vmatprep.subr.bf16.mxu0 %v13917_v51  ;;  %v15206_v51 = vld [vmem:[%s23601_s0 + $0xd8] ss:$12 sps:$4 sm:$0xff]  }
  0x39   :  { %2025 = vmatpush2.bf16.msra.mxu1 %v14020_v15  ;;  %v15314_v15 = vld [vmem:[%s23601_s0 + $0x168] ss:$12 sps:$4 sm:$0xff]  }
  0x3a   :  { %2026 = vmatprep.subr.bf16.mxu1 %v14034_v22  ;;  %24049 = vst [vmem:[#allocation8_spill] sm:$0xff] %v15314_v15  ;;  %v15348_v22 = vld [vmem:[%s23601_s0 + $0x198] ss:$12 sps:$4 sm:$0xff]  }
  0x3b   :  { %11770 = vmatmul.mubr.msk.bf16.gmra.mxu1 %vm1249_vm0, %v13919_v52  ;;  %1369 = vmatpush2.bf16.msra.mxu0 %v13923_v55  ;;  %v13984_v52 = vld [vmem:[%s23601_s0 + $0x170] ss:$12 sps:$4 sm:$0xff]   ;;  %v13988_v55 = vld [vmem:[%s23601_s0 + $0x188] ss:$12 sps:$4 sm:$0xff]   ;;  %24053 = vst [vmem:[#allocation12_spill] sm:$0xff] %v15348_v22 }
  0x3c   :  { %1765 = vmatprep.mubr.bf16.mxu1 %v23613_v1  ;;  %1370 = vmatprep.subr.bf16.mxu0 %v13924_v56  ;;  %v15231_v56 = vld [vmem:[%s23601_s0 + $0x10c] ss:$12 sps:$4 sm:$0xff]  }
  0x3d   :  { %2027 = vmatpush2.bf16.msra.mxu1 %v14032_v21  ;;  %v15339_v21 = vld [vmem:[%s23601_s0 + $0x19c] ss:$12 sps:$4 sm:$0xff]  }
  0x3e   :  { %2028 = vmatprep.subr.bf16.mxu1 %v14045_v26  ;;  %24052 = vst [vmem:[#allocation11_spill] sm:$0xff] %v15339_v21  ;;  %v15356_v26 = vld [vmem:[%s23601_s0 + $0x1b4] ss:$12 sps:$4 sm:$0xff]  }
  0x3f   :  { %1371 = vmatpush2.bf16.msra.mxu0 %v13926_v57  ;;  %v15240_v57 = vld [vmem:[%s23601_s0 + $0x108] ss:$12 sps:$4 sm:$0xff]   ;;  %24054 = vst [vmem:[#allocation13_spill] sm:$0xff] %v15356_v26 }
  0x40   :  { %2347 = vmatprep.subr.bf16.mxu0 %v13980_v61  ;;  %v15257_v61 = vld [vmem:[%s23601_s0 + $0x120] ss:$12 sps:$4 sm:$0xff]  }
  0x41   :  { %2029 = vmatpush2.bf16.msra.mxu1 %v14043_v27  ;;  %24043 = vst [vmem:[#allocation2_spill] sm:$0xff] %v15257_v61  ;;  %v15365_v27 = vld [vmem:[%s23601_s0 + $0x1b0] ss:$12 sps:$4 sm:$0xff]  }
  0x42   :  { %1373 = vmatmul.mubr.bf16.vlgmr.msra.gmra.mxu0 %v14974_v60  ;;  %2030 = vmatprep.subr.bf16.mxu1 %v14056_v35  ;;  %24055 = vst [vmem:[#allocation14_spill] sm:$0xff] %v15365_v27 }
  0x43   :  { %11771 = vmatmul.mubr.msk.bf16.gmra.mxu1 %vm1249_vm0, %v13930_v62  ;;  %1382 = vmatprep.mubr.bf16.mxu0 %v14985_v63  ;;  %v13999_v62 = vld [vmem:[%s23601_s0 + $0x1b8] ss:$12 sps:$4 sm:$0xff]  }
  0x44   :  { %1775 = vmatprep.mubr.bf16.mxu1 %v23613_v1  ;;  %2348 = vmatpush1.bf16.msra.mxu0 %v13978_v0  ;;  %v15265_v0 = vld [vmem:[%s23601_s0 + $0x13c] ss:$12 sps:$4 sm:$0xff]  }
  0x45   :  { %2349 = vmatprep.subr.bf16.mxu0 %v14027_v19  ;;  %2031 = vmatpush2.bf16.msra.mxu1 %v14054_v34  ;;  %24044 = vst [vmem:[#allocation3_spill] sm:$0xff] %v15265_v0  ;;  %v15331_v19 = vld [vmem:[%s23601_s0 + $0x180] ss:$12 sps:$4 sm:$0xff]  }
  0x46   :  { %2032 = vmatprep.subr.bf16.mxu1 %v14063_v39  ;;  %24051 = vst [vmem:[#allocation10_spill] sm:$0xff] %v15331_v19  ;;  %v15388_v39 = vld [vmem:[%s23601_s0 + $0x1c8] ss:$12 sps:$4 sm:$0xff]  }
  0x47   :  { %24057 = vst [vmem:[#allocation16_spill] sm:$0xff] %v15388_v39 }
  0x48   :  { %2350 = vmatpush1.bf16.msra.mxu0 %v14025_v20  ;;  %v14024_v20 = vld [vmem:[%s23601_s0 + $0x218] ss:$12 sps:$4 sm:$0xff]  }
  0x49   :  { %2033 = vmatpush2.bf16.msra.mxu1 %v14061_v40  ;;  %2351 = vmatprep.subr.bf16.mxu0 %v14076_v50  ;;  %v14042_v40 = vld [vmem:[%s23601_s0 + $0x260] ss:$12 sps:$4 sm:$0xff]   ;;  %v14049_v50 = vld [vmem:[%s23601_s0 + $0x278] ss:$12 sps:$4 sm:$0xff]  }
  0x4a   :  { %1383 = vmatmul.mubr.bf16.gmra.mxu0 %v15003_v4  ;;  %2034 = vmatprep.subr.bf16.mxu1 %v14070_v42  ;;  %v15396_v42 = vld [vmem:[%s23601_s0 + $0x1e4] ss:$12 sps:$4 sm:$0xff]  }
  0x4b   :  { %11772 = vmatmul.mubr.msk.bf16.gmra.mxu1 %vm1249_vm0, %v13937_v5  ;;  %1392 = vmatprep.mubr.bf16.mxu0 %v15011_v6  ;;  %v15282_v5 = vld [vmem:[%s23601_s0 + $0x154] ss:$12 sps:$4 sm:$0xff]   ;;  %24058 = vst [vmem:[#allocation17_spill] sm:$0xff] %v15396_v42 }
  0x4c   :  { %1785 = vmatprep.mubr.bf16.mxu1 %v23613_v1  ;;  %2352 = vmatpush1.bf16.msra.mxu0 %v14074_v49  ;;  %24046 = vst [vmem:[#allocation5_spill] sm:$0xff] %v15282_v5  ;;  %v15413_v49 = vld [vmem:[%s23601_s0 + $0x1e0] ss:$12 sps:$4 sm:$0xff]  }
  0x4d   :  { %2035 = vmatpush2.bf16.msra.mxu1 %v14068_v43  ;;  %2353 = vmatprep.subr.bf16.mxu0 %v14098_v7  ;;  %24059 = vst [vmem:[#allocation18_spill] sm:$0xff] %v15413_v49  ;;  %v15438_v7 = vld [vmem:[%s23601_s0 + $0x1f8] ss:$12 sps:$4 sm:$0xff]  }
  0x4e   :  { %2036 = vmatprep.subr.bf16.mxu1 %v14073_v46  ;;  %24061 = vst [vmem:[#allocation20_spill] sm:$0xff] %v15438_v7 }
  0x50   :  { %2354 = vmatpush1.bf16.msra.mxu0 %v14096_v8  ;;  %v14053_v8 = vld [vmem:[%s23601_s0 + $0x290] ss:$12 sps:$4 sm:$0xff]  }
  0x51   :  { %2037 = vmatpush2.bf16.msra.mxu1 %v14071_v47 }
  0x52   :  { %1393 = vmatmul.mubr.bf16.gmra.mxu0 %v15026_v9  ;;  %2672 = vmatprep.subr.bf16.mxu1 %v23613_v1 }
  0x53   :  { %11773 = vmatmul.mubr.msk.bf16.gmra.mxu1 %vm1249_vm0, %v13941_v10  ;;  %1402 = vmatprep.mubr.bf16.mxu0 %v15034_v11  ;;  %v15297_v10 = vld [vmem:[%s23601_s0 + $0x150] ss:$12 sps:$4 sm:$0xff]  }
  0x54   :  { %1795 = vmatprep.mubr.bf16.mxu1 %v23613_v1  ;;  %24047 = vst [vmem:[#allocation6_spill] sm:$0xff] %v15297_v10 }
  0x5a   :  { %1403 = vmatmul.mubr.bf16.gmra.mxu0 %v15049_v14 }
  0x5b   :  { %11774 = vmatmul.mubr.msk.bf16.gmra.mxu1 %vm1249_vm0, %v13948_v17  ;;  %1412 = vmatprep.mubr.bf16.mxu0 %v15063_v18  ;;  %v15322_v17 = vld [vmem:[%s23601_s0 + $0x184] ss:$12 sps:$4 sm:$0xff]  }
  0x5c   :  { %1805 = vmatprep.mubr.bf16.mxu1 %v23613_v1  ;;  %24050 = vst [vmem:[#allocation9_spill] sm:$0xff] %v15322_v17 }
  0x62   :  { %1413 = vmatmul.mubr.bf16.gmra.mxu0 %v15084_v23 }
  0x63   :  { %11775 = vmatmul.mubr.msk.bf16.gmra.mxu1 %vm1249_vm0, %v13952_v24  ;;  %1422 = vmatprep.mubr.bf16.mxu0 %v15092_v25  ;;  %v14031_v24 = vld [vmem:[%s23601_s0 + $0x230] ss:$12 sps:$4 sm:$0xff]  }
  0x64   :  { %1815 = vmatprep.mubr.bf16.mxu1 %v23613_v1 }
  0x6a   :  { %1423 = vmatmul.mubr.bf16.gmra.mxu0 %v15107_v28 }
  0x6b   :  { %11776 = vmatmul.mubr.msk.bf16.gmra.mxu1 %vm1249_vm0, %v13959_v29  ;;  %1432 = vmatprep.mubr.bf16.mxu0 %v15115_v30  ;;  %v14038_v29 = vld [vmem:[%s23601_s0 + $0x248] ss:$12 sps:$4 sm:$0xff]  }
  0x6c   :  { %1825 = vmatprep.mubr.bf16.mxu1 %v23613_v1 }
  0x72   :  { %1433 = vmatmul.mubr.bf16.gmra.mxu0 %v15124_v31 }
  0x73   :  { %11777 = vmatmul.mubr.msk.bf16.gmra.mxu1 %vm1249_vm0, %v13963_v32  ;;  %1442 = vmatprep.mubr.bf16.mxu0 %v15138_v36  ;;  %v15373_v32 = vld [vmem:[%s23601_s0 + $0x1cc] ss:$12 sps:$4 sm:$0xff]  }
  0x74   :  { %1835 = vmatprep.mubr.bf16.mxu1 %v23613_v1  ;;  %24056 = vst [vmem:[#allocation15_spill] sm:$0xff] %v15373_v32 }
  0x7a   :  { %1443 = vmatmul.mubr.bf16.gmra.mxu0 %v15147_v37 }
  0x7b   :  { %11778 = vmatmul.mubr.msk.bf16.gmra.mxu1 %vm1249_vm0, %v13970_v38  ;;  %1452 = vmatprep.mubr.bf16.mxu0 %v15161_v41 }
  0x7c   :  { %1845 = vmatprep.mubr.bf16.mxu1 %v23613_v1 }
  0x82   :  { %1453 = vmatmul.mubr.bf16.gmra.mxu0 %v15176_v44 }
  0x83   :  { %11779 = vmatmul.mubr.msk.bf16.gmra.mxu1 %vm1249_vm0, %v13974_v45  ;;  %1462 = vmatprep.mubr.bf16.mxu0 %v15190_v48 }
  0x84   :  { %1855 = vmatprep.mubr.bf16.mxu1 %v23613_v1 }
  0x8a   :  { %1463 = vmatmul.mubr.bf16.gmra.mxu0 %v15206_v51 }
  0x8b   :  { %11780 = vmatmul.mubr.msk.bf16.gmra.mxu1 %vm1249_vm0, %v13984_v52  ;;  %1472 = vmatprep.mubr.bf16.mxu0 %v15214_v53  ;;  %v15421_v52 = vld [vmem:[%s23601_s0 + $0x1fc] ss:$12 sps:$4 sm:$0xff]  }
  0x8c   :  { %1865 = vmatprep.mubr.bf16.mxu1 %v23613_v1  ;;  %24060 = vst [vmem:[#allocation19_spill] sm:$0xff] %v15421_v52 }
  0x92   :  { %1473 = vmatmul.mubr.bf16.gmra.mxu0 %v15223_v54 }
  0x93   :  { %11781 = vmatmul.mubr.msk.bf16.gmra.mxu1 %vm1249_vm0, %v13988_v55  ;;  %1482 = vmatprep.mubr.bf16.mxu0 %v15231_v56 }
  0x94   :  { %1875 = vmatprep.mubr.bf16.mxu1 %v23613_v1 }
  0x9a   :  { %1483 = vmatmul.mubr.bf16.gmra.mxu0 %v15240_v57 }
  0x9b   :  { %11782 = vmatmul.mubr.msk.bf16.gmra.mxu1 %vm1249_vm0, %v13995_v58  ;;  %1492 = vmatprep.mubr.bf16.mxu0 %v15248_v59 }
  0x9c   :  { %1885 = vmatprep.mubr.bf16.mxu1 %v23613_v1 }
  0xa2   :  { %1493 = vmatmul.mubr.bf16.gmra.mxu0 %v15257_v61 }
  0xa3   :  { %11783 = vmatmul.mubr.msk.bf16.gmra.mxu1 %vm1249_vm0, %v13999_v62  ;;  %1502 = vmatprep.mubr.bf16.mxu0 %v15265_v0 }
  0xa4   :  { %1895 = vmatprep.mubr.bf16.mxu1 %v23613_v1 }
  0xaa   :  { %1503 = vmatmul.mubr.bf16.gmra.mxu0 %v15274_v2 }
  0xab   :  { %11784 = vmatmul.mubr.msk.bf16.gmra.mxu1 %vm1249_vm0, %v14006_v3  ;;  %1512 = vmatprep.mubr.bf16.mxu0 %v15282_v5 }
  0xac   :  { %1905 = vmatprep.mubr.bf16.mxu1 %v23613_v1 }
  0xb2   :  { %1513 = vmatmul.mubr.bf16.gmra.mxu0 %v15297_v10 }
  0xb3   :  { %11785 = vmatmul.mubr.msk.bf16.gmra.mxu1 %vm1249_vm0, %v14010_v12  ;;  %1522 = vmatprep.mubr.bf16.mxu0 %v15305_v13  ;;  %v15446_v12 = vld [vmem:[%s23601_s0 + $0x214] ss:$12 sps:$4 sm:$0xff]  }
  0xb4   :  { %1915 = vmatprep.mubr.bf16.mxu1 %v23613_v1  ;;  %24062 = vst [vmem:[#allocation21_spill] sm:$0xff] %v15446_v12  ;;  %v14099_v13 = vld [vmem:[%s23600_s1 + $0x100] ss:$20 sps:$4 sm:$0xff]  }
  0xba   :  { %1523 = vmatmul.mubr.bf16.gmra.mxu0 %v15314_v15 }
  0xbb   :  { %11786 = vmatmul.mubr.msk.bf16.gmra.mxu1 %vm1249_vm0, %v14017_v16  ;;  %1532 = vmatprep.mubr.bf16.mxu0 %v15322_v17 }
  0xbc   :  { %1925 = vmatprep.mubr.bf16.mxu1 %v23613_v1 }
  0xc2   :  { %1533 = vmatmul.mubr.bf16.gmra.mxu0 %v15331_v19 }
  0xc3   :  { %11787 = vmatmul.mubr.msk.bf16.gmra.mxu1 %vm1249_vm0, %v14024_v20  ;;  %1542 = vmatprep.mubr.bf16.mxu0 %v15339_v21 }
  0xc4   :  { %1935 = vmatprep.mubr.bf16.mxu1 %v23613_v1 }
  0xca   :  { %1543 = vmatmul.mubr.bf16.gmra.mxu0 %v15348_v22 }
  0xcb   :  { %11788 = vmatmul.mubr.msk.bf16.gmra.mxu1 %vm1249_vm0, %v14031_v24  ;;  %1552 = vmatprep.mubr.bf16.mxu0 %v15356_v26 }
  0xcc   :  { %1945 = vmatprep.mubr.bf16.mxu1 %v23613_v1 }
  0xd2   :  { %1553 = vmatmul.mubr.bf16.gmra.mxu0 %v15365_v27 }
  0xd3   :  { %v15376_v34 = vpop.f32.mrf.mxu1  ;;  %11789 = vmatmul.mubr.msk.bf16.gmra.mxu1 %vm1249_vm0, %v14038_v29  ;;  %1562 = vmatprep.mubr.bf16.mxu0 %v15373_v32  ;;  %v15503_v32 = vld [vmem:[%s23600_s1 + $0x308] ss:$20 sps:$4 sm:$0xff]  }
  0xd4   :  { %1955 = vmatprep.mubr.bf16.mxu1 %v23613_v1  ;;  %12907 = vmatprep.subr.bf16.mxu0 %v15503_v32 }
  0xd5   :  { %v15381_v35 = vpop.f32.mrf.mxu1 }
  0xd7   :  { %v15383_v38 = vpop.f32.mrf.mxu1 }
  0xd9   :  { %v15398_v43 = vpop.f32.mrf.mxu1 }
  0xda   :  { %1563 = vmatmul.mubr.bf16.gmra.mxu0 %v15388_v39 }
  0xdb   :  { %v15401_v45 = vpop.f32.mrf.mxu1  ;;  %11790 = vmatmul.mubr.msk.bf16.gmra.mxu1 %vm1249_vm0, %v14042_v40  ;;  %1572 = vmatprep.mubr.bf16.mxu0 %v15396_v42  ;;  %v15463_v40 = vld [vmem:[%s23601_s0 + $0x210] ss:$12 sps:$4 sm:$0xff]   ;;  %v14066_v42 = vld [vmem:[%s23601_s0 + $0x228] ss:$12 sps:$4 sm:$0xff]  }
  0xdc   :  { %1965 = vmatprep.mubr.bf16.mxu1 %v23613_v1  ;;  %24063 = vst [vmem:[#allocation22_spill] sm:$0xff] %v15463_v40 }
  0xdd   :  { %v15406_v46 = vpop.f32.mrf.mxu1 }
  0xdf   :  { %v15408_v47 = vpop.f32.mrf.mxu1 }
  0xe1   :  { %v15423_v55 = vpop.f32.mrf.mxu1 }
  0xe2   :  { %1573 = vmatmul.mubr.bf16.gmra.mxu0 %v15413_v49 }
  0xe3   :  { %v15426_v58 = vpop.f32.mrf.mxu1  ;;  %11791 = vmatmul.mubr.msk.bf16.gmra.mxu1 %vm1249_vm0, %v14049_v50  ;;  %1582 = vmatprep.mubr.bf16.mxu0 %v15421_v52  ;;  %v14060_v50 = vld [vmem:[%s23601_s0 + $0x2a8] ss:$12 sps:$4 sm:$0xff]  }
  0xe4   :  { %1975 = vmatprep.mubr.bf16.mxu1 %v23613_v1 }
  0xe5   :  { %v15431_v62 = vpop.f32.mrf.mxu1 }
  0xe7   :  { %v15433_v3 = vpop.f32.mrf.mxu1 }
  0xe9   :  { %v15448_v16 = vpop.f32.mrf.mxu1 }
  0xea   :  { %1583 = vmatmul.mubr.bf16.gmra.mxu0 %v15438_v7  ;;  %v24065_v7 = vmov 0  }
  0xeb   :  { %v15451_v20 = vpop.f32.mrf.mxu1  ;;  %11792 = vmatmul.mubr.msk.bf16.gmra.mxu1 %vm1249_vm0, %v14053_v8  ;;  %1592 = vmatprep.mubr.bf16.mxu0 %v15446_v12  ;;  %v15471_v8 = vld [vmem:[%s23601_s0 + $0x22c] ss:$12 sps:$4 sm:$0xff]  }
  0xec   :  { %1985 = vmatprep.mubr.bf16.mxu1 %v23613_v1  ;;  %24064 = vst [vmem:[#allocation23_spill] sm:$0xff] %v15471_v8 }
  0xed   :  { %v15456_v24 = vpop.f32.mrf.mxu1 }
  0xef   :  { %v15458_v29 = vpop.f32.mrf.mxu1 }
  0xf1   :  { %v15473_v12 = vpop.f32.mrf.mxu1 }
  0xf2   :  { %1593 = vmatmul.mubr.bf16.gmra.mxu0 %v15463_v40  ;;  %v14067_v40 = vld [vmem:[%s23601_s0 + $0x2c0] ss:$12 sps:$4 sm:$0xff]  }
  0xf3   :  { %v15476_v1 = vpop.f32.mrf.mxu1  ;;  %11793 = vmatmul.mubr.msk.bf16.gmra.mxu1 %vm1249_vm0, %v14060_v50  ;;  %1602 = vmatprep.mubr.bf16.mxu0 %v15471_v8  ;;  %v14077_v50 = vld [vmem:[%s23601_s0 + $0x244] ss:$12 sps:$4 sm:$0xff]  }
  0xf4   :  { %1995 = vmatprep.mubr.bf16.mxu1 %v24065_v7 }
  0xf5   :  { %v15481_v52 = vpop.f32.mrf.mxu1 }
  0xf7   :  { %v15483_v49 = vpop.f32.mrf.mxu1 }
  0xf9   :  { %v15494_v39 = vpop.f32.mrf.mxu1 }
  0xfa   :  { %1603 = vmatmul.mubr.bf16.gmra.mxu0 %v14066_v42  ;;  %v14079_v42 = vld [vmem:[%s23601_s0 + $0x240] ss:$12 sps:$4 sm:$0xff]  }
  0xfb   :  { %v15496_v8 = vpop.f32.mrf.mxu1  ;;  %11794 = vmatmul.mubr.msk.bf16.gmra.mxu1 %vm1249_vm0, %v14067_v40  ;;  %1612 = vmatprep.mubr.bf16.mxu0 %v14077_v50  ;;  %v14080_v40 = vld [vmem:[%s23601_s0 + $0x25c] ss:$12 sps:$4 sm:$0xff]  }
  0xfc   :  { %2038 = vmatprep.mubr.bf16.mxu1 %v14882_v33  ;;  %v14095_v50 = vld [vmem:[%s23600_s1 + $0x128] ss:$20 sps:$4 sm:$0xff]  }
  0xfd   :  { %v15505_v27 = vpop.f32.mrf.mxu1 }
  0xff   :  { %v15508_v26 = vpop.f32.mrf.mxu1 }
 0x101   :  { %v15516_v33 = vpop.f32.mrf.mxu1 }
 0x102   :  { %v1374_v22 = vpop.f32.mrf.mxu0  ;;  %1613 = vmatmul.mubr.bf16.gmra.mxu0 %v14079_v42 }
 0x103   :  { %v15521_v21 = vpop.f32.mrf.mxu1  ;;  %2039 = vmatmul.mubr.bf16.vlgmr.msra.gmra.mxu1 %v14974_v60  ;;  %v15525_v19 = vadd.f32 %v15376_v34, %v1374_v22  ;;  %1622 = vmatprep.mubr.bf16.mxu0 %v14080_v40  ;;  %v14083_v34 = vld [vmem:[%s23601_s0 + $0x274] ss:$12 sps:$4 sm:$0xff]  }
 0x104   :  { %2048 = vmatprep.mubr.bf16.mxu1 %v14985_v63  ;;  %v1376_v17 = vpop.f32.mrf.mxu0  ;;  %2673 = vmatpush1.bf16.msra.mxu1 %v14095_v50  ;;  %v14082_v63 = vld [vmem:[%s23601_s0 + $0x258] ss:$12 sps:$4 sm:$0xff]  }
 0x105   :  { %v15528_v15 = vpop.f32.mrf.mxu1  ;;  %v15534_v42 = vadd.f32 %v15381_v35, %v1376_v17  ;;  %2674 = vmatprep.subr.bf16.mxu1 %v24065_v7  ;;  %v14100_v17 = vld [vmem:[%s23600_s1 + $0xd8] ss:$20 sps:$4 sm:$0xff]  }
 0x106   :  { %v1378_v60 = vpop.f32.mrf.mxu0 }
 0x107   :  { %v15537_v10 = vpop.f32.mrf.mxu1  ;;  %v15543_v22 = vadd.f32 %v15383_v38, %v1378_v60 }
 0x108   :  { %v1380_v40 = vpop.f32.mrf.mxu0  ;;  %2675 = vmatpush1.bf16.msra.mxu1 %v14099_v13 }
 0x109   :  { %v15548_v50 = vpop.f32.mrf.mxu1  ;;  %v15554_v35 = vadd.f32 %v15398_v43, %v1380_v40  ;;  %2676 = vmatprep.subr.bf16.mxu1 %v24065_v7  ;;  %v14101_v43 = vld [vmem:[%s23600_s1 + $0xb0] ss:$20 sps:$4 sm:$0xff]  }
 0x10a   :  { %v1384_v5 = vpop.f32.mrf.mxu0  ;;  %1623 = vmatmul.mubr.bf16.gmra.mxu0 %v14082_v63 }
 0x10b   :  { %v15557_v38 = vpop.f32.mrf.mxu1  ;;  %2049 = vmatmul.mubr.bf16.gmra.mxu1 %v15003_v4  ;;  %v15561_v60 = vadd.f32 %v15401_v45, %v1384_v5  ;;  %1632 = vmatprep.mubr.bf16.mxu0 %v14083_v34  ;;  %v14086_v45 = vld [vmem:[%s23601_s0 + $0x28c] ss:$12 sps:$4 sm:$0xff]  }
 0x10c   :  { %2058 = vmatprep.mubr.bf16.mxu1 %v15011_v6  ;;  %v1386_v13 = vpop.f32.mrf.mxu0  ;;  %2677 = vmatpush1.bf16.msra.mxu1 %v14100_v17  ;;  %v14085_v6 = vld [vmem:[%s23601_s0 + $0x270] ss:$12 sps:$4 sm:$0xff]  }
 0x10d   :  { %24066 = vst [vmem:[#allocation24_spill] sm:$0xff] %v15561_v60  ;;  %v15564_v2 = vpop.f32.mrf.mxu1  ;;  %v15570_v63 = vadd.f32 %v15406_v46, %v1386_v13  ;;  %2678 = vmatprep.subr.bf16.mxu1 %v24065_v7  ;;  %v14102_v46 = vld [vmem:[%s23600_s1 + $0x88] ss:$20 sps:$4 sm:$0xff]   ;;  %v24110_v60 = vld [vmem:[#allocation4_spill] sm:$0xff] }
 0x10e   :  { %v1388_v4 = vpop.f32.mrf.mxu0 }
 0x10f   :  { %v15573_v40 = vpop.f32.mrf.mxu1  ;;  %v15579_v5 = vadd.f32 %v15408_v47, %v1388_v4 }
 0x110   :  { %v1390_v34 = vpop.f32.mrf.mxu0  ;;  %2679 = vmatpush1.bf16.msra.mxu1 %v14101_v43 }
 0x111   :  { %24067 = vst [vmem:[#allocation25_spill] sm:$0xff] %v15579_v5  ;;  %v15584_v17 = vpop.f32.mrf.mxu1  ;;  %v15590_v13 = vadd.f32 %v15423_v55, %v1390_v34  ;;  %2680 = vmatprep.subr.bf16.mxu1 %v24065_v7  ;;  %v14103_v55 = vld [vmem:[%s23600_s1 + $0x60] ss:$20 sps:$4 sm:$0xff]  }
 0x112   :  { %v1394_v0 = vpop.f32.mrf.mxu0  ;;  %1633 = vmatmul.mubr.bf16.gmra.mxu0 %v14085_v6 }
 0x113   :  { %24068 = vst [vmem:[#allocation26_spill] sm:$0xff] %v15590_v13  ;;  %v15593_v47 = vpop.f32.mrf.mxu1  ;;  %2059 = vmatmul.mubr.bf16.gmra.mxu1 %v15026_v9  ;;  %v15597_v4 = vadd.f32 %v15426_v58, %v1394_v0  ;;  %1642 = vmatprep.mubr.bf16.mxu0 %v14086_v45  ;;  %v14091_v58 = vld [vmem:[%s23601_s0 + $0x2a4] ss:$12 sps:$4 sm:$0xff]  }
 0x114   :  { %2068 = vmatprep.mubr.bf16.mxu1 %v15034_v11  ;;  %v1396_v43 = vpop.f32.mrf.mxu0  ;;  %2681 = vmatpush1.bf16.msra.mxu1 %v14102_v46  ;;  %v14088_v11 = vld [vmem:[%s23601_s0 + $0x288] ss:$12 sps:$4 sm:$0xff]  }
 0x115   :  { %24069 = vst [vmem:[#allocation27_spill] sm:$0xff] %v15597_v4  ;;  %v15600_v61 = vpop.f32.mrf.mxu1  ;;  %v15606_v6 = vadd.f32 %v15431_v62, %v1396_v43  ;;  %2682 = vmatprep.subr.bf16.mxu1 %v24065_v7  ;;  %v14105_v62 = vld [vmem:[%s23600_s1 + $0x38] ss:$20 sps:$4 sm:$0xff]  }
 0x116   :  { %v1398_v9 = vpop.f32.mrf.mxu0 }
 0x117   :  { %24070 = vst [vmem:[#allocation28_spill] sm:$0xff] %v15606_v6  ;;  %v15609_v34 = vpop.f32.mrf.mxu1  ;;  %v15615_v0 = vadd.f32 %v15433_v3, %v1398_v9 }
 0x118   :  { %v1400_v45 = vpop.f32.mrf.mxu0  ;;  %2683 = vmatpush1.bf16.msra.mxu1 %v14103_v55 }
 0x119   :  { %24071 = vst [vmem:[#allocation29_spill] sm:$0xff] %v15615_v0  ;;  %v15620_v46 = vpop.f32.mrf.mxu1  ;;  %v15626_v43 = vadd.f32 %v15448_v16, %v1400_v45  ;;  %2684 = vmatprep.subr.bf16.mxu1 %v24065_v7  ;;  %v14106_v16 = vld [vmem:[%s23600_s1 + $0x10] ss:$20 sps:$4 sm:$0xff]  }
 0x11a   :  { %v1404_v6 = vpop.f32.mrf.mxu0  ;;  %1643 = vmatmul.mubr.bf16.gmra.mxu0 %v14088_v11 }
 0x11b   :  { %24072 = vst [vmem:[#allocation30_spill] sm:$0xff] %v15626_v43  ;;  %v15629_v3 = vpop.f32.mrf.mxu1  ;;  %2069 = vmatmul.mubr.bf16.gmra.mxu1 %v15049_v14  ;;  %v15633_v9 = vadd.f32 %v15451_v20, %v1404_v6  ;;  %1652 = vmatprep.mubr.bf16.mxu0 %v14091_v58  ;;  %v14094_v6 = vld [vmem:[%s23601_s0 + $0x2bc] ss:$12 sps:$4 sm:$0xff]  }
 0x11c   :  { %2078 = vmatprep.mubr.bf16.mxu1 %v15063_v18  ;;  %v1406_v55 = vpop.f32.mrf.mxu0  ;;  %2685 = vmatpush1.bf16.msra.mxu1 %v14105_v62  ;;  %v14089_v18 = vld [vmem:[%s23601_s0 + $0x2a0] ss:$12 sps:$4 sm:$0xff]  }
 0x11d   :  { %24073 = vst [vmem:[#allocation31_spill] sm:$0xff] %v15633_v9  ;;  %v15636_v0 = vpop.f32.mrf.mxu1  ;;  %v15642_v11 = vadd.f32 %v15456_v24, %v1406_v55  ;;  %2686 = vmatprep.subr.bf16.mxu1 %v24065_v7 }
 0x11e   :  { %v1408_v14 = vpop.f32.mrf.mxu0 }
 0x11f   :  { %24074 = vst [vmem:[#allocation32_spill] sm:$0xff] %v15642_v11  ;;  %v15645_v45 = vpop.f32.mrf.mxu1  ;;  %v15651_v20 = vadd.f32 %v15458_v29, %v1408_v14 }
 0x120   :  { %v1410_v58 = vpop.f32.mrf.mxu0  ;;  %2687 = vmatpush1.bf16.msra.mxu1 %v14106_v16  ;;  %v14107_v16 = vld [vmem:[%s23600_s1 + $0x268] ss:$20 sps:$4 sm:$0xff]  }
 0x121   :  { %24075 = vst [vmem:[#allocation33_spill] sm:$0xff] %v15651_v20  ;;  %v15656_v62 = vpop.f32.mrf.mxu1  ;;  %v15659_v24 = vadd.f32 %v15473_v12, %v1410_v58  ;;  %2688 = vmatprep.subr.bf16.mxu1 %v24065_v7 }
 0x122   :  { %v1414_v55 = vpop.f32.mrf.mxu0  ;;  %1653 = vmatmul.mubr.bf16.gmra.mxu0 %v14089_v18 }
 0x123   :  { %24076 = vst [vmem:[#allocation34_spill] sm:$0xff] %v15659_v24  ;;  %v15662_v11 = vpop.f32.mrf.mxu1  ;;  %2079 = vmatmul.mubr.bf16.gmra.mxu1 %v15084_v23  ;;  %v15666_v29 = vadd.f32 %v15476_v1, %v1414_v55  ;;  %1662 = vmatprep.mubr.bf16.mxu0 %v14094_v6  ;;  %v14092_v1 = vld [vmem:[%s23601_s0 + $0x2b8] ss:$12 sps:$4 sm:$0xff]  }
 0x124   :  { %2088 = vmatprep.mubr.bf16.mxu1 %v15092_v25  ;;  %v1416_v14 = vpop.f32.mrf.mxu0  ;;  %2689 = vmatpush2.bf16.msra.mxu1 %v14107_v16 }
 0x125   :  { %24077 = vst [vmem:[#allocation35_spill] sm:$0xff] %v15666_v29  ;;  %v15669_v20 = vpop.f32.mrf.mxu1  ;;  %v15672_v12 = vadd.f32 %v15481_v52, %v1416_v14  ;;  %2690 = vmatprep.subr.bf16.mxu1 %v24065_v7  ;;  %v24123_v29 = vld [vmem:[#allocation8_spill] sm:$0xff] }
 0x126   :  { %v1418_v18 = vpop.f32.mrf.mxu0 }
 0x127   :  { %24078 = vst [vmem:[#allocation36_spill] sm:$0xff] %v15672_v12  ;;  %v15677_v58 = vpop.f32.mrf.mxu1  ;;  %v15683_v23 = vadd.f32 %v15483_v49, %v1418_v18 }
 0x128   :  { %v1420_v25 = vpop.f32.mrf.mxu0 }
 0x129   :  { %24079 = vst [vmem:[#allocation37_spill] sm:$0xff] %v15683_v23  ;;  %v15685_v6 = vpop.f32.mrf.mxu1  ;;  %v15689_v52 = vadd.f32 %v15494_v39, %v1420_v25 }
 0x12a   :  { %v1424_v55 = vpop.f32.mrf.mxu0  ;;  %1663 = vmatmul.mubr.bf16.gmra.mxu0 %v14092_v1 }
 0x12b   :  { %24080 = vst [vmem:[#allocation38_spill] sm:$0xff] %v15689_v52  ;;  %v15691_v14 = vpop.f32.mrf.mxu1  ;;  %2089 = vmatmul.mubr.bf16.gmra.mxu1 %v15107_v28  ;;  %v15695_v12 = vadd.f32 %v15496_v8, %v1424_v55  ;;  %2371 = vmatprep.mubr.bf16.mxu0 %v24065_v7 }
 0x12c   :  { %2098 = vmatprep.mubr.bf16.mxu1 %v15115_v30  ;;  %v1426_v49 = vpop.f32.mrf.mxu0 }
 0x12d   :  { %24081 = vst [vmem:[#allocation39_spill] sm:$0xff] %v15695_v12  ;;  %v15699_v16 = vpop.f32.mrf.mxu1  ;;  %v15702_v18 = vadd.f32 %v15505_v27, %v1426_v49  ;;  %v14601_v27 = vld [vmem:[%s23601_s0 + $0x8] ss:$12 sps:$4 sm:$0xff]  }
 0x12e   :  { %v1428_v39 = vpop.f32.mrf.mxu0 }
 0x12f   :  { %v15704_v25 = vpop.f32.mrf.mxu1  ;;  %v15707_v1 = vadd.f32 %v15508_v26, %v1428_v39  ;;  %v14108_v39 = vld [vmem:[%s23600_s1 + $0x240] ss:$20 sps:$4 sm:$0xff]  }
 0x130   :  { %v1430_v28 = vpop.f32.mrf.mxu0  ;;  %2691 = vmatpush2.bf16.msra.mxu1 %v14108_v39 }
 0x131   :  { %24082 = vst [vmem:[#allocation40_spill] sm:$0xff] %v15707_v1  ;;  %v15709_v52 = vpop.f32.mrf.mxu1  ;;  %v15712_v8 = vadd.f32 %v15516_v33, %v1430_v28  ;;  %2692 = vmatprep.subr.bf16.mxu1 %v24065_v7 }
 0x132   :  { %v1434_v30 = vpop.f32.mrf.mxu0  ;;  %11795 = vmatmul.mubr.msk.bf16.vlgmr.msra.gmra.mxu0 %vm1249_vm0, %v14601_v27 }
 0x133   :  { %24083 = vst [vmem:[#allocation41_spill] sm:$0xff] %v15712_v8  ;;  %v15714_v55 = vpop.f32.mrf.mxu1  ;;  %2099 = vmatmul.mubr.bf16.gmra.mxu1 %v15124_v31  ;;  %v15722_v26 = vadd.f32 %v15521_v21, %v1434_v30  ;;  %2381 = vmatprep.mubr.bf16.mxu0 %v24065_v7 }
 0x134   :  { %2108 = vmatprep.mubr.bf16.mxu1 %v15138_v36  ;;  %v1436_v33 = vpop.f32.mrf.mxu0  ;;  %12908 = vmatpush3.bf16.msra.mxu0 %v15503_v32  ;;  %v14109_v36 = vld [vmem:[%s23600_s1 + $0x2e0] ss:$20 sps:$4 sm:$0xff]  }
 0x135   :  { %24084 = vst [vmem:[#allocation42_spill] sm:$0xff] %v15722_v26  ;;  %v15726_v49 = vpop.f32.mrf.mxu1  ;;  %v15730_v31 = vadd.f32 %v15528_v15, %v1436_v33  ;;  %12909 = vmatprep.subr.bf16.mxu0 %v14109_v36 }
 0x136   :  { %v1438_v28 = vpop.f32.mrf.mxu0 }
 0x137   :  { %24085 = vst [vmem:[#allocation43_spill] sm:$0xff] %v15730_v31  ;;  %v15735_v27 = vpop.f32.mrf.mxu1  ;;  %v15738_v21 = vadd.f32 %v15537_v10, %v1438_v28  ;;  %v14602_v10 = vld [vmem:[%s23601_s0 + $0x20] ss:$12 sps:$4 sm:$0xff]  }
 0x138   :  { %v1440_v30 = vpop.f32.mrf.mxu0  ;;  %12910 = vmatpush3.bf16.msra.mxu0 %v14109_v36 }
 0x139   :  { %24086 = vst [vmem:[#allocation44_spill] sm:$0xff] %v15738_v21  ;;  %v15743_v32 = vpop.f32.mrf.mxu1  ;;  %v15747_v15 = vadd.f32 %v15548_v50, %v1440_v30 }
 0x13a   :  { %v1444_v33 = vpop.f32.mrf.mxu0  ;;  %11796 = vmatmul.mubr.msk.bf16.gmra.mxu0 %vm1249_vm0, %v14602_v10 }
 0x13b   :  { %24087 = vst [vmem:[#allocation45_spill] sm:$0xff] %v15747_v15  ;;  %v15749_v31 = vpop.f32.mrf.mxu1  ;;  %2109 = vmatmul.mubr.bf16.gmra.mxu1 %v15147_v37  ;;  %v15757_v39 = vadd.f32 %v15557_v38, %v1444_v33  ;;  %2391 = vmatprep.mubr.bf16.mxu0 %v24065_v7 }
 0x13c   :  { %2118 = vmatprep.mubr.bf16.mxu1 %v15161_v41  ;;  %v1446_v50 = vpop.f32.mrf.mxu0 }
 0x13d   :  { %24088 = vst [vmem:[#allocation46_spill] sm:$0xff] %v15757_v39  ;;  %v15761_v28 = vpop.f32.mrf.mxu1  ;;  %v15764_v30 = vadd.f32 %v15564_v2, %v1446_v50  ;;  %v14603_v2 = vld [vmem:[%s23601_s0 + $0x38] ss:$12 sps:$4 sm:$0xff]  }
 0x13e   :  { %v1448_v37 = vpop.f32.mrf.mxu0 }
 0x13f   :  { %v15766_v15 = vpop.f32.mrf.mxu1  ;;  %v15769_v21 = vadd.f32 %v15573_v40, %v1448_v37 }
 0x140   :  { %v1450_v10 = vpop.f32.mrf.mxu0 }
 0x141   :  { %24089 = vst [vmem:[#allocation47_spill] sm:$0xff] %v15769_v21  ;;  %v15771_v38 = vpop.f32.mrf.mxu1  ;;  %v15774_v41 = vadd.f32 %v15584_v17, %v1450_v10  ;;  %v14110_v17 = vld [vmem:[%s23600_s1 + $0x218] ss:$20 sps:$4 sm:$0xff]  }
 0x142   :  { %v1454_v33 = vpop.f32.mrf.mxu0  ;;  %11797 = vmatmul.mubr.msk.bf16.gmra.mxu0 %vm1249_vm0, %v14603_v2  ;;  %2693 = vmatpush2.bf16.msra.mxu1 %v14110_v17 }
 0x143   :  { %24090 = vst [vmem:[#allocation48_spill] sm:$0xff] %v15774_v41  ;;  %v15776_v39 = vpop.f32.mrf.mxu1  ;;  %2119 = vmatmul.mubr.bf16.gmra.mxu1 %v15176_v44  ;;  %v15784_v40 = vadd.f32 %v15593_v47, %v1454_v33  ;;  %2401 = vmatprep.mubr.bf16.mxu0 %v24065_v7 }
 0x144   :  { %2128 = vmatprep.mubr.bf16.mxu1 %v15190_v48  ;;  %v1456_v36 = vpop.f32.mrf.mxu0  ;;  %2694 = vmatprep.subr.bf16.mxu1 %v24065_v7 }
 0x145   :  { %24091 = vst [vmem:[#allocation49_spill] sm:$0xff] %v15784_v40  ;;  %v15791_v50 = vpop.f32.mrf.mxu1  ;;  %v15794_v44 = vadd.f32 %v15600_v61, %v1456_v36  ;;  %v14604_v61 = vld [vmem:[%s23601_s0 + $0x50] ss:$12 sps:$4 sm:$0xff]  }
 0x146   :  { %v1458_v37 = vpop.f32.mrf.mxu0 }
 0x147   :  { %v15796_v10 = vpop.f32.mrf.mxu1  ;;  %v15800_v48 = vadd.f32 %v15609_v34, %v1458_v37 }
 0x148   :  { %v1460_v47 = vpop.f32.mrf.mxu0 }
 0x149   :  { %24092 = vst [vmem:[#allocation50_spill] sm:$0xff] %v15800_v48  ;;  %v15802_v33 = vpop.f32.mrf.mxu1  ;;  %v15805_v2 = vadd.f32 %v15620_v46, %v1460_v47 }
 0x14a   :  { %v1464_v40 = vpop.f32.mrf.mxu0  ;;  %11798 = vmatmul.mubr.msk.bf16.gmra.mxu0 %vm1249_vm0, %v14604_v61 }
 0x14b   :  { %24093 = vst [vmem:[#allocation51_spill] sm:$0xff] %v15805_v2  ;;  %v15807_v41 = vpop.f32.mrf.mxu1  ;;  %2129 = vmatmul.mubr.bf16.gmra.mxu1 %v15206_v51  ;;  %v15815_v34 = vadd.f32 %v15629_v3, %v1464_v40  ;;  %2411 = vmatprep.mubr.bf16.mxu0 %v24065_v7 }
 0x14c   :  { %2138 = vmatprep.mubr.bf16.mxu1 %v15214_v53  ;;  %v1466_v46 = vpop.f32.mrf.mxu0 }
 0x14d   :  { %24094 = vst [vmem:[#allocation52_spill] sm:$0xff] %v15815_v34  ;;  %v15819_v17 = vpop.f32.mrf.mxu1  ;;  %v15822_v36 = vadd.f32 %v15636_v0, %v1466_v46  ;;  %v14605_v0 = vld [vmem:[%s23601_s0 + $0x68] ss:$12 sps:$4 sm:$0xff]  }
 0x14e   :  { %v1468_v51 = vpop.f32.mrf.mxu0 }
 0x14f   :  { %24095 = vst [vmem:[#allocation53_spill] sm:$0xff] %v15822_v36  ;;  %v15824_v37 = vpop.f32.mrf.mxu1  ;;  %v15827_v47 = vadd.f32 %v15645_v45, %v1468_v51 }
 0x150   :  { %v1470_v61 = vpop.f32.mrf.mxu0 }
 0x151   :  { %24096 = vst [vmem:[#allocation54_spill] sm:$0xff] %v15827_v47  ;;  %v15829_v2 = vpop.f32.mrf.mxu1  ;;  %v15832_v3 = vadd.f32 %v15656_v62, %v1470_v61  ;;  %v14111_v62 = vld [vmem:[%s23600_s1 + $0x1f0] ss:$20 sps:$4 sm:$0xff]  }
 0x152   :  { %v1474_v53 = vpop.f32.mrf.mxu0  ;;  %11799 = vmatmul.mubr.msk.bf16.gmra.mxu0 %vm1249_vm0, %v14605_v0  ;;  %2695 = vmatpush2.bf16.msra.mxu1 %v14111_v62 }
 0x153   :  { %24097 = vst [vmem:[#allocation55_spill] sm:$0xff] %v15832_v3  ;;  %v15834_v40 = vpop.f32.mrf.mxu1  ;;  %2139 = vmatmul.mubr.bf16.gmra.mxu1 %v15223_v54  ;;  %v15842_v45 = vadd.f32 %v15662_v11, %v1474_v53  ;;  %2421 = vmatprep.mubr.bf16.mxu0 %v24065_v7 }
 0x154   :  { %2148 = vmatprep.mubr.bf16.mxu1 %v15231_v56  ;;  %v1476_v46 = vpop.f32.mrf.mxu0  ;;  %2696 = vmatprep.subr.bf16.mxu1 %v24065_v7  ;;  %v14606_v56 = vld [vmem:[%s23601_s0 + $0x80] ss:$12 sps:$4 sm:$0xff]  }
 0x155   :  { %v15849_v51 = vpop.f32.mrf.mxu1  ;;  %v15854_v61 = vadd.f32 %v15669_v20, %v1476_v46 }
 0x156   :  { %v1478_v11 = vpop.f32.mrf.mxu0 }
 0x157   :  { %v15856_v53 = vpop.f32.mrf.mxu1  ;;  %v15862_v0 = vadd.f32 %v15677_v58, %v1478_v11 }
 0x158   :  { %v1480_v3 = vpop.f32.mrf.mxu0 }
 0x159   :  { %24098 = vst [vmem:[#allocation56_spill] sm:$0xff] %v15862_v0  ;;  %v15864_v47 = vpop.f32.mrf.mxu1  ;;  %v15869_v20 = vadd.f32 %v15685_v6, %v1480_v3 }
 0x15a   :  { %v1484_v62 = vpop.f32.mrf.mxu0  ;;  %11800 = vmatmul.mubr.msk.bf16.gmra.mxu0 %vm1249_vm0, %v14606_v56 }
 0x15b   :  { %24099 = vst [vmem:[#allocation57_spill] sm:$0xff] %v15869_v20  ;;  %v15871_v46 = vpop.f32.mrf.mxu1  ;;  %2149 = vmatmul.mubr.bf16.gmra.mxu1 %v15240_v57  ;;  %v15881_v11 = vadd.f32 %v15691_v14, %v1484_v62  ;;  %2431 = vmatprep.mubr.bf16.mxu0 %v24065_v7  ;;  %v24103_v14 = vld [vmem:[#allocation2_spill] sm:$0xff] }
 0x15c   :  { %2158 = vmatprep.mubr.bf16.mxu1 %v15248_v59  ;;  %v1486_v6 = vpop.f32.mrf.mxu0 }
 0x15d   :  { %24100 = vst [vmem:[#allocation58_spill] sm:$0xff] %v15881_v11  ;;  %v15885_v3 = vpop.f32.mrf.mxu1  ;;  %v15890_v54 = vadd.f32 %v15699_v16, %v1486_v6  ;;  %v14112_v16 = vld [vmem:[%s23600_s1 + $0x1c8] ss:$20 sps:$4 sm:$0xff]  }
 0x15e   :  { %v1488_v56 = vpop.f32.mrf.mxu0  ;;  %2697 = vmatpush2.bf16.msra.mxu1 %v14112_v16 }
 0x15f   :  { %v15892_v0 = vpop.f32.mrf.mxu1  ;;  %v15897_v62 = vadd.f32 %v15704_v25, %v1488_v56  ;;  %v14607_v25 = vld [vmem:[%s23601_s0 + $0x98] ss:$12 sps:$4 sm:$0xff]   ;;  %2698 = vmatprep.subr.bf16.mxu1 %v24065_v7 }
 0x160   :  { %v1490_v59 = vpop.f32.mrf.mxu0 }
 0x161   :  { %24101 = vst [vmem:[#allocation59_spill] sm:$0xff] %v15897_v62  ;;  %v15899_v58 = vpop.f32.mrf.mxu1  ;;  %v15904_v57 = vadd.f32 %v15709_v52, %v1490_v59  ;;  %v24105_v59 = vld [vmem:[#allocation3_spill] sm:$0xff] }
 0x162   :  { %v1494_v6 = vpop.f32.mrf.mxu0  ;;  %11801 = vmatmul.mubr.msk.bf16.gmra.mxu0 %vm1249_vm0, %v14607_v25 }
 0x163   :  { %24102 = vst [vmem:[#allocation60_spill] sm:$0xff] %v15904_v57  ;;  %v15909_v11 = vpop.f32.mrf.mxu1  ;;  %2159 = vmatmul.mubr.bf16.gmra.mxu1 %v24103_v14  ;;  %v15919_v52 = vadd.f32 %v15714_v55, %v1494_v6  ;;  %2441 = vmatprep.mubr.bf16.mxu0 %v24065_v7  ;;  %v14113_v55 = vld [vmem:[%s23600_s1 + $0x1a0] ss:$20 sps:$4 sm:$0xff]  }
 0x164   :  { %2168 = vmatprep.mubr.bf16.mxu1 %v24105_v59  ;;  %v1496_v20 = vpop.f32.mrf.mxu0  ;;  %v24106_v6 = vld [vmem:[#allocation28_spill] sm:$0xff]  ;;  %2699 = vmatpush2.bf16.msra.mxu1 %v14113_v55  ;;  %v24112_v55 = vld [vmem:[#allocation5_spill] sm:$0xff] }
 0x165   :  { %24104 = vst [vmem:[#allocation2_spill] sm:$0xff] %v15919_v52  ;;  %v15923_v62 = vpop.f32.mrf.mxu1  ;;  %v15928_v5 = vadd.f32 %v15726_v49, %v1496_v20  ;;  %2700 = vmatprep.subr.bf16.mxu1 %v24065_v7  ;;  %v24117_v49 = vld [vmem:[#allocation6_spill] sm:$0xff] }
 0x166   :  { %v1498_v25 = vpop.f32.mrf.mxu0 }
 0x167   :  { %v15931_v56 = vpop.f32.mrf.mxu1  ;;  %v15939_v16 = vadd.f32 %v15735_v27, %v1498_v25  ;;  %v14608_v27 = vld [vmem:[%s23601_s0 + $0xb0] ss:$12 sps:$4 sm:$0xff]   ;;  %v14114_v25 = vld [vmem:[%s23600_s1 + $0x178] ss:$20 sps:$4 sm:$0xff]  }
 0x168   :  { %v1500_v57 = vpop.f32.mrf.mxu0  ;;  %2701 = vmatpush2.bf16.msra.mxu1 %v14114_v25 }
 0x169   :  { %24107 = vst [vmem:[#allocation3_spill] sm:$0xff] %v15939_v16  ;;  %v15941_v14 = vpop.f32.mrf.mxu1  ;;  %v15946_v52 = vadd.f32 %v15743_v32, %v1500_v57  ;;  %2702 = vmatprep.subr.bf16.mxu1 %v24065_v7 }
 0x16a   :  { %v1504_v4 = vpop.f32.mrf.mxu0  ;;  %11802 = vmatmul.mubr.msk.bf16.gmra.mxu0 %vm1249_vm0, %v14608_v27 }
 0x16b   :  { %24109 = vst [vmem:[#allocation28_spill] sm:$0xff] %v15946_v52  ;;  %v15949_v13 = vpop.f32.mrf.mxu1  ;;  %2169 = vmatmul.mubr.bf16.gmra.mxu1 %v24110_v60  ;;  %v15962_v57 = vadd.f32 %v15749_v31, %v1504_v4  ;;  %2451 = vmatprep.mubr.bf16.mxu0 %v24065_v7  ;;  %v14115_v4 = vld [vmem:[%s23600_s1 + $0x150] ss:$20 sps:$4 sm:$0xff]  }
 0x16c   :  { %2178 = vmatprep.mubr.bf16.mxu1 %v24112_v55  ;;  %v1506_v60 = vpop.f32.mrf.mxu0  ;;  %v24113_v31 = vld [vmem:[#allocation32_spill] sm:$0xff]  ;;  %2703 = vmatpush2.bf16.msra.mxu1 %v14115_v4 }
 0x16d   :  { %24111 = vst [vmem:[#allocation4_spill] sm:$0xff] %v15962_v57  ;;  %v15966_v20 = vpop.f32.mrf.mxu1  ;;  %v15971_v59 = vadd.f32 %v15761_v28, %v1506_v60  ;;  %v24115_v28 = vld [vmem:[#allocation33_spill] sm:$0xff]  ;;  %v24119_v60 = vld [vmem:[#allocation7_spill] sm:$0xff] }
 0x16e   :  { %v1508_v32 = vpop.f32.mrf.mxu0 }
 0x16f   :  { %v15974_v52 = vpop.f32.mrf.mxu1  ;;  %v15982_v25 = vadd.f32 %v15766_v15, %v1508_v32  ;;  %v14609_v15 = vld [vmem:[%s23601_s0 + $0xc8] ss:$12 sps:$4 sm:$0xff]  }
 0x170   :  { %v1510_v43 = vpop.f32.mrf.mxu0 }
 0x171   :  { %24114 = vst [vmem:[#allocation5_spill] sm:$0xff] %v15982_v25  ;;  %v15984_v27 = vpop.f32.mrf.mxu1  ;;  %v15989_v57 = vadd.f32 %v15771_v38, %v1510_v43  ;;  %v14116_v43 = vld [vmem:[%s23600_s1 + $0x2b8] ss:$20 sps:$4 sm:$0xff]  }
 0x172   :  { %v1514_v9 = vpop.f32.mrf.mxu0  ;;  %11803 = vmatmul.mubr.msk.bf16.gmra.mxu0 %vm1249_vm0, %v14609_v15  ;;  %12911 = vmatprep.subr.bf16.mxu0 %v14116_v43 }
 0x173   :  { %24116 = vst [vmem:[#allocation32_spill] sm:$0xff] %v15989_v57  ;;  %v15991_v16 = vpop.f32.mrf.mxu1  ;;  %2179 = vmatmul.mubr.bf16.gmra.mxu1 %v24117_v49  ;;  %v16001_v4 = vadd.f32 %v15776_v39, %v1514_v9  ;;  %2461 = vmatprep.mubr.bf16.mxu0 %v24065_v7 }
 0x174   :  { %2188 = vmatprep.mubr.bf16.mxu1 %v24119_v60  ;;  %v1516_v38 = vpop.f32.mrf.mxu0  ;;  %12912 = vmatpush3.bf16.msra.mxu0 %v14116_v43  ;;  %v24120_v60 = vld [vmem:[#allocation36_spill] sm:$0xff]  ;;  %v16035_v43 = vld [vmem:[%s23601_s0 + $0xe0] ss:$12 sps:$4 sm:$0xff]  }
 0x175   :  { %24118 = vst [vmem:[#allocation33_spill] sm:$0xff] %v16001_v4  ;;  %v16008_v49 = vpop.f32.mrf.mxu1  ;;  %v16013_v55 = vadd.f32 %v15791_v50, %v1516_v38  ;;  %24124 = vst [vmem:[#allocation36_spill] sm:$0xff] %v16035_v43 }
 0x176   :  { %v1518_v9 = vpop.f32.mrf.mxu0 }
 0x177   :  { %v16015_v39 = vpop.f32.mrf.mxu1  ;;  %v16020_v57 = vadd.f32 %v15796_v10, %v1518_v9  ;;  %v24125_v10 = vld [vmem:[#allocation38_spill] sm:$0xff] }
 0x178   :  { %v1520_v24 = vpop.f32.mrf.mxu0 }
 0x179   :  { %24121 = vst [vmem:[#allocation6_spill] sm:$0xff] %v16020_v57  ;;  %v16022_v25 = vpop.f32.mrf.mxu1  ;;  %v16027_v50 = vadd.f32 %v15802_v33, %v1520_v24  ;;  %v24127_v24 = vld [vmem:[#allocation9_spill] sm:$0xff] }
 0x17a   :  { %v1524_v38 = vpop.f32.mrf.mxu0  ;;  %11804 = vmatmul.mubr.msk.bf16.gmra.mxu0 %vm1249_vm0, %v16035_v43 }
 0x17b   :  { %24122 = vst [vmem:[#allocation7_spill] sm:$0xff] %v16027_v50  ;;  %v16029_v4 = vpop.f32.mrf.mxu1  ;;  %2189 = vmatmul.mubr.bf16.gmra.mxu1 %v24123_v29  ;;  %v16042_v15 = vadd.f32 %v15807_v41, %v1524_v38  ;;  %2471 = vmatprep.mubr.bf16.mxu0 %v24065_v7  ;;  %v16073_v41 = vld [vmem:[%s23601_s0 + $0xf8] ss:$12 sps:$4 sm:$0xff]  }
 0x17c   :  { %2198 = vmatprep.mubr.bf16.mxu1 %v24127_v24  ;;  %v1526_v33 = vpop.f32.mrf.mxu0 }
 0x17d   :  { %24126 = vst [vmem:[#allocation8_spill] sm:$0xff] %v16042_v15  ;;  %v16046_v29 = vpop.f32.mrf.mxu1  ;;  %v16051_v57 = vadd.f32 %v15819_v17, %v1526_v33  ;;  %v24130_v15 = vld [vmem:[#allocation10_spill] sm:$0xff] }
 0x17e   :  { %v1528_v43 = vpop.f32.mrf.mxu0  ;;  %24131 = vst [vmem:[#allocation10_spill] sm:$0xff] %v16073_v41 }
 0x17f   :  { %v16053_v23 = vpop.f32.mrf.mxu1  ;;  %v16058_v38 = vadd.f32 %v15824_v37, %v1528_v43  ;;  %v24135_v37 = vld [vmem:[#allocation43_spill] sm:$0xff] }
 0x180   :  { %v1530_v24 = vpop.f32.mrf.mxu0 }
 0x181   :  { %24128 = vst [vmem:[#allocation38_spill] sm:$0xff] %v16058_v38  ;;  %v16060_v9 = vpop.f32.mrf.mxu1  ;;  %v16065_v32 = vadd.f32 %v15829_v2, %v1530_v24  ;;  %v24133_v2 = vld [vmem:[#allocation11_spill] sm:$0xff] }
 0x182   :  { %v1534_v17 = vpop.f32.mrf.mxu0  ;;  %11805 = vmatmul.mubr.msk.bf16.gmra.mxu0 %vm1249_vm0, %v16073_v41 }
 0x183   :  { %24129 = vst [vmem:[#allocation9_spill] sm:$0xff] %v16065_v32  ;;  %v16067_v33 = vpop.f32.mrf.mxu1  ;;  %2199 = vmatmul.mubr.bf16.gmra.mxu1 %v24130_v15  ;;  %v16080_v43 = vadd.f32 %v15834_v40, %v1534_v17  ;;  %2481 = vmatprep.mubr.bf16.mxu0 %v24065_v7  ;;  %v16111_v40 = vld [vmem:[%s23601_s0 + $0x110] ss:$12 sps:$4 sm:$0xff]  }
 0x184   :  { %2208 = vmatprep.mubr.bf16.mxu1 %v24133_v2  ;;  %v1536_v24 = vpop.f32.mrf.mxu0 }
 0x185   :  { %24132 = vst [vmem:[#allocation61_spill] sm:$0xff] %v16080_v43  ;;  %v16084_v15 = vpop.f32.mrf.mxu1  ;;  %v16089_v38 = vadd.f32 %v15849_v51, %v1536_v24  ;;  %v24139_v43 = vld [vmem:[#allocation12_spill] sm:$0xff] }
 0x186   :  { %v1538_v41 = vpop.f32.mrf.mxu0  ;;  %24140 = vst [vmem:[#allocation12_spill] sm:$0xff] %v16111_v40 }
 0x187   :  { %24134 = vst [vmem:[#allocation11_spill] sm:$0xff] %v16089_v38  ;;  %v16091_v1 = vpop.f32.mrf.mxu1  ;;  %v16096_v17 = vadd.f32 %v15856_v53, %v1538_v41  ;;  %v24141_v53 = vld [vmem:[#allocation45_spill] sm:$0xff] }
 0x188   :  { %v1540_v2 = vpop.f32.mrf.mxu0 }
 0x189   :  { %24136 = vst [vmem:[#allocation43_spill] sm:$0xff] %v16096_v17  ;;  %v16098_v32 = vpop.f32.mrf.mxu1  ;;  %v16103_v50 = vadd.f32 %v15864_v47, %v1540_v2  ;;  %v24143_v47 = vld [vmem:[#allocation13_spill] sm:$0xff] }
 0x18a   :  { %v1544_v51 = vpop.f32.mrf.mxu0  ;;  %11806 = vmatmul.mubr.msk.bf16.gmra.mxu0 %vm1249_vm0, %v16111_v40 }
 0x18b   :  { %24138 = vst [vmem:[#allocation62_spill] sm:$0xff] %v16103_v50  ;;  %v16105_v24 = vpop.f32.mrf.mxu1  ;;  %2209 = vmatmul.mubr.bf16.gmra.mxu1 %v24139_v43  ;;  %v16118_v12 = vadd.f32 %v15871_v46, %v1544_v51  ;;  %2491 = vmatprep.mubr.bf16.mxu0 %v24065_v7  ;;  %v16149_v46 = vld [vmem:[%s23601_s0 + $0x128] ss:$12 sps:$4 sm:$0xff]  }
 0x18c   :  { %2218 = vmatprep.mubr.bf16.mxu1 %v24143_v47  ;;  %v1546_v2 = vpop.f32.mrf.mxu0 }
 0x18d   :  { %24142 = vst [vmem:[#allocation45_spill] sm:$0xff] %v16118_v12  ;;  %v16122_v43 = vpop.f32.mrf.mxu1  ;;  %v16127_v26 = vadd.f32 %v15885_v3, %v1546_v2  ;;  %v24148_v12 = vld [vmem:[#allocation14_spill] sm:$0xff] }
 0x18e   :  { %v1548_v40 = vpop.f32.mrf.mxu0  ;;  %24149 = vst [vmem:[#allocation14_spill] sm:$0xff] %v16149_v46 }
 0x18f   :  { %24145 = vst [vmem:[#allocation13_spill] sm:$0xff] %v16127_v26  ;;  %v16129_v38 = vpop.f32.mrf.mxu1  ;;  %v16134_v51 = vadd.f32 %v15892_v0, %v1548_v40  ;;  %v24150_v0 = vld [vmem:[#allocation48_spill] sm:$0xff] }
 0x190   :  { %v1550_v47 = vpop.f32.mrf.mxu0 }
 0x191   :  { %24146 = vst [vmem:[#allocation63_spill] sm:$0xff] %v16134_v51  ;;  %v16136_v41 = vpop.f32.mrf.mxu1  ;;  %v16141_v8 = vadd.f32 %v15899_v58, %v1550_v47  ;;  %v24152_v58 = vld [vmem:[#allocation15_spill] sm:$0xff]  ;;  %v24165_v51 = vld [vmem:[#allocation18_spill] sm:$0xff] }
 0x192   :  { %v1554_v3 = vpop.f32.mrf.mxu0  ;;  %11807 = vmatmul.mubr.msk.bf16.gmra.mxu0 %vm1249_vm0, %v16149_v46 }
 0x193   :  { %24147 = vst [vmem:[#allocation64_spill] sm:$0xff] %v16141_v8  ;;  %v16143_v2 = vpop.f32.mrf.mxu1  ;;  %2219 = vmatmul.mubr.bf16.gmra.mxu1 %v24148_v12  ;;  %v16156_v50 = vadd.f32 %v15909_v11, %v1554_v3  ;;  %2501 = vmatprep.mubr.bf16.mxu0 %v24065_v7  ;;  %v16187_v11 = vld [vmem:[%s23601_s0 + $0x140] ss:$12 sps:$4 sm:$0xff]  }
 0x194   :  { %2228 = vmatprep.mubr.bf16.mxu1 %v24152_v58  ;;  %v1556_v47 = vpop.f32.mrf.mxu0 }
 0x195   :  { %24151 = vst [vmem:[#allocation48_spill] sm:$0xff] %v16156_v50  ;;  %v16160_v12 = vpop.f32.mrf.mxu1  ;;  %v16165_v17 = vadd.f32 %v15923_v62, %v1556_v47  ;;  %v24156_v50 = vld [vmem:[#allocation16_spill] sm:$0xff] }
 0x196   :  { %v1558_v46 = vpop.f32.mrf.mxu0  ;;  %24157 = vst [vmem:[#allocation16_spill] sm:$0xff] %v16187_v11 }
 0x197   :  { %v16167_v26 = vpop.f32.mrf.mxu1  ;;  %v16172_v3 = vadd.f32 %v15931_v56, %v1558_v46  ;;  %v14117_v46 = vld [vmem:[%s23600_s1 + $0x290] ss:$20 sps:$4 sm:$0xff]  }
 0x198   :  { %v1560_v58 = vpop.f32.mrf.mxu0  ;;  %12913 = vmatprep.subr.bf16.mxu0 %v14117_v46 }
 0x199   :  { %24154 = vst [vmem:[#allocation15_spill] sm:$0xff] %v16172_v3  ;;  %v16174_v40 = vpop.f32.mrf.mxu1  ;;  %v16179_v21 = vadd.f32 %v15941_v14, %v1560_v58  ;;  %v24160_v14 = vld [vmem:[#allocation17_spill] sm:$0xff]  ;;  %12914 = vmatpush3.bf16.msra.mxu0 %v14117_v46 }
 0x19a   :  { %v1564_v62 = vpop.f32.mrf.mxu0  ;;  %11808 = vmatmul.mubr.msk.bf16.gmra.mxu0 %vm1249_vm0, %v16187_v11 }
 0x19b   :  { %24155 = vst [vmem:[#allocation65_spill] sm:$0xff] %v16179_v21  ;;  %v16181_v47 = vpop.f32.mrf.mxu1  ;;  %2229 = vmatmul.mubr.bf16.gmra.mxu1 %v24156_v50  ;;  %v16194_v8 = vadd.f32 %v15949_v13, %v1564_v62  ;;  %2511 = vmatprep.mubr.bf16.mxu0 %v24065_v7 }
 0x19c   :  { %2238 = vmatprep.mubr.bf16.mxu1 %v24160_v14  ;;  %v1566_v58 = vpop.f32.mrf.mxu0 }
 0x19d   :  { %24159 = vst [vmem:[#allocation66_spill] sm:$0xff] %v16194_v8  ;;  %v16198_v50 = vpop.f32.mrf.mxu1  ;;  %v16203_v48 = vadd.f32 %v15966_v20, %v1566_v58  ;;  %v24168_v58 = vld [vmem:[#allocation19_spill] sm:$0xff] }
 0x19e   :  { %v1568_v11 = vpop.f32.mrf.mxu0 }
 0x19f   :  { %24161 = vst [vmem:[#allocation17_spill] sm:$0xff] %v16203_v48  ;;  %v16208_v13 = vpop.f32.mrf.mxu1  ;;  %v16213_v14 = vadd.f32 %v15974_v52, %v1568_v11  ;;  %v16228_v52 = vld [vmem:[%s23601_s0 + $0x158] ss:$12 sps:$4 sm:$0xff]   ;;  %v24171_v11 = vmax.f32 %v15525_v19, %v15842_v45 }
 0x1a0   :  { %v1570_v21 = vpop.f32.mrf.mxu0  ;;  %24166 = vst [vmem:[#allocation18_spill] sm:$0xff] %v16228_v52  ;;  %v24177_v19 = vld [vmem:[#allocation57_spill] sm:$0xff] }
 0x1a1   :  { %24162 = vst [vmem:[#allocation67_spill] sm:$0xff] %v16213_v14  ;;  %v16215_v56 = vpop.f32.mrf.mxu1  ;;  %v16220_v3 = vadd.f32 %v15984_v27, %v1570_v21 }
 0x1a2   :  { %v1574_v8 = vpop.f32.mrf.mxu0  ;;  %11809 = vmatmul.mubr.msk.bf16.gmra.mxu0 %vm1249_vm0, %v16228_v52  ;;  %v24169_v52 = vmax.f32 %v15534_v42, %v15854_v61 }
 0x1a3   :  { %24164 = vst [vmem:[#allocation68_spill] sm:$0xff] %v16220_v3  ;;  %v16222_v34 = vpop.f32.mrf.mxu1  ;;  %2239 = vmatmul.mubr.bf16.gmra.mxu1 %v24165_v51  ;;  %2521 = vmatprep.mubr.bf16.mxu0 %v24065_v7  ;;  %v1908_v51 = vadd.f32 %v15991_v16, %v1574_v8  ;;  %v24173_v8 = vld [vmem:[#allocation56_spill] sm:$0xff] }
 0x1a4   :  { %2248 = vmatprep.mubr.bf16.mxu1 %v24168_v58  ;;  %v1576_v21 = vpop.f32.mrf.mxu0  ;;  %v24174_v16 = vmax.f32 %v15543_v22, %v24173_v8  ;;  %v24178_v22 = vmax.f32 %v15554_v35, %v24177_v19  ;;  %v24181_v8 = vmax.f32 %v15570_v63, %v15890_v54  ;;  %v24191_v54 = vld [vmem:[#allocation22_spill] sm:$0xff] }
 0x1a5   :  { %v16236_v27 = vpop.f32.mrf.mxu1  ;;  %v1910_v62 = vadd.f32 %v16008_v49, %v1576_v21  ;;  %v16253_v36 = vmax.f32 %v24171_v11, %v1908_v51 }
 0x1a6   :  { %v1578_v14 = vpop.f32.mrf.mxu0 }
 0x1a7   :  { %v16240_v20 = vpop.f32.mrf.mxu1  ;;  %v16245_v48 = vmax.f32 %v24169_v52, %v1910_v62  ;;  %v1912_v46 = vadd.f32 %v16015_v39, %v1578_v14  ;;  %24172 = vst [vmem:[#allocation69_spill] sm:$0xff] %v16253_v36  ;;  %v24176_v62 = vld [vmem:[#allocation20_spill] sm:$0xff]  ;;  %v24180_v14 = vld [vmem:[#allocation21_spill] sm:$0xff] }
 0x1a8   :  { %v1580_v58 = vpop.f32.mrf.mxu0  ;;  %v16267_v39 = vld [vmem:[%s23601_s0 + $0x170] ss:$12 sps:$4 sm:$0xff]  }
 0x1a9   :  { %24170 = vst [vmem:[#allocation19_spill] sm:$0xff] %v16245_v48  ;;  %v16248_v3 = vpop.f32.mrf.mxu1  ;;  %v16258_v49 = vmax.f32 %v24174_v16, %v1912_v46  ;;  %v1914_v21 = vadd.f32 %v16022_v25, %v1580_v58 }
 0x1aa   :  { %v1584_v42 = vpop.f32.mrf.mxu0  ;;  %11810 = vmatmul.mubr.msk.bf16.gmra.mxu0 %vm1249_vm0, %v16267_v39 }
 0x1ab   :  { %24175 = vst [vmem:[#allocation56_spill] sm:$0xff] %v16258_v49  ;;  %v16261_v61 = vpop.f32.mrf.mxu1  ;;  %2249 = vmatmul.mubr.bf16.gmra.mxu1 %v24176_v62  ;;  %v16274_v45 = vmax.f32 %v24178_v22, %v1914_v21  ;;  %v13058_v25 = vpack.i.bf16 %v16258_v49, %v16253_v36  ;;  %2531 = vmatprep.mubr.bf16.mxu0 %v24065_v7  ;;  %v24183_v22 = vld [vmem:[#allocation24_spill] sm:$0xff] }
 0x1ac   :  { %2258 = vmatprep.mubr.bf16.mxu1 %v24180_v14  ;;  %v1586_v52 = vpop.f32.mrf.mxu0  ;;  %v1918_v46 = vadd.f32 %v16029_v4, %v1584_v42  ;;  %v24184_v4 = vld [vmem:[#allocation58_spill] sm:$0xff]  ;;  %v24187_v14 = vld [vmem:[#allocation25_spill] sm:$0xff] }
 0x1ad   :  { %24179 = vst [vmem:[#allocation20_spill] sm:$0xff] %v16274_v45  ;;  %v16280_v11 = vpop.f32.mrf.mxu1  ;;  %v1920_v51 = vadd.f32 %v16046_v29, %v1586_v52  ;;  %13059 = vrot.lane.b32.xlu1 %v13058_v25, %s14714_s29  ;;  %v24185_v42 = vmax.f32 %v24183_v22, %v24184_v4  ;;  %v24188_v52 = vld [vmem:[#allocation59_spill] sm:$0xff] }
 0x1ae   :  { %v1588_v35 = vpop.f32.mrf.mxu0  ;;  %v24189_v49 = vmax.f32 %v24187_v14, %v24188_v52  ;;  %v24197_v14 = vmax.f32 %v24106_v6, %v15928_v5 }
 0x1af   :  { %v16285_v58 = vpop.f32.mrf.mxu1  ;;  %v16290_v16 = vmax.f32 %v24181_v8, %v1920_v51  ;;  %v1922_v21 = vadd.f32 %v16053_v23, %v1588_v35  ;;  %v16298_v29 = vmax.f32 %v24185_v42, %v1918_v46  ;;  %v16313_v46 = vld [vmem:[%s23601_s0 + $0x188] ss:$12 sps:$4 sm:$0xff]  }
 0x1b0   :  { %v1590_v62 = vpop.f32.mrf.mxu0  ;;  %v24193_v51 = vld [vmem:[#allocation60_spill] sm:$0xff]  ;;  %v24196_v8 = vld [vmem:[#allocation23_spill] sm:$0xff] }
 0x1b1   :  { %24182 = vst [vmem:[#allocation57_spill] sm:$0xff] %v16290_v16  ;;  %v16293_v19 = vpop.f32.mrf.mxu1  ;;  %24186 = vst [vmem:[#allocation21_spill] sm:$0xff] %v16298_v29  ;;  %v16303_v36 = vmax.f32 %v24189_v49, %v1922_v21  ;;  %v1924_v45 = vadd.f32 %v16060_v9, %v1590_v62  ;;  %13064 = vrot.lane.b32.xlu1 %v13058_v25, %s14715_s30  ;;  %v24192_v49 = vld [vmem:[#allocation26_spill] sm:$0xff] }
 0x1b2   :  { %v1594_v63 = vpop.f32.mrf.mxu0  ;;  %11811 = vmatmul.mubr.msk.bf16.gmra.mxu0 %vm1249_vm0, %v16313_v46  ;;  %v24194_v35 = vmax.f32 %v24192_v49, %v24193_v51 }
 0x1b3   :  { %24190 = vst [vmem:[#allocation24_spill] sm:$0xff] %v16303_v36  ;;  %v16307_v23 = vpop.f32.mrf.mxu1  ;;  %2259 = vmatmul.mubr.bf16.gmra.mxu1 %v24191_v54  ;;  %v13073_v25 = vpack.i.bf16 %v16303_v36, %v16298_v29  ;;  %2541 = vmatprep.mubr.bf16.mxu0 %v24065_v7  ;;  %v1928_v22 = vadd.f32 %v16067_v33, %v1594_v63  ;;  %v24199_v33 = vld [vmem:[#allocation27_spill] sm:$0xff]  ;;  %v24200_v63 = vld [vmem:[#allocation2_spill] sm:$0xff] }
 0x1b4   :  { %v16320_v9 = vmax.f32 %v24194_v35, %v1924_v45  ;;  %2268 = vmatprep.mubr.bf16.mxu1 %v24196_v8  ;;  %v1596_v21 = vpop.f32.mrf.mxu0  ;;  %v24203_v8 = vld [vmem:[#allocation29_spill] sm:$0xff] }
 0x1b5   :  { %v16325_v62 = vpop.f32.mrf.mxu1  ;;  %v1930_v4 = vadd.f32 %v16084_v15, %v1596_v21  ;;  %13074 = vrot.lane.b32.xlu1 %v13073_v25, %s14715_s30  ;;  %13069 = vrot.lane.b32.xlu0 %v13073_v25, %s14714_s29  ;;  %v24201_v15 = vmax.f32 %v24199_v33, %v24200_v63  ;;  %v24204_v25 = vld [vmem:[#allocation3_spill] sm:$0xff] }
 0x1b6   :  { %24195 = vst [vmem:[#allocation58_spill] sm:$0xff] %v16320_v9  ;;  %v1598_v45 = vpop.f32.mrf.mxu0  ;;  %v24205_v21 = vmax.f32 %v24203_v8, %v24204_v25 }
 0x1b7   :  { %v16332_v42 = vpop.f32.mrf.mxu1  ;;  %v16337_v52 = vmax.f32 %v24197_v14, %v1930_v4  ;;  %v1932_v54 = vadd.f32 %v16091_v1, %v1598_v45  ;;  %v16345_v35 = vmax.f32 %v24201_v15, %v1928_v22  ;;  %v14618_v1 = vld [vmem:[%s23601_s0 + $0x228] ss:$12 sps:$4 sm:$0xff]   ;;  %v16361_v22 = vld [vmem:[%s23601_s0 + $0x1a0] ss:$12 sps:$4 sm:$0xff]  }
 0x1b8   :  { %v1600_v49 = vpop.f32.mrf.mxu0  ;;  %v24207_v4 = vld [vmem:[#allocation30_spill] sm:$0xff]  ;;  %v24208_v45 = vld [vmem:[#allocation28_spill] sm:$0xff] }
 0x1b9   :  { %24198 = vst [vmem:[#allocation25_spill] sm:$0xff] %v16337_v52  ;;  %v16340_v51 = vpop.f32.mrf.mxu1  ;;  %24202 = vst [vmem:[#allocation59_spill] sm:$0xff] %v16345_v35  ;;  %v16350_v36 = vmax.f32 %v24205_v21, %v1932_v54  ;;  %v1934_v29 = vadd.f32 %v16098_v32, %v1600_v49  ;;  %v24209_v14 = vmax.f32 %v24207_v4, %v24208_v45  ;;  %v14620_v49 = vld [vmem:[%s23601_s0 + $0x244] ss:$12 sps:$4 sm:$0xff]  }
 0x1ba   :  { %v1604_v5 = vpop.f32.mrf.mxu0  ;;  %11812 = vmatmul.mubr.msk.bf16.gmra.mxu0 %vm1249_vm0, %v16361_v22  ;;  %v24211_v21 = vmax.f32 %v24113_v31, %v15971_v59 }
 0x1bb   :  { %24206 = vst [vmem:[#allocation22_spill] sm:$0xff] %v16350_v36  ;;  %v16353_v6 = vpop.f32.mrf.mxu1  ;;  %2269 = vmatmul.mubr.bf16.gmra.mxu1 %v14618_v1  ;;  %v16368_v32 = vmax.f32 %v24209_v14, %v1934_v29  ;;  %v13083_v54 = vpack.i.bf16 %v16350_v36, %v16345_v35  ;;  %2551 = vmatprep.mubr.bf16.mxu0 %v24065_v7 }
 0x1bc   :  { %2278 = vmatprep.mubr.bf16.mxu1 %v14620_v49  ;;  %v1606_v33 = vpop.f32.mrf.mxu0  ;;  %v1938_v15 = vadd.f32 %v16105_v24, %v1604_v5  ;;  %v24213_v24 = vld [vmem:[#allocation31_spill] sm:$0xff]  ;;  %v24214_v5 = vld [vmem:[#allocation4_spill] sm:$0xff] }
 0x1bd   :  { %24210 = vst [vmem:[#allocation26_spill] sm:$0xff] %v16368_v32  ;;  %v16375_v63 = vpop.f32.mrf.mxu1  ;;  %v1940_v8 = vadd.f32 %v16122_v43, %v1606_v33  ;;  %13084 = vrot.lane.b32.xlu1 %v13083_v54, %s14715_s30  ;;  %13079 = vrot.lane.b32.xlu0 %v13083_v54, %s14714_s29  ;;  %v24215_v43 = vmax.f32 %v24213_v24, %v24214_v5  ;;  %v24217_v54 = vld [vmem:[#allocation5_spill] sm:$0xff] }
 0x1be   :  { %v1608_v29 = vpop.f32.mrf.mxu0  ;;  %v24218_v33 = vmax.f32 %v24115_v28, %v24217_v54  ;;  %v24220_v28 = vld [vmem:[#allocation34_spill] sm:$0xff] }
 0x1bf   :  { %v16382_v25 = vpop.f32.mrf.mxu1  ;;  %v16387_v1 = vmax.f32 %v24211_v21, %v1940_v8  ;;  %v1942_v4 = vadd.f32 %v16129_v38, %v1608_v29  ;;  %v16395_v49 = vmax.f32 %v24215_v43, %v1938_v15  ;;  %v14621_v38 = vld [vmem:[%s23601_s0 + $0x240] ss:$12 sps:$4 sm:$0xff]   ;;  %v16411_v15 = vld [vmem:[%s23601_s0 + $0x1b8] ss:$12 sps:$4 sm:$0xff]   ;;  %v24221_v8 = vld [vmem:[#allocation32_spill] sm:$0xff] }
 0x1c0   :  { %v1610_v45 = vpop.f32.mrf.mxu0  ;;  %v24222_v29 = vmax.f32 %v24220_v28, %v24221_v8 }
 0x1c1   :  { %24212 = vst [vmem:[#allocation60_spill] sm:$0xff] %v16387_v1  ;;  %v16390_v14 = vpop.f32.mrf.mxu1  ;;  %24216 = vst [vmem:[#allocation23_spill] sm:$0xff] %v16395_v49  ;;  %v16400_v36 = vmax.f32 %v24218_v33, %v1942_v4  ;;  %v1944_v35 = vadd.f32 %v16136_v41, %v1610_v45  ;;  %v14623_v4 = vld [vmem:[%s23601_s0 + $0x25c] ss:$12 sps:$4 sm:$0xff]   ;;  %v24224_v33 = vmax.f32 %v24120_v60, %v16013_v55 }
 0x1c2   :  { %v1614_v59 = vpop.f32.mrf.mxu0  ;;  %11813 = vmatmul.mubr.msk.bf16.gmra.mxu0 %vm1249_vm0, %v16411_v15 }
 0x1c3   :  { %24219 = vst [vmem:[#allocation27_spill] sm:$0xff] %v16400_v36  ;;  %v16403_v31 = vpop.f32.mrf.mxu1  ;;  %2279 = vmatmul.mubr.bf16.gmra.mxu1 %v14621_v38  ;;  %v16418_v41 = vmax.f32 %v24222_v29, %v1944_v35  ;;  %v13093_v21 = vpack.i.bf16 %v16400_v36, %v16395_v49  ;;  %2561 = vmatprep.mubr.bf16.mxu0 %v24065_v7 }
 0x1c4   :  { %2288 = vmatprep.mubr.bf16.mxu1 %v14623_v4  ;;  %v1616_v45 = vpop.f32.mrf.mxu0  ;;  %v1948_v5 = vadd.f32 %v16143_v2, %v1614_v59  ;;  %v24226_v2 = vld [vmem:[#allocation35_spill] sm:$0xff]  ;;  %v24227_v59 = vld [vmem:[#allocation33_spill] sm:$0xff] }
 0x1c5   :  { %24223 = vst [vmem:[#allocation2_spill] sm:$0xff] %v16418_v41  ;;  %v16425_v24 = vpop.f32.mrf.mxu1  ;;  %v1950_v43 = vadd.f32 %v16160_v12, %v1616_v45  ;;  %13094 = vrot.lane.b32.xlu1 %v13093_v21, %s14715_s30  ;;  %13089 = vrot.lane.b32.xlu0 %v13093_v21, %s14714_s29  ;;  %v24228_v12 = vmax.f32 %v24226_v2, %v24227_v59  ;;  %v24230_v45 = vld [vmem:[#allocation37_spill] sm:$0xff]  ;;  %v24231_v21 = vld [vmem:[#allocation6_spill] sm:$0xff] }
 0x1c6   :  { %v1618_v35 = vpop.f32.mrf.mxu0  ;;  %v24232_v36 = vmax.f32 %v24230_v45, %v24231_v21 }
 0x1c7   :  { %v16432_v54 = vpop.f32.mrf.mxu1  ;;  %v16437_v38 = vmax.f32 %v24224_v33, %v1950_v43  ;;  %v1952_v28 = vadd.f32 %v16167_v26, %v1618_v35  ;;  %v16445_v4 = vmax.f32 %v24228_v12, %v1948_v5  ;;  %v14624_v26 = vld [vmem:[%s23601_s0 + $0x258] ss:$12 sps:$4 sm:$0xff]   ;;  %v16461_v5 = vld [vmem:[%s23601_s0 + $0x1d0] ss:$12 sps:$4 sm:$0xff]   ;;  %v14626_v33 = vld [vmem:[%s23601_s0 + $0x274] ss:$12 sps:$4 sm:$0xff]   ;;  %v24237_v12 = vmax.f32 %v15702_v18, %v16051_v57 }
 0x1c8   :  { %v1620_v8 = vpop.f32.mrf.mxu0 }
 0x1c9   :  { %24225 = vst [vmem:[#allocation29_spill] sm:$0xff] %v16437_v38  ;;  %v16440_v29 = vpop.f32.mrf.mxu1  ;;  %24229 = vst [vmem:[#allocation3_spill] sm:$0xff] %v16445_v4  ;;  %v16450_v49 = vmax.f32 %v24232_v36, %v1952_v28  ;;  %v1954_v41 = vadd.f32 %v16174_v40, %v1620_v8  ;;  %v24234_v36 = vld [vmem:[#allocation7_spill] sm:$0xff] }
 0x1ca   :  { %v1624_v55 = vpop.f32.mrf.mxu0  ;;  %11814 = vmatmul.mubr.msk.bf16.gmra.mxu0 %vm1249_vm0, %v16461_v5  ;;  %v24235_v43 = vmax.f32 %v24125_v10, %v24234_v36 }
 0x1cb   :  { %24233 = vst [vmem:[#allocation30_spill] sm:$0xff] %v16450_v49  ;;  %v16453_v60 = vpop.f32.mrf.mxu1  ;;  %2289 = vmatmul.mubr.bf16.gmra.mxu1 %v14624_v26  ;;  %v13103_v35 = vpack.i.bf16 %v16450_v49, %v16445_v4  ;;  %2571 = vmatprep.mubr.bf16.mxu0 %v24065_v7  ;;  %v1958_v2 = vadd.f32 %v16181_v47, %v1624_v55  ;;  %v24239_v47 = vld [vmem:[#allocation39_spill] sm:$0xff]  ;;  %v24240_v55 = vld [vmem:[#allocation8_spill] sm:$0xff] }
 0x1cc   :  { %v16468_v40 = vmax.f32 %v24235_v43, %v1954_v41  ;;  %2298 = vmatprep.mubr.bf16.mxu1 %v14626_v33  ;;  %v1626_v28 = vpop.f32.mrf.mxu0  ;;  %v24243_v33 = vld [vmem:[#allocation40_spill] sm:$0xff] }
 0x1cd   :  { %v16475_v8 = vpop.f32.mrf.mxu1  ;;  %v1960_v59 = vadd.f32 %v16198_v50, %v1626_v28  ;;  %13104 = vrot.lane.b32.xlu1 %v13103_v35, %s14715_s30  ;;  %13099 = vrot.lane.b32.xlu0 %v13103_v35, %s14714_s29  ;;  %v24241_v50 = vmax.f32 %v24239_v47, %v24240_v55  ;;  %v24244_v35 = vld [vmem:[#allocation38_spill] sm:$0xff] }
 0x1ce   :  { %24236 = vst [vmem:[#allocation28_spill] sm:$0xff] %v16468_v40  ;;  %v1628_v10 = vpop.f32.mrf.mxu0  ;;  %v24245_v28 = vmax.f32 %v24243_v33, %v24244_v35 }
 0x1cf   :  { %v16482_v41 = vpop.f32.mrf.mxu1  ;;  %v16487_v45 = vmax.f32 %v24237_v12, %v1960_v59  ;;  %v1962_v21 = vadd.f32 %v16208_v13, %v1628_v10  ;;  %v16495_v43 = vmax.f32 %v24241_v50, %v1958_v2  ;;  %v14627_v13 = vld [vmem:[%s23601_s0 + $0x270] ss:$12 sps:$4 sm:$0xff]   ;;  %v16511_v2 = vld [vmem:[%s23601_s0 + $0x1e8] ss:$12 sps:$4 sm:$0xff]  }
 0x1d0   :  { %v1630_v26 = vpop.f32.mrf.mxu0  ;;  %v24247_v59 = vld [vmem:[#allocation41_spill] sm:$0xff] }
 0x1d1   :  { %24238 = vst [vmem:[#allocation31_spill] sm:$0xff] %v16487_v45  ;;  %v16490_v36 = vpop.f32.mrf.mxu1  ;;  %24242 = vst [vmem:[#allocation4_spill] sm:$0xff] %v16495_v43  ;;  %v16500_v49 = vmax.f32 %v24245_v28, %v1962_v21  ;;  %v1964_v4 = vadd.f32 %v16215_v56, %v1630_v26  ;;  %v24248_v10 = vld [vmem:[#allocation9_spill] sm:$0xff]  ;;  %v24251_v28 = vld [vmem:[#allocation11_spill] sm:$0xff] }
 0x1d2   :  { %v1634_v18 = vpop.f32.mrf.mxu0  ;;  %11815 = vmatmul.mubr.msk.bf16.gmra.mxu0 %vm1249_vm0, %v16511_v2  ;;  %v24249_v12 = vmax.f32 %v24247_v59, %v24248_v10  ;;  %v14629_v26 = vld [vmem:[%s23601_s0 + $0x28c] ss:$12 sps:$4 sm:$0xff]  }
 0x1d3   :  { %24246 = vst [vmem:[#allocation5_spill] sm:$0xff] %v16500_v49  ;;  %v16503_v57 = vpop.f32.mrf.mxu1  ;;  %2299 = vmatmul.mubr.bf16.gmra.mxu1 %v14627_v13  ;;  %v13113_v21 = vpack.i.bf16 %v16500_v49, %v16495_v43  ;;  %2581 = vmatprep.mubr.bf16.mxu0 %v24065_v7  ;;  %v1968_v50 = vadd.f32 %v16222_v34, %v1634_v18  ;;  %v24254_v34 = vld [vmem:[#allocation42_spill] sm:$0xff]  ;;  %v24255_v18 = vld [vmem:[#allocation61_spill] sm:$0xff]  ;;  %v24258_v49 = vld [vmem:[#allocation44_spill] sm:$0xff] }
 0x1d4   :  { %v16518_v56 = vmax.f32 %v24249_v12, %v1964_v4  ;;  %2308 = vmatprep.mubr.bf16.mxu1 %v14629_v26  ;;  %v1636_v47 = vpop.f32.mrf.mxu0  ;;  %v24252_v13 = vmax.f32 %v24135_v37, %v24251_v28  ;;  %v14632_v28 = vld [vmem:[%s23601_s0 + $0x2a4] ss:$12 sps:$4 sm:$0xff]  }
 0x1d5   :  { %v16525_v55 = vpop.f32.mrf.mxu1  ;;  %v1970_v33 = vadd.f32 %v16236_v27, %v1636_v47  ;;  %13114 = vrot.lane.b32.xlu1 %v13113_v21, %s14715_s30  ;;  %13109 = vrot.lane.b32.xlu0 %v13113_v21, %s14714_s29  ;;  %v24256_v27 = vmax.f32 %v24254_v34, %v24255_v18  ;;  %v24259_v21 = vld [vmem:[#allocation43_spill] sm:$0xff]  ;;  %v24266_v18 = vld [vmem:[#allocation13_spill] sm:$0xff] }
 0x1d6   :  { %24250 = vst [vmem:[#allocation34_spill] sm:$0xff] %v16518_v56  ;;  %v1638_v4 = vpop.f32.mrf.mxu0  ;;  %v24260_v43 = vmax.f32 %v24258_v49, %v24259_v21  ;;  %v24263_v49 = vld [vmem:[#allocation62_spill] sm:$0xff] }
 0x1d7   :  { %v16532_v35 = vpop.f32.mrf.mxu1  ;;  %v16537_v59 = vmax.f32 %v24252_v13, %v1970_v33  ;;  %v1972_v10 = vadd.f32 %v16240_v20, %v1638_v4  ;;  %v16545_v47 = vmax.f32 %v24256_v27, %v1968_v50  ;;  %v14630_v20 = vld [vmem:[%s23601_s0 + $0x288] ss:$12 sps:$4 sm:$0xff]   ;;  %v16561_v50 = vld [vmem:[%s23601_s0 + $0x200] ss:$12 sps:$4 sm:$0xff]   ;;  %v24267_v27 = vmax.f32 %v15764_v30, %v24266_v18 }
 0x1d8   :  { %v1640_v12 = vpop.f32.mrf.mxu0  ;;  %24262 = vst [vmem:[#allocation37_spill] sm:$0xff] %v16561_v50 }
 0x1d9   :  { %24253 = vst [vmem:[#allocation32_spill] sm:$0xff] %v16537_v59  ;;  %v16540_v26 = vpop.f32.mrf.mxu1  ;;  %24257 = vst [vmem:[#allocation35_spill] sm:$0xff] %v16545_v47  ;;  %v16550_v56 = vmax.f32 %v24260_v43, %v1972_v10  ;;  %v1974_v45 = vadd.f32 %v16248_v3, %v1640_v12  ;;  %v24264_v43 = vmax.f32 %v24141_v53, %v24263_v49 }
 0x1da   :  { %v1644_v37 = vpop.f32.mrf.mxu0  ;;  %11816 = vmatmul.mubr.msk.bf16.gmra.mxu0 %vm1249_vm0, %v16561_v50 }
 0x1db   :  { %24261 = vst [vmem:[#allocation33_spill] sm:$0xff] %v16550_v56  ;;  %v16553_v33 = vpop.f32.mrf.mxu1  ;;  %2309 = vmatmul.mubr.bf16.gmra.mxu1 %v14630_v20  ;;  %v16568_v3 = vmax.f32 %v24264_v43, %v1974_v45  ;;  %v13123_v4 = vpack.i.bf16 %v16550_v56, %v16545_v47  ;;  %2591 = vmatprep.mubr.bf16.mxu0 %v24065_v7 }
 0x1dc   :  { %2318 = vmatprep.mubr.bf16.mxu1 %v14632_v28  ;;  %v1646_v13 = vpop.f32.mrf.mxu0  ;;  %v1978_v12 = vadd.f32 %v16261_v61, %v1644_v37  ;;  %v24269_v61 = vld [vmem:[#allocation46_spill] sm:$0xff]  ;;  %v24270_v37 = vld [vmem:[#allocation45_spill] sm:$0xff] }
 0x1dd   :  { %24265 = vst [vmem:[#allocation6_spill] sm:$0xff] %v16568_v3  ;;  %v16575_v10 = vpop.f32.mrf.mxu1  ;;  %v1980_v34 = vadd.f32 %v16280_v11, %v1646_v13  ;;  %13124 = vrot.lane.b32.xlu1 %v13123_v4, %s14715_s30  ;;  %13119 = vrot.lane.b32.xlu0 %v13123_v4, %s14714_s29  ;;  %v24271_v11 = vmax.f32 %v24269_v61, %v24270_v37  ;;  %v24273_v13 = vld [vmem:[#allocation47_spill] sm:$0xff] }
 0x1de   :  { %v1648_v53 = vpop.f32.mrf.mxu0  ;;  %v24274_v4 = vld [vmem:[#allocation63_spill] sm:$0xff] }
 0x1df   :  { %v16582_v45 = vpop.f32.mrf.mxu1  ;;  %v16587_v21 = vmax.f32 %v24267_v27, %v1980_v34  ;;  %v1982_v20 = vadd.f32 %v16285_v58, %v1648_v53  ;;  %v16595_v28 = vmax.f32 %v24271_v11, %v1978_v12  ;;  %v24275_v56 = vmax.f32 %v24273_v13, %v24274_v4  ;;  %v14633_v58 = vld [vmem:[%s23601_s0 + $0x2a0] ss:$12 sps:$4 sm:$0xff]   ;;  %v16611_v12 = vld [vmem:[%s23601_s0 + $0x218] ss:$12 sps:$4 sm:$0xff]   ;;  %v14635_v27 = vld [vmem:[%s23601_s0 + $0x2bc] ss:$12 sps:$4 sm:$0xff]  }
 0x1e0   :  { %v1650_v49 = vpop.f32.mrf.mxu0  ;;  %24277 = vst [vmem:[#allocation40_spill] sm:$0xff] %v16611_v12  ;;  %v24281_v11 = vmax.f32 %v15794_v44, %v16165_v17 }
 0x1e1   :  { %24268 = vst [vmem:[#allocation7_spill] sm:$0xff] %v16587_v21  ;;  %v16590_v43 = vpop.f32.mrf.mxu1  ;;  %24272 = vst [vmem:[#allocation39_spill] sm:$0xff] %v16595_v28  ;;  %v16600_v47 = vmax.f32 %v24275_v56, %v1982_v20  ;;  %v1984_v3 = vadd.f32 %v16293_v19, %v1650_v49  ;;  %v24278_v56 = vld [vmem:[#allocation64_spill] sm:$0xff] }
 0x1e2   :  { %v1654_v30 = vpop.f32.mrf.mxu0  ;;  %11817 = vmatmul.mubr.msk.bf16.gmra.mxu0 %vm1249_vm0, %v16611_v12  ;;  %v24279_v53 = vmax.f32 %v24150_v0, %v24278_v56 }
 0x1e3   :  { %24276 = vst [vmem:[#allocation8_spill] sm:$0xff] %v16600_v47  ;;  %v16603_v34 = vpop.f32.mrf.mxu1  ;;  %2319 = vmatmul.mubr.bf16.gmra.mxu1 %v14633_v58  ;;  %v13133_v18 = vpack.i.bf16 %v16600_v47, %v16595_v28  ;;  %2601 = vmatprep.mubr.bf16.mxu0 %v24065_v7  ;;  %v1988_v61 = vadd.f32 %v16307_v23, %v1654_v30  ;;  %v24283_v23 = vld [vmem:[#allocation49_spill] sm:$0xff]  ;;  %v24284_v30 = vld [vmem:[#allocation48_spill] sm:$0xff] }
 0x1e4   :  { %v16618_v19 = vmax.f32 %v24279_v53, %v1984_v3  ;;  %2328 = vmatprep.mubr.bf16.mxu1 %v14635_v27  ;;  %v1656_v20 = vpop.f32.mrf.mxu0  ;;  %v24287_v27 = vld [vmem:[#allocation50_spill] sm:$0xff] }
 0x1e5   :  { %v16625_v49 = vpop.f32.mrf.mxu1  ;;  %v1990_v37 = vadd.f32 %v16325_v62, %v1656_v20  ;;  %13134 = vrot.lane.b32.xlu1 %v13133_v18, %s14715_s30  ;;  %13129 = vrot.lane.b32.xlu0 %v13133_v18, %s14714_s29  ;;  %v24285_v62 = vmax.f32 %v24283_v23, %v24284_v30  ;;  %v24288_v18 = vld [vmem:[#allocation15_spill] sm:$0xff]  ;;  %v14638_v30 = vld [vmem:[%s23601_s0 + $0x4] ss:$12 sps:$4 sm:$0xff]  }
 0x1e6   :  { %24280 = vst [vmem:[#allocation38_spill] sm:$0xff] %v16618_v19  ;;  %v1658_v0 = vpop.f32.mrf.mxu0  ;;  %v24289_v20 = vmax.f32 %v24287_v27, %v24288_v18 }
 0x1e7   :  { %v16632_v3 = vpop.f32.mrf.mxu1  ;;  %v16637_v13 = vmax.f32 %v24281_v11, %v1990_v37  ;;  %v1992_v4 = vadd.f32 %v16332_v42, %v1658_v0  ;;  %v16645_v53 = vmax.f32 %v24285_v62, %v1988_v61  ;;  %v14636_v42 = vld [vmem:[%s23601_s0 + $0x2b8] ss:$12 sps:$4 sm:$0xff]   ;;  %v16661_v61 = vld [vmem:[%s23601_s0 + $0x230] ss:$12 sps:$4 sm:$0xff]   ;;  %v24292_v37 = vld [vmem:[#allocation51_spill] sm:$0xff] }
 0x1e8   :  { %v1660_v58 = vpop.f32.mrf.mxu0  ;;  %24291 = vst [vmem:[#allocation42_spill] sm:$0xff] %v16661_v61  ;;  %v24293_v0 = vld [vmem:[#allocation65_spill] sm:$0xff] }
 0x1e9   :  { %24282 = vst [vmem:[#allocation41_spill] sm:$0xff] %v16637_v13  ;;  %v16640_v56 = vpop.f32.mrf.mxu1  ;;  %24286 = vst [vmem:[#allocation9_spill] sm:$0xff] %v16645_v53  ;;  %v16650_v47 = vmax.f32 %v24289_v20, %v1992_v4  ;;  %v1994_v28 = vadd.f32 %v16340_v51, %v1660_v58  ;;  %v24294_v11 = vmax.f32 %v24292_v37, %v24293_v0  ;;  %v24296_v20 = vld [vmem:[#allocation53_spill] sm:$0xff] }
 0x1ea   :  { %v1664_v44 = vpop.f32.mrf.mxu0  ;;  %11818 = vmatmul.mubr.msk.bf16.gmra.mxu0 %vm1249_vm0, %v16661_v61 }
 0x1eb   :  { %24290 = vst [vmem:[#allocation11_spill] sm:$0xff] %v16650_v47  ;;  %v16653_v17 = vpop.f32.mrf.mxu1  ;;  %2329 = vmatmul.mubr.bf16.gmra.mxu1 %v14636_v42  ;;  %v16668_v51 = vmax.f32 %v24294_v11, %v1994_v28  ;;  %v13143_v4 = vpack.i.bf16 %v16650_v47, %v16645_v53  ;;  %2611 = vmatprep.mubr.bf16.mxu0 %v24065_v7  ;;  %v24297_v42 = vld [vmem:[#allocation17_spill] sm:$0xff]  ;;  %v24304_v47 = vld [vmem:[#allocation54_spill] sm:$0xff] }
 0x1ec   :  { %v1666_v58 = vpop.f32.mrf.mxu0  ;;  %2704 = vmatprep.mubr.bf16.mxu1 %v14638_v30  ;;  %v1998_v62 = vadd.f32 %v16353_v6, %v1664_v44  ;;  %v24298_v37 = vmax.f32 %v24296_v20, %v24297_v42  ;;  %v24300_v6 = vld [vmem:[#allocation52_spill] sm:$0xff]  ;;  %v24301_v44 = vld [vmem:[#allocation66_spill] sm:$0xff] }
 0x1ed   :  { %24295 = vst [vmem:[#allocation61_spill] sm:$0xff] %v16668_v51  ;;  %v16673_v23 = vpop.f32.mrf.mxu1  ;;  %v2000_v27 = vadd.f32 %v16375_v63, %v1666_v58  ;;  %13144 = vrot.lane.b32.xlu1 %v13143_v4, %s14715_s30  ;;  %13139 = vrot.lane.b32.xlu0 %v13143_v4, %s14714_s29  ;;  %v24302_v63 = vmax.f32 %v24300_v6, %v24301_v44  ;;  %v24305_v4 = vld [vmem:[#allocation67_spill] sm:$0xff] }
 0x1ee   :  { %v1668_v28 = vpop.f32.mrf.mxu0  ;;  %v24306_v51 = vmax.f32 %v24304_v47, %v24305_v4  ;;  %v24309_v47 = vld [vmem:[#allocation55_spill] sm:$0xff] }
 0x1ef   :  { %v16682_v18 = vpop.f32.mrf.mxu1  ;;  %v16687_v0 = vmax.f32 %v24298_v37, %v2000_v27  ;;  %v2002_v11 = vadd.f32 %v16382_v25, %v1668_v28  ;;  %v16695_v58 = vmax.f32 %v24302_v63, %v1998_v62  ;;  %v16708_v25 = vld [vmem:[%s23601_s0 + $0x248] ss:$12 sps:$4 sm:$0xff]   ;;  %v14640_v62 = vld [vmem:[%s23601_s0] ss:$12 sps:$4 sm:$0xff]  }
 0x1f0   :  { %v1670_v53 = vpop.f32.mrf.mxu0  ;;  %24308 = vst [vmem:[#allocation13_spill] sm:$0xff] %v16708_v25  ;;  %v14641_v6 = vld [vmem:[%s23601_s0 + $0x1c] ss:$12 sps:$4 sm:$0xff]  }
 0x1f1   :  { %24299 = vst [vmem:[#allocation44_spill] sm:$0xff] %v16687_v0  ;;  %v16690_v30 = vpop.f32.mrf.mxu1  ;;  %24303 = vst [vmem:[#allocation43_spill] sm:$0xff] %v16695_v58  ;;  %v16700_v13 = vmax.f32 %v24306_v51, %v2002_v11  ;;  %v2004_v19 = vadd.f32 %v16390_v14, %v1670_v53  ;;  %v24310_v51 = vld [vmem:[#allocation68_spill] sm:$0xff] }
 0x1f2   :  { %v2373_v27 = vpop.f32.mrf.mxu0  ;;  %11819 = vmatmul.mubr.msk.bf16.gmra.mxu0 %vm1249_vm0, %v16708_v25  ;;  %v24311_v28 = vmax.f32 %v24309_v47, %v24310_v51  ;;  %v16751_v51 = vld [vmem:[%s23601_s0 + $0x260] ss:$12 sps:$4 sm:$0xff]  }
 0x1f3   :  { %24307 = vst [vmem:[#allocation62_spill] sm:$0xff] %v16700_v13  ;;  %v16703_v20 = vpop.f32.mrf.mxu1  ;;  %2705 = vmatmul.mubr.bf16.vlgmr.msra.gmra.mxu1 %v14640_v62  ;;  %v16721_v53 = vadd.f32 %v2373_v27, %v16403_v31  ;;  %v13153_v42 = vpack.i.bf16 %v16700_v13, %v16695_v58  ;;  %2621 = vmatprep.mubr.bf16.mxu0 %v24065_v7  ;;  %24314 = vst [vmem:[#allocation47_spill] sm:$0xff] %v16751_v51 }
 0x1f4   :  { %v16718_v14 = vmax.f32 %v24311_v28, %v2004_v19  ;;  %v2375_v11 = vpop.f32.mrf.mxu0  ;;  %2712 = vmatprep.mubr.bf16.mxu1 %v14641_v6 }
 0x1f5   :  { %v16726_v37 = vpop.f32.mrf.mxu1  ;;  %v16732_v44 = vadd.f32 %v2375_v11, %v16425_v24  ;;  %13154 = vrot.lane.b32.xlu1 %v13153_v42, %s14715_s30  ;;  %13149 = vrot.lane.b32.xlu0 %v13153_v42, %s14714_s29 }
 0x1f6   :  { %24312 = vst [vmem:[#allocation46_spill] sm:$0xff] %v16718_v14  ;;  %v2377_v19 = vpop.f32.mrf.mxu0 }
 0x1f7   :  { %v16736_v31 = vpop.f32.mrf.mxu1  ;;  %v16739_v63 = vadd.f32 %v2377_v19, %v16432_v54  ;;  %v14643_v54 = vld [vmem:[%s23601_s0 + $0x18] ss:$12 sps:$4 sm:$0xff]  }
 0x1f8   :  { %v2379_v27 = vpop.f32.mrf.mxu0 }
 0x1f9   :  { %v16741_v4 = vpop.f32.mrf.mxu1  ;;  %v16744_v62 = vadd.f32 %v2379_v27, %v16440_v29  ;;  %v14644_v29 = vld [vmem:[%s23601_s0 + $0x34] ss:$12 sps:$4 sm:$0xff]  }
 0x1fa   :  { %v2383_v24 = vpop.f32.mrf.mxu0  ;;  %11820 = vmatmul.mubr.msk.bf16.gmra.mxu0 %vm1249_vm0, %v16751_v51 }
 0x1fb   :  { %24313 = vst [vmem:[#allocation45_spill] sm:$0xff] %v16744_v62  ;;  %v16746_v47 = vpop.f32.mrf.mxu1  ;;  %2713 = vmatmul.mubr.bf16.gmra.mxu1 %v14643_v54  ;;  %v16759_v28 = vadd.f32 %v2383_v24, %v16453_v60  ;;  %2631 = vmatprep.mubr.bf16.mxu0 %v24065_v7 }
 0x1fc   :  { %2720 = vmatprep.mubr.bf16.mxu1 %v14644_v29  ;;  %v2385_v11 = vpop.f32.mrf.mxu0 }
 0x1fd   :  { %v16765_v42 = vpop.f32.mrf.mxu1  ;;  %v16768_v6 = vadd.f32 %v2385_v11, %v16475_v8  ;;  %v16785_v8 = vld [vmem:[%s23601_s0 + $0x278] ss:$12 sps:$4 sm:$0xff]  }
 0x1fe   :  { %v2387_v27 = vpop.f32.mrf.mxu0  ;;  %24316 = vst [vmem:[#allocation64_spill] sm:$0xff] %v16785_v8 }
 0x1ff   :  { %v16770_v19 = vpop.f32.mrf.mxu1  ;;  %v16773_v54 = vadd.f32 %v2387_v27, %v16482_v41  ;;  %v14646_v41 = vld [vmem:[%s23601_s0 + $0x30] ss:$12 sps:$4 sm:$0xff]  }
 0x200   :  { %v2389_v24 = vpop.f32.mrf.mxu0 }
 0x201   :  { %v16775_v60 = vpop.f32.mrf.mxu1  ;;  %v16778_v13 = vadd.f32 %v2389_v24, %v16490_v36  ;;  %v14647_v36 = vld [vmem:[%s23601_s0 + $0x4c] ss:$12 sps:$4 sm:$0xff]  }
 0x202   :  { %v2393_v29 = vpop.f32.mrf.mxu0  ;;  %11821 = vmatmul.mubr.msk.bf16.gmra.mxu0 %vm1249_vm0, %v16785_v8 }
 0x203   :  { %24315 = vst [vmem:[#allocation63_spill] sm:$0xff] %v16778_v13  ;;  %v16780_v58 = vpop.f32.mrf.mxu1  ;;  %2721 = vmatmul.mubr.bf16.gmra.mxu1 %v14646_v41  ;;  %v16793_v11 = vadd.f32 %v2393_v29, %v16503_v57  ;;  %2641 = vmatprep.mubr.bf16.mxu0 %v24065_v7  ;;  %v14684_v13 = vld [vmem:[%s23601_s0 + $0x168] ss:$12 sps:$4 sm:$0xff]  }
 0x204   :  { %2728 = vmatprep.mubr.bf16.mxu1 %v14647_v36  ;;  %v2395_v24 = vpop.f32.mrf.mxu0 }
 0x205   :  { %v16799_v27 = vpop.f32.mrf.mxu1  ;;  %v16802_v14 = vadd.f32 %v2395_v24, %v16525_v55  ;;  %v16819_v55 = vld [vmem:[%s23601_s0 + $0x290] ss:$12 sps:$4 sm:$0xff]  }
 0x206   :  { %v2397_v21 = vpop.f32.mrf.mxu0  ;;  %24318 = vst [vmem:[#allocation48_spill] sm:$0xff] %v16819_v55 }
 0x207   :  { %v16804_v0 = vpop.f32.mrf.mxu1  ;;  %v16807_v41 = vadd.f32 %v2397_v21, %v16532_v35  ;;  %v14649_v35 = vld [vmem:[%s23601_s0 + $0x48] ss:$12 sps:$4 sm:$0xff]  }
 0x208   :  { %v2399_v29 = vpop.f32.mrf.mxu0 }
 0x209   :  { %v16809_v57 = vpop.f32.mrf.mxu1  ;;  %v16812_v59 = vadd.f32 %v2399_v29, %v16540_v26  ;;  %v14650_v26 = vld [vmem:[%s23601_s0 + $0x64] ss:$12 sps:$4 sm:$0xff]  }
 0x20a   :  { %v2403_v36 = vpop.f32.mrf.mxu0  ;;  %11822 = vmatmul.mubr.msk.bf16.gmra.mxu0 %vm1249_vm0, %v16819_v55 }
 0x20b   :  { %24317 = vst [vmem:[#allocation49_spill] sm:$0xff] %v16812_v59  ;;  %v16814_v40 = vpop.f32.mrf.mxu1  ;;  %2729 = vmatmul.mubr.bf16.gmra.mxu1 %v14649_v35  ;;  %v16827_v21 = vadd.f32 %v2403_v36, %v16553_v33  ;;  %2651 = vmatprep.mubr.bf16.mxu0 %v24065_v7 }
 0x20c   :  { %2736 = vmatprep.mubr.bf16.mxu1 %v14650_v26  ;;  %v2405_v29 = vpop.f32.mrf.mxu0 }
 0x20d   :  { %v16833_v24 = vpop.f32.mrf.mxu1  ;;  %v16836_v38 = vadd.f32 %v2405_v29, %v16575_v10  ;;  %v16853_v10 = vld [vmem:[%s23601_s0 + $0x2a8] ss:$12 sps:$4 sm:$0xff]  }
 0x20e   :  { %v2407_v32 = vpop.f32.mrf.mxu0  ;;  %24320 = vst [vmem:[#allocation15_spill] sm:$0xff] %v16853_v10 }
 0x20f   :  { %v16838_v1 = vpop.f32.mrf.mxu1  ;;  %v16841_v35 = vadd.f32 %v2407_v32, %v16582_v45  ;;  %v14652_v32 = vld [vmem:[%s23601_s0 + $0x60] ss:$12 sps:$4 sm:$0xff]  }
 0x210   :  { %v2409_v36 = vpop.f32.mrf.mxu0 }
 0x211   :  { %v16843_v33 = vpop.f32.mrf.mxu1  ;;  %v16846_v52 = vadd.f32 %v2409_v36, %v16590_v43  ;;  %v14653_v43 = vld [vmem:[%s23601_s0 + $0x7c] ss:$12 sps:$4 sm:$0xff]  }
 0x212   :  { %v2413_v26 = vpop.f32.mrf.mxu0  ;;  %11823 = vmatmul.mubr.msk.bf16.gmra.mxu0 %vm1249_vm0, %v16853_v10 }
 0x213   :  { %24319 = vst [vmem:[#allocation50_spill] sm:$0xff] %v16846_v52  ;;  %v16848_v9 = vpop.f32.mrf.mxu1  ;;  %2737 = vmatmul.mubr.bf16.gmra.mxu1 %v14652_v32  ;;  %v16861_v45 = vadd.f32 %v2413_v26, %v16603_v34  ;;  %2661 = vmatprep.mubr.bf16.mxu0 %v24065_v7 }
 0x214   :  { %2744 = vmatprep.mubr.bf16.mxu1 %v14653_v43  ;;  %v2415_v36 = vpop.f32.mrf.mxu0 }
 0x215   :  { %v16867_v29 = vpop.f32.mrf.mxu1  ;;  %v16870_v16 = vadd.f32 %v2415_v36, %v16625_v49  ;;  %v16887_v49 = vld [vmem:[%s23601_s0 + $0x2c0] ss:$12 sps:$4 sm:$0xff]   ;;  %v14657_v36 = vld [vmem:[%s23601_s0 + $0x8] ss:$12 sps:$4 sm:$0xff]  }
 0x216   :  { %v2417_v10 = vpop.f32.mrf.mxu0  ;;  %24322 = vst [vmem:[#allocation65_spill] sm:$0xff] %v16887_v49 }
 0x217   :  { %v16872_v48 = vpop.f32.mrf.mxu1  ;;  %v16875_v32 = vadd.f32 %v2417_v10, %v16632_v3  ;;  %v14655_v3 = vld [vmem:[%s23601_s0 + $0x78] ss:$12 sps:$4 sm:$0xff]  }
 0x218   :  { %v2419_v26 = vpop.f32.mrf.mxu0 }
 0x219   :  { %v16877_v34 = vpop.f32.mrf.mxu1  ;;  %v16880_v7 = vadd.f32 %v2419_v26, %v16640_v56  ;;  %v14656_v56 = vld [vmem:[%s23601_s0 + $0x94] ss:$12 sps:$4 sm:$0xff]  }
 0x21a   :  { %v2423_v43 = vpop.f32.mrf.mxu0  ;;  %11824 = vmatmul.mubr.msk.bf16.gmra.mxu0 %vm1249_vm0, %v16887_v49 }
 0x21b   :  { %24321 = vst [vmem:[#allocation51_spill] sm:$0xff] %v16880_v7  ;;  %v16882_v55 = vpop.f32.mrf.mxu1  ;;  %2745 = vmatmul.mubr.bf16.gmra.mxu1 %v14655_v3  ;;  %v16895_v10 = vadd.f32 %v2423_v43, %v16653_v17  ;;  %12915 = vmatprep.mubr.msk.bf16.mxu0 %vm1249_vm0, %v14657_v36 }
 0x21c   :  { %2752 = vmatprep.mubr.bf16.mxu1 %v14656_v56  ;;  %v2425_v49 = vpop.f32.mrf.mxu0 }
 0x21d   :  { %24323 = vst [vmem:[#allocation53_spill] sm:$0xff] %v16895_v10  ;;  %v16904_v26 = vpop.f32.mrf.mxu1  ;;  %v16907_v8 = vadd.f32 %v2425_v49, %v16673_v23  ;;  %v14658_v23 = vld [vmem:[%s23601_s0 + $0x90] ss:$12 sps:$4 sm:$0xff]   ;;  %v14659_v49 = vld [vmem:[%s23601_s0 + $0x20] ss:$12 sps:$4 sm:$0xff]  }
 0x21e   :  { %v2427_v17 = vpop.f32.mrf.mxu0 }
 0x21f   :  { %24324 = vst [vmem:[#allocation17_spill] sm:$0xff] %v16907_v8  ;;  %v16909_v3 = vpop.f32.mrf.mxu1  ;;  %v16912_v43 = vadd.f32 %v2427_v17, %v16682_v18  ;;  %v14661_v17 = vld [vmem:[%s23601_s0 + $0x38] ss:$12 sps:$4 sm:$0xff]  }
 0x220   :  { %v2429_v56 = vpop.f32.mrf.mxu0 }
 0x221   :  { %24325 = vst [vmem:[#allocation52_spill] sm:$0xff] %v16912_v43  ;;  %v16914_v51 = vpop.f32.mrf.mxu1  ;;  %v16917_v25 = vadd.f32 %v2429_v56, %v16690_v30  ;;  %v14660_v30 = vld [vmem:[%s23601_s0 + $0xac] ss:$12 sps:$4 sm:$0xff]  }
 0x222   :  { %v2433_v36 = vpop.f32.mrf.mxu0  ;;  %12916 = vmatmul.mubr.msk.bf16.vlgmr.msra.gmra.mxu0 %vm1249_vm0, %v14659_v49 }
 0x223   :  { %24326 = vst [vmem:[#allocation66_spill] sm:$0xff] %v16917_v25  ;;  %v16919_v61 = vpop.f32.mrf.mxu1  ;;  %2753 = vmatmul.mubr.bf16.gmra.mxu1 %v14658_v23  ;;  %v16929_v18 = vadd.f32 %v2433_v36, %v16703_v20  ;;  %12919 = vmatprep.mubr.msk.bf16.mxu0 %vm1249_vm0, %v14661_v17 }
 0x224   :  { %2760 = vmatprep.mubr.bf16.mxu1 %v14660_v30  ;;  %v2435_v23 = vpop.f32.mrf.mxu0 }
 0x225   :  { %24327 = vst [vmem:[#allocation54_spill] sm:$0xff] %v16929_v18  ;;  %v16938_v56 = vpop.f32.mrf.mxu1  ;;  %v16941_v12 = vadd.f32 %v2435_v23, %v16726_v37  ;;  %v14662_v37 = vld [vmem:[%s23601_s0 + $0xa8] ss:$12 sps:$4 sm:$0xff]   ;;  %v14663_v23 = vld [vmem:[%s23601_s0 + $0x50] ss:$12 sps:$4 sm:$0xff]  }
 0x226   :  { %v2437_v20 = vpop.f32.mrf.mxu0 }
 0x227   :  { %24328 = vst [vmem:[#allocation67_spill] sm:$0xff] %v16941_v12  ;;  %v16943_v49 = vpop.f32.mrf.mxu1  ;;  %v16946_v36 = vadd.f32 %v2437_v20, %v16736_v31  ;;  %v14665_v20 = vld [vmem:[%s23601_s0 + $0x68] ss:$12 sps:$4 sm:$0xff]  }
 0x228   :  { %v2439_v30 = vpop.f32.mrf.mxu0 }
 0x229   :  { %24329 = vst [vmem:[#allocation55_spill] sm:$0xff] %v16946_v36  ;;  %v16948_v18 = vpop.f32.mrf.mxu1  ;;  %v16951_v25 = vadd.f32 %v2439_v30, %v16741_v4  ;;  %v14664_v4 = vld [vmem:[%s23601_s0 + $0xc4] ss:$12 sps:$4 sm:$0xff]  }
 0x22a   :  { %v2443_v17 = vpop.f32.mrf.mxu0  ;;  %12920 = vmatmul.mubr.msk.bf16.gmra.mxu0 %vm1249_vm0, %v14663_v23 }
 0x22b   :  { %24330 = vst [vmem:[#allocation68_spill] sm:$0xff] %v16951_v25  ;;  %v16953_v50 = vpop.f32.mrf.mxu1  ;;  %2761 = vmatmul.mubr.bf16.gmra.mxu1 %v14662_v37  ;;  %v16963_v31 = vadd.f32 %v2443_v17, %v16746_v47  ;;  %12923 = vmatprep.mubr.msk.bf16.mxu0 %vm1249_vm0, %v14665_v20 }
 0x22c   :  { %2768 = vmatprep.mubr.bf16.mxu1 %v14664_v4  ;;  %v2445_v37 = vpop.f32.mrf.mxu0 }
 0x22d   :  { %24331 = vst [vmem:[#allocation70_spill] sm:$0xff] %v16963_v31  ;;  %v16972_v30 = vpop.f32.mrf.mxu1  ;;  %v16975_v25 = vadd.f32 %v2445_v37, %v16765_v42  ;;  %v14666_v42 = vld [vmem:[%s23601_s0 + $0xc0] ss:$12 sps:$4 sm:$0xff]  }
 0x22e   :  { %v2447_v47 = vpop.f32.mrf.mxu0  ;;  %v14667_v37 = vld [vmem:[%s23601_s0 + $0x80] ss:$12 sps:$4 sm:$0xff]  }
 0x22f   :  { %24332 = vst [vmem:[#allocation71_spill] sm:$0xff] %v16975_v25  ;;  %v16977_v23 = vpop.f32.mrf.mxu1  ;;  %v16980_v17 = vadd.f32 %v2447_v47, %v16770_v19  ;;  %v14669_v47 = vld [vmem:[%s23601_s0 + $0x98] ss:$12 sps:$4 sm:$0xff]  }
 0x230   :  { %v2449_v4 = vpop.f32.mrf.mxu0 }
 0x231   :  { %24333 = vst [vmem:[#allocation72_spill] sm:$0xff] %v16980_v17  ;;  %v16982_v31 = vpop.f32.mrf.mxu1  ;;  %v16985_v36 = vadd.f32 %v2449_v4, %v16775_v60  ;;  %v14668_v60 = vld [vmem:[%s23601_s0 + $0xdc] ss:$12 sps:$4 sm:$0xff]  }
 0x232   :  { %v2453_v20 = vpop.f32.mrf.mxu0  ;;  %12924 = vmatmul.mubr.msk.bf16.gmra.mxu0 %vm1249_vm0, %v14667_v37 }
 0x233   :  { %24334 = vst [vmem:[#allocation73_spill] sm:$0xff] %v16985_v36  ;;  %v16987_v12 = vpop.f32.mrf.mxu1  ;;  %2769 = vmatmul.mubr.bf16.gmra.mxu1 %v14666_v42  ;;  %v16997_v19 = vadd.f32 %v2453_v20, %v16780_v58  ;;  %12927 = vmatprep.mubr.msk.bf16.mxu0 %vm1249_vm0, %v14669_v47 }
 0x234   :  { %2776 = vmatprep.mubr.bf16.mxu1 %v14668_v60  ;;  %v2455_v42 = vpop.f32.mrf.mxu0 }
 0x235   :  { %24335 = vst [vmem:[#allocation74_spill] sm:$0xff] %v16997_v19  ;;  %v17006_v4 = vpop.f32.mrf.mxu1  ;;  %v17009_v36 = vadd.f32 %v2455_v42, %v16799_v27  ;;  %v14670_v27 = vld [vmem:[%s23601_s0 + $0xd8] ss:$12 sps:$4 sm:$0xff]   ;;  %v14671_v42 = vld [vmem:[%s23601_s0 + $0xb0] ss:$12 sps:$4 sm:$0xff]  }
 0x236   :  { %v2457_v58 = vpop.f32.mrf.mxu0 }
 0x237   :  { %24336 = vst [vmem:[#allocation75_spill] sm:$0xff] %v17009_v36  ;;  %v17011_v37 = vpop.f32.mrf.mxu1  ;;  %v17014_v20 = vadd.f32 %v2457_v58, %v16804_v0  ;;  %v14673_v58 = vld [vmem:[%s23601_s0 + $0xc8] ss:$12 sps:$4 sm:$0xff]  }
 0x238   :  { %v2459_v60 = vpop.f32.mrf.mxu0 }
 0x239   :  { %24337 = vst [vmem:[#allocation76_spill] sm:$0xff] %v17014_v20  ;;  %v17016_v19 = vpop.f32.mrf.mxu1  ;;  %v17019_v17 = vadd.f32 %v2459_v60, %v16809_v57  ;;  %v14672_v57 = vld [vmem:[%s23601_s0 + $0xf4] ss:$12 sps:$4 sm:$0xff]  }
 0x23a   :  { %v2463_v47 = vpop.f32.mrf.mxu0  ;;  %12928 = vmatmul.mubr.msk.bf16.gmra.mxu0 %vm1249_vm0, %v14671_v42 }
 0x23b   :  { %24338 = vst [vmem:[#allocation77_spill] sm:$0xff] %v17019_v17  ;;  %v17021_v25 = vpop.f32.mrf.mxu1  ;;  %2777 = vmatmul.mubr.bf16.gmra.mxu1 %v14670_v27  ;;  %v17031_v0 = vadd.f32 %v2463_v47, %v16814_v40  ;;  %12931 = vmatprep.mubr.msk.bf16.mxu0 %vm1249_vm0, %v14673_v58 }
 0x23c   :  { %2784 = vmatprep.mubr.bf16.mxu1 %v14672_v57  ;;  %v2465_v27 = vpop.f32.mrf.mxu0 }
 0x23d   :  { %24339 = vst [vmem:[#allocation78_spill] sm:$0xff] %v17031_v0  ;;  %v17040_v60 = vpop.f32.mrf.mxu1  ;;  %v17043_v17 = vadd.f32 %v2465_v27, %v16833_v24  ;;  %v14674_v24 = vld [vmem:[%s23601_s0 + $0xf0] ss:$12 sps:$4 sm:$0xff]  }
 0x23e   :  { %v2467_v40 = vpop.f32.mrf.mxu0  ;;  %v24343_v27 = vld [vmem:[#allocation36_spill] sm:$0xff] }
 0x23f   :  { %24340 = vst [vmem:[#allocation79_spill] sm:$0xff] %v17043_v17  ;;  %v17045_v42 = vpop.f32.mrf.mxu1  ;;  %v17048_v47 = vadd.f32 %v2467_v40, %v16838_v1  ;;  %v14675_v40 = vld [vmem:[%s23601_s0 + $0x10c] ss:$12 sps:$4 sm:$0xff]  }
 0x240   :  { %v2469_v57 = vpop.f32.mrf.mxu0 }
 0x241   :  { %24341 = vst [vmem:[#allocation80_spill] sm:$0xff] %v17048_v47  ;;  %v17050_v0 = vpop.f32.mrf.mxu1  ;;  %v17053_v20 = vadd.f32 %v2469_v57, %v16843_v33  ;;  %v24345_v33 = vld [vmem:[#allocation10_spill] sm:$0xff] }
 0x242   :  { %v2473_v58 = vpop.f32.mrf.mxu0  ;;  %12932 = vmatmul.mubr.msk.bf16.gmra.mxu0 %vm1249_vm0, %v24343_v27 }
 0x243   :  { %24342 = vst [vmem:[#allocation81_spill] sm:$0xff] %v17053_v20  ;;  %v17055_v36 = vpop.f32.mrf.mxu1  ;;  %2785 = vmatmul.mubr.bf16.gmra.mxu1 %v14674_v24  ;;  %v17063_v1 = vadd.f32 %v2473_v58, %v16848_v9  ;;  %12935 = vmatprep.mubr.msk.bf16.mxu0 %vm1249_vm0, %v24345_v33  ;;  %v24349_v58 = vld [vmem:[#allocation12_spill] sm:$0xff] }
 0x244   :  { %2792 = vmatprep.mubr.bf16.mxu1 %v14675_v40  ;;  %v2475_v20 = vpop.f32.mrf.mxu0 }
 0x245   :  { %24344 = vst [vmem:[#allocation36_spill] sm:$0xff] %v17063_v1  ;;  %v17070_v57 = vpop.f32.mrf.mxu1  ;;  %v17075_v47 = vadd.f32 %v2475_v20, %v16867_v29  ;;  %v14676_v1 = vld [vmem:[%s23601_s0 + $0x108] ss:$12 sps:$4 sm:$0xff]  }
 0x246   :  { %24346 = vst [vmem:[#allocation10_spill] sm:$0xff] %v17070_v57  ;;  %v2477_v9 = vpop.f32.mrf.mxu0 }
 0x247   :  { %v17077_v27 = vpop.f32.mrf.mxu1  ;;  %v17082_v40 = vadd.f32 %v2477_v9, %v16872_v48 }
 0x248   :  { %v2479_v33 = vpop.f32.mrf.mxu0 }
 0x249   :  { %24347 = vst [vmem:[#allocation82_spill] sm:$0xff] %v17082_v40  ;;  %v17084_v17 = vpop.f32.mrf.mxu1  ;;  %v17089_v24 = vadd.f32 %v2479_v33, %v16877_v34  ;;  %v14677_v34 = vld [vmem:[%s23601_s0 + $0x124] ss:$12 sps:$4 sm:$0xff]  }
 0x24a   :  { %v2483_v20 = vpop.f32.mrf.mxu0  ;;  %12936 = vmatmul.mubr.msk.bf16.gmra.mxu0 %vm1249_vm0, %v24349_v58  ;;  %v24351_v33 = vld [vmem:[#allocation14_spill] sm:$0xff] }
 0x24b   :  { %24348 = vst [vmem:[#allocation83_spill] sm:$0xff] %v17089_v24  ;;  %v17091_v29 = vpop.f32.mrf.mxu1  ;;  %2793 = vmatmul.mubr.bf16.gmra.mxu1 %v14676_v1  ;;  %v17101_v9 = vadd.f32 %v2483_v20, %v16882_v55  ;;  %12939 = vmatprep.mubr.msk.bf16.mxu0 %vm1249_vm0, %v24351_v33  ;;  %v24354_v20 = vld [vmem:[#allocation16_spill] sm:$0xff] }
 0x24c   :  { %2800 = vmatprep.mubr.bf16.mxu1 %v14677_v34  ;;  %v2485_v1 = vpop.f32.mrf.mxu0 }
 0x24d   :  { %24350 = vst [vmem:[#allocation12_spill] sm:$0xff] %v17101_v9  ;;  %v17108_v57 = vpop.f32.mrf.mxu1  ;;  %v17113_v40 = vadd.f32 %v2485_v1, %v16904_v26  ;;  %v14678_v9 = vld [vmem:[%s23601_s0 + $0x120] ss:$12 sps:$4 sm:$0xff]  }
 0x24e   :  { %v2487_v55 = vpop.f32.mrf.mxu0 }
 0x24f   :  { %v17115_v48 = vpop.f32.mrf.mxu1  ;;  %v17120_v34 = vadd.f32 %v2487_v55, %v16909_v3 }
 0x250   :  { %v2489_v33 = vpop.f32.mrf.mxu0 }
 0x251   :  { %24352 = vst [vmem:[#allocation14_spill] sm:$0xff] %v17120_v34  ;;  %v17122_v24 = vpop.f32.mrf.mxu1  ;;  %v17127_v58 = vadd.f32 %v2489_v33, %v16914_v51  ;;  %v14679_v51 = vld [vmem:[%s23601_s0 + $0x13c] ss:$12 sps:$4 sm:$0xff]   ;;  %v24356_v33 = vld [vmem:[#allocation18_spill] sm:$0xff] }
 0x252   :  { %v2493_v1 = vpop.f32.mrf.mxu0  ;;  %12940 = vmatmul.mubr.msk.bf16.gmra.mxu0 %vm1249_vm0, %v24354_v20 }
 0x253   :  { %24353 = vst [vmem:[#allocation84_spill] sm:$0xff] %v17127_v58  ;;  %v17129_v26 = vpop.f32.mrf.mxu1  ;;  %2801 = vmatmul.mubr.bf16.gmra.mxu1 %v14678_v9  ;;  %v17139_v55 = vadd.f32 %v2493_v1, %v16919_v61  ;;  %12943 = vmatprep.mubr.msk.bf16.mxu0 %vm1249_vm0, %v24356_v33 }
 0x254   :  { %2808 = vmatprep.mubr.bf16.mxu1 %v14679_v51  ;;  %v2495_v9 = vpop.f32.mrf.mxu0 }
 0x255   :  { %24355 = vst [vmem:[#allocation16_spill] sm:$0xff] %v17139_v55  ;;  %v17146_v62 = vpop.f32.mrf.mxu1  ;;  %v17151_v34 = vadd.f32 %v2495_v9, %v16938_v56  ;;  %v14680_v55 = vld [vmem:[%s23601_s0 + $0x138] ss:$12 sps:$4 sm:$0xff]  }
 0x256   :  { %v2497_v61 = vpop.f32.mrf.mxu0 }
 0x257   :  { %v17153_v3 = vpop.f32.mrf.mxu1  ;;  %v17158_v51 = vadd.f32 %v2497_v61, %v16943_v49 }
 0x258   :  { %v2499_v33 = vpop.f32.mrf.mxu0 }
 0x259   :  { %v17160_v58 = vpop.f32.mrf.mxu1  ;;  %v17165_v20 = vadd.f32 %v2499_v33, %v16948_v18  ;;  %v14681_v18 = vld [vmem:[%s23601_s0 + $0x154] ss:$12 sps:$4 sm:$0xff]  }
 0x25a   :  { %v2503_v9 = vpop.f32.mrf.mxu0  ;;  %12944 = vmatmul.mubr.msk.bf16.gmra.mxu0 %vm1249_vm0, %v16267_v39 }
 0x25b   :  { %24357 = vst [vmem:[#allocation18_spill] sm:$0xff] %v17165_v20  ;;  %v17167_v56 = vpop.f32.mrf.mxu1  ;;  %2809 = vmatmul.mubr.bf16.gmra.mxu1 %v14680_v55  ;;  %v17177_v61 = vadd.f32 %v2503_v9, %v16953_v50  ;;  %12947 = vmatprep.mubr.msk.bf16.mxu0 %vm1249_vm0, %v16313_v46  ;;  %v14120_v55 = vld [vmem:[%s23602_s3 + $0x74] ss:$8 sps:$4 sm:$0xff]   ;;  %v14118_v50 = vld [vmem:[%s23602_s3 + $0x70] ss:$8 sps:$4 sm:$0xff]  }
 0x25c   :  { %2816 = vmatprep.mubr.bf16.mxu1 %v14681_v18  ;;  %v2505_v39 = vpop.f32.mrf.mxu0  ;;  %5030 = vmatprep.subr.bf16.mxu0 %v14120_v55  ;;  %v14123_v20 = vld [vmem:[%s23602_s3 + $0x64] ss:$8 sps:$4 sm:$0xff]  }
 0x25d   :  { %v17187_v33 = vpop.f32.mrf.mxu1  ;;  %v17195_v49 = vadd.f32 %v2505_v39, %v16972_v30  ;;  %5031 = vmatpush1.bf16.msra.mxu0 %v14118_v50  ;;  %v14121_v30 = vld [vmem:[%s23602_s3 + $0x60] ss:$8 sps:$4 sm:$0xff]  }
 0x25e   :  { %v2507_v46 = vpop.f32.mrf.mxu0  ;;  %5032 = vmatprep.subr.bf16.mxu0 %v14123_v20  ;;  %v14126_v20 = vld [vmem:[%s23602_s3 + $0x54] ss:$8 sps:$4 sm:$0xff]  }
 0x25f   :  { %v17197_v18 = vpop.f32.mrf.mxu1  ;;  %v17202_v1 = vadd.f32 %v2507_v46, %v16977_v23  ;;  %v14682_v46 = vld [vmem:[%s23601_s0 + $0x150] ss:$12 sps:$4 sm:$0xff]  }
 0x260   :  { %v2509_v9 = vpop.f32.mrf.mxu0 }
 0x261   :  { %v17207_v59 = vpop.f32.mrf.mxu1  ;;  %v17215_v39 = vadd.f32 %v2509_v9, %v16982_v31  ;;  %v14683_v31 = vld [vmem:[%s23601_s0 + $0x16c] ss:$12 sps:$4 sm:$0xff]   ;;  %5033 = vmatpush1.bf16.msra.mxu0 %v14121_v30 }
 0x262   :  { %v2513_v50 = vpop.f32.mrf.mxu0  ;;  %12948 = vmatmul.mubr.msk.bf16.gmra.mxu0 %vm1249_vm0, %v16361_v22  ;;  %5034 = vmatprep.subr.bf16.mxu0 %v14126_v20  ;;  %v14129_v30 = vld [vmem:[%s23602_s3 + $0x44] ss:$8 sps:$4 sm:$0xff]  }
 0x263   :  { %24358 = vst [vmem:[#allocation85_spill] sm:$0xff] %v17215_v39  ;;  %v17217_v23 = vpop.f32.mrf.mxu1  ;;  %2817 = vmatmul.mubr.bf16.gmra.mxu1 %v14682_v46  ;;  %v17227_v55 = vadd.f32 %v2513_v50, %v16987_v12  ;;  %12951 = vmatprep.mubr.msk.bf16.mxu0 %vm1249_vm0, %v16411_v15  ;;  %v14124_v12 = vld [vmem:[%s23602_s3 + $0x50] ss:$8 sps:$4 sm:$0xff]  }
 0x264   :  { %2824 = vmatprep.mubr.bf16.mxu1 %v14683_v31  ;;  %v2515_v22 = vpop.f32.mrf.mxu0 }
 0x265   :  { %v17237_v9 = vpop.f32.mrf.mxu1  ;;  %v17245_v46 = vadd.f32 %v2515_v22, %v17006_v4  ;;  %5035 = vmatpush1.bf16.msra.mxu0 %v14124_v12  ;;  %v14127_v4 = vld [vmem:[%s23602_s3 + $0x40] ss:$8 sps:$4 sm:$0xff]  }
 0x266   :  { %v2517_v31 = vpop.f32.mrf.mxu0  ;;  %5036 = vmatprep.subr.bf16.mxu0 %v14129_v30  ;;  %v14686_v12 = vld [vmem:[%s23601_s0 + $0x180] ss:$12 sps:$4 sm:$0xff]  }
 0x267   :  { %v17247_v15 = vpop.f32.mrf.mxu1  ;;  %v17252_v39 = vadd.f32 %v2517_v31, %v17011_v37 }
 0x268   :  { %v2519_v50 = vpop.f32.mrf.mxu0 }
 0x269   :  { %v17257_v52 = vpop.f32.mrf.mxu1  ;;  %v17265_v22 = vadd.f32 %v2519_v50, %v17016_v19  ;;  %v14685_v19 = vld [vmem:[%s23601_s0 + $0x184] ss:$12 sps:$4 sm:$0xff]   ;;  %5037 = vmatpush1.bf16.msra.mxu0 %v14127_v4 }
 0x26a   :  { %v2523_v31 = vpop.f32.mrf.mxu0  ;;  %12952 = vmatmul.mubr.msk.bf16.gmra.mxu0 %vm1249_vm0, %v16461_v5  ;;  %v14135_v4 = vld [vmem:[%s23602_s3 + $0x24] ss:$8 sps:$4 sm:$0xff]  }
 0x26b   :  { %24359 = vst [vmem:[#allocation86_spill] sm:$0xff] %v17265_v22  ;;  %v17267_v37 = vpop.f32.mrf.mxu1  ;;  %2825 = vmatmul.mubr.bf16.gmra.mxu1 %v14684_v13  ;;  %v17277_v20 = vadd.f32 %v2523_v31, %v17021_v25  ;;  %12955 = vmatprep.mubr.msk.bf16.mxu0 %vm1249_vm0, %v16511_v2  ;;  %v14132_v13 = vld [vmem:[%s23602_s3 + $0x34] ss:$8 sps:$4 sm:$0xff]   ;;  %v14130_v25 = vld [vmem:[%s23602_s3 + $0x30] ss:$8 sps:$4 sm:$0xff]  }
 0x26c   :  { %2832 = vmatprep.mubr.bf16.mxu1 %v14685_v19  ;;  %v2525_v5 = vpop.f32.mrf.mxu0  ;;  %5038 = vmatprep.subr.bf16.mxu0 %v14132_v13 }
 0x26d   :  { %24360 = vst [vmem:[#allocation87_spill] sm:$0xff] %v17277_v20  ;;  %v17287_v50 = vpop.f32.mrf.mxu1  ;;  %v17295_v31 = vadd.f32 %v2525_v5, %v17040_v60  ;;  %5039 = vmatpush1.bf16.msra.mxu0 %v14130_v25  ;;  %v14133_v60 = vld [vmem:[%s23602_s3 + $0x20] ss:$8 sps:$4 sm:$0xff]   ;;  %v24364_v25 = vld [vmem:[#allocation37_spill] sm:$0xff] }
 0x26e   :  { %v2527_v19 = vpop.f32.mrf.mxu0  ;;  %5040 = vmatprep.subr.bf16.mxu0 %v14135_v4 }
 0x26f   :  { %24361 = vst [vmem:[#allocation88_spill] sm:$0xff] %v17295_v31  ;;  %v17297_v2 = vpop.f32.mrf.mxu1  ;;  %v17302_v22 = vadd.f32 %v2527_v19, %v17045_v42 }
 0x270   :  { %v2529_v30 = vpop.f32.mrf.mxu0 }
 0x271   :  { %24362 = vst [vmem:[#allocation89_spill] sm:$0xff] %v17302_v22  ;;  %v17307_v7 = vpop.f32.mrf.mxu1  ;;  %v17315_v5 = vadd.f32 %v2529_v30, %v17050_v0  ;;  %v14687_v0 = vld [vmem:[%s23601_s0 + $0x19c] ss:$12 sps:$4 sm:$0xff]   ;;  %v24367_v30 = vld [vmem:[#allocation40_spill] sm:$0xff]  ;;  %5041 = vmatpush1.bf16.msra.mxu0 %v14133_v60  ;;  %v14141_v60 = vld [vmem:[%s23602_s3 + $0x4] ss:$8 sps:$4 sm:$0xff]  }
 0x272   :  { %v2533_v19 = vpop.f32.mrf.mxu0  ;;  %12956 = vmatmul.mubr.msk.bf16.gmra.mxu0 %vm1249_vm0, %v24364_v25 }
 0x273   :  { %24363 = vst [vmem:[#allocation90_spill] sm:$0xff] %v17315_v5  ;;  %v17317_v42 = vpop.f32.mrf.mxu1  ;;  %2833 = vmatmul.mubr.bf16.gmra.mxu1 %v14686_v12  ;;  %v17327_v13 = vadd.f32 %v2533_v19, %v17055_v36  ;;  %12959 = vmatprep.mubr.msk.bf16.mxu0 %vm1249_vm0, %v24367_v30  ;;  %v14138_v12 = vld [vmem:[%s23602_s3 + $0x14] ss:$8 sps:$4 sm:$0xff]   ;;  %v14136_v36 = vld [vmem:[%s23602_s3 + $0x10] ss:$8 sps:$4 sm:$0xff]   ;;  %v24369_v5 = vld [vmem:[#allocation10_spill] sm:$0xff] }
 0x274   :  { %2840 = vmatprep.mubr.bf16.mxu1 %v14687_v0  ;;  %v2535_v25 = vpop.f32.mrf.mxu0  ;;  %5042 = vmatprep.subr.bf16.mxu0 %v14138_v12 }
 0x275   :  { %24366 = vst [vmem:[#allocation37_spill] sm:$0xff] %v17327_v13  ;;  %v17337_v4 = vpop.f32.mrf.mxu1  ;;  %v17345_v0 = vadd.f32 %v2535_v25, %v24369_v5  ;;  %5043 = vmatpush1.bf16.msra.mxu0 %v14136_v36  ;;  %v14139_v5 = vld [vmem:[%s23602_s3] ss:$8 sps:$4 sm:$0xff]  }
 0x276   :  { %v2537_v31 = vpop.f32.mrf.mxu0  ;;  %5044 = vmatprep.subr.bf16.mxu0 %v14141_v60  ;;  %v24375_v36 = vld [vmem:[#allocation42_spill] sm:$0xff] }
 0x277   :  { %24370 = vst [vmem:[#allocation40_spill] sm:$0xff] %v17345_v0  ;;  %v17347_v30 = vpop.f32.mrf.mxu1  ;;  %v17352_v20 = vadd.f32 %v2537_v31, %v17077_v27  ;;  %v14688_v0 = vld [vmem:[%s23601_s0 + $0x198] ss:$12 sps:$4 sm:$0xff]  }
 0x278   :  { %v2539_v8 = vpop.f32.mrf.mxu0 }
 0x279   :  { %24372 = vst [vmem:[#allocation10_spill] sm:$0xff] %v17352_v20  ;;  %v17357_v10 = vpop.f32.mrf.mxu1  ;;  %v17365_v43 = vadd.f32 %v2539_v8, %v17084_v17  ;;  %v14689_v8 = vld [vmem:[%s23601_s0 + $0x1b4] ss:$12 sps:$4 sm:$0xff]   ;;  %v24378_v17 = vld [vmem:[#allocation13_spill] sm:$0xff]  ;;  %5045 = vmatpush1.bf16.msra.mxu0 %v14139_v5  ;;  %v14147_v5 = vld [vmem:[%s23602_s3 + $0xe4] ss:$8 sps:$4 sm:$0xff]  }
 0x27a   :  { %v2543_v31 = vpop.f32.mrf.mxu0  ;;  %12960 = vmatmul.mubr.msk.bf16.gmra.mxu0 %vm1249_vm0, %v24375_v36 }
 0x27b   :  { %24374 = vst [vmem:[#allocation91_spill] sm:$0xff] %v17365_v43  ;;  %v17367_v27 = vpop.f32.mrf.mxu1  ;;  %2841 = vmatmul.mubr.bf16.gmra.mxu1 %v14688_v0  ;;  %v17377_v25 = vadd.f32 %v2543_v31, %v17091_v29  ;;  %12963 = vmatprep.mubr.msk.bf16.mxu0 %vm1249_vm0, %v24378_v17  ;;  %v14144_v0 = vld [vmem:[%s23602_s3 + $0xf4] ss:$8 sps:$4 sm:$0xff]   ;;  %v14142_v29 = vld [vmem:[%s23602_s3 + $0xf0] ss:$8 sps:$4 sm:$0xff]  }
 0x27c   :  { %2848 = vmatprep.mubr.bf16.mxu1 %v14689_v8  ;;  %v2545_v36 = vpop.f32.mrf.mxu0  ;;  %5046 = vmatprep.subr.bf16.mxu0 %v14144_v0 }
 0x27d   :  { %24377 = vst [vmem:[#allocation42_spill] sm:$0xff] %v17377_v25  ;;  %v17387_v60 = vpop.f32.mrf.mxu1  ;;  %v17395_v8 = vadd.f32 %v2545_v36, %v17108_v57  ;;  %5047 = vmatpush2.bf16.msra.mxu0 %v14142_v29  ;;  %v14145_v57 = vld [vmem:[%s23602_s3 + $0xe0] ss:$8 sps:$4 sm:$0xff]  }
 0x27e   :  { %v2547_v43 = vpop.f32.mrf.mxu0  ;;  %5048 = vmatprep.subr.bf16.mxu0 %v14147_v5  ;;  %v24385_v29 = vld [vmem:[#allocation47_spill] sm:$0xff] }
 0x27f   :  { %24380 = vst [vmem:[#allocation13_spill] sm:$0xff] %v17395_v8  ;;  %v17397_v17 = vpop.f32.mrf.mxu1  ;;  %v17402_v12 = vadd.f32 %v2547_v43, %v17115_v48  ;;  %v14690_v8 = vld [vmem:[%s23601_s0 + $0x1b0] ss:$12 sps:$4 sm:$0xff]  }
 0x280   :  { %v2549_v13 = vpop.f32.mrf.mxu0 }
 0x281   :  { %24382 = vst [vmem:[#allocation92_spill] sm:$0xff] %v17402_v12  ;;  %v17407_v19 = vpop.f32.mrf.mxu1  ;;  %v17415_v20 = vadd.f32 %v2549_v13, %v17122_v24  ;;  %v14691_v24 = vld [vmem:[%s23601_s0 + $0x1cc] ss:$12 sps:$4 sm:$0xff]   ;;  %v24388_v13 = vld [vmem:[#allocation64_spill] sm:$0xff]  ;;  %5049 = vmatpush2.bf16.msra.mxu0 %v14145_v57 }
 0x282   :  { %v2553_v48 = vpop.f32.mrf.mxu0  ;;  %12964 = vmatmul.mubr.msk.bf16.gmra.mxu0 %vm1249_vm0, %v24385_v29  ;;  %v14153_v57 = vld [vmem:[%s23602_s3 + $0xc4] ss:$8 sps:$4 sm:$0xff]  }
 0x283   :  { %24384 = vst [vmem:[#allocation93_spill] sm:$0xff] %v17415_v20  ;;  %v17417_v43 = vpop.f32.mrf.mxu1  ;;  %2849 = vmatmul.mubr.bf16.gmra.mxu1 %v14690_v8  ;;  %v17427_v36 = vadd.f32 %v2553_v48, %v17129_v26  ;;  %12967 = vmatprep.mubr.msk.bf16.mxu0 %vm1249_vm0, %v24388_v13  ;;  %v14150_v8 = vld [vmem:[%s23602_s3 + $0xd4] ss:$8 sps:$4 sm:$0xff]   ;;  %v14148_v26 = vld [vmem:[%s23602_s3 + $0xd0] ss:$8 sps:$4 sm:$0xff]  }
 0x284   :  { %2856 = vmatprep.mubr.bf16.mxu1 %v14691_v24  ;;  %v2555_v29 = vpop.f32.mrf.mxu0  ;;  %5050 = vmatprep.subr.bf16.mxu0 %v14150_v8 }
 0x285   :  { %24387 = vst [vmem:[#allocation47_spill] sm:$0xff] %v17427_v36  ;;  %v17437_v5 = vpop.f32.mrf.mxu1  ;;  %v17445_v24 = vadd.f32 %v2555_v29, %v17146_v62  ;;  %5051 = vmatpush2.bf16.msra.mxu0 %v14148_v26  ;;  %v14151_v62 = vld [vmem:[%s23602_s3 + $0xc0] ss:$8 sps:$4 sm:$0xff]   ;;  %v24395_v26 = vld [vmem:[#allocation48_spill] sm:$0xff] }
 0x286   :  { %v2557_v20 = vpop.f32.mrf.mxu0  ;;  %5052 = vmatprep.subr.bf16.mxu0 %v14153_v57 }
 0x287   :  { %24390 = vst [vmem:[#allocation64_spill] sm:$0xff] %v17445_v24  ;;  %v17447_v13 = vpop.f32.mrf.mxu1  ;;  %v17452_v0 = vadd.f32 %v2557_v20, %v17153_v3  ;;  %v14692_v24 = vld [vmem:[%s23601_s0 + $0x1c8] ss:$12 sps:$4 sm:$0xff]  }
 0x288   :  { %v2559_v25 = vpop.f32.mrf.mxu0 }
 0x289   :  { %24392 = vst [vmem:[#allocation94_spill] sm:$0xff] %v17452_v0  ;;  %v17457_v31 = vpop.f32.mrf.mxu1  ;;  %v17465_v12 = vadd.f32 %v2559_v25, %v17160_v58  ;;  %v14693_v58 = vld [vmem:[%s23601_s0 + $0x1e4] ss:$12 sps:$4 sm:$0xff]   ;;  %v24398_v25 = vld [vmem:[#allocation15_spill] sm:$0xff]  ;;  %5053 = vmatpush2.bf16.msra.mxu0 %v14151_v62 }
 0x28a   :  { %v2563_v20 = vpop.f32.mrf.mxu0  ;;  %12968 = vmatmul.mubr.msk.bf16.gmra.mxu0 %vm1249_vm0, %v24395_v26  ;;  %v14159_v62 = vld [vmem:[%s23602_s3 + $0xa4] ss:$8 sps:$4 sm:$0xff]  }
 0x28b   :  { %24394 = vst [vmem:[#allocation95_spill] sm:$0xff] %v17465_v12  ;;  %v17467_v3 = vpop.f32.mrf.mxu1  ;;  %2857 = vmatmul.mubr.bf16.gmra.mxu1 %v14692_v24  ;;  %v17477_v29 = vadd.f32 %v2563_v20, %v17167_v56  ;;  %12971 = vmatprep.mubr.msk.bf16.mxu0 %vm1249_vm0, %v24398_v25  ;;  %v14156_v24 = vld [vmem:[%s23602_s3 + $0xb4] ss:$8 sps:$4 sm:$0xff]   ;;  %v14154_v56 = vld [vmem:[%s23602_s3 + $0xb0] ss:$8 sps:$4 sm:$0xff]   ;;  %v24413_v20 = vld [vmem:[#allocation19_spill] sm:$0xff] }
 0x28c   :  { %2864 = vmatprep.mubr.bf16.mxu1 %v14693_v58  ;;  %v2565_v26 = vpop.f32.mrf.mxu0  ;;  %5054 = vmatprep.subr.bf16.mxu0 %v14156_v24 }
 0x28d   :  { %24397 = vst [vmem:[#allocation48_spill] sm:$0xff] %v17477_v29  ;;  %v17487_v57 = vpop.f32.mrf.mxu1  ;;  %v17495_v58 = vadd.f32 %v2565_v26, %v17187_v33  ;;  %5055 = vmatpush2.bf16.msra.mxu0 %v14154_v56  ;;  %v14157_v33 = vld [vmem:[%s23602_s3 + $0xa0] ss:$8 sps:$4 sm:$0xff]   ;;  %v24405_v56 = vld [vmem:[#allocation65_spill] sm:$0xff]  ;;  %v24408_v29 = vld [vmem:[#allocation36_spill] sm:$0xff] }
 0x28e   :  { %v2567_v12 = vpop.f32.mrf.mxu0  ;;  %5056 = vmatprep.subr.bf16.mxu0 %v14159_v62 }
 0x28f   :  { %24400 = vst [vmem:[#allocation15_spill] sm:$0xff] %v17495_v58  ;;  %v17497_v25 = vpop.f32.mrf.mxu1  ;;  %v17502_v8 = vadd.f32 %v2567_v12, %v17197_v18  ;;  %v14694_v58 = vld [vmem:[%s23601_s0 + $0x1e0] ss:$12 sps:$4 sm:$0xff]  }
 0x290   :  { %v2569_v36 = vpop.f32.mrf.mxu0 }
 0x291   :  { %24402 = vst [vmem:[#allocation96_spill] sm:$0xff] %v17502_v8  ;;  %v17507_v48 = vpop.f32.mrf.mxu1  ;;  %v17515_v0 = vadd.f32 %v2569_v36, %v17207_v59  ;;  %v14695_v59 = vld [vmem:[%s23601_s0 + $0x1fc] ss:$12 sps:$4 sm:$0xff]   ;;  %5057 = vmatpush2.bf16.msra.mxu0 %v14157_v33  ;;  %v24411_v8 = vmax.f32 %v16732_v44, %v17075_v47  ;;  %v24414_v44 = vld [vmem:[#allocation82_spill] sm:$0xff] }
 0x292   :  { %v2573_v12 = vpop.f32.mrf.mxu0  ;;  %12972 = vmatmul.mubr.msk.bf16.gmra.mxu0 %vm1249_vm0, %v24405_v56  ;;  %v14162_v36 = vld [vmem:[%s23602_s3 + $0x94] ss:$8 sps:$4 sm:$0xff]   ;;  %v14160_v56 = vld [vmem:[%s23602_s3 + $0x90] ss:$8 sps:$4 sm:$0xff]   ;;  %v24415_v47 = vmax.f32 %v16739_v63, %v24414_v44  ;;  %vm11521_vm0 = vcmask 818176  }
 0x293   :  { %24404 = vst [vmem:[#allocation97_spill] sm:$0xff] %v17515_v0  ;;  %v17517_v18 = vpop.f32.mrf.mxu1  ;;  %2865 = vmatmul.mubr.bf16.gmra.mxu1 %v14694_v58  ;;  %v2574_v26 = vadd.f32 %v2573_v12, %v17217_v23  ;;  %v24409_v23 = vmax.f32 %v16721_v53, %v24408_v29  ;;  %5058 = vmatprep.subr.bf16.mxu0 %v14162_v36  ;;  %v14168_v53 = vld [vmem:[%s23602_s3 + $0x84] ss:$8 sps:$4 sm:$0xff]  }
 0x294   :  { %2872 = vmatprep.mubr.bf16.mxu1 %v14695_v59  ;;  %v2575_v58 = vpop.f32.mrf.mxu0  ;;  %v14696_v63 = vld [vmem:[%s23601_s0 + $0x1f8] ss:$12 sps:$4 sm:$0xff]  }
 0x295   :  { %v17533_v62 = vpop.f32.mrf.mxu1  ;;  %v17541_v12 = vmax.f32 %v24409_v23, %v2574_v26  ;;  %v2576_v0 = vadd.f32 %v2575_v58, %v17237_v9  ;;  %5059 = vmatpush2.bf16.msra.mxu0 %v14160_v56  ;;  %v14166_v26 = vld [vmem:[%s23602_s3 + $0x80] ss:$8 sps:$4 sm:$0xff]  }
 0x296   :  { %24407 = vst [vmem:[#allocation65_spill] sm:$0xff] %v17533_v62  ;;  %v2577_v22 = vpop.f32.mrf.mxu0  ;;  %5060 = vmatprep.subr.bf16.mxu0 %v14168_v53  ;;  %v24418_v56 = vld [vmem:[#allocation83_spill] sm:$0xff]  ;;  %v24422_v53 = vld [vmem:[#allocation12_spill] sm:$0xff] }
 0x297   :  { %24410 = vst [vmem:[#allocation36_spill] sm:$0xff] %v17541_v12  ;;  %v17544_v59 = vpop.f32.mrf.mxu1  ;;  %v17549_v24 = vmax.f32 %v24411_v8, %v2576_v0  ;;  %v2578_v33 = vadd.f32 %v2577_v22, %v17247_v15  ;;  %v13163_v62 = vpack.i.bf16 %v17541_v12, %v24413_v20  ;;  %v14163_v22 = vld [vmem:[%s23602_s3 + $0x170] ss:$8 sps:$4 sm:$0xff]   ;;  %v14165_v8 = vld [vmem:[%s23602_s3 + $0x174] ss:$8 sps:$4 sm:$0xff]  }
 0x298   :  { %v2579_v9 = vpop.f32.mrf.mxu0  ;;  %5163 = vmatprep.subr.bf16.mxu1 %v14165_v8  ;;  %v24427_v8 = vld [vmem:[#allocation57_spill] sm:$0xff] }
 0x299   :  { %24412 = vst [vmem:[#allocation98_spill] sm:$0xff] %v17549_v24  ;;  %v17557_v29 = vpop.f32.mrf.mxu1  ;;  %v17565_v0 = vmax.f32 %v24415_v47, %v2578_v33  ;;  %v2580_v15 = vadd.f32 %v2579_v9, %v17257_v52  ;;  %13164 = vrot.lane.b32.xlu1 %v13163_v62, %s14715_s30  ;;  %13159 = vrot.lane.b32.xlu0 %v13163_v62, %s14714_s29  ;;  %v24417_v52 = vld [vmem:[#allocation45_spill] sm:$0xff]  ;;  %v24421_v9 = vld [vmem:[#allocation20_spill] sm:$0xff] }
 0x29a   :  { %v2583_v58 = vpop.f32.mrf.mxu0  ;;  %v24419_v62 = vmax.f32 %v24417_v52, %v24418_v56  ;;  %v14697_v47 = vld [vmem:[%s23601_s0 + $0x214] ss:$12 sps:$4 sm:$0xff]   ;;  %5061 = vmatpush2.bf16.msra.mxu0 %v14166_v26  ;;  %5164 = vmatpush1.bf16.msra.mxu1 %v14163_v22  ;;  %v24425_v56 = vmax.f32 %v16768_v6, %v17113_v40 }
 0x29b   :  { %24416 = vst [vmem:[#allocation19_spill] sm:$0xff] %v17565_v0  ;;  %v17576_v36 = vpop.f32.mrf.mxu1  ;;  %2873 = vmatmul.mubr.bf16.gmra.mxu1 %v14696_v63  ;;  %v2584_v33 = vadd.f32 %v2583_v58, %v17267_v37  ;;  %v13168_v44 = vpack.i.bf16 %v17565_v0, %v24421_v9  ;;  %v24423_v63 = vmax.f32 %v16759_v28, %v24422_v53 }
 0x29c   :  { %v17584_v23 = vmax.f32 %v24419_v62, %v2580_v15  ;;  %2880 = vmatprep.mubr.bf16.mxu1 %v14697_v47  ;;  %v2585_v24 = vpop.f32.mrf.mxu0 }
 0x29d   :  { %v17592_v12 = vpop.f32.mrf.mxu1  ;;  %v17597_v15 = vmax.f32 %v24423_v63, %v2584_v33  ;;  %v2586_v37 = vadd.f32 %v2585_v24, %v17287_v50  ;;  %13169 = vrot.lane.b32.xlu0 %v13168_v44, %s14714_s29  ;;  %v24428_v50 = vld [vmem:[#allocation14_spill] sm:$0xff]  ;;  %v24431_v63 = vld [vmem:[#allocation63_spill] sm:$0xff] }
 0x29e   :  { %24420 = vst [vmem:[#allocation82_spill] sm:$0xff] %v17584_v23  ;;  %v2587_v52 = vpop.f32.mrf.mxu0  ;;  %v24429_v24 = vmax.f32 %v16773_v54, %v24428_v50 }
 0x29f   :  { %24424 = vst [vmem:[#allocation45_spill] sm:$0xff] %v17597_v15  ;;  %v17601_v58 = vpop.f32.mrf.mxu1  ;;  %v17606_v62 = vmax.f32 %v24425_v56, %v2586_v37  ;;  %v2588_v26 = vadd.f32 %v2587_v52, %v17297_v2  ;;  %v13183_v28 = vpack.i.bf16 %v17597_v15, %v24427_v8  ;;  %v14698_v2 = vld [vmem:[%s23601_s0 + $0x210] ss:$12 sps:$4 sm:$0xff]  }
 0x2a0   :  { %v2589_v47 = vpop.f32.mrf.mxu0  ;;  %v24432_v37 = vld [vmem:[#allocation84_spill] sm:$0xff] }
 0x2a1   :  { %24426 = vst [vmem:[#allocation83_spill] sm:$0xff] %v17606_v62  ;;  %v17611_v33 = vpop.f32.mrf.mxu1  ;;  %v17616_v22 = vmax.f32 %v24429_v24, %v2588_v26  ;;  %v2590_v53 = vadd.f32 %v2589_v47, %v17307_v7  ;;  %13184 = vrot.lane.b32.xlu1 %v13183_v28, %s14715_s30  ;;  %13174 = vrot.lane.b32.xlu0 %v13168_v44, %s14715_s30  ;;  %v24435_v7 = vld [vmem:[#allocation58_spill] sm:$0xff]  ;;  %v14699_v44 = vld [vmem:[%s23601_s0 + $0x22c] ss:$12 sps:$4 sm:$0xff]   ;;  %v24436_v24 = vld [vmem:[#allocation16_spill] sm:$0xff] }
 0x2a2   :  { %v2593_v40 = vpop.f32.mrf.mxu0  ;;  %v24433_v52 = vmax.f32 %v24431_v63, %v24432_v37 }
 0x2a3   :  { %24430 = vst [vmem:[#allocation20_spill] sm:$0xff] %v17616_v22  ;;  %v17621_v6 = vpop.f32.mrf.mxu1  ;;  %2881 = vmatmul.mubr.bf16.gmra.mxu1 %v14698_v2  ;;  %v2594_v56 = vadd.f32 %v2593_v40, %v17317_v42  ;;  %v13188_v26 = vpack.i.bf16 %v17616_v22, %v24435_v7  ;;  %v24437_v2 = vmax.f32 %v16793_v11, %v24436_v24  ;;  %v14169_v42 = vld [vmem:[%s23602_s3 + $0x160] ss:$8 sps:$4 sm:$0xff]   ;;  %v14171_v40 = vld [vmem:[%s23602_s3 + $0x164] ss:$8 sps:$4 sm:$0xff]  }
 0x2a4   :  { %v17629_v54 = vmax.f32 %v24433_v52, %v2590_v53  ;;  %2888 = vmatprep.mubr.bf16.mxu1 %v14699_v44  ;;  %v2595_v50 = vpop.f32.mrf.mxu0  ;;  %v24439_v11 = vmax.f32 %v16802_v14, %v17151_v34  ;;  %5165 = vmatprep.subr.bf16.mxu1 %v14171_v40  ;;  %v24442_v24 = vmax.f32 %v16807_v41, %v17158_v51 }
 0x2a5   :  { %v17637_v47 = vpop.f32.mrf.mxu1  ;;  %v17642_v15 = vmax.f32 %v24437_v2, %v2594_v56  ;;  %v2596_v53 = vadd.f32 %v2595_v50, %v17337_v4  ;;  %13189 = vrot.lane.b32.xlu1 %v13188_v26, %s14714_s29  ;;  %13179 = vrot.lane.b32.xlu0 %v13183_v28, %s14714_s29  ;;  %v24441_v56 = vld [vmem:[#allocation25_spill] sm:$0xff] }
 0x2a6   :  { %24434 = vst [vmem:[#allocation12_spill] sm:$0xff] %v17629_v54  ;;  %v2597_v37 = vpop.f32.mrf.mxu0  ;;  %5166 = vmatpush1.bf16.msra.mxu1 %v14169_v42  ;;  %v24445_v42 = vld [vmem:[#allocation18_spill] sm:$0xff] }
 0x2a7   :  { %24438 = vst [vmem:[#allocation57_spill] sm:$0xff] %v17642_v15  ;;  %v17653_v63 = vpop.f32.mrf.mxu1  ;;  %v17658_v52 = vmax.f32 %v24439_v11, %v2596_v53  ;;  %v2598_v4 = vadd.f32 %v2597_v37, %v17347_v30  ;;  %v13203_v28 = vpack.i.bf16 %v17642_v15, %v24441_v56  ;;  %v14700_v30 = vld [vmem:[%s23601_s0 + $0x228] ss:$12 sps:$4 sm:$0xff]   ;;  %v24444_v53 = vld [vmem:[#allocation49_spill] sm:$0xff] }
 0x2a8   :  { %v2599_v50 = vpop.f32.mrf.mxu0  ;;  %v24446_v40 = vmax.f32 %v24444_v53, %v24445_v42 }
 0x2a9   :  { %24440 = vst [vmem:[#allocation14_spill] sm:$0xff] %v17658_v52  ;;  %v17663_v44 = vpop.f32.mrf.mxu1  ;;  %v17668_v2 = vmax.f32 %v24442_v24, %v2598_v4  ;;  %v2600_v22 = vadd.f32 %v2599_v50, %v17357_v10  ;;  %13204 = vrot.lane.b32.xlu1 %v13203_v28, %s14715_s30  ;;  %13194 = vrot.lane.b32.xlu0 %v13188_v26, %s14715_s30  ;;  %v24448_v10 = vld [vmem:[#allocation26_spill] sm:$0xff] }
 0x2aa   :  { %v2603_v34 = vpop.f32.mrf.mxu0  ;;  %v14701_v26 = vld [vmem:[%s23601_s0 + $0x244] ss:$12 sps:$4 sm:$0xff]   ;;  %v24449_v50 = vmax.f32 %v16827_v21, %v17177_v61 }
 0x2ab   :  { %24443 = vst [vmem:[#allocation63_spill] sm:$0xff] %v17668_v2  ;;  %v17673_v14 = vpop.f32.mrf.mxu1  ;;  %2889 = vmatmul.mubr.bf16.gmra.mxu1 %v14700_v30  ;;  %v17681_v41 = vmax.f32 %v24446_v40, %v2600_v22  ;;  %v2604_v51 = vadd.f32 %v2603_v34, %v17367_v27  ;;  %v13208_v37 = vpack.i.bf16 %v17668_v2, %v24448_v10  ;;  %v24453_v40 = vld [vmem:[#allocation60_spill] sm:$0xff] }
 0x2ac   :  { %2896 = vmatprep.mubr.bf16.mxu1 %v14701_v26  ;;  %v2605_v4 = vpop.f32.mrf.mxu0  ;;  %v24451_v30 = vmax.f32 %v16836_v38, %v17195_v49 }
 0x2ad   :  { %24447 = vst [vmem:[#allocation84_spill] sm:$0xff] %v17681_v41  ;;  %v17689_v11 = vpop.f32.mrf.mxu1  ;;  %v17694_v24 = vmax.f32 %v24449_v50, %v2604_v51  ;;  %v2606_v22 = vadd.f32 %v2605_v4, %v17387_v60  ;;  %13209 = vrot.lane.b32.xlu1 %v13208_v37, %s14714_s29  ;;  %13199 = vrot.lane.b32.xlu0 %v13203_v28, %s14714_s29  ;;  %v24456_v4 = vld [vmem:[#allocation50_spill] sm:$0xff]  ;;  %v24457_v50 = vld [vmem:[#allocation85_spill] sm:$0xff] }
 0x2ae   :  { %v2607_v34 = vpop.f32.mrf.mxu0  ;;  %v24454_v51 = vmax.f32 %v16841_v35, %v17202_v1 }
 0x2af   :  { %24450 = vst [vmem:[#allocation58_spill] sm:$0xff] %v17694_v24  ;;  %v17699_v27 = vpop.f32.mrf.mxu1  ;;  %v17704_v53 = vmax.f32 %v24451_v30, %v2606_v22  ;;  %v2608_v42 = vadd.f32 %v2607_v34, %v17397_v17  ;;  %v13223_v21 = vpack.i.bf16 %v17694_v24, %v24453_v40  ;;  %v14702_v17 = vld [vmem:[%s23601_s0 + $0x240] ss:$12 sps:$4 sm:$0xff]   ;;  %v24458_v22 = vmax.f32 %v24456_v4, %v24457_v50  ;;  %v24465_v50 = vld [vmem:[#allocation29_spill] sm:$0xff] }
 0x2b0   :  { %v2609_v60 = vpop.f32.mrf.mxu0 }
 0x2b1   :  { %24452 = vst [vmem:[#allocation16_spill] sm:$0xff] %v17704_v53  ;;  %v17709_v61 = vpop.f32.mrf.mxu1  ;;  %v17714_v28 = vmax.f32 %v24454_v51, %v2608_v42  ;;  %v2610_v26 = vadd.f32 %v2609_v60, %v17407_v19  ;;  %13224 = vrot.lane.b32.xlu1 %v13223_v21, %s14715_s30  ;;  %13214 = vrot.lane.b32.xlu0 %v13208_v37, %s14715_s30  ;;  %v24460_v19 = vld [vmem:[#allocation2_spill] sm:$0xff]  ;;  %v14703_v37 = vld [vmem:[%s23601_s0 + $0x25c] ss:$12 sps:$4 sm:$0xff]  }
 0x2b2   :  { %v2613_v38 = vpop.f32.mrf.mxu0  ;;  %v24461_v60 = vmax.f32 %v16861_v45, %v17227_v55  ;;  %v24463_v45 = vmax.f32 %v16870_v16, %v17245_v46 }
 0x2b3   :  { %24455 = vst [vmem:[#allocation25_spill] sm:$0xff] %v17714_v28  ;;  %v17719_v49 = vpop.f32.mrf.mxu1  ;;  %2897 = vmatmul.mubr.bf16.gmra.mxu1 %v14702_v17  ;;  %v17727_v35 = vmax.f32 %v24458_v22, %v2610_v26  ;;  %v2614_v1 = vadd.f32 %v2613_v38, %v17417_v43  ;;  %v13228_v34 = vpack.i.bf16 %v17714_v28, %v24460_v19  ;;  %v14172_v43 = vld [vmem:[%s23602_s3 + $0x150] ss:$8 sps:$4 sm:$0xff]   ;;  %v14174_v38 = vld [vmem:[%s23602_s3 + $0x154] ss:$8 sps:$4 sm:$0xff]  }
 0x2b4   :  { %2904 = vmatprep.mubr.bf16.mxu1 %v14703_v37  ;;  %v2615_v30 = vpop.f32.mrf.mxu0  ;;  %5167 = vmatprep.subr.bf16.mxu1 %v14174_v38  ;;  %v24466_v37 = vmax.f32 %v16875_v32, %v17252_v39 }
 0x2b5   :  { %24459 = vst [vmem:[#allocation49_spill] sm:$0xff] %v17727_v35  ;;  %v2708_v42 = vpop.f32.mrf.mxu1  ;;  %v17738_v51 = vmax.f32 %v24461_v60, %v2614_v1  ;;  %v2616_v26 = vadd.f32 %v2615_v30, %v17437_v5  ;;  %13229 = vrot.lane.b32.xlu1 %v13228_v34, %s14714_s29  ;;  %13219 = vrot.lane.b32.xlu0 %v13223_v21, %s14714_s29  ;;  %v24468_v60 = vld [vmem:[#allocation51_spill] sm:$0xff] }
 0x2b6   :  { %v2617_v17 = vpop.f32.mrf.mxu0  ;;  %5168 = vmatpush1.bf16.msra.mxu1 %v14172_v43 }
 0x2b7   :  { %24462 = vst [vmem:[#allocation18_spill] sm:$0xff] %v17738_v51  ;;  %v17749_v4 = vpop.f32.mrf.mxu1  ;;  %v17754_v55 = vmax.f32 %v24463_v45, %v2616_v26  ;;  %v2618_v5 = vadd.f32 %v2617_v17, %v17447_v13  ;;  %v13243_v21 = vpack.i.bf16 %v17738_v51, %v24465_v50  ;;  %v14704_v13 = vld [vmem:[%s23601_s0 + $0x258] ss:$12 sps:$4 sm:$0xff]  }
 0x2b8   :  { %v2619_v22 = vpop.f32.mrf.mxu0  ;;  %v24469_v26 = vld [vmem:[#allocation86_spill] sm:$0xff] }
 0x2b9   :  { %24464 = vst [vmem:[#allocation26_spill] sm:$0xff] %v17754_v55  ;;  %v2711_v1 = vpop.f32.mrf.mxu1  ;;  %v17762_v30 = vmax.f32 %v24466_v37, %v2618_v5  ;;  %v2620_v42 = vadd.f32 %v2619_v22, %v17457_v31  ;;  %13244 = vrot.lane.b32.xlu1 %v13243_v21, %s14715_s30  ;;  %13234 = vrot.lane.b32.xlu0 %v13228_v34, %s14715_s30  ;;  %v24472_v31 = vld [vmem:[#allocation28_spill] sm:$0xff]  ;;  %v24473_v5 = vld [vmem:[#allocation53_spill] sm:$0xff]  ;;  %v24474_v22 = vld [vmem:[#allocation87_spill] sm:$0xff] }
 0x2ba   :  { %v2623_v16 = vpop.f32.mrf.mxu0  ;;  %v24470_v43 = vmax.f32 %v24468_v60, %v24469_v26  ;;  %v14705_v34 = vld [vmem:[%s23601_s0 + $0x274] ss:$12 sps:$4 sm:$0xff]   ;;  %v24475_v1 = vmax.f32 %v24473_v5, %v24474_v22 }
 0x2bb   :  { %24467 = vst [vmem:[#allocation60_spill] sm:$0xff] %v17762_v30  ;;  %v17767_v46 = vpop.f32.mrf.mxu1  ;;  %2905 = vmatmul.mubr.bf16.gmra.mxu1 %v14704_v13  ;;  %v2624_v39 = vadd.f32 %v2623_v16, %v17467_v3  ;;  %v13248_v38 = vpack.i.bf16 %v17762_v30, %v24472_v31  ;;  %v24477_v13 = vld [vmem:[#allocation17_spill] sm:$0xff]  ;;  %v24478_v60 = vld [vmem:[#allocation88_spill] sm:$0xff] }
 0x2bc   :  { %v17775_v32 = vmax.f32 %v24470_v43, %v2620_v42  ;;  %2912 = vmatprep.mubr.bf16.mxu1 %v14705_v34  ;;  %v2625_v17 = vpop.f32.mrf.mxu0  ;;  %v24479_v26 = vmax.f32 %v24477_v13, %v24478_v60  ;;  %v24487_v60 = vld [vmem:[#allocation90_spill] sm:$0xff]  ;;  %v24497_v30 = vld [vmem:[#allocation40_spill] sm:$0xff] }
 0x2bd   :  { %v2716_v45 = vpop.f32.mrf.mxu1  ;;  %v17786_v37 = vmax.f32 %v24475_v1, %v2624_v39  ;;  %v2626_v42 = vadd.f32 %v2625_v17, %v17487_v57  ;;  %13249 = vrot.lane.b32.xlu1 %v13248_v38, %s14714_s29  ;;  %13239 = vrot.lane.b32.xlu0 %v13243_v21, %s14714_s29  ;;  %v24482_v57 = vld [vmem:[#allocation52_spill] sm:$0xff]  ;;  %v24483_v17 = vld [vmem:[#allocation89_spill] sm:$0xff] }
 0x2be   :  { %24471 = vst [vmem:[#allocation50_spill] sm:$0xff] %v17775_v32  ;;  %v2627_v3 = vpop.f32.mrf.mxu0  ;;  %v24481_v45 = vld [vmem:[#allocation31_spill] sm:$0xff]  ;;  %v24484_v1 = vmax.f32 %v24482_v57, %v24483_v17 }
 0x2bf   :  { %24476 = vst [vmem:[#allocation85_spill] sm:$0xff] %v17786_v37  ;;  %v17791_v16 = vpop.f32.mrf.mxu1  ;;  %v17796_v43 = vmax.f32 %v24479_v26, %v2626_v42  ;;  %v2628_v34 = vadd.f32 %v2627_v3, %v17497_v25  ;;  %v13263_v39 = vpack.i.bf16 %v17786_v37, %v24481_v45  ;;  %v14706_v25 = vld [vmem:[%s23601_s0 + $0x270] ss:$12 sps:$4 sm:$0xff]   ;;  %v24486_v3 = vld [vmem:[#allocation66_spill] sm:$0xff] }
 0x2c0   :  { %v2629_v5 = vpop.f32.mrf.mxu0  ;;  %v24488_v26 = vmax.f32 %v24486_v3, %v24487_v60  ;;  %v14175_v57 = vld [vmem:[%s23602_s3 + $0x140] ss:$8 sps:$4 sm:$0xff]   ;;  %v14177_v17 = vld [vmem:[%s23602_s3 + $0x144] ss:$8 sps:$4 sm:$0xff]   ;;  %v24495_v60 = vld [vmem:[#allocation65_spill] sm:$0xff] }
 0x2c1   :  { %24480 = vst [vmem:[#allocation2_spill] sm:$0xff] %v17796_v43  ;;  %v2719_v22 = vpop.f32.mrf.mxu1  ;;  %v17804_v51 = vmax.f32 %v24484_v1, %v2628_v34  ;;  %v2630_v21 = vadd.f32 %v2629_v5, %v17507_v48  ;;  %13264 = vrot.lane.b32.xlu1 %v13263_v39, %s14715_s30  ;;  %13254 = vrot.lane.b32.xlu0 %v13248_v38, %s14715_s30  ;;  %v24490_v48 = vld [vmem:[#allocation34_spill] sm:$0xff]  ;;  %v14707_v38 = vld [vmem:[%s23601_s0 + $0x28c] ss:$12 sps:$4 sm:$0xff]  }
 0x2c2   :  { %v2633_v42 = vpop.f32.mrf.mxu0  ;;  %5169 = vmatprep.subr.bf16.mxu1 %v14177_v17 }
 0x2c3   :  { %24485 = vst [vmem:[#allocation29_spill] sm:$0xff] %v17804_v51  ;;  %v17809_v13 = vpop.f32.mrf.mxu1  ;;  %2913 = vmatmul.mubr.bf16.gmra.mxu1 %v14706_v25  ;;  %v17817_v22 = vmax.f32 %v24488_v26, %v2630_v21  ;;  %v2634_v34 = vadd.f32 %v2633_v42, %v17517_v18  ;;  %v13268_v5 = vpack.i.bf16 %v17804_v51, %v24490_v48  ;;  %v24491_v25 = vld [vmem:[#allocation54_spill] sm:$0xff]  ;;  %v24492_v18 = vld [vmem:[#allocation37_spill] sm:$0xff]  ;;  %v24496_v51 = vld [vmem:[#allocation67_spill] sm:$0xff] }
 0x2c4   :  { %2920 = vmatprep.mubr.bf16.mxu1 %v14707_v38  ;;  %v2635_v1 = vpop.f32.mrf.mxu0  ;;  %v24493_v42 = vmax.f32 %v24491_v25, %v24492_v18  ;;  %v24498_v28 = vmax.f32 %v24496_v51, %v24497_v30  ;;  %v24500_v25 = vld [vmem:[#allocation32_spill] sm:$0xff]  ;;  %5170 = vmatpush1.bf16.msra.mxu1 %v14175_v57  ;;  %v24506_v57 = vld [vmem:[#allocation91_spill] sm:$0xff] }
 0x2c5   :  { %24489 = vst [vmem:[#allocation51_spill] sm:$0xff] %v17817_v22  ;;  %v2724_v21 = vpop.f32.mrf.mxu1  ;;  %v2636_v26 = vadd.f32 %v2635_v1, %v24495_v60  ;;  %13269 = vrot.lane.b32.xlu1 %v13268_v5, %s14714_s29  ;;  %13259 = vrot.lane.b32.xlu0 %v13263_v39, %s14714_s29  ;;  %v24502_v60 = vld [vmem:[#allocation10_spill] sm:$0xff]  ;;  %v24505_v30 = vld [vmem:[#allocation68_spill] sm:$0xff] }
 0x2c6   :  { %v17834_v3 = vmax.f32 %v24493_v42, %v2634_v34  ;;  %v2637_v38 = vpop.f32.mrf.mxu0  ;;  %v24501_v42 = vld [vmem:[#allocation55_spill] sm:$0xff] }
 0x2c7   :  { %v17839_v37 = vpop.f32.mrf.mxu1  ;;  %v17844_v24 = vmax.f32 %v24498_v28, %v2636_v26  ;;  %v2638_v21 = vadd.f32 %v2637_v38, %v17544_v59  ;;  %v24503_v39 = vmax.f32 %v24501_v42, %v24502_v60  ;;  %v14708_v59 = vld [vmem:[%s23601_s0 + $0x288] ss:$12 sps:$4 sm:$0xff]   ;;  %v24507_v26 = vmax.f32 %v24505_v30, %v24506_v57  ;;  %v24510_v60 = vld [vmem:[#allocation70_spill] sm:$0xff]  ;;  %v24515_v57 = vld [vmem:[#allocation13_spill] sm:$0xff] }
 0x2c8   :  { %24494 = vst [vmem:[#allocation86_spill] sm:$0xff] %v17834_v3  ;;  %v13283_v34 = vpack.i.bf16 %v17834_v3, %v24500_v25  ;;  %v2639_v1 = vpop.f32.mrf.mxu0  ;;  %v24514_v30 = vld [vmem:[#allocation71_spill] sm:$0xff] }
 0x2c9   :  { %24499 = vst [vmem:[#allocation28_spill] sm:$0xff] %v17844_v24  ;;  %v2727_v18 = vpop.f32.mrf.mxu1  ;;  %v17852_v15 = vmax.f32 %v24503_v39, %v2638_v21  ;;  %v2640_v17 = vadd.f32 %v2639_v1, %v17557_v29  ;;  %13274 = vrot.lane.b32.xlu0 %v13268_v5, %s14715_s30  ;;  %v24509_v29 = vld [vmem:[#allocation6_spill] sm:$0xff] }
 0x2ca   :  { %13284 = vrot.lane.b32.xlu1 %v13283_v34, %s14715_s30  ;;  %v2643_v28 = vpop.f32.mrf.mxu0  ;;  %v14709_v5 = vld [vmem:[%s23601_s0 + $0x2a4] ss:$12 sps:$4 sm:$0xff]  }
 0x2cb   :  { %24504 = vst [vmem:[#allocation53_spill] sm:$0xff] %v17852_v15  ;;  %v17857_v51 = vpop.f32.mrf.mxu1  ;;  %2921 = vmatmul.mubr.bf16.gmra.mxu1 %v14708_v59  ;;  %v17865_v38 = vmax.f32 %v24507_v26, %v2640_v17  ;;  %v2644_v21 = vadd.f32 %v2643_v28, %v17576_v36  ;;  %v13288_v1 = vpack.i.bf16 %v17852_v15, %v24509_v29  ;;  %v24511_v39 = vld [vmem:[#allocation42_spill] sm:$0xff]  ;;  %v24518_v15 = vld [vmem:[#allocation7_spill] sm:$0xff] }
 0x2cc   :  { %2928 = vmatprep.mubr.bf16.mxu1 %v14709_v5  ;;  %v2645_v18 = vpop.f32.mrf.mxu0  ;;  %v24512_v59 = vmax.f32 %v24510_v60, %v24511_v39  ;;  %v24516_v26 = vmax.f32 %v24514_v30, %v24515_v57  ;;  %v24524_v57 = vld [vmem:[#allocation93_spill] sm:$0xff] }
 0x2cd   :  { %24508 = vst [vmem:[#allocation87_spill] sm:$0xff] %v17865_v38  ;;  %v2732_v42 = vpop.f32.mrf.mxu1  ;;  %v2646_v17 = vadd.f32 %v2645_v18, %v17592_v12  ;;  %13279 = vrot.lane.b32.xlu0 %v13283_v34, %s14714_s29  ;;  %v24519_v12 = vld [vmem:[#allocation72_spill] sm:$0xff] }
 0x2ce   :  { %v17876_v3 = vmax.f32 %v24512_v59, %v2644_v21  ;;  %13289 = vrot.lane.b32.xlu1 %v13288_v1, %s14714_s29  ;;  %v2647_v36 = vpop.f32.mrf.mxu0  ;;  %v24520_v18 = vld [vmem:[#allocation92_spill] sm:$0xff] }
 0x2cf   :  { %v17881_v28 = vpop.f32.mrf.mxu1  ;;  %v17886_v5 = vmax.f32 %v24516_v26, %v2646_v17  ;;  %v2648_v42 = vadd.f32 %v2647_v36, %v17601_v58  ;;  %v24521_v59 = vmax.f32 %v24519_v12, %v24520_v18  ;;  %v14710_v58 = vld [vmem:[%s23601_s0 + $0x2a0] ss:$12 sps:$4 sm:$0xff]   ;;  %v24523_v36 = vld [vmem:[#allocation73_spill] sm:$0xff] }
 0x2d0   :  { %24513 = vst [vmem:[#allocation17_spill] sm:$0xff] %v17876_v3  ;;  %v13303_v21 = vpack.i.bf16 %v17876_v3, %v24518_v15  ;;  %v2649_v60 = vpop.f32.mrf.mxu0  ;;  %v24525_v26 = vmax.f32 %v24523_v36, %v24524_v57  ;;  %v14178_v12 = vld [vmem:[%s23602_s3 + $0x130] ss:$8 sps:$4 sm:$0xff]   ;;  %v14180_v18 = vld [vmem:[%s23602_s3 + $0x134] ss:$8 sps:$4 sm:$0xff]  }
 0x2d1   :  { %24517 = vst [vmem:[#allocation88_spill] sm:$0xff] %v17886_v5  ;;  %v2735_v39 = vpop.f32.mrf.mxu1  ;;  %v17894_v2 = vmax.f32 %v24521_v59, %v2648_v42  ;;  %v2650_v34 = vadd.f32 %v2649_v60, %v17611_v33  ;;  %13294 = vrot.lane.b32.xlu0 %v13288_v1, %s14715_s30  ;;  %v24527_v33 = vld [vmem:[#allocation38_spill] sm:$0xff]  ;;  %v14711_v1 = vld [vmem:[%s23601_s0 + $0x2bc] ss:$12 sps:$4 sm:$0xff]   ;;  %5171 = vmatprep.subr.bf16.mxu1 %v14180_v18  ;;  %v24533_v3 = vld [vmem:[#allocation64_spill] sm:$0xff] }
 0x2d2   :  { %13304 = vrot.lane.b32.xlu1 %v13303_v21, %s14715_s30  ;;  %v2653_v17 = vpop.f32.mrf.mxu0  ;;  %5172 = vmatpush1.bf16.msra.mxu1 %v14178_v12  ;;  %v24542_v12 = vld [vmem:[#allocation95_spill] sm:$0xff] }
 0x2d3   :  { %24522 = vst [vmem:[#allocation31_spill] sm:$0xff] %v17894_v2  ;;  %v17899_v30 = vpop.f32.mrf.mxu1  ;;  %2929 = vmatmul.mubr.bf16.gmra.mxu1 %v14710_v58  ;;  %v17907_v39 = vmax.f32 %v24525_v26, %v2650_v34  ;;  %v2654_v42 = vadd.f32 %v2653_v17, %v17621_v6  ;;  %v13308_v60 = vpack.i.bf16 %v17894_v2, %v24527_v33  ;;  %v24528_v58 = vld [vmem:[#allocation74_spill] sm:$0xff]  ;;  %v24529_v6 = vld [vmem:[#allocation47_spill] sm:$0xff] }
 0x2d4   :  { %2936 = vmatprep.mubr.bf16.mxu1 %v14711_v1  ;;  %v2655_v59 = vpop.f32.mrf.mxu0  ;;  %v24530_v17 = vmax.f32 %v24528_v58, %v24529_v6  ;;  %v24532_v2 = vld [vmem:[#allocation75_spill] sm:$0xff]  ;;  %v24536_v58 = vld [vmem:[#allocation41_spill] sm:$0xff]  ;;  %v24537_v6 = vld [vmem:[#allocation76_spill] sm:$0xff] }
 0x2d5   :  { %24526 = vst [vmem:[#allocation52_spill] sm:$0xff] %v17907_v39  ;;  %v2740_v34 = vpop.f32.mrf.mxu1  ;;  %v2656_v57 = vadd.f32 %v2655_v59, %v17637_v47  ;;  %13299 = vrot.lane.b32.xlu0 %v13303_v21, %s14714_s29  ;;  %v24534_v0 = vmax.f32 %v24532_v2, %v24533_v3  ;;  %v24541_v3 = vld [vmem:[#allocation77_spill] sm:$0xff] }
 0x2d6   :  { %v17924_v36 = vmax.f32 %v24530_v17, %v2654_v42  ;;  %13309 = vrot.lane.b32.xlu1 %v13308_v60, %s14714_s29  ;;  %v2657_v26 = vpop.f32.mrf.mxu0  ;;  %v24538_v17 = vld [vmem:[#allocation94_spill] sm:$0xff] }
 0x2d7   :  { %v17929_v1 = vpop.f32.mrf.mxu1  ;;  %v17934_v39 = vmax.f32 %v24534_v0, %v2656_v57  ;;  %v2658_v34 = vadd.f32 %v2657_v26, %v17653_v63  ;;  %v24539_v21 = vmax.f32 %v24537_v6, %v24538_v17  ;;  %v14712_v63 = vld [vmem:[%s23601_s0 + $0x2b8] ss:$12 sps:$4 sm:$0xff]   ;;  %v24543_v57 = vmax.f32 %v24541_v3, %v24542_v12  ;;  %v17960_v6 = vpop.permute.xlu1 %13059  ;;  %v24551_v3 = vld [vmem:[#allocation15_spill] sm:$0xff] }
 0x2d8   :  { %24531 = vst [vmem:[#allocation89_spill] sm:$0xff] %v17924_v36  ;;  %v13323_v42 = vpack.i.bf16 %v17924_v36, %v24536_v58  ;;  %v2659_v47 = vpop.f32.mrf.mxu0  ;;  %v24546_v17 = vld [vmem:[#allocation78_spill] sm:$0xff] }
 0x2d9   :  { %24535 = vst [vmem:[#allocation66_spill] sm:$0xff] %v17934_v39  ;;  %v2743_v59 = vpop.f32.mrf.mxu1  ;;  %v17942_v5 = vmax.f32 %v24539_v21, %v2658_v34  ;;  %v2660_v18 = vadd.f32 %v2659_v47, %v17663_v44  ;;  %13314 = vrot.lane.b32.xlu0 %v13308_v60, %s14715_s30  ;;  %v24545_v44 = vld [vmem:[#allocation61_spill] sm:$0xff]  ;;  %v24547_v21 = vld [vmem:[#allocation48_spill] sm:$0xff] }
 0x2da   :  { %13324 = vrot.lane.b32.xlu1 %v13323_v42, %s14715_s30  ;;  %v2663_v0 = vpop.f32.mrf.mxu0  ;;  %v24548_v36 = vmax.f32 %v24546_v17, %v24547_v21 }
 0x2db   :  { %24540 = vst [vmem:[#allocation90_spill] sm:$0xff] %v17942_v5  ;;  %v17947_v2 = vpop.f32.mrf.mxu1  ;;  %2937 = vmatmul.mubr.bf16.gmra.mxu1 %v14712_v63  ;;  %v17955_v26 = vmax.f32 %v24543_v57, %v2660_v18  ;;  %v2664_v34 = vadd.f32 %v2663_v0, %v17673_v14  ;;  %v13328_v47 = vpack.i.bf16 %v17942_v5, %v24545_v44  ;;  %v24550_v0 = vld [vmem:[#allocation79_spill] sm:$0xff]  ;;  %v24554_v5 = vld [vmem:[#allocation44_spill] sm:$0xff] }
 0x2dc   :  { %v2665_v59 = vpop.f32.mrf.mxu0  ;;  %v24552_v12 = vmax.f32 %v24550_v0, %v24551_v3  ;;  %v17994_v3 = vpop.permute.xlu1 %13064 }
 0x2dd   :  { %24544 = vst [vmem:[#allocation54_spill] sm:$0xff] %v17955_v26  ;;  %v2748_v60 = vpop.f32.mrf.mxu1  ;;  %v17965_v39 = vmax.f32 %v24548_v36, %v2664_v34  ;;  %v2666_v63 = vadd.f32 %v2665_v59, %v17689_v11  ;;  %13319 = vrot.lane.b32.xlu0 %v13323_v42, %s14714_s29  ;;  %v24555_v11 = vld [vmem:[#allocation80_spill] sm:$0xff] }
 0x2de   :  { %13329 = vrot.lane.b32.xlu1 %v13328_v47, %s14714_s29  ;;  %v2667_v18 = vpop.f32.mrf.mxu0  ;;  %v24556_v59 = vld [vmem:[#allocation96_spill] sm:$0xff] }
 0x2df   :  { %24549 = vst [vmem:[#allocation37_spill] sm:$0xff] %v17965_v39  ;;  %v17970_v14 = vpop.f32.mrf.mxu1  ;;  %v17975_v57 = vmax.f32 %v24552_v12, %v2666_v63  ;;  %v2668_v60 = vadd.f32 %v2667_v18, %v17699_v27  ;;  %v13343_v36 = vpack.i.bf16 %v17965_v39, %v24554_v5  ;;  %v24557_v21 = vmax.f32 %v24555_v11, %v24556_v59  ;;  %v14181_v27 = vld [vmem:[%s23602_s3 + $0x120] ss:$8 sps:$4 sm:$0xff]   ;;  %v14183_v63 = vld [vmem:[%s23602_s3 + $0x124] ss:$8 sps:$4 sm:$0xff]   ;;  %v24559_v12 = vld [vmem:[#allocation81_spill] sm:$0xff] }
 0x2e0   :  { %v2669_v34 = vpop.f32.mrf.mxu0  ;;  %5173 = vmatprep.subr.bf16.mxu1 %v14183_v63 }
 0x2e1   :  { %24553 = vst [vmem:[#allocation65_spill] sm:$0xff] %v17975_v57  ;;  %v2751_v17 = vpop.f32.mrf.mxu1  ;;  %v17983_v26 = vmax.f32 %v24557_v21, %v2668_v60  ;;  %v2670_v42 = vadd.f32 %v2669_v34, %v17709_v61  ;;  %13334 = vrot.lane.b32.xlu0 %v13328_v47, %s14715_s30  ;;  %v24560_v60 = vld [vmem:[#allocation97_spill] sm:$0xff]  ;;  %v24564_v47 = vld [vmem:[#allocation46_spill] sm:$0xff]  ;;  %5174 = vmatpush1.bf16.msra.mxu1 %v14181_v27 }
 0x2e2   :  { %13344 = vrot.lane.b32.xlu1 %v13343_v36, %s14715_s30  ;;  %v12917_v0 = vpop.f32.mrf.mxu0  ;;  %v24561_v17 = vmax.f32 %v24559_v12, %v24560_v60  ;;  %v18013_v60 = vpop.permute.xlu0 %13069 }
 0x2e3   :  { %24558 = vst [vmem:[#allocation67_spill] sm:$0xff] %v17983_v26  ;;  %v2754_v18 = vpop.f32.mrf.mxu1  ;;  %v18002_v34 = vadd.f32 %v12917_v0, %v17767_v46  ;;  %v13348_v11 = vpack.i.bf16 %v17983_v26, %v24564_v47 }
 0x2e4   :  { %v17999_v61 = vmax.f32 %v24561_v17, %v2670_v42  ;;  %v2979_v21 = vpop.f32.mrf.mxu0  ;;  %v18020_v17 = vpop.permute.xlu1 %13074 }
 0x2e5   :  { %24563 = vst [vmem:[#allocation55_spill] sm:$0xff] %v18002_v34  ;;  %v2756_v59 = vpop.f32.mrf.mxu1  ;;  %v18007_v39 = vadd.f32 %v2979_v21, %v17719_v49  ;;  %13339 = vrot.lane.b32.xlu0 %v13343_v36, %s14714_s29  ;;  %v24591_v34 = vunpack.i.l.bf16 %v17994_v3 }
 0x2e6   :  { %24562 = vst [vmem:[#allocation40_spill] sm:$0xff] %v17999_v61  ;;  %13349 = vrot.lane.b32.xlu1 %v13348_v11, %s14714_s29  ;;  %v12918_v42 = vpop.f32.mrf.mxu0  ;;  %v18023_v36 = vpop.permute.xlu0 %13079 }
 0x2e7   :  { %24565 = vst [vmem:[#allocation10_spill] sm:$0xff] %v18007_v39  ;;  %v18011_v12 = vpop.f32.mrf.mxu1  ;;  %v18016_v46 = vadd.f32 %v12918_v42, %v17791_v16 }
 0x2e8   :  { %v18018_v63 = vpop.f32.mrf.mxu0  ;;  %v18028_v61 = vpop.permute.xlu1 %13084 }
 0x2e9   :  { %24566 = vst [vmem:[#allocation68_spill] sm:$0xff] %v18016_v46  ;;  %v2759_v0 = vpop.f32.mrf.mxu1  ;;  %13354 = vrot.lane.b32.xlu0 %v13348_v11, %s14715_s30 }
 0x2ea   :  { %v12921_v27 = vpop.f32.mrf.mxu0  ;;  %v18033_v57 = vpop.permute.xlu0 %13089 }
 0x2eb   :  { %v2762_v49 = vpop.f32.mrf.mxu1  ;;  %v18026_v59 = vadd.f32 %v12921_v27, %v17857_v51  ;;  %v14184_v51 = vld [vmem:[%s23602_s3 + $0x110] ss:$8 sps:$4 sm:$0xff]  }
 0x2ec   :  { %v2995_v26 = vpop.f32.mrf.mxu0  ;;  %v18040_v22 = vpop.permute.xlu1 %13094 }
 0x2ed   :  { %v2764_v21 = vpop.f32.mrf.mxu1  ;;  %v18031_v16 = vadd.f32 %v2995_v26, %v17809_v13  ;;  %v14186_v13 = vld [vmem:[%s23602_s3 + $0x114] ss:$8 sps:$4 sm:$0xff]  }
 0x2ee   :  { %v12922_v0 = vpop.f32.mrf.mxu0  ;;  %v18048_v21 = vpop.permute.xlu0 %13099  ;;  %5175 = vmatprep.subr.bf16.mxu1 %v14186_v13 }
 0x2ef   :  { %v2765_v42 = vpop.f32.mrf.mxu1  ;;  %v18036_v11 = vadd.f32 %v12922_v0, %v17881_v28  ;;  %5176 = vmatpush1.bf16.msra.mxu1 %v14184_v51 }
 0x2f0   :  { %v18038_v24 = vpop.f32.mrf.mxu0  ;;  %v18053_v43 = vpop.permute.xlu1 %13104 }
 0x2f1   :  { %v2767_v38 = vpop.f32.mrf.mxu1 }
 0x2f2   :  { %v12925_v27 = vpop.f32.mrf.mxu0  ;;  %v18060_v53 = vpop.permute.xlu0 %13109 }
 0x2f3   :  { %v2770_v26 = vpop.f32.mrf.mxu1  ;;  %v18051_v28 = vadd.f32 %v12925_v27, %v17947_v2 }
 0x2f4   :  { %v3011_v0 = vpop.f32.mrf.mxu0  ;;  %v18067_v13 = vpop.permute.xlu1 %13114 }
 0x2f5   :  { %v2772_v38 = vpop.f32.mrf.mxu1  ;;  %v18056_v32 = vadd.f32 %v3011_v0, %v17899_v30 }
 0x2f6   :  { %v12926_v35 = vpop.f32.mrf.mxu0  ;;  %v18069_v38 = vpop.permute.xlu0 %13119 }
 0x2f7   :  { %v18058_v55 = vpop.f32.mrf.mxu1  ;;  %v18063_v41 = vadd.f32 %v12926_v35, %v17970_v14  ;;  %24568 = vst [vmem:[#allocation70_spill] sm:$0xff] %v18069_v38  ;;  %v14189_v35 = vld [vmem:[%s23602_s3 + $0x104] ss:$8 sps:$4 sm:$0xff]  }
 0x2f8   :  { %24567 = vst [vmem:[#allocation91_spill] sm:$0xff] %v18058_v55  ;;  %v18065_v2 = vpop.f32.mrf.mxu0  ;;  %v18073_v62 = vpop.permute.xlu1 %13124  ;;  %5177 = vmatprep.subr.bf16.mxu1 %v14189_v35 }
 0x2f9   :  { %v2775_v52 = vpop.f32.mrf.mxu1  ;;  %24570 = vst [vmem:[#allocation71_spill] sm:$0xff] %v18073_v62 }
 0x2fa   :  { %v12929_v51 = vpop.f32.mrf.mxu0  ;;  %v14187_v52 = vld [vmem:[%s23602_s3 + $0x100] ss:$8 sps:$4 sm:$0xff]   ;;  %v18083_v23 = vpop.permute.xlu0 %13129 }
 0x2fb   :  { %v2778_v27 = vpop.f32.mrf.mxu1  ;;  %v18071_v54 = vadd.f32 %v12929_v51, %v2762_v49  ;;  %5178 = vmatpush1.bf16.msra.mxu1 %v14187_v52 }
 0x2fc   :  { %v3027_v0 = vpop.f32.mrf.mxu0 }
 0x2fd   :  { %24569 = vst [vmem:[#allocation42_spill] sm:$0xff] %v18071_v54  ;;  %v2780_v30 = vpop.f32.mrf.mxu1  ;;  %v18075_v47 = vadd.f32 %v3027_v0, %v2754_v18  ;;  %v18089_v18 = vpop.permute.xlu1 %13134 }
 0x2fe   :  { %v12930_v5 = vpop.f32.mrf.mxu0  ;;  %24572 = vst [vmem:[#allocation72_spill] sm:$0xff] %v18089_v18  ;;  %v18091_v58 = vpop.permute.xlu0 %13139 }
 0x2ff   :  { %v2781_v14 = vpop.f32.mrf.mxu1  ;;  %v18085_v49 = vadd.f32 %v12930_v5, %v2765_v42  ;;  %v13061_v5 = vunpack.i.l.bf16 %v17960_v6 }
 0x300   :  { %v18087_v30 = vpop.f32.mrf.mxu0 }
 0x301   :  { %24571 = vst [vmem:[#allocation13_spill] sm:$0xff] %v18085_v49  ;;  %v2783_v51 = vpop.f32.mrf.mxu1 }
 0x302   :  { %v12933_v44 = vpop.f32.mrf.mxu0  ;;  %v18099_v51 = vpop.permute.xlu1 %13144 }
 0x303   :  { %v2786_v0 = vpop.f32.mrf.mxu1  ;;  %v18093_v33 = vadd.f32 %v12933_v44, %v2778_v27  ;;  %v18112_v48 = vpop.permute.xlu0 %13149 }
 0x304   :  { %v3043_v25 = vpop.f32.mrf.mxu0  ;;  %24575 = vst [vmem:[#allocation93_spill] sm:$0xff] %v18112_v48 }
 0x305   :  { %24573 = vst [vmem:[#allocation92_spill] sm:$0xff] %v18093_v33  ;;  %v2788_v29 = vpop.f32.mrf.mxu1  ;;  %v18101_v52 = vadd.f32 %v3043_v25, %v2770_v26  ;;  %v24588_v26 = vunpack.i.h.bf16 %v17960_v6 }
 0x306   :  { %v12934_v15 = vpop.f32.mrf.mxu0 }
 0x307   :  { %24574 = vst [vmem:[#allocation73_spill] sm:$0xff] %v18101_v52  ;;  %v18107_v29 = vpop.f32.mrf.mxu1  ;;  %v18114_v25 = vadd.f32 %v12934_v15, %v2781_v14  ;;  %v18126_v14 = vpop.permute.xlu1 %13154  ;;  %v14190_v15 = vld [vmem:[%s23602_s3 + $0x1f0] ss:$8 sps:$4 sm:$0xff]  }
 0x308   :  { %v18120_v52 = vpop.f32.mrf.mxu0 }
 0x309   :  { %24576 = vst [vmem:[#allocation74_spill] sm:$0xff] %v18114_v25  ;;  %v2791_v44 = vpop.f32.mrf.mxu1  ;;  %24577 = vst [vmem:[#allocation47_spill] sm:$0xff] %v18120_v52 }
 0x30a   :  { %v12937_v25 = vpop.f32.mrf.mxu0 }
 0x30b   :  { %v2794_v27 = vpop.f32.mrf.mxu1  ;;  %v18136_v35 = vpop.permute.xlu0 %13159 }
 0x30c   :  { %v18134_v52 = vadd.f32 %v12937_v25, %v2794_v27  ;;  %24579 = vst [vmem:[#allocation64_spill] sm:$0xff] %v18136_v35  ;;  %v13161_v49 = vunpack.i.l.bf16 %v18136_v35  ;;  %v3059_v48 = vpop.f32.mrf.mxu0  ;;  %v18146_v25 = vpop.permute.xlu1 %13164 }
 0x30d   :  { %v2796_v44 = vpop.f32.mrf.mxu1  ;;  %24580 = vst [vmem:[#allocation76_spill] sm:$0xff] %v18146_v25  ;;  %v18148_v42 = vadd.f32 %v3059_v48, %v2786_v0  ;;  %v24582_v48 = vunpack.i.h.bf16 %v18136_v35  ;;  %v13166_v33 = vunpack.i.l.bf16 %v18146_v25 }
 0x30e   :  { %24578 = vst [vmem:[#allocation75_spill] sm:$0xff] %v18134_v52  ;;  %v14192_v44 = vld [vmem:[%s23602_s3 + $0x1f4] ss:$8 sps:$4 sm:$0xff]   ;;  %v3719_v27 = vsel %vm3718_vm1, %v13061_v5, %v13161_v49  ;;  %v12938_v52 = vpop.f32.mrf.mxu0 }
 0x30f   :  { %24581 = vst [vmem:[#allocation94_spill] sm:$0xff] %v18148_v42  ;;  %v2797_v55 = vpop.f32.mrf.mxu1  ;;  %v3720_v0 = vsel %vm3718_vm1, %v13161_v49, %v24582_v48  ;;  %v18167_v38 = vpop.permute.xlu0 %13169  ;;  %5179 = vmatprep.subr.bf16.mxu1 %v14192_v44  ;;  %v18175_v49 = vadd.f32 %v18018_v63, %v17749_v4  ;;  %v24592_v44 = vunpack.i.h.bf16 %v18146_v25 }
 0x310   :  { %v18165_v62 = vadd.f32 %v12938_v52, %v2797_v55  ;;  %24584 = vst [vmem:[#allocation95_spill] sm:$0xff] %v18167_v38  ;;  %v23866_v5 = vunpack.i.h.bf16 %v18167_v38  ;;  %v13171_v54 = vunpack.i.l.bf16 %v18167_v38  ;;  %v3062_v35 = vpop.f32.mrf.mxu0  ;;  %5180 = vmatpush2.bf16.msra.mxu1 %v14190_v15  ;;  %v24586_v55 = vld [vmem:[#allocation69_spill] sm:$0xff] }
 0x311   :  { %v2799_v18 = vpop.f32.mrf.mxu1  ;;  %24585 = vst [vmem:[#allocation78_spill] sm:$0xff] %v18175_v49  ;;  %v3899_v52 = vmax.f32 %v24586_v55, %v3719_v27  ;;  %v18181_v48 = vadd.f32 %v3062_v35, %v18107_v29  ;;  %v3900_v27 = vmax.f32 %v24413_v20, %v3720_v0  ;;  %v4201_v35 = vsel %vm4199_vm2, %v13166_v33, %v24592_v44  ;;  %v24593_v29 = vld [vmem:[#allocation56_spill] sm:$0xff] }
 0x312   :  { %24583 = vst [vmem:[#allocation77_spill] sm:$0xff] %v18165_v62  ;;  %v3723_v18 = vsel %vm3718_vm1, %v24588_v26, %v13171_v54  ;;  %v3724_v15 = vsel %vm3718_vm1, %v13171_v54, %v23866_v5  ;;  %v12941_v63 = vpop.f32.mrf.mxu0  ;;  %v4200_v54 = vsel %vm4199_vm2, %v24591_v34, %v13166_v33  ;;  %v24594_v34 = vunpack.i.h.bf16 %v17994_v3 }
 0x313   :  { %24587 = vst [vmem:[#allocation48_spill] sm:$0xff] %v18181_v48  ;;  %v2802_v4 = vpop.f32.mrf.mxu1  ;;  %v18196_v6 = vpop.permute.xlu1 %13184  ;;  %v4380_v38 = vmax.f32 %v3899_v52, %v4200_v54  ;;  %v3904_v62 = vmax.f32 %v24593_v29, %v3723_v18  ;;  %v3905_v48 = vmax.f32 %v24421_v9, %v3724_v15  ;;  %v4381_v33 = vmax.f32 %v3900_v27, %v4201_v35 }
 0x314   :  { %24589 = vst [vmem:[#allocation79_spill] sm:$0xff] %v18196_v6  ;;  %v18198_v26 = vpop.permute.xlu0 %13174  ;;  %v3075_v55 = vpop.f32.mrf.mxu0  ;;  %v13186_v52 = vunpack.i.l.bf16 %v18196_v6  ;;  %v24599_v18 = vunpack.i.l.bf16 %v18013_v60 }
 0x315   :  { %24590 = vst [vmem:[#allocation15_spill] sm:$0xff] %v18198_v26  ;;  %v13176_v20 = vunpack.i.l.bf16 %v18198_v26  ;;  %v2804_v0 = vpop.f32.mrf.mxu1  ;;  %v18209_v46 = vadd.f32 %v3075_v55, %v2802_v4  ;;  %v24595_v39 = vunpack.i.h.bf16 %v18198_v26  ;;  %v24712_v26 = vunpack.i.h.bf16 %v18099_v51 }
 0x316   :  { %v12942_v0 = vpop.f32.mrf.mxu0 }
 0x317   :  { %v4204_v5 = vsel %vm4199_vm2, %v24594_v34, %v13176_v20  ;;  %v2805_v42 = vpop.f32.mrf.mxu1  ;;  %v4205_v25 = vsel %vm4199_vm2, %v13176_v20, %v24595_v39  ;;  %v18222_v9 = vpop.permute.xlu1 %13189 }
 0x318   :  { %v4385_v44 = vmax.f32 %v3904_v62, %v4204_v5  ;;  %24596 = vst [vmem:[#allocation80_spill] sm:$0xff] %v18222_v9  ;;  %v18224_v15 = vpop.permute.xlu0 %13179  ;;  %v4386_v3 = vmax.f32 %v3905_v48, %v4205_v25  ;;  %v23875_v4 = vunpack.i.h.bf16 %v18222_v9  ;;  %v13191_v55 = vunpack.i.l.bf16 %v18222_v9  ;;  %v3078_v35 = vpop.f32.mrf.mxu0 }
 0x319   :  { %24597 = vst [vmem:[#allocation96_spill] sm:$0xff] %v18224_v15  ;;  %v23876_v29 = vunpack.i.h.bf16 %v18224_v15  ;;  %v13181_v39 = vunpack.i.l.bf16 %v18224_v15  ;;  %v2807_v27 = vpop.f32.mrf.mxu1  ;;  %v18232_v62 = vadd.f32 %v18038_v24, %v17839_v37  ;;  %v18234_v54 = vadd.f32 %v3078_v35, %v2805_v42 }
 0x31a   :  { %v4480_v5 = vpack.c.bf16 %v4385_v44, %v4380_v38  ;;  %v4481_v20 = vpack.c.bf16 %v4386_v3, %v4381_v33  ;;  %v24598_v25 = vunpack.i.h.bf16 %v18013_v60  ;;  %v3732_v34 = vsel %vm3718_vm1, %v13191_v55, %v23875_v4  ;;  %v18248_v38 = vpop.f32.mrf.mxu0  ;;  %v24601_v44 = vld [vmem:[#allocation21_spill] sm:$0xff] }
 0x31b   :  { %v3727_v27 = vsel %vm3718_vm1, %v24599_v18, %v13181_v39  ;;  %v3728_v24 = vsel %vm3718_vm1, %v13181_v39, %v23876_v29  ;;  %v2810_v37 = vpop.f32.mrf.mxu1  ;;  %v24600_v42 = vunpack.i.l.bf16 %v18020_v17  ;;  %v18258_v60 = vpop.permute.xlu1 %13204  ;;  %v24604_v39 = vld [vmem:[#allocation24_spill] sm:$0xff] }
 0x31c   :  { %v3731_v48 = vsel %vm3718_vm1, %v24598_v25, %v13191_v55  ;;  %v3909_v3 = vmax.f32 %v24601_v44, %v3727_v27  ;;  %v18256_v35 = vadd.f32 %v12941_v63, %v2810_v37  ;;  %24602 = vst [vmem:[#allocation81_spill] sm:$0xff] %v18258_v60  ;;  %v18260_v18 = vpop.permute.xlu0 %13194  ;;  %5062 = vmatprep.mubr.bf16.mxu0 %v4481_v20  ;;  %v24605_v27 = vunpack.i.h.bf16 %v18196_v6 }
 0x31d   :  { %v4208_v33 = vsel %vm4199_vm2, %v24600_v42, %v13186_v52  ;;  %24603 = vst [vmem:[#allocation97_spill] sm:$0xff] %v18260_v18  ;;  %v3914_v25 = vmax.f32 %v24604_v39, %v3731_v48  ;;  %v23878_v4 = vunpack.i.h.bf16 %v18260_v18  ;;  %v13196_v29 = vunpack.i.l.bf16 %v18260_v18  ;;  %v2812_v49 = vpop.f32.mrf.mxu1  ;;  %5063 = vmatmul.mubr.bf16.vlgmr.msra.gmra.mxu0 %v4480_v5  ;;  %v3091_v42 = vpop.f32.mrf.mxu0 }
 0x31e   :  { %v4209_v44 = vsel %vm4199_vm2, %v13186_v52, %v24605_v27  ;;  %v3910_v20 = vmax.f32 %v24427_v8, %v3728_v24  ;;  %v3915_v48 = vmax.f32 %v24435_v7, %v3732_v34  ;;  %v13206_v39 = vunpack.i.l.bf16 %v18258_v60  ;;  %v14195_v24 = vld [vmem:[%s23602_s3 + $0x1e4] ss:$8 sps:$4 sm:$0xff]  }
 0x31f   :  { %v24606_v55 = vunpack.i.h.bf16 %v18020_v17  ;;  %v2813_v5 = vpop.f32.mrf.mxu1  ;;  %v4213_v52 = vsel %vm4199_vm2, %v13196_v29, %v23878_v4  ;;  %v4390_v27 = vmax.f32 %v3909_v3, %v4208_v33  ;;  %v18282_v37 = vpop.permute.xlu1 %13209  ;;  %v14193_v17 = vld [vmem:[%s23602_s3 + $0x1e0] ss:$8 sps:$4 sm:$0xff]   ;;  %5181 = vmatprep.subr.bf16.mxu1 %v14195_v24 }
 0x320   :  { %v18280_v63 = vadd.f32 %v12942_v0, %v2813_v5  ;;  %24607 = vst [vmem:[#allocation69_spill] sm:$0xff] %v18282_v37  ;;  %v18284_v8 = vpop.permute.xlu0 %13199  ;;  %v4391_v7 = vmax.f32 %v3910_v20, %v4209_v44  ;;  %v4396_v34 = vmax.f32 %v3915_v48, %v4213_v52  ;;  %v13211_v33 = vunpack.i.l.bf16 %v18282_v37  ;;  %5182 = vmatpush2.bf16.msra.mxu1 %v14193_v17 }
 0x321   :  { %v4212_v49 = vsel %vm4199_vm2, %v24606_v55, %v13196_v29  ;;  %24608 = vst [vmem:[#allocation56_spill] sm:$0xff] %v18284_v8  ;;  %v23880_v29 = vunpack.i.h.bf16 %v18282_v37  ;;  %v13201_v3 = vunpack.i.l.bf16 %v18284_v8  ;;  %v2815_v55 = vpop.f32.mrf.mxu1  ;;  %v24609_v5 = vunpack.i.h.bf16 %v18023_v36 }
 0x322   :  { %v4395_v6 = vmax.f32 %v3914_v25, %v4212_v49  ;;  %v18296_v25 = vpop.f32.mrf.mxu0  ;;  %v4486_v48 = vpack.c.bf16 %v4396_v34, %v4391_v7  ;;  %v24610_v55 = vunpack.i.l.bf16 %v18023_v36  ;;  %v24611_v44 = vunpack.i.h.bf16 %v18284_v8 }
 0x323   :  { %v3739_v52 = vsel %vm3718_vm1, %v24609_v5, %v13211_v33  ;;  %v3740_v4 = vsel %vm3718_vm1, %v13211_v33, %v23880_v29  ;;  %v2818_v20 = vpop.f32.mrf.mxu1  ;;  %v18320_v24 = vpop.permute.xlu1 %13224  ;;  %v24615_v5 = vunpack.i.l.bf16 %v18028_v61 }
 0x324   :  { %v4485_v49 = vpack.c.bf16 %v4395_v6, %v4390_v27  ;;  %v3735_v0 = vsel %vm3718_vm1, %v24610_v55, %v13201_v3  ;;  %v3736_v18 = vsel %vm3718_vm1, %v13201_v3, %v24611_v44  ;;  %v18315_v6 = vadd.f32 %v18065_v2, %v17929_v1  ;;  %v24612_v27 = vld [vmem:[#allocation59_spill] sm:$0xff]  ;;  %24613 = vst [vmem:[#allocation21_spill] sm:$0xff] %v18320_v24  ;;  %v18322_v33 = vpop.permute.xlu0 %13214 }
 0x325   :  { %v3919_v7 = vmax.f32 %v24612_v27, %v3735_v0  ;;  %v18318_v34 = vadd.f32 %v3091_v42, %v2818_v20  ;;  %24614 = vst [vmem:[#allocation24_spill] sm:$0xff] %v18322_v33  ;;  %5072 = vmatprep.mubr.bf16.mxu0 %v4486_v48  ;;  %v3920_v36 = vmax.f32 %v24441_v56, %v3736_v18  ;;  %v23885_v17 = vunpack.i.h.bf16 %v18322_v33  ;;  %v2820_v2 = vpop.f32.mrf.mxu1  ;;  %v3094_v0 = vpop.f32.mrf.mxu0  ;;  %v24617_v20 = vld [vmem:[#allocation22_spill] sm:$0xff] }
 0x326   :  { %v4216_v3 = vsel %vm4199_vm2, %v24615_v5, %v13206_v39  ;;  %v13216_v1 = vunpack.i.l.bf16 %v18322_v33  ;;  %5073 = vmatmul.mubr.bf16.gmra.mxu0 %v4485_v49  ;;  %v24616_v42 = vunpack.i.h.bf16 %v18258_v60  ;;  %v3924_v55 = vmax.f32 %v24617_v20, %v3739_v52 }
 0x327   :  { %v3925_v48 = vmax.f32 %v24448_v10, %v3740_v4  ;;  %v13226_v27 = vunpack.i.l.bf16 %v18320_v24  ;;  %v24618_v5 = vunpack.i.h.bf16 %v18028_v61  ;;  %v2821_v2 = vpop.f32.mrf.mxu1  ;;  %v18347_v29 = vpop.permute.xlu1 %13229  ;;  %v4400_v4 = vmax.f32 %v3919_v7, %v4216_v3  ;;  %v14196_v3 = vld [vmem:[%s23602_s3 + $0x1d0] ss:$8 sps:$4 sm:$0xff]  }
 0x328   :  { %v4217_v44 = vsel %vm4199_vm2, %v13206_v39, %v24616_v42  ;;  %v4221_v39 = vsel %vm4199_vm2, %v13216_v1, %v23885_v17  ;;  %v18345_v20 = vadd.f32 %v3094_v0, %v2821_v2  ;;  %24619 = vst [vmem:[#allocation59_spill] sm:$0xff] %v18347_v29  ;;  %v18349_v56 = vpop.permute.xlu0 %13219  ;;  %v23883_v18 = vunpack.i.h.bf16 %v18347_v29 }
 0x329   :  { %v4220_v49 = vsel %vm4199_vm2, %v24618_v5, %v13216_v1  ;;  %v4401_v42 = vmax.f32 %v3920_v36, %v4217_v44  ;;  %24620 = vst [vmem:[#allocation22_spill] sm:$0xff] %v18349_v56  ;;  %v4406_v10 = vmax.f32 %v3925_v48, %v4221_v39  ;;  %v13231_v61 = vunpack.i.l.bf16 %v18347_v29  ;;  %v2823_v33 = vpop.f32.mrf.mxu1  ;;  %v18355_v1 = vpop.f32.mrf.mxu0 }
 0x32a   :  { %v4405_v52 = vmax.f32 %v3924_v55, %v4220_v49  ;;  %v23884_v5 = vunpack.i.h.bf16 %v18349_v56  ;;  %v13221_v60 = vunpack.i.l.bf16 %v18349_v56  ;;  %v18359_v36 = vadd.f32 %v18087_v30, %v18011_v12  ;;  %v14198_v55 = vld [vmem:[%s23602_s3 + $0x1d4] ss:$8 sps:$4 sm:$0xff]  }
 0x32b   :  { %v4491_v44 = vpack.c.bf16 %v4406_v10, %v4401_v42  ;;  %v24621_v33 = vunpack.i.h.bf16 %v18033_v57  ;;  %v3748_v12 = vsel %vm3718_vm1, %v13231_v61, %v23883_v18  ;;  %v24622_v30 = vunpack.i.l.bf16 %v18033_v57  ;;  %v2826_v39 = vpop.f32.mrf.mxu1  ;;  %v14203_v42 = vld [vmem:[%s23602_s3 + $0x1c4] ss:$8 sps:$4 sm:$0xff]   ;;  %v18391_v57 = vpop.permute.xlu1 %13244  ;;  %5183 = vmatprep.subr.bf16.mxu1 %v14198_v55 }
 0x32c   :  { %v4490_v7 = vpack.c.bf16 %v4405_v52, %v4400_v4  ;;  %v3744_v2 = vsel %vm3718_vm1, %v13221_v60, %v23884_v5  ;;  %v24623_v52 = vunpack.i.l.bf16 %v18040_v22  ;;  %v24624_v4 = vld [vmem:[#allocation23_spill] sm:$0xff]  ;;  %5184 = vmatpush2.bf16.msra.mxu1 %v14196_v3 }
 0x32d   :  { %v3747_v48 = vsel %vm3718_vm1, %v24621_v33, %v13231_v61  ;;  %v3743_v49 = vsel %vm3718_vm1, %v24622_v30, %v13221_v60  ;;  %v18389_v61 = vadd.f32 %v18248_v38, %v2826_v39  ;;  %24625 = vst [vmem:[#allocation23_spill] sm:$0xff] %v18391_v57  ;;  %v18393_v30 = vpop.permute.xlu0 %13234  ;;  %5082 = vmatprep.mubr.bf16.mxu0 %v4491_v44  ;;  %v24627_v18 = vld [vmem:[#allocation27_spill] sm:$0xff]  ;;  %v2828_v29 = vpop.f32.mrf.mxu1  ;;  %v18405_v44 = vld [vmem:[%s23602_s3 + $0x250] sm:$0x77] }
 0x32e   :  { %v4224_v10 = vsel %vm4199_vm2, %v24623_v52, %v13226_v27  ;;  %v3929_v33 = vmax.f32 %v24624_v4, %v3743_v49  ;;  %24626 = vst [vmem:[#allocation99_spill] sm:$0xff] %v18393_v30  ;;  %v3930_v60 = vmax.f32 %v24453_v40, %v3744_v2  ;;  %v3934_v5 = vmax.f32 %v24627_v18, %v3747_v48  ;;  %v3107_v52 = vpop.f32.mrf.mxu0 }
 0x32f   :  { %v23888_v17 = vunpack.i.h.bf16 %v18393_v30  ;;  %v13236_v0 = vunpack.i.l.bf16 %v18393_v30  ;;  %5083 = vmatmul.mubr.bf16.gmra.mxu0 %v4490_v7  ;;  %v24628_v49 = vunpack.i.h.bf16 %v18320_v24  ;;  %v13246_v48 = vunpack.i.l.bf16 %v18391_v57  ;;  %v2829_v2 = vpop.f32.mrf.mxu1  ;;  %5185 = vmatprep.subr.bf16.mxu1 %v14203_v42  ;;  %v18424_v3 = vpop.permute.xlu1 %13249 }
 0x330   :  { %v3935_v29 = vmax.f32 %v24460_v19, %v3748_v12  ;;  %v24629_v7 = vunpack.i.h.bf16 %v18040_v22  ;;  %v18422_v19 = vadd.f32 %v18296_v25, %v2829_v2  ;;  %24630 = vst [vmem:[#allocation27_spill] sm:$0xff] %v18424_v3  ;;  %v11930_v22 = vcombine.high %v18405_v44, %v18405_v44  ;;  %v14209_v25 = vld [vmem:[%s23602_s3 + $0x1b4] ss:$8 sps:$4 sm:$0xff]  }
 0x331   :  { %v4225_v38 = vsel %vm4199_vm2, %v13226_v27, %v24628_v49  ;;  %v14201_v27 = vld [vmem:[%s23602_s3 + $0x1c0] ss:$8 sps:$4 sm:$0xff]   ;;  %v4229_v39 = vsel %vm4199_vm2, %v13236_v0, %v23888_v17  ;;  %v4410_v49 = vmax.f32 %v3929_v33, %v4224_v10  ;;  %v18426_v12 = vpop.permute.xlu0 %13239  ;;  %v13251_v24 = vunpack.i.l.bf16 %v18424_v3  ;;  %v18434_v10 = vpop.f32.mrf.mxu0 }
 0x332   :  { %v4228_v55 = vsel %vm4199_vm2, %v24629_v7, %v13236_v0  ;;  %v4411_v4 = vmax.f32 %v3930_v60, %v4225_v38  ;;  %24631 = vst [vmem:[#allocation100_spill] sm:$0xff] %v18426_v12  ;;  %v4416_v18 = vmax.f32 %v3935_v29, %v4229_v39  ;;  %v23889_v7 = vunpack.i.h.bf16 %v18424_v3  ;;  %5186 = vmatpush2.bf16.msra.mxu1 %v14201_v27  ;;  %v14207_v29 = vld [vmem:[%s23602_s3 + $0x1b0] ss:$8 sps:$4 sm:$0xff]   ;;  %v24674_v3 = vld [vmem:[#allocation6_spill] sm:$0xff] }
 0x333   :  { %v4415_v40 = vmax.f32 %v3934_v5, %v4228_v55  ;;  %v23890_v0 = vunpack.i.h.bf16 %v18426_v12  ;;  %v13241_v42 = vunpack.i.l.bf16 %v18426_v12  ;;  %v2831_v5 = vpop.f32.mrf.mxu1  ;;  %v24632_v55 = vunpack.i.h.bf16 %v18048_v21  ;;  %11931 = vmatprep.subr.msk.bf16.mxu0 %vm5023_vm3, %v11930_v22  ;;  %5187 = vmatprep.subr.bf16.mxu1 %v14209_v25 }
 0x334   :  { %v4496_v60 = vpack.c.bf16 %v4416_v18, %v4411_v4  ;;  %v3756_v39 = vsel %vm3718_vm1, %v13251_v24, %v23889_v7  ;;  %v24633_v5 = vunpack.i.l.bf16 %v18048_v21  ;;  %v24634_v27 = vunpack.i.l.bf16 %v18053_v43  ;;  %v24638_v7 = vld [vmem:[#allocation30_spill] sm:$0xff] }
 0x335   :  { %v4495_v38 = vpack.c.bf16 %v4415_v40, %v4410_v49  ;;  %v3755_v2 = vsel %vm3718_vm1, %v24632_v55, %v13251_v24  ;;  %v3752_v40 = vsel %vm3718_vm1, %v13241_v42, %v23890_v0  ;;  %v2834_v18 = vpop.f32.mrf.mxu1  ;;  %v24635_v49 = vld [vmem:[#allocation3_spill] sm:$0xff]  ;;  %v18463_v24 = vpop.permute.xlu1 %13264 }
 0x336   :  { %v3751_v17 = vsel %vm3718_vm1, %v24633_v5, %v13241_v42  ;;  %v4232_v4 = vsel %vm4199_vm2, %v24634_v27, %v13246_v48  ;;  %v18461_v33 = vadd.f32 %v3107_v52, %v2834_v18  ;;  %24636 = vst [vmem:[#allocation3_spill] sm:$0xff] %v18463_v24  ;;  %v18465_v21 = vpop.permute.xlu0 %13254  ;;  %5092 = vmatprep.mubr.bf16.mxu0 %v4496_v60  ;;  %v3110_v27 = vpop.f32.mrf.mxu0 }
 0x337   :  { %v3939_v55 = vmax.f32 %v24635_v49, %v3751_v17  ;;  %24637 = vst [vmem:[#allocation101_spill] sm:$0xff] %v18465_v21  ;;  %v3940_v5 = vmax.f32 %v24465_v50, %v3752_v40  ;;  %v3944_v42 = vmax.f32 %v24638_v7, %v3755_v2  ;;  %v23892_v0 = vunpack.i.h.bf16 %v18465_v21  ;;  %v2836_v12 = vpop.f32.mrf.mxu1  ;;  %5093 = vmatmul.mubr.bf16.gmra.mxu0 %v4495_v38 }
 0x338   :  { %v13256_v22 = vunpack.i.l.bf16 %v18465_v21  ;;  %v24639_v17 = vunpack.i.h.bf16 %v18391_v57  ;;  %v13266_v50 = vunpack.i.l.bf16 %v18463_v24  ;;  %v3945_v7 = vmax.f32 %v24472_v31, %v3756_v39  ;;  %5188 = vmatpush2.bf16.msra.mxu1 %v14207_v29 }
 0x339   :  { %v24640_v2 = vunpack.i.h.bf16 %v18053_v43  ;;  %v2837_v38 = vpop.f32.mrf.mxu1  ;;  %v4420_v40 = vmax.f32 %v3939_v55, %v4232_v4  ;;  %v18487_v18 = vpop.permute.xlu1 %13269  ;;  %v11929_v43 = vcombine.low %v18405_v44, %v18405_v44 }
 0x33a   :  { %v4233_v52 = vsel %vm4199_vm2, %v13246_v48, %v24639_v17  ;;  %v4237_v48 = vsel %vm4199_vm2, %v13256_v22, %v23892_v0  ;;  %v18485_v17 = vadd.f32 %v3110_v27, %v2837_v38  ;;  %24641 = vst [vmem:[#allocation30_spill] sm:$0xff] %v18487_v18  ;;  %v18489_v60 = vpop.permute.xlu0 %13259  ;;  %v23894_v29 = vunpack.i.h.bf16 %v18487_v18  ;;  %v18497_v55 = vpop.f32.mrf.mxu0 }
 0x33b   :  { %v4236_v12 = vsel %vm4199_vm2, %v24640_v2, %v13256_v22  ;;  %v4421_v25 = vmax.f32 %v3940_v5, %v4233_v52  ;;  %24642 = vst [vmem:[#allocation102_spill] sm:$0xff] %v18489_v60  ;;  %v4426_v31 = vmax.f32 %v3945_v7, %v4237_v48  ;;  %v13271_v39 = vunpack.i.l.bf16 %v18487_v18  ;;  %v2839_v4 = vpop.f32.mrf.mxu1  ;;  %v24651_v22 = vld [vmem:[#allocation42_spill] sm:$0xff] }
 0x33c   :  { %v4425_v49 = vmax.f32 %v3944_v42, %v4236_v12  ;;  %v23893_v2 = vunpack.i.h.bf16 %v18489_v60  ;;  %v13261_v5 = vunpack.i.l.bf16 %v18489_v60  ;;  %v14206_v42 = vld [vmem:[%s23602_s3 + $0x244] ss:$8 sps:$4 sm:$0xff]   ;;  %v5025_v52 = vsel %vm5023_vm3, %v11929_v43, 0 }
 0x33d   :  { %v4501_v27 = vpack.c.bf16 %v4426_v31, %v4421_v25  ;;  %v24643_v7 = vunpack.i.h.bf16 %v18060_v53  ;;  %v3764_v38 = vsel %vm3718_vm1, %v13271_v39, %v23894_v29  ;;  %v24644_v48 = vunpack.i.l.bf16 %v18060_v53  ;;  %v2842_v25 = vpop.f32.mrf.mxu1  ;;  %5301 = vmatpush1.bf16.msra.mxu0 %v5025_v52  ;;  %v24645_v31 = vld [vmem:[#allocation4_spill] sm:$0xff]  ;;  %v18525_v53 = vpop.permute.xlu1 %13284 }
 0x33e   :  { %v4500_v44 = vpack.c.bf16 %v4425_v49, %v4420_v40  ;;  %v3760_v0 = vsel %vm3718_vm1, %v13261_v5, %v23893_v2  ;;  %v14204_v40 = vld [vmem:[%s23602_s3 + $0x240] ss:$8 sps:$4 sm:$0xff]   ;;  %24646 = vst [vmem:[#allocation4_spill] sm:$0xff] %v18525_v53  ;;  %v14212_v52 = vld [vmem:[%s23602_s3 + $0x234] ss:$8 sps:$4 sm:$0xff]   ;;  %v24649_v29 = vunpack.i.h.bf16 %v18463_v24  ;;  %5302 = vmatprep.subr.bf16.mxu0 %v14206_v42 }
 0x33f   :  { %v3763_v12 = vsel %vm3718_vm1, %v24643_v7, %v13271_v39  ;;  %v3759_v4 = vsel %vm3718_vm1, %v24644_v48, %v13261_v5  ;;  %v18523_v39 = vadd.f32 %v18355_v1, %v2842_v25  ;;  %v18527_v7 = vpop.permute.xlu0 %13274  ;;  %5102 = vmatprep.mubr.bf16.mxu0 %v4501_v27  ;;  %v3950_v5 = vmax.f32 %v24481_v45, %v3760_v0  ;;  %v2844_v25 = vpop.f32.mrf.mxu1  ;;  %v24650_v45 = vld [vmem:[#allocation5_spill] sm:$0xff] }
 0x340   :  { %v3949_v43 = vmax.f32 %v24645_v31, %v3759_v4  ;;  %24647 = vst [vmem:[#allocation103_spill] sm:$0xff] %v18527_v7  ;;  %v24648_v48 = vunpack.i.l.bf16 %v18067_v13  ;;  %v13276_v1 = vunpack.i.l.bf16 %v18527_v7  ;;  %5103 = vmatmul.mubr.bf16.gmra.mxu0 %v4500_v44  ;;  %v3123_v31 = vpop.f32.mrf.mxu0  ;;  %v4241_v27 = vsel %vm4199_vm2, %v13266_v50, %v24649_v29  ;;  %v14210_v42 = vld [vmem:[%s23602_s3 + $0x230] ss:$8 sps:$4 sm:$0xff]  }
 0x341   :  { %v3954_v0 = vmax.f32 %v24650_v45, %v3763_v12  ;;  %v13286_v4 = vunpack.i.l.bf16 %v18525_v53  ;;  %v24653_v25 = vunpack.i.h.bf16 %v18067_v13  ;;  %v2845_v21 = vpop.f32.mrf.mxu1  ;;  %v24654_v24 = vunpack.i.h.bf16 %v18527_v7  ;;  %5303 = vmatpush1.bf16.msra.mxu0 %v14204_v40  ;;  %v18559_v45 = vpop.permute.xlu1 %13289 }
 0x342   :  { %v4240_v2 = vsel %vm4199_vm2, %v24648_v48, %v13266_v50  ;;  %v24652_v48 = vld [vmem:[#allocation34_spill] sm:$0xff]  ;;  %v4431_v29 = vmax.f32 %v3950_v5, %v4241_v27  ;;  %24655 = vst [vmem:[#allocation5_spill] sm:$0xff] %v18559_v45  ;;  %5304 = vmatprep.subr.bf16.mxu0 %v14212_v52  ;;  %v23902_v49 = vunpack.i.h.bf16 %v18559_v45  ;;  %v18567_v27 = vpop.f32.mrf.mxu0 }
 0x343   :  { %v3955_v18 = vmax.f32 %v24652_v48, %v3764_v38  ;;  %v4244_v44 = vsel %vm4199_vm2, %v24653_v25, %v13276_v1  ;;  %v4245_v50 = vsel %vm4199_vm2, %v13276_v1, %v24654_v24  ;;  %v18557_v38 = vadd.f32 %v18434_v10, %v2845_v21  ;;  %v18561_v13 = vpop.permute.xlu0 %13279  ;;  %v2847_v1 = vpop.f32.mrf.mxu1  ;;  %v24657_v10 = vld [vmem:[#allocation93_spill] sm:$0xff] }
 0x344   :  { %v4435_v12 = vmax.f32 %v3954_v0, %v4244_v44  ;;  %24656 = vst [vmem:[#allocation42_spill] sm:$0xff] %v18561_v13  ;;  %v4430_v25 = vmax.f32 %v3949_v43, %v4240_v2  ;;  %v13291_v24 = vunpack.i.l.bf16 %v18559_v45  ;;  %v13281_v5 = vunpack.i.l.bf16 %v18561_v13  ;;  %v24658_v0 = vld [vmem:[#allocation13_spill] sm:$0xff]  ;;  %v24659_v2 = vld [vmem:[#allocation70_spill] sm:$0xff] }
 0x345   :  { %v4436_v48 = vmax.f32 %v3955_v18, %v4245_v50  ;;  %v24660_v43 = vunpack.i.h.bf16 %v24659_v2  ;;  %v24661_v40 = vunpack.i.l.bf16 %v24659_v2  ;;  %v24662_v7 = vunpack.i.h.bf16 %v18561_v13  ;;  %v2850_v57 = vpop.f32.mrf.mxu1  ;;  %5305 = vmatpush1.bf16.msra.mxu0 %v14210_v42  ;;  %v18591_v45 = vpop.permute.xlu1 %13304 }
 0x346   :  { %v4505_v18 = vpack.c.bf16 %v4435_v12, %v4430_v25  ;;  %v3772_v50 = vsel %vm3718_vm1, %v13291_v24, %v23902_v49  ;;  %v24664_v12 = vld [vmem:[#allocation47_spill] sm:$0xff]  ;;  %v18589_v44 = vadd.f32 %v3123_v31, %v2850_v57  ;;  %24666 = vst [vmem:[#allocation34_spill] sm:$0xff] %v18591_v45  ;;  %v24671_v57 = vunpack.i.h.bf16 %v18525_v53 }
 0x347   :  { %v4506_v60 = vpack.c.bf16 %v4436_v48, %v4431_v29  ;;  %v3771_v52 = vsel %vm3718_vm1, %v24660_v43, %v13291_v24  ;;  %v3767_v1 = vsel %vm3718_vm1, %v24661_v40, %v13281_v5  ;;  %v3768_v21 = vsel %vm3718_vm1, %v13281_v5, %v24662_v7  ;;  %v24663_v29 = vld [vmem:[#allocation91_spill] sm:$0xff]  ;;  %v18593_v24 = vpop.permute.xlu0 %13294  ;;  %v24668_v40 = vld [vmem:[#allocation32_spill] sm:$0xff] }
 0x348   :  { %v18586_v48 = vadd.f32 %v24664_v12, %v24663_v29  ;;  %v24665_v25 = vld [vmem:[#allocation35_spill] sm:$0xff]  ;;  %24667 = vst [vmem:[#allocation93_spill] sm:$0xff] %v18593_v24  ;;  %v3960_v2 = vmax.f32 %v24668_v40, %v3768_v21  ;;  %v13296_v5 = vunpack.i.l.bf16 %v18593_v24  ;;  %v2852_v29 = vpop.f32.mrf.mxu1  ;;  %v4249_v31 = vsel %vm4199_vm2, %v13286_v4, %v24671_v57  ;;  %v24672_v12 = vld [vmem:[#allocation33_spill] sm:$0xff] }
 0x349   :  { %v3959_v43 = vmax.f32 %v24665_v25, %v3767_v1  ;;  %5112 = vmatprep.mubr.bf16.mxu0 %v4506_v60  ;;  %v24669_v49 = vld [vmem:[#allocation71_spill] sm:$0xff]  ;;  %v3126_v1 = vpop.f32.mrf.mxu0  ;;  %v3964_v25 = vmax.f32 %v24672_v12, %v3771_v52  ;;  %v24673_v60 = vld [vmem:[#allocation73_spill] sm:$0xff]  ;;  %v13306_v42 = vunpack.i.l.bf16 %v18591_v45  ;;  %v24676_v53 = vunpack.i.h.bf16 %v18593_v24  ;;  %v18618_v21 = vpop.permute.xlu1 %13309 }
 0x34a   :  { %v24670_v13 = vunpack.i.l.bf16 %v24669_v49  ;;  %5113 = vmatmul.mubr.bf16.gmra.mxu0 %v4505_v18  ;;  %v24675_v30 = vunpack.i.h.bf16 %v24669_v49  ;;  %v2853_v29 = vpop.f32.mrf.mxu1  ;;  %v4441_v57 = vmax.f32 %v3960_v2, %v4249_v31  ;;  %24677 = vst [vmem:[#allocation13_spill] sm:$0xff] %v18618_v21  ;;  %v23910_v56 = vunpack.i.h.bf16 %v18618_v21 }
 0x34b   :  { %v18616_v12 = vadd.f32 %v3126_v1, %v2853_v29  ;;  %v18620_v40 = vpop.permute.xlu0 %13299  ;;  %v13311_v49 = vunpack.i.l.bf16 %v18618_v21  ;;  %v24679_v31 = vunpack.i.h.bf16 %v18083_v23  ;;  %v18641_v29 = vpop.f32.mrf.mxu0 }
 0x34c   :  { %v4248_v7 = vsel %vm4199_vm2, %v24670_v13, %v13286_v4  ;;  %v3965_v13 = vmax.f32 %v24674_v3, %v3772_v50  ;;  %v4252_v18 = vsel %vm4199_vm2, %v24675_v30, %v13296_v5  ;;  %v4253_v4 = vsel %vm4199_vm2, %v13296_v5, %v24676_v53  ;;  %24678 = vst [vmem:[#allocation70_spill] sm:$0xff] %v18620_v40  ;;  %v2855_v8 = vpop.f32.mrf.mxu1 }
 0x34d   :  { %v4445_v52 = vmax.f32 %v3964_v25, %v4252_v18  ;;  %v4440_v50 = vmax.f32 %v3959_v43, %v4248_v7  ;;  %v23911_v30 = vunpack.i.h.bf16 %v18620_v40  ;;  %v13301_v24 = vunpack.i.l.bf16 %v18620_v40  ;;  %v3139_v37 = vpop.f32.mrf.mxu0 }
 0x34e   :  { %v4446_v3 = vmax.f32 %v3965_v13, %v4253_v4  ;;  %v3779_v43 = vsel %vm3718_vm1, %v24679_v31, %v13311_v49  ;;  %v3780_v7 = vsel %vm3718_vm1, %v13311_v49, %v23910_v56  ;;  %v24680_v25 = vunpack.i.l.bf16 %v18083_v23  ;;  %v2858_v18 = vpop.f32.mrf.mxu1  ;;  %v24681_v4 = vld [vmem:[#allocation72_spill] sm:$0xff]  ;;  %v18650_v49 = vpop.permute.xlu1 %13324 }
 0x34f   :  { %v4510_v1 = vpack.c.bf16 %v4445_v52, %v4440_v50  ;;  %v3776_v8 = vsel %vm3718_vm1, %v13301_v24, %v23911_v30  ;;  %v18648_v31 = vadd.f32 %v18497_v55, %v2858_v18  ;;  %24684 = vst [vmem:[#allocation91_spill] sm:$0xff] %v18650_v49  ;;  %v18652_v23 = vpop.permute.xlu0 %13314  ;;  %v24688_v18 = vld [vmem:[#allocation8_spill] sm:$0xff]  ;;  %v24691_v40 = vunpack.i.h.bf16 %v24681_v4 }
 0x350   :  { %v4511_v5 = vpack.c.bf16 %v4446_v3, %v4441_v57  ;;  %v3775_v13 = vsel %vm3718_vm1, %v24680_v25, %v13301_v24  ;;  %v24682_v57 = vunpack.i.l.bf16 %v24681_v4  ;;  %v24683_v3 = vld [vmem:[#allocation39_spill] sm:$0xff]  ;;  %24685 = vst [vmem:[#allocation47_spill] sm:$0xff] %v18652_v23  ;;  %v13326_v24 = vunpack.i.l.bf16 %v18650_v49  ;;  %v2860_v53 = vpop.f32.mrf.mxu1 }
 0x351   :  { %v3969_v50 = vmax.f32 %v24683_v3, %v3775_v13  ;;  %v24686_v25 = vld [vmem:[#allocation7_spill] sm:$0xff]  ;;  %v13316_v2 = vunpack.i.l.bf16 %v18652_v23  ;;  %v24687_v13 = vunpack.i.h.bf16 %v18591_v45  ;;  %v24689_v3 = vld [vmem:[#allocation92_spill] sm:$0xff] }
 0x352   :  { %v4256_v52 = vsel %vm4199_vm2, %v24682_v57, %v13306_v42  ;;  %5122 = vmatprep.mubr.bf16.mxu0 %v4511_v5  ;;  %v3970_v56 = vmax.f32 %v24686_v25, %v3776_v8  ;;  %v3974_v57 = vmax.f32 %v24688_v18, %v3779_v43  ;;  %v24690_v8 = vld [vmem:[#allocation38_spill] sm:$0xff]  ;;  %v2861_v53 = vpop.f32.mrf.mxu1  ;;  %v24693_v18 = vunpack.i.l.bf16 %v18099_v51 }
 0x353   :  { %5123 = vmatmul.mubr.bf16.gmra.mxu0 %v4510_v1  ;;  %v4257_v55 = vsel %vm4199_vm2, %v13306_v42, %v24687_v13  ;;  %v3975_v25 = vmax.f32 %v24690_v8, %v3780_v7  ;;  %v4260_v30 = vsel %vm4199_vm2, %v24691_v40, %v13316_v2  ;;  %v24692_v1 = vunpack.i.h.bf16 %v18652_v23  ;;  %v14215_v43 = vld [vmem:[%s23602_s3 + $0x224] ss:$8 sps:$4 sm:$0xff]   ;;  %v18681_v40 = vpop.permute.xlu1 %13329  ;;  %v18683_v21 = vpop.permute.xlu0 %13319 }
 0x354   :  { %v4451_v42 = vmax.f32 %v3970_v56, %v4257_v55  ;;  %v4450_v13 = vmax.f32 %v3969_v50, %v4256_v52  ;;  %v4264_v7 = vsel %vm4199_vm2, %v24693_v18, %v13326_v24  ;;  %v4455_v8 = vmax.f32 %v3974_v57, %v4260_v30  ;;  %24694 = vst [vmem:[#allocation35_spill] sm:$0xff] %v18681_v40  ;;  %v14213_v56 = vld [vmem:[%s23602_s3 + $0x220] ss:$8 sps:$4 sm:$0xff]   ;;  %v2863_v55 = vpop.f32.mrf.mxu1 }
 0x355   :  { %v4261_v45 = vsel %vm4199_vm2, %v13316_v2, %v24692_v1  ;;  %v18679_v4 = vadd.f32 %v18567_v27, %v2861_v53  ;;  %24695 = vst [vmem:[#allocation32_spill] sm:$0xff] %v18683_v21  ;;  %v13331_v52 = vunpack.i.l.bf16 %v18681_v40  ;;  %v13321_v30 = vunpack.i.l.bf16 %v18683_v21  ;;  %5306 = vmatprep.subr.bf16.mxu0 %v14215_v43  ;;  %v14218_v27 = vld [vmem:[%s23602_s3 + $0x1a4] ss:$8 sps:$4 sm:$0xff]   ;;  %v14216_v50 = vld [vmem:[%s23602_s3 + $0x1a0] ss:$8 sps:$4 sm:$0xff]   ;;  %v18703_v55 = vpop.f32.mrf.mxu0 }
 0x356   :  { %v4456_v5 = vmax.f32 %v3975_v25, %v4261_v45  ;;  %v24696_v45 = vld [vmem:[#allocation74_spill] sm:$0xff]  ;;  %v4515_v53 = vpack.c.bf16 %v4455_v8, %v4450_v13  ;;  %v24697_v1 = vunpack.i.h.bf16 %v18650_v49  ;;  %5307 = vmatpush1.bf16.msra.mxu0 %v14213_v56  ;;  %v24698_v43 = vunpack.i.h.bf16 %v18091_v58  ;;  %v2866_v56 = vpop.f32.mrf.mxu1  ;;  %5189 = vmatprep.subr.bf16.mxu1 %v14218_v27  ;;  %v24702_v57 = vld [vmem:[#allocation11_spill] sm:$0xff]  ;;  %v24703_v49 = vld [vmem:[#allocation9_spill] sm:$0xff] }
 0x357   :  { %v24699_v23 = vunpack.i.h.bf16 %v18681_v40  ;;  %v3140_v9 = vadd.f32 %v3139_v37, %v2866_v56  ;;  %5190 = vmatpush2.bf16.msra.mxu1 %v14216_v50  ;;  %v24711_v50 = vunpack.i.l.bf16 %v18126_v14 }
 0x358   :  { %v4516_v25 = vpack.c.bf16 %v4456_v5, %v4451_v42  ;;  %v4265_v18 = vsel %vm4199_vm2, %v13326_v24, %v24697_v1  ;;  %v3787_v2 = vsel %vm3718_vm1, %v24698_v43, %v13331_v52  ;;  %v24700_v42 = vunpack.i.l.bf16 %v18091_v58  ;;  %v14221_v1 = vld [vmem:[%s23602_s3 + $0x214] ss:$8 sps:$4 sm:$0xff]   ;;  %v18724_v58 = vpop.permute.xlu0 %13334  ;;  %v2868_v37 = vpop.f32.mrf.mxu1 }
 0x359   :  { %v3788_v5 = vsel %vm3718_vm1, %v13331_v52, %v24699_v23  ;;  %v24701_v24 = vunpack.i.h.bf16 %v18683_v21  ;;  %v3984_v43 = vmax.f32 %v24702_v57, %v3787_v2  ;;  %v18722_v23 = vpop.permute.xlu1 %13344  ;;  %24705 = vst [vmem:[#allocation33_spill] sm:$0xff] %v18724_v58  ;;  %v24706_v52 = vld [vmem:[#allocation41_spill] sm:$0xff]  ;;  %5308 = vmatprep.subr.bf16.mxu0 %v14221_v1 }
 0x35a   :  { %v3783_v13 = vsel %vm3718_vm1, %v24700_v42, %v13321_v30  ;;  %24704 = vst [vmem:[#allocation71_spill] sm:$0xff] %v18722_v23  ;;  %5132 = vmatprep.mubr.bf16.mxu0 %v4516_v25  ;;  %v14224_v57 = vld [vmem:[%s23602_s3 + $0x194] ss:$8 sps:$4 sm:$0xff]   ;;  %v24707_v25 = vld [vmem:[#allocation10_spill] sm:$0xff]  ;;  %v14222_v37 = vld [vmem:[%s23602_s3 + $0x190] ss:$8 sps:$4 sm:$0xff]  }
 0x35b   :  { %v3784_v8 = vsel %vm3718_vm1, %v13321_v30, %v24701_v24  ;;  %v3979_v40 = vmax.f32 %v24703_v49, %v3783_v13  ;;  %v14219_v30 = vld [vmem:[%s23602_s3 + $0x210] ss:$8 sps:$4 sm:$0xff]   ;;  %v13346_v24 = vunpack.i.l.bf16 %v18722_v23  ;;  %v13336_v49 = vunpack.i.l.bf16 %v18724_v58  ;;  %5133 = vmatmul.mubr.bf16.gmra.mxu0 %v4515_v53  ;;  %v24708_v13 = vld [vmem:[#allocation94_spill] sm:$0xff]  ;;  %v3142_v53 = vpop.f32.mrf.mxu0  ;;  %5191 = vmatprep.subr.bf16.mxu1 %v14224_v57 }
 0x35c   :  { %v3980_v42 = vmax.f32 %v24706_v52, %v3784_v8  ;;  %v24709_v8 = vmax.f32 %v24707_v25, %v24708_v13  ;;  %v24710_v52 = vld [vmem:[#allocation61_spill] sm:$0xff]  ;;  %v24713_v13 = vunpack.i.h.bf16 %v18724_v58  ;;  %5309 = vmatpush1.bf16.msra.mxu0 %v14219_v30  ;;  %5192 = vmatpush2.bf16.msra.mxu1 %v14222_v37  ;;  %v24718_v57 = vld [vmem:[#allocation78_spill] sm:$0xff] }
 0x35d   :  { %v3985_v27 = vmax.f32 %v24710_v52, %v3788_v5  ;;  %v4460_v15 = vmax.f32 %v3979_v40, %v4264_v7  ;;  %v4272_v2 = vsel %vm4199_vm2, %v24711_v50, %v13346_v24  ;;  %v4268_v25 = vsel %vm4199_vm2, %v24712_v26, %v13336_v49  ;;  %v14227_v5 = vld [vmem:[%s23602_s3 + $0x204] ss:$8 sps:$4 sm:$0xff]   ;;  %v18763_v51 = vpop.permute.xlu1 %13349 }
 0x35e   :  { %v18740_v56 = vmax.f32 %v24709_v8, %v3140_v9  ;;  %v4461_v21 = vmax.f32 %v3980_v42, %v4265_v18  ;;  %v2869_v9 = vpop.f32.mrf.mxu1  ;;  %v4269_v18 = vsel %vm4199_vm2, %v13336_v49, %v24713_v13  ;;  %v24714_v7 = vunpack.i.h.bf16 %v18722_v23  ;;  %v18761_v8 = vpop.permute.xlu0 %13339  ;;  %24716 = vst [vmem:[#allocation6_spill] sm:$0xff] %v18763_v51  ;;  %v24717_v26 = vld [vmem:[#allocation98_spill] sm:$0xff]  ;;  %5310 = vmatprep.subr.bf16.mxu0 %v14227_v5 }
 0x35f   :  { %v4465_v1 = vmax.f32 %v3984_v43, %v4268_v25  ;;  %v3143_v42 = vadd.f32 %v3142_v53, %v2869_v9  ;;  %24715 = vst [vmem:[#allocation73_spill] sm:$0xff] %v18761_v8  ;;  %v4466_v50 = vmax.f32 %v3985_v27, %v4269_v18  ;;  %v13341_v49 = vunpack.i.l.bf16 %v18761_v8  ;;  %v14230_v27 = vld [vmem:[%s23602_s3 + $0x184] ss:$8 sps:$4 sm:$0xff]   ;;  %v24719_v9 = vld [vmem:[#allocation48_spill] sm:$0xff] }
 0x360   :  { %v4273_v40 = vsel %vm4199_vm2, %v13346_v24, %v24714_v7  ;;  %v13358_v52 = vpack.i.bf16 %v18740_v56, %v24717_v26  ;;  %v14225_v24 = vld [vmem:[%s23602_s3 + $0x200] ss:$8 sps:$4 sm:$0xff]   ;;  %v13351_v53 = vunpack.i.l.bf16 %v18763_v51  ;;  %v2871_v25 = vpop.f32.mrf.mxu1  ;;  %v24720_v13 = vmax.f32 %v24718_v57, %v24719_v9  ;;  %5193 = vmatprep.subr.bf16.mxu1 %v14230_v27 }
 0x361   :  { %v4521_v7 = vpack.c.bf16 %v4466_v50, %v4461_v21  ;;  %v4520_v30 = vpack.c.bf16 %v4465_v1, %v4460_v15  ;;  %v24721_v43 = vunpack.i.l.bf16 %v24657_v10  ;;  %v24722_v37 = vunpack.i.h.bf16 %v18761_v8  ;;  %5311 = vmatpush1.bf16.msra.mxu0 %v14225_v24  ;;  %v14228_v15 = vld [vmem:[%s23602_s3 + $0x180] ss:$8 sps:$4 sm:$0xff]   ;;  %v24729_v8 = vld [vmem:[#allocation44_spill] sm:$0xff] }
 0x362   :  { %v18780_v18 = vmax.f32 %v24720_v13, %v3143_v42  ;;  %13359 = vrot.lane.b32.xlu0 %v13358_v52, %s14714_s29  ;;  %v24723_v25 = vunpack.i.h.bf16 %v24657_v10  ;;  %v24724_v57 = vunpack.i.h.bf16 %v18763_v51  ;;  %v2874_v9 = vpop.f32.mrf.mxu1  ;;  %v12961_v13 = vpop.f32.mrf.mxu0  ;;  %v24725_v21 = vld [vmem:[#allocation43_spill] sm:$0xff]  ;;  %v24726_v50 = vld [vmem:[#allocation62_spill] sm:$0xff]  ;;  %5194 = vmatpush2.bf16.msra.mxu1 %v14228_v15 }
 0x363   :  { %v3791_v23 = vsel %vm3718_vm1, %v24721_v43, %v13341_v49  ;;  %v3792_v5 = vsel %vm3718_vm1, %v13341_v49, %v24722_v37  ;;  %v3148_v49 = vadd.f32 %v18641_v29, %v2874_v9  ;;  %5142 = vmatprep.mubr.bf16.mxu0 %v4521_v7  ;;  %v18801_v10 = vpop.permute.xlu0 %13354  ;;  %v24728_v37 = vld [vmem:[#allocation82_spill] sm:$0xff] }
 0x364   :  { %v3795_v58 = vsel %vm3718_vm1, %v24723_v25, %v13351_v53  ;;  %v3796_v42 = vsel %vm3718_vm1, %v13351_v53, %v24724_v57  ;;  %v3989_v1 = vmax.f32 %v24725_v21, %v3791_v23  ;;  %24727 = vst [vmem:[#allocation72_spill] sm:$0xff] %v18801_v10  ;;  %v13368_v25 = vpack.i.bf16 %v18780_v18, %v24728_v37  ;;  %v2876_v57 = vpop.f32.mrf.mxu1  ;;  %v24730_v23 = vld [vmem:[#allocation55_spill] sm:$0xff]  ;;  %v24733_v29 = vld [vmem:[#allocation46_spill] sm:$0xff] }
 0x365   :  { %v3994_v43 = vmax.f32 %v24726_v50, %v3795_v58  ;;  %v13356_v24 = vunpack.i.l.bf16 %v18801_v10  ;;  %5143 = vmatmul.mubr.bf16.gmra.mxu0 %v4520_v30  ;;  %v3990_v51 = vmax.f32 %v24729_v8, %v3792_v5  ;;  %v24731_v21 = vld [vmem:[#allocation75_spill] sm:$0xff]  ;;  %v3995_v7 = vmax.f32 %v24733_v29, %v3796_v42  ;;  %v3155_v30 = vpop.f32.mrf.mxu0 }
 0x366   :  { %v24732_v58 = vmax.f32 %v24730_v23, %v24731_v21  ;;  %13364 = vrot.lane.b32.xlu0 %v13358_v52, %s14715_s30  ;;  %13369 = vrot.lane.b32.xlu1 %v13368_v25, %s14714_s29  ;;  %v4470_v9 = vmax.f32 %v3989_v1, %v4272_v2  ;;  %v24734_v53 = vunpack.i.h.bf16 %v18126_v14  ;;  %v2877_v26 = vpop.f32.mrf.mxu1  ;;  %v24735_v8 = vunpack.i.h.bf16 %v18801_v10  ;;  %v24737_v21 = vld [vmem:[#allocation83_spill] sm:$0xff]  ;;  %v24738_v1 = vld [vmem:[#allocation68_spill] sm:$0xff] }
 0x367   :  { %v4471_v5 = vmax.f32 %v3990_v51, %v4273_v40  ;;  %v3151_v23 = vadd.f32 %v18703_v55, %v2877_v26  ;;  %v12962_v15 = vpop.f32.mrf.mxu0  ;;  %v24741_v55 = vld [vmem:[#allocation12_spill] sm:$0xff] }
 0x368   :  { %v18811_v50 = vmax.f32 %v24732_v58, %v3148_v49  ;;  %v4276_v57 = vsel %vm4199_vm2, %v24734_v53, %v13356_v24  ;;  %v4277_v27 = vsel %vm4199_vm2, %v13356_v24, %v24735_v8  ;;  %v24736_v49 = vmov 0   ;;  %v2879_v14 = vpop.f32.mrf.mxu1  ;;  %v24739_v53 = vld [vmem:[#allocation77_spill] sm:$0xff] }
 0x369   :  { %6133 = vmatprep.subr.bf16.mxu0 %v24736_v49  ;;  %v4475_v52 = vmax.f32 %v3994_v43, %v4276_v57  ;;  %v4476_v42 = vmax.f32 %v3995_v7, %v4277_v27  ;;  %v24740_v58 = vmax.f32 %v24738_v1, %v24739_v53  ;;  %v24742_v57 = vmax.f32 %v18031_v16, %v18209_v46  ;;  %v24743_v27 = vld [vmem:[#allocation14_spill] sm:$0xff]  ;;  %v24745_v14 = vld [vmem:[#allocation84_spill] sm:$0xff] }
 0x36a   :  { %v13378_v2 = vpack.i.bf16 %v18811_v50, %v24737_v21  ;;  %13374 = vrot.lane.b32.xlu1 %v13368_v25, %s14715_s30  ;;  %v2882_v43 = vpop.f32.mrf.mxu1  ;;  %v3158_v25 = vpop.f32.mrf.mxu0 }
 0x36b   :  { %v18829_v29 = vmax.f32 %v24740_v58, %v3151_v23  ;;  %v4526_v40 = vpack.c.bf16 %v4476_v42, %v4471_v5  ;;  %v4525_v51 = vpack.c.bf16 %v4475_v52, %v4470_v9  ;;  %v3156_v24 = vadd.f32 %v3155_v30, %v2882_v43  ;;  %v24747_v43 = vld [vmem:[#allocation16_spill] sm:$0xff] }
 0x36c   :  { %13379 = vrot.lane.b32.xlu0 %v13378_v2, %s14714_s29  ;;  %v2884_v7 = vpop.f32.mrf.mxu1  ;;  %v24744_v23 = vmax.f32 %v18232_v62, %v18234_v54  ;;  %v12965_v16 = vpop.f32.mrf.mxu0  ;;  %v24746_v58 = vmax.f32 %v18026_v59, %v18256_v35 }
 0x36d   :  { %5152 = vmatprep.mubr.bf16.mxu0 %v4526_v40  ;;  %v13388_v26 = vpack.i.bf16 %v18829_v29, %v24741_v55  ;;  %v18838_v8 = vmax.f32 %v24742_v57, %v3156_v24 }
 0x36e   :  { %5153 = vmatmul.mubr.bf16.gmra.mxu0 %v4525_v51  ;;  %v2885_v9 = vpop.f32.mrf.mxu1  ;;  %v3171_v62 = vpop.f32.mrf.mxu0 }
 0x36f   :  { %13389 = vrot.lane.b32.xlu1 %v13388_v26, %s14714_s29  ;;  %5328 = vmatprep.mubr.bf16.mxu0 %v24736_v49  ;;  %v3159_v30 = vadd.f32 %v3158_v25, %v2885_v9  ;;  %v13398_v5 = vpack.i.bf16 %v18838_v8, %v24743_v27  ;;  %v24749_v25 = vld [vmem:[#allocation49_spill] sm:$0xff] }
 0x370   :  { %13384 = vrot.lane.b32.xlu0 %v13378_v2, %s14715_s30  ;;  %v2887_v52 = vpop.f32.mrf.mxu1  ;;  %v12966_v59 = vpop.f32.mrf.mxu0 }
 0x371   :  { %v18848_v42 = vmax.f32 %v24744_v23, %v3159_v30  ;;  %v24750_v30 = vmax.f32 %v18056_v32, %v18318_v34  ;;  %v24751_v23 = vld [vmem:[#allocation26_spill] sm:$0xff] }
 0x372   :  { %v2890_v46 = vpop.f32.mrf.mxu1 }
 0x373   :  { %13394 = vrot.lane.b32.xlu1 %v13388_v26, %s14715_s30  ;;  %v3164_v2 = vadd.f32 %v12961_v13, %v2890_v46  ;;  %v13408_v1 = vpack.i.bf16 %v18848_v42, %v24745_v14  ;;  %v24748_v26 = vmax.f32 %v18036_v11, %v18280_v63  ;;  %v3174_v11 = vpop.f32.mrf.mxu0 }
 0x374   :  { %13399 = vrot.lane.b32.xlu0 %v13398_v5, %s14714_s29  ;;  %v2892_v53 = vpop.f32.mrf.mxu1 }
 0x375   :  { %v18857_v40 = vmax.f32 %v24746_v58, %v3164_v2  ;;  %v12969_v34 = vpop.f32.mrf.mxu0 }
 0x376   :  { %v2893_v54 = vpop.f32.mrf.mxu1 }
 0x377   :  { %13409 = vrot.lane.b32.xlu1 %v13408_v1, %s14714_s29  ;;  %v3167_v51 = vadd.f32 %v12962_v15, %v2893_v54  ;;  %v13418_v24 = vpack.i.bf16 %v18857_v40, %v24747_v43 }
 0x378   :  { %13404 = vrot.lane.b32.xlu0 %v13398_v5, %s14715_s30  ;;  %v2895_v13 = vpop.f32.mrf.mxu1 }
 0x379   :  { %v18866_v7 = vmax.f32 %v24748_v26, %v3167_v51 }
 0x37a   :  { %v2898_v35 = vpop.f32.mrf.mxu1 }
 0x37b   :  { %13414 = vrot.lane.b32.xlu1 %v13408_v1, %s14715_s30  ;;  %v3172_v57 = vadd.f32 %v3171_v62, %v2898_v35  ;;  %v13428_v9 = vpack.i.bf16 %v18866_v7, %v24749_v25  ;;  %v24752_v1 = vmax.f32 %v18315_v6, %v18345_v20  ;;  %v24753_v62 = vld [vmem:[#allocation50_spill] sm:$0xff]  ;;  %v3187_v6 = vpop.f32.mrf.mxu0 }
 0x37c   :  { %13419 = vrot.lane.b32.xlu0 %v13418_v24, %s14714_s29  ;;  %v2900_v15 = vpop.f32.mrf.mxu1  ;;  %v24755_v35 = vld [vmem:[#allocation2_spill] sm:$0xff] }
 0x37d   :  { %v18875_v5 = vmax.f32 %v24750_v30, %v3172_v57 }
 0x37e   :  { %v2901_v63 = vpop.f32.mrf.mxu1 }
 0x37f   :  { %13429 = vrot.lane.b32.xlu1 %v13428_v9, %s14714_s29  ;;  %v3175_v52 = vadd.f32 %v3174_v11, %v2901_v63  ;;  %v13438_v46 = vpack.i.bf16 %v18875_v5, %v24751_v23  ;;  %v24757_v11 = vld [vmem:[#allocation51_spill] sm:$0xff] }
 0x380   :  { %13424 = vrot.lane.b32.xlu0 %v13418_v24, %s14715_s30  ;;  %v2903_v2 = vpop.f32.mrf.mxu1  ;;  %v24754_v24 = vmax.f32 %v18051_v28, %v18389_v61  ;;  %v12970_v28 = vpop.f32.mrf.mxu0 }
 0x381   :  { %v18884_v53 = vmax.f32 %v24752_v1, %v3175_v52  ;;  %v24758_v52 = vmax.f32 %v18075_v47, %v18461_v33  ;;  %v24759_v1 = vld [vmem:[#allocation28_spill] sm:$0xff] }
 0x382   :  { %v2906_v32 = vpop.f32.mrf.mxu1 }
 0x383   :  { %13434 = vrot.lane.b32.xlu1 %v13428_v9, %s14715_s30  ;;  %v3180_v58 = vadd.f32 %v12965_v16, %v2906_v32  ;;  %v13448_v54 = vpack.i.bf16 %v18884_v53, %v24753_v62  ;;  %v24756_v9 = vmax.f32 %v18063_v41, %v18422_v19  ;;  %v3190_v41 = vpop.f32.mrf.mxu0 }
 0x384   :  { %13439 = vrot.lane.b32.xlu0 %v13438_v46, %s14714_s29  ;;  %v2908_v51 = vpop.f32.mrf.mxu1 }
 0x385   :  { %v18893_v13 = vmax.f32 %v24754_v24, %v3180_v58  ;;  %v12973_v33 = vpop.f32.mrf.mxu0 }
 0x386   :  { %v2909_v20 = vpop.f32.mrf.mxu1 }
 0x387   :  { %13449 = vrot.lane.b32.xlu1 %v13448_v54, %s14714_s29  ;;  %v3183_v26 = vadd.f32 %v12966_v59, %v2909_v20  ;;  %v13458_v57 = vpack.i.bf16 %v18893_v13, %v24755_v35 }
 0x388   :  { %13444 = vrot.lane.b32.xlu0 %v13438_v46, %s14715_s30  ;;  %v2911_v16 = vpop.f32.mrf.mxu1 }
 0x389   :  { %v18902_v15 = vmax.f32 %v24756_v9, %v3183_v26 }
 0x38a   :  { %v2914_v61 = vpop.f32.mrf.mxu1 }
 0x38b   :  { %13454 = vrot.lane.b32.xlu1 %v13448_v54, %s14715_s30  ;;  %v3188_v30 = vadd.f32 %v3187_v6, %v2914_v61  ;;  %v13468_v63 = vpack.i.bf16 %v18902_v15, %v24757_v11  ;;  %v24760_v54 = vmax.f32 %v18359_v36, %v18485_v17  ;;  %v24761_v6 = vld [vmem:[#allocation87_spill] sm:$0xff]  ;;  %v3203_v36 = vpop.f32.mrf.mxu0  ;;  %v24763_v61 = vld [vmem:[#allocation88_spill] sm:$0xff] }
 0x38c   :  { %13459 = vrot.lane.b32.xlu0 %v13458_v57, %s14714_s29  ;;  %v2916_v59 = vpop.f32.mrf.mxu1 }
 0x38d   :  { %v18911_v46 = vmax.f32 %v24758_v52, %v3188_v30 }
 0x38e   :  { %v2917_v19 = vpop.f32.mrf.mxu1 }
 0x38f   :  { %13469 = vrot.lane.b32.xlu1 %v13468_v63, %s14714_s29  ;;  %v3191_v2 = vadd.f32 %v3190_v41, %v2917_v19  ;;  %v13478_v32 = vpack.i.bf16 %v18911_v46, %v24759_v1  ;;  %v24765_v41 = vld [vmem:[#allocation52_spill] sm:$0xff] }
 0x390   :  { %13464 = vrot.lane.b32.xlu0 %v13458_v57, %s14715_s30  ;;  %v2919_v58 = vpop.f32.mrf.mxu1  ;;  %v24762_v57 = vmax.f32 %v24651_v22, %v18523_v39  ;;  %v12974_v22 = vpop.f32.mrf.mxu0 }
 0x391   :  { %v18920_v51 = vmax.f32 %v24760_v54, %v3191_v2  ;;  %v24766_v2 = vmax.f32 %v24673_v60, %v18589_v44  ;;  %v24767_v54 = vld [vmem:[#allocation66_spill] sm:$0xff] }
 0x392   :  { %v2922_v47 = vpop.f32.mrf.mxu1 }
 0x393   :  { %13474 = vrot.lane.b32.xlu1 %v13468_v63, %s14715_s30  ;;  %v3196_v24 = vadd.f32 %v12969_v34, %v2922_v47  ;;  %v13488_v20 = vpack.i.bf16 %v18920_v51, %v24761_v6  ;;  %v24764_v63 = vmax.f32 %v24658_v0, %v18557_v38  ;;  %v3206_v38 = vpop.f32.mrf.mxu0 }
 0x394   :  { %13479 = vrot.lane.b32.xlu0 %v13478_v32, %s14714_s29  ;;  %v2924_v26 = vpop.f32.mrf.mxu1 }
 0x395   :  { %v18929_v16 = vmax.f32 %v24762_v57, %v3196_v24  ;;  %v24769_v57 = vld [vmem:[#allocation54_spill] sm:$0xff] }
 0x396   :  { %v2925_v17 = vpop.f32.mrf.mxu1 }
 0x397   :  { %13489 = vrot.lane.b32.xlu1 %v13488_v20, %s14714_s29  ;;  %v3199_v9 = vadd.f32 %v12970_v28, %v2925_v17  ;;  %v13498_v30 = vpack.i.bf16 %v18929_v16, %v24763_v61 }
 0x398   :  { %13484 = vrot.lane.b32.xlu0 %v13478_v32, %s14715_s30  ;;  %v2927_v34 = vpop.f32.mrf.mxu1 }
 0x399   :  { %v18938_v59 = vmax.f32 %v24764_v63, %v3199_v9  ;;  %v24770_v9 = vmax.f32 %v24689_v3, %v18648_v31  ;;  %v24772_v34 = vld [vmem:[#allocation65_spill] sm:$0xff]  ;;  %v24775_v31 = vld [vmem:[#allocation40_spill] sm:$0xff] }
 0x39a   :  { %v2930_v39 = vpop.f32.mrf.mxu1 }
 0x39b   :  { %13494 = vrot.lane.b32.xlu1 %v13488_v20, %s14715_s30  ;;  %v3204_v52 = vadd.f32 %v3203_v36, %v2930_v39  ;;  %v13508_v19 = vpack.i.bf16 %v18938_v59, %v24765_v41  ;;  %v24768_v20 = vmax.f32 %v18586_v48, %v18616_v12 }
 0x39c   :  { %13499 = vrot.lane.b32.xlu0 %v13498_v30, %s14714_s29  ;;  %v2932_v28 = vpop.f32.mrf.mxu1 }
 0x39d   :  { %v18947_v32 = vmax.f32 %v24766_v2, %v3204_v52 }
 0x39e   :  { %v2933_v0 = vpop.f32.mrf.mxu1 }
 0x39f   :  { %13509 = vrot.lane.b32.xlu1 %v13508_v19, %s14714_s29  ;;  %v3207_v58 = vadd.f32 %v3206_v38, %v2933_v0  ;;  %v13518_v47 = vpack.i.bf16 %v18947_v32, %v24767_v54 }
 0x3a0   :  { %13504 = vrot.lane.b32.xlu0 %v13498_v30, %s14715_s30  ;;  %v2935_v24 = vpop.f32.mrf.mxu1 }
 0x3a1   :  { %v18956_v26 = vmax.f32 %v24768_v20, %v3207_v58  ;;  %v24776_v24 = vld [vmem:[#allocation95_spill] sm:$0xff] }
 0x3a2   :  { %v2938_v44 = vpop.f32.mrf.mxu1  ;;  %v24777_v20 = vunpack.i.h.bf16 %v24776_v24 }
 0x3a3   :  { %13514 = vrot.lane.b32.xlu1 %v13508_v19, %s14715_s30  ;;  %v3212_v60 = vadd.f32 %v12973_v33, %v2938_v44  ;;  %v13528_v36 = vpack.i.bf16 %v18956_v26, %v24769_v57  ;;  %v24773_v33 = vmax.f32 %v24696_v45, %v18679_v4  ;;  %v24786_v57 = vld [vmem:[#allocation98_spill] sm:$0xff] }
 0x3a4   :  { %13519 = vrot.lane.b32.xlu0 %v13518_v47, %s14714_s29  ;;  %v2940_v17 = vpop.f32.mrf.mxu1 }
 0x3a5   :  { %v18965_v30 = vmax.f32 %v24770_v9, %v3212_v60 }
 0x3a6   :  { %v2941_v48 = vpop.f32.mrf.mxu1 }
 0x3a7   :  { %24771 = vst [vmem:[#allocation39_spill] sm:$0xff] %v18965_v30  ;;  %13529 = vrot.lane.b32.xlu1 %v13528_v36, %s14714_s29  ;;  %v3215_v12 = vadd.f32 %v12974_v22, %v2941_v48  ;;  %v13538_v63 = vpack.i.bf16 %v18965_v30, %v24772_v34  ;;  %v14233_v22 = vld [vmem:[%s23603_s4 + $0x1d8] ss:$12 sps:$4 sm:$0xff]  }
 0x3a8   :  { %13524 = vrot.lane.b32.xlu0 %v13518_v47, %s14715_s30  ;;  %v2943_v39 = vpop.f32.mrf.mxu1  ;;  %6000 = vmatprep.subr.bf16.mxu1 %v14233_v22 }
 0x3a9   :  { %v18974_v52 = vmax.f32 %v24773_v33, %v3215_v12 }
 0x3ab   :  { %24774 = vst [vmem:[#allocation7_spill] sm:$0xff] %v18974_v52  ;;  %13534 = vrot.lane.b32.xlu1 %v13528_v36, %s14715_s30  ;;  %v13548_v3 = vpack.i.bf16 %v18974_v52, %v24775_v31 }
 0x3ac   :  { %13539 = vrot.lane.b32.xlu0 %v13538_v63, %s14714_s29 }
 0x3af   :  { %13549 = vrot.lane.b32.xlu1 %v13548_v3, %s14714_s29 }
 0x3b0   :  { %13544 = vrot.lane.b32.xlu0 %v13538_v63, %s14715_s30  ;;  %v24778_v63 = vld [vmem:[#allocation64_spill] sm:$0xff] }
 0x3b1   :  { %v24779_v39 = vunpack.i.h.bf16 %v24778_v63 }
 0x3b3   :  { %13554 = vrot.lane.b32.xlu1 %v13548_v3, %s14715_s30 }
 0x3d4   :  { %v13360_v4 = vpop.permute.xlu0 %13359 }
 0x3d5   :  { %v13362_v28 = vunpack.i.h.bf16 %v13360_v4  ;;  %v13361_v0 = vunpack.i.l.bf16 %v13360_v4  ;;  %v24780_v4 = vld [vmem:[#allocation76_spill] sm:$0xff] }
 0x3d7   :  { %v3903_v17 = vmax.f32 %v18740_v56, %v13362_v28  ;;  %v3721_v33 = vsel %vm3718_vm1, %v24779_v39, %v13361_v0  ;;  %v3722_v3 = vsel %vm3718_vm1, %v13361_v0, %v13362_v28 }
 0x3d8   :  { %v13365_v45 = vpop.permute.xlu0 %13364  ;;  %v13370_v19 = vpop.permute.xlu1 %13369  ;;  %v3902_v52 = vmax.f32 %v24786_v57, %v3722_v3  ;;  %v14231_v57 = vld [vmem:[%s23603_s4 + $0x1d4] ss:$12 sps:$4 sm:$0xff]  }
 0x3d9   :  { %v13372_v2 = vunpack.i.h.bf16 %v13370_v19  ;;  %v13371_v38 = vunpack.i.l.bf16 %v13370_v19  ;;  %v13367_v58 = vunpack.i.h.bf16 %v13365_v45  ;;  %v13366_v47 = vunpack.i.l.bf16 %v13365_v45 }
 0x3da   :  { %v24781_v45 = vunpack.i.h.bf16 %v24780_v4 }
 0x3db   :  { %v3725_v44 = vsel %vm3718_vm1, %v24777_v20, %v13371_v38  ;;  %v3908_v9 = vmax.f32 %v18780_v18, %v13372_v2  ;;  %v3726_v48 = vsel %vm3718_vm1, %v13371_v38, %v13372_v2  ;;  %v4384_v24 = vmax.f32 %v3903_v17, %v13367_v58  ;;  %v24782_v20 = vld [vmem:[#allocation19_spill] sm:$0xff] }
 0x3dc   :  { %v13375_v36 = vpop.permute.xlu1 %13374  ;;  %v4202_v19 = vsel %vm4199_vm2, %v24781_v45, %v13366_v47  ;;  %v3906_v56 = vmax.f32 %v24782_v20, %v3725_v44  ;;  %v14234_v18 = vld [vmem:[%s23603_s4 + $0x1dc] ss:$12 sps:$4 sm:$0xff]   ;;  %v3907_v4 = vmax.f32 %v24728_v37, %v3726_v48  ;;  %v24785_v45 = vld [vmem:[#allocation36_spill] sm:$0xff]  ;;  %v4203_v44 = vsel %vm4199_vm2, %v13366_v47, %v13367_v58 }
 0x3dd   :  { %v13377_v12 = vunpack.i.h.bf16 %v13375_v36  ;;  %v13376_v22 = vunpack.i.l.bf16 %v13375_v36  ;;  %v24783_v38 = vld [vmem:[#allocation15_spill] sm:$0xff]  ;;  %v3901_v17 = vmax.f32 %v24785_v45, %v3721_v33  ;;  %v24787_v37 = vld [vmem:[#allocation96_spill] sm:$0xff]  ;;  %v24791_v45 = vld [vmem:[#allocation45_spill] sm:$0xff] }
 0x3de   :  { %v13380_v60 = vpop.permute.xlu0 %13379  ;;  %v24784_v63 = vunpack.i.h.bf16 %v24783_v38  ;;  %v24788_v48 = vunpack.i.h.bf16 %v24787_v37 }
 0x3df   :  { %v4389_v10 = vmax.f32 %v3908_v9, %v13377_v12  ;;  %v13381_v2 = vunpack.i.l.bf16 %v13380_v60  ;;  %v4207_v28 = vsel %vm4199_vm2, %v13376_v22, %v13377_v12  ;;  %v4382_v38 = vmax.f32 %v3901_v17, %v4202_v19  ;;  %v14238_v12 = vld [vmem:[%s23603_s4 + $0x1c4] ss:$12 sps:$4 sm:$0xff]  }
 0x3e0   :  { %v4206_v39 = vsel %vm4199_vm2, %v24784_v63, %v13376_v22  ;;  %v4388_v30 = vmax.f32 %v3907_v4, %v4207_v28  ;;  %v13382_v54 = vunpack.i.h.bf16 %v13380_v60  ;;  %v4383_v22 = vmax.f32 %v3902_v52, %v4203_v44  ;;  %v24789_v19 = vld [vmem:[#allocation80_spill] sm:$0xff]  ;;  %v14237_v63 = vld [vmem:[%s23603_s4 + $0x1c0] ss:$12 sps:$4 sm:$0xff]  }
 0x3e1   :  { %v13390_v36 = vpop.permute.xlu1 %13389  ;;  %v4387_v9 = vmax.f32 %v3906_v56, %v4206_v39  ;;  %v4484_v20 = vpack.c.bf16 %v4389_v10, %v4384_v24  ;;  %v3729_v33 = vsel %vm3718_vm1, %v24788_v48, %v13381_v2  ;;  %v24790_v24 = vunpack.i.h.bf16 %v24789_v19  ;;  %v14241_v19 = vld [vmem:[%s23603_s4 + $0x1a8] ss:$12 sps:$4 sm:$0xff]  }
 0x3e2   :  { %v13385_v0 = vpop.permute.xlu0 %13384  ;;  %v13392_v31 = vunpack.i.h.bf16 %v13390_v36  ;;  %v13391_v34 = vunpack.i.l.bf16 %v13390_v36  ;;  %v4483_v36 = vpack.c.bf16 %v4388_v30, %v4383_v22  ;;  %v3913_v4 = vmax.f32 %v18811_v50, %v13382_v54 }
 0x3e3   :  { %11932 = vmatmul.mubr.msk.bf16.vlgmr.msra.gmra.mxu0 %vm4992_vm4, %v4484_v20  ;;  %v13386_v58 = vunpack.i.l.bf16 %v13385_v0  ;;  %v4482_v60 = vpack.c.bf16 %v4387_v9, %v4382_v38  ;;  %v13387_v3 = vunpack.i.h.bf16 %v13385_v0  ;;  %v3730_v0 = vsel %vm3718_vm1, %v13381_v2, %v13382_v54  ;;  %v24794_v38 = vld [vmem:[#allocation20_spill] sm:$0xff] }
 0x3e4   :  { %5338 = vmatprep.mubr.bf16.mxu0 %v24736_v49  ;;  %v3733_v56 = vsel %vm3718_vm1, %v24790_v24, %v13391_v34  ;;  %6134 = vmatpush1.bf16.msra.mxu0 %v14234_v18  ;;  %v3734_v39 = vsel %vm3718_vm1, %v13391_v34, %v13392_v31  ;;  %v3911_v17 = vmax.f32 %v24791_v45, %v3729_v33  ;;  %v24792_v18 = vld [vmem:[#allocation79_spill] sm:$0xff]  ;;  %v24795_v34 = vld [vmem:[#allocation97_spill] sm:$0xff] }
 0x3e5   :  { %v13395_v10 = vpop.permute.xlu1 %13394  ;;  %6135 = vmatprep.subr.bf16.mxu0 %v24736_v49  ;;  %v3918_v44 = vmax.f32 %v18829_v29, %v13392_v31  ;;  %v24793_v9 = vunpack.i.h.bf16 %v24792_v18  ;;  %v3916_v37 = vmax.f32 %v24794_v38, %v3733_v56  ;;  %v24796_v48 = vunpack.i.h.bf16 %v24795_v34  ;;  %5195 = vmatprep.mubr.bf16.mxu1 %v4483_v36  ;;  %v14235_v29 = vld [vmem:[%s23603_s4 + $0x1bc] ss:$12 sps:$4 sm:$0xff]   ;;  %v14242_v24 = vld [vmem:[%s23603_s4 + $0x1ac] ss:$12 sps:$4 sm:$0xff]  }
 0x3e6   :  { %v19018_v47 = vpop.permute.xlu0 %13399  ;;  %v13397_v52 = vunpack.i.h.bf16 %v13395_v10  ;;  %v13396_v28 = vunpack.i.l.bf16 %v13395_v10  ;;  %v4394_v31 = vmax.f32 %v3913_v4, %v13387_v3  ;;  %v3917_v2 = vmax.f32 %v24741_v55, %v3734_v39  ;;  %5196 = vmatmul.mubr.bf16.vlgmr.msra.gmra.mxu1 %v4482_v60  ;;  %v14245_v38 = vld [vmem:[%s23603_s4 + $0x190] ss:$12 sps:$4 sm:$0xff]  }
 0x3e7   :  { %v4210_v20 = vsel %vm4199_vm2, %v24793_v9, %v13386_v58  ;;  %v13402_v33 = vunpack.i.h.bf16 %v19018_v47  ;;  %v4211_v56 = vsel %vm4199_vm2, %v13386_v58, %v13387_v3  ;;  %6001 = vmatpush1.bf16.msra.mxu1 %v14231_v57  ;;  %v3912_v55 = vmax.f32 %v24737_v21, %v3730_v0  ;;  %v14239_v21 = vld [vmem:[%s23603_s4 + $0x1a4] ss:$12 sps:$4 sm:$0xff]   ;;  %v24797_v0 = vld [vmem:[#allocation69_spill] sm:$0xff] }
 0x3e8   :  { %v4214_v30 = vsel %vm4199_vm2, %v24796_v48, %v13396_v28  ;;  %v4215_v10 = vsel %vm4199_vm2, %v13396_v28, %v13397_v52  ;;  %v4399_v22 = vmax.f32 %v3918_v44, %v13397_v52  ;;  %6136 = vmatpush1.bf16.msra.mxu0 %v14238_v12  ;;  %6002 = vmatprep.subr.bf16.mxu1 %v14237_v63  ;;  %v13401_v52 = vunpack.i.l.bf16 %v19018_v47  ;;  %v14246_v47 = vld [vmem:[%s23603_s4 + $0x194] ss:$12 sps:$4 sm:$0xff]  }
 0x3e9   :  { %v13410_v54 = vpop.permute.xlu1 %13409  ;;  %v4397_v28 = vmax.f32 %v3916_v37, %v4214_v30  ;;  %6137 = vmatprep.subr.bf16.mxu0 %v24736_v49  ;;  %v4398_v12 = vmax.f32 %v3917_v2, %v4215_v10  ;;  %v4392_v39 = vmax.f32 %v3911_v17, %v4210_v20  ;;  %v3923_v58 = vmax.f32 %v18838_v8, %v13402_v33 }
 0x3ea   :  { %v19044_v50 = vpop.permute.xlu0 %13404  ;;  %v13412_v36 = vunpack.i.h.bf16 %v13410_v54  ;;  %v13411_v4 = vunpack.i.l.bf16 %v13410_v54  ;;  %v4489_v60 = vpack.c.bf16 %v4399_v22, %v4394_v31  ;;  %v4393_v57 = vmax.f32 %v3912_v55, %v4211_v56  ;;  %v24801_v22 = vld [vmem:[#allocation63_spill] sm:$0xff] }
 0x3eb   :  { %v13407_v45 = vunpack.i.h.bf16 %v19044_v50  ;;  %v13406_v3 = vunpack.i.l.bf16 %v19044_v50  ;;  %v24798_v17 = vunpack.i.h.bf16 %v24797_v0  ;;  %v4487_v20 = vpack.c.bf16 %v4397_v28, %v4392_v39  ;;  %6003 = vmatpush1.bf16.msra.mxu1 %v14235_v29  ;;  %v24802_v28 = vld [vmem:[#allocation24_spill] sm:$0xff]  ;;  %v14250_v55 = vld [vmem:[%s23603_s4 + $0x17c] ss:$12 sps:$4 sm:$0xff]  }
 0x3ec   :  { %11933 = vmatmul.mubr.msk.bf16.gmra.mxu0 %vm4992_vm4, %v4489_v60  ;;  %v3928_v63 = vmax.f32 %v18848_v42, %v13412_v36  ;;  %v3742_v37 = vsel %vm3718_vm1, %v13411_v4, %v13412_v36  ;;  %v4488_v48 = vpack.c.bf16 %v4398_v12, %v4393_v57  ;;  %6004 = vmatprep.subr.bf16.mxu1 %v14241_v19  ;;  %v24799_v42 = vld [vmem:[#allocation56_spill] sm:$0xff]  ;;  %v24803_v36 = vunpack.i.h.bf16 %v24802_v28  ;;  %v24804_v60 = vld [vmem:[#allocation81_spill] sm:$0xff] }
 0x3ed   :  { %v13415_v18 = vpop.permute.xlu1 %13414  ;;  %v3741_v9 = vsel %vm3718_vm1, %v24798_v17, %v13411_v4  ;;  %5348 = vmatprep.mubr.bf16.mxu0 %v24736_v49  ;;  %6138 = vmatpush1.bf16.msra.mxu0 %v14242_v24  ;;  %v24800_v30 = vunpack.i.h.bf16 %v24799_v42  ;;  %v4404_v50 = vmax.f32 %v3923_v58, %v13407_v45  ;;  %v3738_v29 = vsel %vm3718_vm1, %v13401_v52, %v13402_v33  ;;  %v14243_v4 = vld [vmem:[%s23603_s4 + $0x18c] ss:$12 sps:$4 sm:$0xff]  }
 0x3ee   :  { %v19062_v44 = vpop.permute.xlu0 %13419  ;;  %v13417_v8 = vunpack.i.h.bf16 %v13415_v18  ;;  %v13416_v34 = vunpack.i.l.bf16 %v13415_v18  ;;  %6139 = vmatprep.subr.bf16.mxu0 %v24736_v49  ;;  %v3926_v56 = vmax.f32 %v24801_v22, %v3741_v9  ;;  %5205 = vmatprep.mubr.bf16.mxu1 %v4488_v48  ;;  %v24805_v12 = vunpack.i.h.bf16 %v24804_v60  ;;  %v14249_v18 = vld [vmem:[%s23603_s4 + $0x178] ss:$12 sps:$4 sm:$0xff]  }
 0x3ef   :  { %v3737_v10 = vsel %vm3718_vm1, %v24800_v30, %v13401_v52  ;;  %v3927_v39 = vmax.f32 %v24745_v14, %v3742_v37  ;;  %5206 = vmatmul.mubr.bf16.gmra.mxu1 %v4487_v20  ;;  %v24806_v58 = vld [vmem:[#allocation57_spill] sm:$0xff]  ;;  %v3922_v17 = vmax.f32 %v24743_v27, %v3738_v29  ;;  %v13422_v9 = vunpack.i.h.bf16 %v19062_v44  ;;  %v14247_v27 = vld [vmem:[%s23603_s4 + $0x174] ss:$12 sps:$4 sm:$0xff]  }
 0x3f0   :  { %v4409_v54 = vmax.f32 %v3928_v63, %v13417_v8  ;;  %v4222_v19 = vsel %vm4199_vm2, %v24803_v36, %v13416_v34  ;;  %v4223_v24 = vsel %vm4199_vm2, %v13416_v34, %v13417_v8  ;;  %v4218_v33 = vsel %vm4199_vm2, %v24805_v12, %v13406_v3  ;;  %6005 = vmatpush1.bf16.msra.mxu1 %v14239_v21  ;;  %v24807_v29 = vld [vmem:[#allocation22_spill] sm:$0xff]  ;;  %v24809_v36 = vld [vmem:[#allocation59_spill] sm:$0xff] }
 0x3f1   :  { %v13430_v2 = vpop.permute.xlu1 %13429  ;;  %v3921_v57 = vmax.f32 %v24806_v58, %v3737_v10  ;;  %v4219_v63 = vsel %vm4199_vm2, %v13406_v3, %v13407_v45  ;;  %v4407_v0 = vmax.f32 %v3926_v56, %v4222_v19  ;;  %6140 = vmatpush1.bf16.msra.mxu0 %v14246_v47  ;;  %v4408_v20 = vmax.f32 %v3927_v39, %v4223_v24 }
 0x3f2   :  { %v19085_v31 = vpop.permute.xlu0 %13424  ;;  %v4494_v52 = vpack.c.bf16 %v4409_v54, %v4404_v50  ;;  %v13432_v8 = vunpack.i.h.bf16 %v13430_v2  ;;  %6006 = vmatprep.subr.bf16.mxu1 %v14245_v38  ;;  %v13421_v48 = vunpack.i.l.bf16 %v19062_v44  ;;  %v13431_v42 = vunpack.i.l.bf16 %v13430_v2  ;;  %6141 = vmatprep.subr.bf16.mxu0 %v24736_v49  ;;  %v14253_v44 = vld [vmem:[%s23603_s4 + $0x160] ss:$12 sps:$4 sm:$0xff]  }
 0x3f3   :  { %v4402_v37 = vmax.f32 %v3921_v57, %v4218_v33  ;;  %v13427_v45 = vunpack.i.h.bf16 %v19085_v31  ;;  %v4403_v3 = vmax.f32 %v3922_v17, %v4219_v63  ;;  %v3933_v30 = vmax.f32 %v18857_v40, %v13422_v9  ;;  %v24814_v57 = vld [vmem:[#allocation25_spill] sm:$0xff] }
 0x3f4   :  { %11934 = vmatmul.mubr.msk.bf16.gmra.mxu0 %vm4992_vm4, %v4494_v52  ;;  %6007 = vmatpush1.bf16.msra.mxu1 %v14243_v4  ;;  %v3938_v10 = vmax.f32 %v18866_v7, %v13432_v8  ;;  %v24808_v22 = vunpack.i.h.bf16 %v24807_v29  ;;  %v13426_v28 = vunpack.i.l.bf16 %v19085_v31  ;;  %v24810_v19 = vunpack.i.h.bf16 %v24809_v36  ;;  %v24811_v31 = vld [vmem:[#allocation99_spill] sm:$0xff] }
 0x3f5   :  { %v13435_v14 = vpop.permute.xlu1 %13434  ;;  %5358 = vmatprep.mubr.bf16.mxu0 %v24736_v49  ;;  %v4492_v38 = vpack.c.bf16 %v4407_v0, %v4402_v37  ;;  %6142 = vmatpush1.bf16.msra.mxu0 %v14250_v55  ;;  %v4493_v50 = vpack.c.bf16 %v4408_v20, %v4403_v3  ;;  %v3746_v40 = vsel %vm3718_vm1, %v13421_v48, %v13422_v9  ;;  %v14251_v55 = vld [vmem:[%s23603_s4 + $0x15c] ss:$12 sps:$4 sm:$0xff]   ;;  %v24812_v33 = vunpack.i.h.bf16 %v24811_v31 }
 0x3f6   :  { %v19111_v34 = vpop.permute.xlu0 %13439  ;;  %v13437_v21 = vunpack.i.h.bf16 %v13435_v14  ;;  %v13436_v47 = vunpack.i.l.bf16 %v13435_v14  ;;  %6008 = vmatprep.subr.bf16.mxu1 %v14249_v18  ;;  %v3745_v56 = vsel %vm3718_vm1, %v24808_v22, %v13421_v48  ;;  %v3749_v24 = vsel %vm3718_vm1, %v24810_v19, %v13431_v42  ;;  %6143 = vmatprep.subr.bf16.mxu0 %v24736_v49  ;;  %v24813_v18 = vld [vmem:[#allocation58_spill] sm:$0xff]  ;;  %v24819_v19 = vld [vmem:[#allocation100_spill] sm:$0xff] }
 0x3f7   :  { %v4414_v7 = vmax.f32 %v3933_v30, %v13427_v45  ;;  %5215 = vmatprep.mubr.bf16.mxu1 %v4493_v50  ;;  %v3750_v60 = vsel %vm3718_vm1, %v13431_v42, %v13432_v8  ;;  %v13442_v12 = vunpack.i.h.bf16 %v19111_v34  ;;  %v3931_v58 = vmax.f32 %v24813_v18, %v3745_v56  ;;  %v24815_v8 = vld [vmem:[#allocation21_spill] sm:$0xff] }
 0x3f8   :  { %v4419_v4 = vmax.f32 %v3938_v10, %v13437_v21  ;;  %v4230_v39 = vsel %vm4199_vm2, %v24812_v33, %v13436_v47  ;;  %5216 = vmatmul.mubr.bf16.gmra.mxu1 %v4492_v38  ;;  %v3936_v63 = vmax.f32 %v24814_v57, %v3749_v24  ;;  %v3932_v14 = vmax.f32 %v24747_v43, %v3746_v40  ;;  %v24823_v33 = vld [vmem:[#allocation101_spill] sm:$0xff] }
 0x3f9   :  { %v13450_v2 = vpop.permute.xlu1 %13449  ;;  %6009 = vmatpush1.bf16.msra.mxu1 %v14247_v27  ;;  %v24816_v20 = vunpack.i.h.bf16 %v24815_v8  ;;  %v4231_v48 = vsel %vm4199_vm2, %v13436_v47, %v13437_v21  ;;  %v4227_v3 = vsel %vm4199_vm2, %v13426_v28, %v13427_v45  ;;  %v3937_v38 = vmax.f32 %v24749_v25, %v3750_v60  ;;  %v24821_v60 = vld [vmem:[#allocation23_spill] sm:$0xff] }
 0x3fa   :  { %v19126_v54 = vpop.permute.xlu0 %13444  ;;  %v13452_v52 = vunpack.i.h.bf16 %v13450_v2  ;;  %v4499_v0 = vpack.c.bf16 %v4419_v4, %v4414_v7  ;;  %6010 = vmatprep.subr.bf16.mxu1 %v14253_v44  ;;  %v4417_v30 = vmax.f32 %v3936_v63, %v4230_v39  ;;  %v13451_v10 = vunpack.i.l.bf16 %v13450_v2  ;;  %v19180_v63 = vpop.f32.mrf.mxu0 }
 0x3fb   :  { %v4226_v37 = vsel %vm4199_vm2, %v24816_v20, %v13426_v28  ;;  %v13447_v42 = vunpack.i.h.bf16 %v19126_v54  ;;  %v3943_v27 = vmax.f32 %v18875_v5, %v13442_v12  ;;  %v13441_v43 = vunpack.i.l.bf16 %v19111_v34  ;;  %v24817_v5 = vld [vmem:[#allocation27_spill] sm:$0xff]  ;;  %v24826_v20 = vld [vmem:[#allocation18_spill] sm:$0xff] }
 0x3fc   :  { %11935 = vmatmul.mubr.msk.bf16.gmra.mxu0 %vm4992_vm4, %v4499_v0  ;;  %v3948_v50 = vmax.f32 %v18884_v53, %v13452_v52  ;;  %v4412_v21 = vmax.f32 %v3931_v58, %v4226_v37  ;;  %v13446_v47 = vunpack.i.l.bf16 %v19126_v54  ;;  %v4418_v45 = vmax.f32 %v3937_v38, %v4231_v48 }
 0x3fd   :  { %v13455_v9 = vpop.permute.xlu1 %13454  ;;  %5368 = vmatprep.mubr.bf16.mxu0 %v24736_v49  ;;  %6011 = vmatpush1.bf16.msra.mxu1 %v14251_v55  ;;  %v4424_v2 = vmax.f32 %v3943_v27, %v13447_v42  ;;  %v4413_v28 = vmax.f32 %v3932_v14, %v4227_v3  ;;  %v24818_v36 = vunpack.i.h.bf16 %v24817_v5  ;;  %v24820_v24 = vunpack.i.h.bf16 %v24819_v19 }
 0x3fe   :  { %v19147_v17 = vpop.permute.xlu0 %13459  ;;  %v13457_v29 = vunpack.i.h.bf16 %v13455_v9  ;;  %v13456_v44 = vunpack.i.l.bf16 %v13455_v9  ;;  %v4497_v53 = vpack.c.bf16 %v4417_v30, %v4412_v21  ;;  %v3754_v4 = vsel %vm3718_vm1, %v13441_v43, %v13442_v12  ;;  %v24825_v9 = vld [vmem:[#allocation60_spill] sm:$0xff] }
 0x3ff   :  { %v3757_v34 = vsel %vm3718_vm1, %v24818_v36, %v13451_v10  ;;  %v3753_v40 = vsel %vm3718_vm1, %v24820_v24, %v13441_v43  ;;  %v4498_v54 = vpack.c.bf16 %v4418_v45, %v4413_v28  ;;  %v24822_v31 = vunpack.i.h.bf16 %v24821_v60  ;;  %v24831_v60 = vld [vmem:[#allocation103_spill] sm:$0xff] }
 0x400   :  { %v4429_v56 = vmax.f32 %v3948_v50, %v13457_v29  ;;  %v24824_v39 = vunpack.i.h.bf16 %v24823_v33  ;;  %v3758_v0 = vsel %vm3718_vm1, %v13451_v10, %v13452_v52  ;;  %v3946_v14 = vmax.f32 %v24825_v9, %v3757_v34 }
 0x401   :  { %v13470_v25 = vpop.permute.xlu1 %13469  ;;  %v4234_v55 = vsel %vm4199_vm2, %v24822_v31, %v13446_v47  ;;  %v13462_v8 = vunpack.i.h.bf16 %v19147_v17  ;;  %5225 = vmatprep.mubr.bf16.mxu1 %v4498_v54  ;;  %v3941_v37 = vmax.f32 %v24826_v20, %v3753_v40  ;;  %v4235_v48 = vsel %vm4199_vm2, %v13446_v47, %v13447_v42  ;;  %v19198_v42 = vpop.f32.mrf.mxu0 }
 0x402   :  { %v19163_v22 = vpop.permute.xlu0 %13464  ;;  %v4504_v7 = vpack.c.bf16 %v4429_v56, %v4424_v2  ;;  %v4238_v18 = vsel %vm4199_vm2, %v24824_v39, %v13456_v44  ;;  %v13472_v12 = vunpack.i.h.bf16 %v13470_v25  ;;  %5226 = vmatmul.mubr.bf16.gmra.mxu1 %v4497_v53  ;;  %v4239_v3 = vsel %vm4199_vm2, %v13456_v44, %v13457_v29  ;;  %v24829_v53 = vld [vmem:[#allocation102_spill] sm:$0xff]  ;;  %v24833_v39 = vld [vmem:[#allocation29_spill] sm:$0xff] }
 0x403   :  { %v4427_v38 = vmax.f32 %v3946_v14, %v4238_v18  ;;  %v13467_v30 = vunpack.i.h.bf16 %v19163_v22  ;;  %v13471_v27 = vunpack.i.l.bf16 %v13470_v25  ;;  %v3942_v52 = vmax.f32 %v24751_v23, %v3754_v4  ;;  %v24834_v14 = vld [vmem:[#allocation3_spill] sm:$0xff] }
 0x404   :  { %11936 = vmatmul.mubr.msk.bf16.gmra.mxu0 %vm4992_vm4, %v4504_v7  ;;  %v4422_v10 = vmax.f32 %v3941_v37, %v4234_v55  ;;  %v3947_v43 = vmax.f32 %v24753_v62, %v3758_v0  ;;  %v13461_v50 = vunpack.i.l.bf16 %v19147_v17  ;;  %v3953_v29 = vmax.f32 %v18893_v13, %v13462_v8  ;;  %v24827_v17 = vld [vmem:[#allocation30_spill] sm:$0xff] }
 0x405   :  { %v13475_v57 = vpop.permute.xlu1 %13474  ;;  %5378 = vmatprep.mubr.bf16.mxu0 %v24736_v49  ;;  %v3958_v47 = vmax.f32 %v18902_v15, %v13472_v12  ;;  %v13466_v23 = vunpack.i.l.bf16 %v19163_v22  ;;  %v4423_v2 = vmax.f32 %v3942_v52, %v4235_v48  ;;  %v24828_v28 = vunpack.i.h.bf16 %v24827_v17  ;;  %v19212_v22 = vpop.f32.mrf.mxu0 }
 0x406   :  { %v19178_v58 = vpop.permute.xlu0 %13479  ;;  %v13477_v44 = vunpack.i.h.bf16 %v13475_v57  ;;  %v13476_v25 = vunpack.i.l.bf16 %v13475_v57  ;;  %v4428_v62 = vmax.f32 %v3947_v43, %v4239_v3  ;;  %v4434_v56 = vmax.f32 %v3953_v29, %v13467_v30  ;;  %v24836_v3 = vld [vmem:[#allocation85_spill] sm:$0xff] }
 0x407   :  { %v3765_v5 = vsel %vm3718_vm1, %v24828_v28, %v13471_v27  ;;  %v4502_v34 = vpack.c.bf16 %v4427_v38, %v4422_v10  ;;  %v24830_v19 = vunpack.i.h.bf16 %v24829_v53  ;;  %v3766_v13 = vsel %vm3718_vm1, %v13471_v27, %v13472_v12  ;;  %v24839_v28 = vld [vmem:[#allocation5_spill] sm:$0xff] }
 0x408   :  { %v4439_v36 = vmax.f32 %v3958_v47, %v13477_v44  ;;  %v4503_v15 = vpack.c.bf16 %v4428_v62, %v4423_v2  ;;  %v3762_v54 = vsel %vm3718_vm1, %v13461_v50, %v13462_v8  ;;  %v13482_v4 = vunpack.i.h.bf16 %v19178_v58 }
 0x409   :  { %v19195_v45 = vpop.permute.xlu1 %13489  ;;  %v3761_v24 = vsel %vm3718_vm1, %v24830_v19, %v13461_v50  ;;  %v24832_v31 = vunpack.i.h.bf16 %v24831_v60  ;;  %v3956_v18 = vmax.f32 %v24833_v39, %v3765_v5  ;;  %v13481_v57 = vunpack.i.l.bf16 %v19178_v58  ;;  %v19235_v50 = vpop.f32.mrf.mxu0  ;;  %v24843_v60 = vld [vmem:[#allocation86_spill] sm:$0xff] }
 0x40a   :  { %v19193_v21 = vpop.permute.xlu0 %13484  ;;  %v4509_v33 = vpack.c.bf16 %v4439_v36, %v4434_v56  ;;  %v4247_v0 = vsel %vm4199_vm2, %v13476_v25, %v13477_v44  ;;  %5235 = vmatprep.mubr.bf16.mxu1 %v4503_v15  ;;  %v13492_v9 = vunpack.i.h.bf16 %v19195_v45  ;;  %v24835_v12 = vunpack.i.h.bf16 %v24834_v14  ;;  %v24846_v14 = vld [vmem:[#allocation53_spill] sm:$0xff] }
 0x40b   :  { %v4246_v55 = vsel %vm4199_vm2, %v24832_v31, %v13476_v25  ;;  %v4243_v20 = vsel %vm4199_vm2, %v13466_v23, %v13467_v30  ;;  %v3957_v37 = vmax.f32 %v24757_v11, %v3766_v13  ;;  %5236 = vmatmul.mubr.bf16.gmra.mxu1 %v4502_v34  ;;  %v13487_v48 = vunpack.i.h.bf16 %v19193_v21 }
 0x40c   :  { %v4242_v8 = vsel %vm4199_vm2, %v24835_v12, %v13466_v23  ;;  %v3951_v38 = vmax.f32 %v24836_v3, %v3761_v24  ;;  %v3952_v58 = vmax.f32 %v24755_v35, %v3762_v54  ;;  %v4437_v27 = vmax.f32 %v3956_v18, %v4246_v55  ;;  %11937 = vmatmul.mubr.msk.bf16.gmra.mxu0 %vm4992_vm4, %v4509_v33  ;;  %v24837_v23 = vld [vmem:[#allocation42_spill] sm:$0xff]  ;;  %v24841_v24 = vld [vmem:[#allocation4_spill] sm:$0xff]  ;;  %v24844_v33 = vld [vmem:[#allocation93_spill] sm:$0xff] }
 0x40d   :  { %v13495_v7 = vpop.permute.xlu1 %13494  ;;  %v13491_v52 = vunpack.i.l.bf16 %v19195_v45  ;;  %v3963_v30 = vmax.f32 %v18911_v46, %v13482_v4  ;;  %v13486_v11 = vunpack.i.l.bf16 %v19193_v21  ;;  %v4438_v47 = vmax.f32 %v3957_v37, %v4247_v0  ;;  %5388 = vmatprep.mubr.bf16.mxu0 %v24736_v49 }
 0x40e   :  { %v19210_v40 = vpop.permute.xlu0 %13499  ;;  %v13497_v29 = vunpack.i.h.bf16 %v13495_v7  ;;  %v4432_v44 = vmax.f32 %v3951_v38, %v4242_v8  ;;  %v3968_v35 = vmax.f32 %v18920_v51, %v13492_v9  ;;  %v13496_v25 = vunpack.i.l.bf16 %v13495_v7  ;;  %v19250_v51 = vpop.f32.mrf.mxu0 }
 0x40f   :  { %v4433_v45 = vmax.f32 %v3952_v58, %v4243_v20  ;;  %v24838_v2 = vunpack.i.h.bf16 %v24837_v23  ;;  %v3770_v56 = vsel %vm3718_vm1, %v13481_v57, %v13482_v4  ;;  %v4444_v17 = vmax.f32 %v3963_v30, %v13487_v48 }
 0x410   :  { %v24840_v46 = vunpack.i.h.bf16 %v24839_v28  ;;  %v4449_v5 = vmax.f32 %v3968_v35, %v13497_v29  ;;  %v4507_v34 = vpack.c.bf16 %v4437_v27, %v4432_v44  ;;  %v24842_v13 = vunpack.i.h.bf16 %v24841_v24  ;;  %v24852_v24 = vld [vmem:[#allocation47_spill] sm:$0xff] }
 0x411   :  { %v13510_v43 = vpop.permute.xlu1 %13509  ;;  %v3769_v62 = vsel %vm3718_vm1, %v24838_v2, %v13481_v57  ;;  %v4508_v36 = vpack.c.bf16 %v4438_v47, %v4433_v45  ;;  %v3774_v7 = vsel %vm3718_vm1, %v13491_v52, %v13492_v9  ;;  %v13502_v54 = vunpack.i.h.bf16 %v19210_v40 }
 0x412   :  { %v19233_v10 = vpop.permute.xlu0 %13504  ;;  %v3773_v21 = vsel %vm3718_vm1, %v24840_v46, %v13491_v52  ;;  %v4250_v15 = vsel %vm4199_vm2, %v24842_v13, %v13486_v11  ;;  %v13512_v4 = vunpack.i.h.bf16 %v13510_v43  ;;  %v3961_v31 = vmax.f32 %v24843_v60, %v3769_v62 }
 0x413   :  { %v13501_v55 = vunpack.i.l.bf16 %v19210_v40  ;;  %v24845_v39 = vunpack.i.h.bf16 %v24844_v33  ;;  %v4514_v57 = vpack.c.bf16 %v4449_v5, %v4444_v17  ;;  %5245 = vmatprep.mubr.bf16.mxu1 %v4508_v36  ;;  %v3962_v0 = vmax.f32 %v24759_v1, %v3770_v56  ;;  %v19273_v1 = vpop.f32.mrf.mxu0  ;;  %v24851_v36 = vld [vmem:[#allocation17_spill] sm:$0xff] }
 0x414   :  { %v3966_v12 = vmax.f32 %v24846_v14, %v3773_v21  ;;  %v4255_v8 = vsel %vm4199_vm2, %v13496_v25, %v13497_v29  ;;  %5246 = vmatmul.mubr.bf16.gmra.mxu1 %v4507_v34  ;;  %v13507_v9 = vunpack.i.h.bf16 %v19233_v10  ;;  %v4251_v20 = vsel %vm4199_vm2, %v13486_v11, %v13487_v48  ;;  %v24847_v48 = vld [vmem:[#allocation70_spill] sm:$0xff] }
 0x415   :  { %v13515_v19 = vpop.permute.xlu1 %13514  ;;  %v4254_v18 = vsel %vm4199_vm2, %v24845_v39, %v13496_v25  ;;  %v4442_v37 = vmax.f32 %v3961_v31, %v4250_v15  ;;  %v3967_v40 = vmax.f32 %v24761_v6, %v3774_v7  ;;  %v13511_v3 = vunpack.i.l.bf16 %v13510_v43  ;;  %11938 = vmatmul.mubr.msk.bf16.gmra.mxu0 %vm4992_vm4, %v4514_v57  ;;  %v19290_v28 = vpop.f32.mrf.mxu0 }
 0x416   :  { %v19248_v53 = vpop.permute.xlu0 %13519  ;;  %v3973_v27 = vmax.f32 %v18929_v16, %v13502_v54  ;;  %v4447_v52 = vmax.f32 %v3966_v12, %v4254_v18  ;;  %v3978_v30 = vmax.f32 %v18938_v59, %v13512_v4  ;;  %v13517_v29 = vunpack.i.h.bf16 %v13515_v19  ;;  %5398 = vmatprep.mubr.bf16.mxu0 %v24736_v49  ;;  %v24849_v16 = vld [vmem:[#allocation13_spill] sm:$0xff] }
 0x417   :  { %v24848_v11 = vunpack.i.h.bf16 %v24847_v48  ;;  %v3778_v43 = vsel %vm3718_vm1, %v13501_v55, %v13502_v54  ;;  %v13516_v47 = vunpack.i.l.bf16 %v13515_v19  ;;  %v4448_v44 = vmax.f32 %v3967_v40, %v4255_v8  ;;  %v19311_v12 = vpop.f32.mrf.mxu0  ;;  %v24857_v8 = vld [vmem:[#allocation32_spill] sm:$0xff] }
 0x418   :  { %v13506_v35 = vunpack.i.l.bf16 %v19233_v10  ;;  %v4454_v25 = vmax.f32 %v3973_v27, %v13507_v9  ;;  %v4459_v45 = vmax.f32 %v3978_v30, %v13517_v29  ;;  %v4443_v23 = vmax.f32 %v3962_v0, %v4251_v20 }
 0x419   :  { %v19271_v58 = vpop.permute.xlu1 %13529  ;;  %v3777_v6 = vsel %vm3718_vm1, %v24848_v11, %v13501_v55  ;;  %v24850_v2 = vunpack.i.h.bf16 %v24849_v16  ;;  %v3782_v62 = vsel %vm3718_vm1, %v13511_v3, %v13512_v4  ;;  %v13522_v56 = vunpack.i.h.bf16 %v19248_v53  ;;  %v24854_v4 = vld [vmem:[#allocation34_spill] sm:$0xff]  ;;  %v24856_v55 = vld [vmem:[#allocation31_spill] sm:$0xff] }
 0x41a   :  { %v19269_v38 = vpop.permute.xlu0 %13524  ;;  %v13521_v46 = vunpack.i.l.bf16 %v19248_v53  ;;  %v4519_v21 = vpack.c.bf16 %v4459_v45, %v4454_v25  ;;  %v4513_v5 = vpack.c.bf16 %v4448_v44, %v4443_v23  ;;  %v4512_v10 = vpack.c.bf16 %v4447_v52, %v4442_v37  ;;  %v19332_v45 = vpop.f32.mrf.mxu0  ;;  %v24862_v23 = vld [vmem:[#allocation91_spill] sm:$0xff] }
 0x41b   :  { %v3781_v59 = vsel %vm3718_vm1, %v24850_v2, %v13511_v3  ;;  %v3971_v34 = vmax.f32 %v24851_v36, %v3777_v6  ;;  %v3972_v19 = vmax.f32 %v24763_v61, %v3778_v43  ;;  %v24853_v13 = vunpack.i.h.bf16 %v24852_v24  ;;  %v24859_v3 = vld [vmem:[#allocation35_spill] sm:$0xff]  ;;  %v24861_v6 = vld [vmem:[#allocation89_spill] sm:$0xff] }
 0x41c   :  { %v13532_v7 = vunpack.i.h.bf16 %v19271_v58  ;;  %v24855_v60 = vunpack.i.h.bf16 %v24854_v4  ;;  %v4259_v53 = vsel %vm4199_vm2, %v13506_v35, %v13507_v9  ;;  %v3976_v33 = vmax.f32 %v24856_v55, %v3781_v59  ;;  %5255 = vmatprep.mubr.bf16.mxu1 %v4513_v5  ;;  %v24865_v5 = vld [vmem:[#allocation33_spill] sm:$0xff]  ;;  %v19346_v55 = vpop.f32.mrf.mxu0 }
 0x41d   :  { %v19288_v17 = vpop.permute.xlu1 %13534  ;;  %v4262_v15 = vsel %vm4199_vm2, %v24853_v13, %v13516_v47  ;;  %v13531_v39 = vunpack.i.l.bf16 %v19271_v58  ;;  %v3977_v61 = vmax.f32 %v24765_v41, %v3782_v62  ;;  %v3983_v18 = vmax.f32 %v18947_v32, %v13522_v56  ;;  %5256 = vmatmul.mubr.bf16.gmra.mxu1 %v4512_v10  ;;  %11939 = vmatmul.mubr.msk.bf16.gmra.mxu0 %vm4992_vm4, %v4519_v21  ;;  %v24864_v62 = vld [vmem:[#allocation90_spill] sm:$0xff] }
 0x41e   :  { %v19299_v54 = vpop.permute.xlu0 %13539  ;;  %v4258_v31 = vsel %vm4199_vm2, %v24855_v60, %v13506_v35  ;;  %v4263_v57 = vsel %vm4199_vm2, %v13516_v47, %v13517_v29  ;;  %v13527_v0 = vunpack.i.h.bf16 %v19269_v38  ;;  %v24858_v20 = vunpack.i.h.bf16 %v24857_v8  ;;  %5408 = vmatprep.mubr.bf16.mxu0 %v24736_v49 }
 0x41f   :  { %v4457_v37 = vmax.f32 %v3976_v33, %v4262_v15  ;;  %v13526_v40 = vunpack.i.l.bf16 %v19269_v38  ;;  %v13542_v41 = vunpack.i.h.bf16 %v19299_v54  ;;  %v3988_v32 = vmax.f32 %v18956_v26, %v13532_v7  ;;  %v14254_v26 = vld [vmem:[%s23603_s4 + $0x164] ss:$12 sps:$4 sm:$0xff]   ;;  %v24868_v33 = vld [vmem:[#allocation39_spill] sm:$0xff] }
 0x420   :  { %v3785_v9 = vsel %vm3718_vm1, %v24858_v20, %v13521_v46  ;;  %v24860_v58 = vunpack.i.h.bf16 %v24859_v3  ;;  %v13541_v52 = vunpack.i.l.bf16 %v19299_v54  ;;  %v13537_v30 = vunpack.i.h.bf16 %v19288_v17  ;;  %6144 = vmatpush1.bf16.msra.mxu0 %v14254_v26 }
 0x421   :  { %v13550_v14 = vpop.permute.xlu1 %13549  ;;  %v4452_v29 = vmax.f32 %v3971_v34, %v4258_v31  ;;  %v3786_v48 = vsel %vm3718_vm1, %v13521_v46, %v13522_v56  ;;  %v13536_v38 = vunpack.i.l.bf16 %v19288_v17  ;;  %v4458_v11 = vmax.f32 %v3977_v61, %v4263_v57  ;;  %6145 = vmatprep.subr.bf16.mxu0 %v24736_v49  ;;  %v24869_v57 = vld [vmem:[#allocation7_spill] sm:$0xff] }
 0x422   :  { %v3789_v27 = vsel %vm3718_vm1, %v24860_v58, %v13531_v39  ;;  %v3981_v43 = vmax.f32 %v24861_v6, %v3785_v9  ;;  %v4464_v47 = vmax.f32 %v3983_v18, %v13527_v0  ;;  %v4469_v44 = vmax.f32 %v3988_v32, %v13537_v30  ;;  %v13545_v25 = vpop.permute.xlu0 %13544  ;;  %v24870_v9 = vld [vmem:[#allocation54_spill] sm:$0xff]  ;;  %v19362_v6 = vpop.f32.mrf.mxu0 }
 0x423   :  { %v4453_v35 = vmax.f32 %v3972_v19, %v4259_v53  ;;  %v24863_v16 = vunpack.i.h.bf16 %v24862_v23  ;;  %v3790_v59 = vsel %vm3718_vm1, %v13531_v39, %v13532_v7  ;;  %v3986_v56 = vmax.f32 %v24864_v62, %v3789_v27  ;;  %v24867_v7 = vld [vmem:[#allocation66_spill] sm:$0xff] }
 0x424   :  { %v4517_v17 = vpack.c.bf16 %v4457_v37, %v4452_v29  ;;  %v3794_v21 = vsel %vm3718_vm1, %v13541_v52, %v13542_v41  ;;  %v24866_v10 = vunpack.i.h.bf16 %v24865_v5  ;;  %v4524_v34 = vpack.c.bf16 %v4469_v44, %v4464_v47  ;;  %v24871_v37 = vld [vmem:[#allocation65_spill] sm:$0xff]  ;;  %v24872_v27 = vld [vmem:[#allocation6_spill] sm:$0xff] }
 0x425   :  { %v4266_v2 = vsel %vm4199_vm2, %v24863_v16, %v13526_v40  ;;  %v13555_v46 = vpop.permute.xlu1 %13554  ;;  %v4518_v19 = vpack.c.bf16 %v4458_v11, %v4453_v35  ;;  %v13547_v24 = vunpack.i.h.bf16 %v13545_v25  ;;  %v13546_v13 = vunpack.i.l.bf16 %v13545_v25  ;;  %v24877_v35 = vld [vmem:[#allocation72_spill] sm:$0xff] }
 0x426   :  { %v4270_v36 = vsel %vm4199_vm2, %v24866_v10, %v13536_v38  ;;  %v13552_v15 = vunpack.i.h.bf16 %v13550_v14  ;;  %v13551_v54 = vunpack.i.l.bf16 %v13550_v14  ;;  %v3982_v4 = vmax.f32 %v24867_v7, %v3786_v48  ;;  %11940 = vmatmul.mubr.msk.bf16.gmra.mxu0 %vm4992_vm4, %v4524_v34  ;;  %v24874_v48 = vld [vmem:[#allocation40_spill] sm:$0xff] }
 0x427   :  { %v4267_v60 = vsel %vm4199_vm2, %v13526_v40, %v13527_v0  ;;  %5265 = vmatprep.mubr.bf16.mxu1 %v4518_v19  ;;  %v13557_v31 = vunpack.i.h.bf16 %v13555_v46  ;;  %v13556_v53 = vunpack.i.l.bf16 %v13555_v46  ;;  %v3993_v39 = vmax.f32 %v24868_v33, %v13542_v41  ;;  %5418 = vmatprep.mubr.bf16.mxu0 %v24736_v49  ;;  %v24879_v46 = vld [vmem:[#allocation67_spill] sm:$0xff]  ;;  %v14255_v5 = vld [vmem:[%s23603_s4 + $0x144] ss:$12 sps:$4 sm:$0xff]   ;;  %v14262_v33 = vld [vmem:[%s23603_s4 + $0x134] ss:$12 sps:$4 sm:$0xff]  }
 0x428   :  { %v4271_v61 = vsel %vm4199_vm2, %v13536_v38, %v13537_v30  ;;  %v4467_v18 = vmax.f32 %v3986_v56, %v4270_v36  ;;  %5266 = vmatmul.mubr.bf16.gmra.mxu1 %v4517_v17  ;;  %v3998_v8 = vmax.f32 %v24869_v57, %v13552_v15  ;;  %v4462_v20 = vmax.f32 %v3981_v43, %v4266_v2  ;;  %v24875_v43 = vld [vmem:[#allocation73_spill] sm:$0xff]  ;;  %v14257_v17 = vld [vmem:[%s23603_s4 + $0x148] ss:$12 sps:$4 sm:$0xff]  }
 0x429   :  { %v3987_v14 = vmax.f32 %v24870_v9, %v3790_v59  ;;  %v3992_v32 = vmax.f32 %v24871_v37, %v3794_v21  ;;  %v3798_v0 = vsel %vm3718_vm1, %v13551_v54, %v13552_v15  ;;  %v4275_v40 = vsel %vm4199_vm2, %v13546_v13, %v13547_v24  ;;  %6012 = vmatprep.subr.bf16.mxu1 %v14257_v17  ;;  %v14258_v19 = vld [vmem:[%s23603_s4 + $0x14c] ss:$12 sps:$4 sm:$0xff]   ;;  %v14266_v37 = vld [vmem:[%s23603_s4 + $0x234] ss:$12 sps:$4 sm:$0xff]  }
 0x42a   :  { %v4474_v3 = vmax.f32 %v3993_v39, %v13547_v24  ;;  %v4279_v41 = vsel %vm4199_vm2, %v13556_v53, %v13557_v31  ;;  %v4479_v58 = vmax.f32 %v3998_v8, %v13557_v31  ;;  %v24873_v30 = vunpack.i.h.bf16 %v24872_v27  ;;  %v19383_v24 = vpop.f32.mrf.mxu0  ;;  %v24882_v15 = vld [vmem:[#allocation37_spill] sm:$0xff]  ;;  %6013 = vmatpush1.bf16.msra.mxu1 %v14255_v5  ;;  %6146 = vmatpush1.bf16.msra.mxu0 %v14258_v19  ;;  %v11990_v39 = vld [vmem:[%s23603_s4 + $0x24c] sm:$0xff]  ;;  %v14265_v8 = vld [vmem:[%s23603_s4 + $0x254] ss:$0 sps:$4 sm:$0xff]  }
 0x42b   :  { %v3997_v38 = vmax.f32 %v24874_v48, %v3798_v0  ;;  %v4463_v11 = vmax.f32 %v3982_v4, %v4267_v60  ;;  %v4468_v26 = vmax.f32 %v3987_v14, %v4271_v61  ;;  %v24876_v47 = vunpack.i.h.bf16 %v24875_v43  ;;  %v14261_v60 = vld [vmem:[%s23603_s4 + $0x130] ss:$12 sps:$4 sm:$0xff]   ;;  %6147 = vmatprep.subr.bf16.mxu0 %v24736_v49  ;;  %v14277_v48 = vld [vmem:[%s23603_s4 + $0x20c] ss:$12 sps:$4 sm:$0xff]  }
 0x42c   :  { %v3797_v29 = vsel %vm3718_vm1, %v24873_v30, %v13551_v54  ;;  %v24878_v25 = vunpack.i.h.bf16 %v24877_v35  ;;  %v4522_v16 = vpack.c.bf16 %v4467_v18, %v4462_v20  ;;  %v4529_v2 = vpack.c.bf16 %v4479_v58, %v4474_v3  ;;  %v19394_v31 = vpop.f32.mrf.mxu0  ;;  %6014 = vmatprep.subr.bf16.mxu1 %v14261_v60  ;;  %v14269_v0 = vld [vmem:[%s23603_s4 + $0x23c] ss:$12 sps:$4 sm:$0xff]   ;;  %v14272_v3 = vld [vmem:[%s23603_s4 + $0x220] ss:$12 sps:$4 sm:$0xff]   ;;  %v14273_v58 = vld [vmem:[%s23603_s4 + $0x224] ss:$12 sps:$4 sm:$0xff]  }
 0x42d   :  { %v3793_v44 = vsel %vm3718_vm1, %v24876_v47, %v13541_v52  ;;  %v4523_v59 = vpack.c.bf16 %v4468_v26, %v4463_v11  ;;  %v4473_v62 = vmax.f32 %v3992_v32, %v4275_v40  ;;  %v4478_v56 = vmax.f32 %v3997_v38, %v4279_v41  ;;  %v24880_v52 = vld [vmem:[#allocation71_spill] sm:$0xff]  ;;  %v14268_v32 = vld [vmem:[%s23603_s4 + $0x238] ss:$12 sps:$4 sm:$0xff]   ;;  %v14280_v26 = vld [vmem:[%s23603_s4 + $0x1f0] ss:$12 sps:$4 sm:$0xff]  }
 0x42e   :  { %v4278_v23 = vsel %vm4199_vm2, %v24878_v25, %v13556_v53  ;;  %v3996_v21 = vmax.f32 %v24879_v46, %v3797_v29  ;;  %v24881_v10 = vunpack.i.h.bf16 %v24880_v52  ;;  %v3991_v54 = vmax.f32 %v24882_v15, %v3793_v44  ;;  %11941 = vmatmul.mubr.msk.bf16.gmra.mxu0 %vm4992_vm4, %v4529_v2  ;;  %v19402_v18 = vpop.f32.mrf.mxu0  ;;  %v14270_v40 = vld [vmem:[%s23603_s4 + $0x21c] ss:$12 sps:$4 sm:$0xff]   ;;  %v14274_v30 = vld [vmem:[%s23603_s4 + $0x204] ss:$12 sps:$4 sm:$0xff]   ;;  %v14278_v11 = vld [vmem:[%s23603_s4 + $0x1ec] ss:$12 sps:$4 sm:$0xff]  }
 0x42f   :  { %5275 = vmatprep.mubr.bf16.mxu1 %v4523_v59  ;;  %v4528_v34 = vpack.c.bf16 %v4478_v56, %v4473_v62  ;;  %6148 = vmatpush1.bf16.msra.mxu0 %v14262_v33  ;;  %v12029_v61 = vcombine.high %v11990_v39, %v11990_v39  ;;  %v12028_v57 = vcombine.low %v11990_v39, %v11990_v39  ;;  %v5998_v9 = vsel %vm5990_vm5, %v14265_v8, 0  ;;  %v14276_v29 = vld [vmem:[%s23603_s4 + $0x208] ss:$12 sps:$4 sm:$0xff]   ;;  %v14284_v62 = vld [vmem:[%s23603_s4 + $0xac] ss:$12 sps:$4 sm:$0xff]  }
 0x430   :  { %v4274_v36 = vsel %vm4199_vm2, %v24881_v10, %v13546_v13  ;;  %v4477_v7 = vmax.f32 %v3996_v21, %v4278_v23  ;;  %5276 = vmatmul.mubr.bf16.gmra.mxu1 %v4522_v16  ;;  %v14259_v13 = vld [vmem:[%s23603_s4 + $0x12c] ss:$12 sps:$4 sm:$0xff]   ;;  %6155 = vmatprep.subr.bf16.mxu0 %v24736_v49  ;;  %v19411_v14 = vpop.f32.mrf.mxu0  ;;  %v14281_v47 = vld [vmem:[%s23603_s4 + $0x1f4] ss:$12 sps:$4 sm:$0xff]  }
 0x431   :  { %5285 = vmatprep.mubr.bf16.mxu1 %v4528_v34  ;;  %v4472_v4 = vmax.f32 %v3991_v54, %v4274_v36  ;;  %6015 = vmatpush1.bf16.msra.mxu1 %v14259_v13  ;;  %v5992_v20 = vsel %vm5990_vm5, %v12028_v57, 0  ;;  %v4607_v54 = vlaneseq }
 0x432   :  { %12031 = vmatprep.subr.msk.bf16.mxu1 %vm5990_vm5, %v12029_v61  ;;  %v19429_v41 = vpop.f32.mrf.mxu0 }
 0x433   :  { %v4527_v53 = vpack.c.bf16 %v4477_v7, %v4472_v4  ;;  %6156 = vmatpush2.bf16.msra.mxu0 %v5998_v9  ;;  %v19503_v4 = vshrl.u32 %v4607_v54, 7 }
 0x434   :  { %6157 = vmatprep.subr.bf16.mxu0 %v24736_v49  ;;  %v19435_v27 = vpop.f32.mrf.mxu0 }
 0x435   :  { %6023 = vmatpush2.bf16.msra.mxu1 %v5992_v20  ;;  %24885 = vst [vmem:[#allocation38_spill] sm:$0xff] %v19503_v4  ;;  %v23931_v60 = vsub.s32 0, %v19503_v4  ;;  %v23930_v39 = vsub.s32 1, %v19503_v4 }
 0x436   :  { %6024 = vmatprep.subr.bf16.mxu1 %v14268_v32  ;;  %v19447_v38 = vpop.f32.mrf.mxu0 }
 0x437   :  { %6158 = vmatpush2.bf16.msra.mxu0 %v14269_v0 }
 0x438   :  { %5286 = vmatmul.mubr.bf16.gmra.mxu1 %v4527_v53  ;;  %6159 = vmatprep.subr.bf16.mxu0 %v24736_v49  ;;  %v19456_v43 = vpop.f32.mrf.mxu0  ;;  %v4605_v53 = vld [vmem:[%s23604_s2] sm:$0x3] }
 0x439   :  { %6025 = vmatpush2.bf16.msra.mxu1 %v14266_v37  ;;  %v19516_v57 = vrot.slane %v4605_v53, %v23931_v60  ;;  %v19520_v20 = vrot.slane %v4605_v53, %v23930_v39 }
 0x43a   :  { %6026 = vmatprep.subr.bf16.mxu1 %v14272_v3  ;;  %v19462_v44 = vpop.f32.mrf.mxu0 }
 0x43b   :  { %6160 = vmatpush2.bf16.msra.mxu0 %v14273_v58  ;;  %v5065_v37 = vadd.f32 %v19180_v63, %v19516_v57 }
 0x43c   :  { %6161 = vmatprep.subr.bf16.mxu0 %v24736_v49  ;;  %v19464_v35 = vpop.f32.mrf.mxu0 }
 0x43d   :  { %6027 = vmatpush2.bf16.msra.mxu1 %v14270_v40  ;;  %v5067_v40 = vadd.f32 %v19198_v42, %v19520_v20  ;;  %v5075_v42 = vadd.f32 %v19250_v51, %v19516_v57 }
 0x43e   :  { %6028 = vmatprep.subr.bf16.mxu1 %v14276_v29  ;;  %v19466_v25 = vpop.f32.mrf.mxu0 }
 0x43f   :  { %6162 = vmatpush2.bf16.msra.mxu0 %v14277_v48 }
 0x440   :  { %6163 = vmatprep.subr.bf16.mxu0 %v24736_v49  ;;  %v19468_v23 = vpop.f32.mrf.mxu0 }
 0x441   :  { %6029 = vmatpush2.bf16.msra.mxu1 %v14274_v30  ;;  %v5069_v30 = vadd.f32 %v19212_v22, %v19516_v57 }
 0x442   :  { %6030 = vmatprep.subr.bf16.mxu1 %v14280_v26  ;;  %v19470_v16 = vpop.f32.mrf.mxu0  ;;  %v5071_v26 = vadd.f32 %v19235_v50, %v19520_v20 }
 0x443   :  { %6164 = vmatpush2.bf16.msra.mxu0 %v14281_v47 }
 0x444   :  { %6608 = vmatprep.subr.bf16.mxu0 %v24736_v49  ;;  %v19472_v2 = vpop.f32.mrf.mxu0 }
 0x445   :  { %6031 = vmatpush2.bf16.msra.mxu1 %v14278_v11 }
 0x446   :  { %v19474_v59 = vpop.f32.mrf.mxu0  ;;  %6475 = vmatprep.subr.bf16.mxu1 %v14284_v62 }
 0x448   :  { %v19479_v56 = vpop.f32.mrf.mxu0 }
 0x44a   :  { %v19481_v17 = vpop.f32.mrf.mxu0 }
 0x44c   :  { %v19483_v46 = vpop.f32.mrf.mxu0 }
 0x44e   :  { %v19485_v21 = vpop.f32.mrf.mxu0 }
 0x450   :  { %v19487_v5 = vpop.f32.mrf.mxu0 }
 0x452   :  { %v19489_v52 = vpop.f32.mrf.mxu0 }
 0x454   :  { %v19491_v10 = vpop.f32.mrf.mxu0 }
 0x456   :  { %v19493_v36 = vpop.f32.mrf.mxu0 }
 0x458   :  { %v19495_v34 = vpop.f32.mrf.mxu0 }
 0x45a   :  { %v19497_v19 = vpop.f32.mrf.mxu0 }
 0x45c   :  { %v19499_v15 = vpop.f32.mrf.mxu0 }
 0x45d   :  { %24883 = vst [vmem:[#allocation8_spill] sm:$0xff] %v19499_v15 }
 0x45e   :  { %v19501_v7 = vpop.f32.mrf.mxu0 }
 0x45f   :  { %24884 = vst [vmem:[#allocation92_spill] sm:$0xff] %v19501_v7 }
 0x460   :  { %v19505_v13 = vpop.f32.mrf.mxu0 }
 0x461   :  { %24886 = vst [vmem:[#allocation74_spill] sm:$0xff] %v19505_v13 }
 0x462   :  { %v19511_v33 = vpop.f32.mrf.mxu0 }
 0x463   :  { %24887 = vst [vmem:[#allocation11_spill] sm:$0xff] %v19511_v33 }
 0x4a3   :  { %v5330_v61 = vpop.f32.mrf.mxu0 }
 0x4a5   :  { %v5332_v8 = vpop.f32.mrf.mxu0 }
 0x4a6   :  { %v5197_v32 = vpop.f32.mrf.mxu1 }
 0x4a7   :  { %v5334_v9 = vpop.f32.mrf.mxu0  ;;  %v5198_v3 = vadd.f32 %v5197_v32, %v5065_v37 }
 0x4a8   :  { %v5199_v58 = vpop.f32.mrf.mxu1 }
 0x4a9   :  { %v5336_v0 = vpop.f32.mrf.mxu0  ;;  %v5200_v29 = vadd.f32 %v5199_v58, %v5067_v40  ;;  %v5331_v47 = vadd.f32 %v5330_v61, %v5198_v3  ;;  %v5077_v58 = vadd.f32 %v19273_v1, %v19520_v20  ;;  %v5081_v1 = vadd.f32 %v19311_v12, %v19520_v20 }
 0x4aa   :  { %v5201_v48 = vpop.f32.mrf.mxu1 }
 0x4ab   :  { %v5202_v62 = vadd.f32 %v5201_v48, %v5069_v30  ;;  %v5333_v53 = vadd.f32 %v5332_v8, %v5200_v29  ;;  %v5429_v32 = vmax.f32 %v5331_v47, 0.0 }
 0x4ac   :  { %v5340_v11 = vpop.f32.mrf.mxu0  ;;  %v5203_v54 = vpop.f32.mrf.mxu1 }
 0x4ad   :  { %v5335_v39 = vadd.f32 %v5334_v9, %v5202_v62  ;;  %v5204_v60 = vadd.f32 %v5203_v54, %v5071_v26  ;;  %v5430_v61 = vmax.f32 %v5333_v53, 0.0  ;;  %v5079_v9 = vadd.f32 %v19290_v28, %v19516_v57 }
 0x4ae   :  { %v5342_v63 = vpop.f32.mrf.mxu0 }
 0x4af   :  { %v5431_v4 = vmax.f32 %v5335_v39, 0.0  ;;  %v5337_v22 = vadd.f32 %v5336_v0, %v5204_v60  ;;  %v5207_v40 = vpop.f32.mrf.mxu1 }
 0x4b0   :  { %v5344_v37 = vpop.f32.mrf.mxu0  ;;  %v5208_v33 = vadd.f32 %v5207_v40, %v5075_v42 }
 0x4b1   :  { %v19534_v3 = vpack.c.bf16 %v5431_v4, %v5429_v32  ;;  %v5432_v30 = vmax.f32 %v5337_v22, 0.0  ;;  %v5209_v8 = vpop.f32.mrf.mxu1 }
 0x4b2   :  { %v5346_v50 = vpop.f32.mrf.mxu0  ;;  %v5210_v29 = vadd.f32 %v5209_v8, %v5077_v58  ;;  %v5341_v0 = vadd.f32 %v5340_v11, %v5208_v33  ;;  %v5085_v58 = vadd.f32 %v19332_v45, %v19516_v57 }
 0x4b3   :  { %24888 = vst [vmem:[#allocation9_spill] sm:$0xff] %v19534_v3  ;;  %v19538_v48 = vpack.c.bf16 %v5432_v30, %v5430_v61  ;;  %v5211_v39 = vpop.f32.mrf.mxu1  ;;  %v5592_v60 = vshrl.u32 %v19534_v3, 16  ;;  %v5594_v4 = vshll.u32 %v19534_v3, 16 }
 0x4b4   :  { %v5350_v51 = vpop.f32.mrf.mxu0  ;;  %v5212_v26 = vadd.f32 %v5211_v39, %v5079_v9  ;;  %v5343_v53 = vadd.f32 %v5342_v63, %v5210_v29  ;;  %v5433_v11 = vmax.f32 %v5341_v0, 0.0  ;;  %v5087_v63 = vadd.f32 %v19346_v55, %v19520_v20 }
 0x4b5   :  { %24889 = vst [vmem:[#allocation41_spill] sm:$0xff] %v19538_v48  ;;  %v5213_v62 = vpop.f32.mrf.mxu1  ;;  %v5604_v54 = vshrl.u32 %v19538_v48, 16  ;;  %v5606_v28 = vshll.u32 %v19538_v48, 16  ;;  %v19546_v40 = vrot.slane %v5592_v60, 1  ;;  %v19554_v39 = vrot.slane %v5594_v4, 2 }
 0x4b6   :  { %v5352_v47 = vpop.f32.mrf.mxu0  ;;  %v5345_v42 = vadd.f32 %v5344_v37, %v5212_v26  ;;  %v5214_v32 = vadd.f32 %v5213_v62, %v5081_v1  ;;  %v5434_v1 = vmax.f32 %v5343_v53, 0.0  ;;  %v5596_v3 = vrot.slane %v5594_v4, 1 }
 0x4b7   :  { %v19550_v12 = vrot.slane %v5604_v54, 1  ;;  %v19552_v33 = vrot.slane %v5606_v28, 2 }
 0x4b8   :  { %v5354_v22 = vpop.f32.mrf.mxu0  ;;  %v5435_v61 = vmax.f32 %v5345_v42, 0.0  ;;  %v5347_v30 = vadd.f32 %v5346_v50, %v5214_v32  ;;  %v5217_v8 = vpop.f32.mrf.mxu1  ;;  %v5089_v50 = vadd.f32 %v19362_v6, %v19516_v57 }
 0x4b9   :  { %v5218_v37 = vadd.f32 %v5217_v8, %v5085_v58  ;;  %v5608_v8 = vrot.slane %v5606_v28, 1 }
 0x4ba   :  { %v5356_v9 = vpop.f32.mrf.mxu0  ;;  %v19560_v45 = vpack.c.bf16 %v5435_v61, %v5433_v11  ;;  %v5436_v26 = vmax.f32 %v5347_v30, 0.0  ;;  %v5219_v62 = vpop.f32.mrf.mxu1  ;;  %v5091_v61 = vadd.f32 %v19383_v24, %v19520_v20  ;;  %v5095_v30 = vadd.f32 %v19394_v31, %v19516_v57 }
 0x4bb   :  { %v5220_v42 = vadd.f32 %v5219_v62, %v5087_v63  ;;  %v5351_v0 = vadd.f32 %v5350_v51, %v5218_v37  ;;  %v5609_v48 = vor.u32 %v5608_v8, %v5604_v54  ;;  %v5597_v31 = vor.u32 %v5596_v3, %v5592_v60 }
 0x4bc   :  { %v19566_v32 = vpop.f32.mrf.mxu0  ;;  %v19568_v55 = vpack.c.bf16 %v5436_v26, %v5434_v1  ;;  %v5221_v58 = vpop.f32.mrf.mxu1  ;;  %v5599_v53 = vshll.u32 %v19560_v45, 16  ;;  %v24890_v51 = vshrl.u32 %v19560_v45, 16  ;;  %v5097_v3 = vadd.f32 %v19402_v18, %v19520_v20 }
 0x4bd   :  { %v5222_v6 = vadd.f32 %v5221_v58, %v5089_v50  ;;  %v5353_v1 = vadd.f32 %v5352_v47, %v5220_v42  ;;  %v14282_v50 = vld [vmem:[%s23603_s4 + $0xa8] ss:$12 sps:$4 sm:$0xff]   ;;  %v5437_v58 = vmax.f32 %v5351_v0, 0.0  ;;  %v14285_v47 = vld [vmem:[%s23603_s4 + $0xb0] ss:$12 sps:$4 sm:$0xff]  }
 0x4be   :  { %v19576_v63 = vpop.f32.mrf.mxu0  ;;  %v5223_v62 = vpop.f32.mrf.mxu1  ;;  %v5611_v4 = vshll.u32 %v19568_v55, 16  ;;  %v5601_v24 = vrot.slane %v5599_v53, 1  ;;  %v7441_v37 = vrot.slane %v24890_v51, 1  ;;  %v24891_v54 = vshrl.u32 %v19568_v55, 16  ;;  %v14288_v0 = vld [vmem:[%s23603_s4 + $0x94] ss:$12 sps:$4 sm:$0xff]  }
 0x4bf   :  { %v5355_v26 = vadd.f32 %v5354_v22, %v5222_v6  ;;  %v5224_v29 = vadd.f32 %v5223_v62, %v5091_v61  ;;  %v14289_v51 = vld [vmem:[%s23603_s4 + $0x98] ss:$12 sps:$4 sm:$0xff]  }
 0x4c0   :  { %v19580_v11 = vpop.f32.mrf.mxu0  ;;  %v5613_v13 = vrot.slane %v5611_v4, 1  ;;  %v7448_v22 = vrot.slane %v24891_v54, 1  ;;  %v7449_v42 = vrot.slane %v5611_v4, 2  ;;  %v5602_v62 = vsel %vm5590_vm6, %v5597_v31, %v5601_v24  ;;  %v14286_v31 = vld [vmem:[%s23603_s4 + $0x90] ss:$12 sps:$4 sm:$0xff]  }
 0x4c1   :  { %v5439_v7 = vmax.f32 %v5355_v26, 0.0  ;;  %v5357_v15 = vadd.f32 %v5356_v9, %v5224_v29  ;;  %v7442_v9 = vrot.slane %v5599_v53, 2  ;;  %v5438_v29 = vmax.f32 %v5353_v1, 0.0 }
 0x4c2   :  { %v19587_v28 = vpop.f32.mrf.mxu0  ;;  %v5614_v60 = vsel %vm5590_vm6, %v5609_v48, %v5613_v13  ;;  %v5227_v6 = vpop.f32.mrf.mxu1  ;;  %v19607_v26 = vor.u32 %v7449_v42, %v7448_v22  ;;  %v19643_v54 = vadd.f32 %v19456_v43, %v19516_v57 }
 0x4c3   :  { %v19600_v8 = vpack.c.bf16 %v5439_v7, %v5437_v58  ;;  %v5440_v61 = vmax.f32 %v5357_v15, 0.0  ;;  %12032 = vmatprep.mubr.msk.bf16.mxu1 %vm5959_vm7, %v5614_v60  ;;  %12042 = vmatprep.mubr.msk.bf16.mxu0 %vm5959_vm7, %v5614_v60  ;;  %v5228_v18 = vadd.f32 %v5227_v6, %v5095_v30  ;;  %v19609_v53 = vor.u32 %v7442_v9, %v7441_v37 }
 0x4c4   :  { %6033 = vmatmul.mubr.bf16.vlgmr.msra.gmra.mxu1 %v5602_v62  ;;  %6166 = vmatmul.mubr.bf16.vlgmr.msra.gmra.mxu0 %v5602_v62  ;;  %v19605_v48 = vpop.f32.mrf.mxu0  ;;  %v5099_v15 = vadd.f32 %v19411_v14, %v19516_v57  ;;  %v5101_v7 = vadd.f32 %v19429_v41, %v19520_v20  ;;  %v5229_v1 = vpop.f32.mrf.mxu1  ;;  %v5105_v14 = vadd.f32 %v19435_v27, %v19516_v57 }
 0x4c5   :  { %v19615_v4 = vpack.c.bf16 %v5440_v61, %v5438_v29  ;;  %v5619_v30 = vshll.u32 %v19600_v8, 16  ;;  %6476 = vmatpush1.bf16.msra.mxu1 %v14282_v50  ;;  %6609 = vmatpush1.bf16.msra.mxu0 %v14285_v47  ;;  %v5230_v37 = vadd.f32 %v5229_v1, %v5097_v3  ;;  %v14292_v50 = vld [vmem:[%s23603_s4 + $0x7c] ss:$12 sps:$4 sm:$0xff]   ;;  %v24892_v58 = vor.u32 %v19552_v33, %v19550_v12  ;;  %v14290_v1 = vld [vmem:[%s23603_s4 + $0x78] ss:$12 sps:$4 sm:$0xff]  }
 0x4c6   :  { %v19626_v41 = vpop.f32.mrf.mxu0  ;;  %6477 = vmatprep.subr.bf16.mxu1 %v14288_v0  ;;  %6610 = vmatprep.subr.bf16.mxu0 %v24736_v49  ;;  %v5107_v27 = vadd.f32 %v19447_v38, %v19520_v20  ;;  %v5231_v22 = vpop.f32.mrf.mxu1  ;;  %v5361_v0 = vadd.f32 %v19566_v32, %v5228_v18  ;;  %v24893_v12 = vshrl.u32 %v19560_v45, 16  ;;  %v24894_v61 = vshrl.u32 %v19568_v55, 16 }
 0x4c7   :  { %v19637_v47 = vsel %vm7437_vm8, %v24892_v58, %v19607_v26  ;;  %v5627_v3 = vshll.u32 %v19615_v4, 16  ;;  %v5639_v60 = vshrl.u32 %v19615_v4, 16  ;;  %v5232_v42 = vadd.f32 %v5231_v22, %v5099_v15 }
 0x4c8   :  { %v19648_v9 = vpop.f32.mrf.mxu0  ;;  %v5617_v33 = vor.u32 %v24893_v12, %v5601_v24  ;;  %v19654_v38 = vrot.slane %v5619_v30, 1  ;;  %v5363_v43 = vadd.f32 %v19576_v63, %v5230_v37  ;;  %v5233_v29 = vpop.f32.mrf.mxu1  ;;  %v5625_v6 = vor.u32 %v24894_v61, %v5613_v13  ;;  %v14293_v13 = vld [vmem:[%s23603_s4 + $0x80] ss:$12 sps:$4 sm:$0xff]  }
 0x4c9   :  { %v19659_v62 = vrot.slane %v5627_v3, 1  ;;  %v5631_v32 = vshrl.u32 %v19600_v8, 16  ;;  %6478 = vmatpush1.bf16.msra.mxu1 %v14286_v31  ;;  %6611 = vmatpush1.bf16.msra.mxu0 %v14289_v51  ;;  %v5365_v18 = vadd.f32 %v19580_v11, %v5232_v42  ;;  %v5234_v15 = vadd.f32 %v5233_v29, %v5101_v7  ;;  %v14296_v51 = vld [vmem:[%s23603_s4 + $0x64] ss:$12 sps:$4 sm:$0xff]  }
 0x4ca   :  { %v19663_v24 = vpop.f32.mrf.mxu0  ;;  %6479 = vmatprep.subr.bf16.mxu1 %v14292_v50  ;;  %6612 = vmatprep.subr.bf16.mxu0 %v24736_v49  ;;  %v24895_v63 = vor.u32 %v19554_v39, %v19546_v40  ;;  %v5111_v7 = vadd.f32 %v19462_v44, %v19520_v20  ;;  %v7456_v37 = vrot.slane %v5639_v60, 1  ;;  %v7457_v50 = vrot.slane %v5627_v3, 2 }
 0x4cb   :  { %v5630_v31 = vsel %vm5590_vm6, %v5625_v6, %v19659_v62  ;;  %v5441_v58 = vmax.f32 %v5361_v0, 0.0  ;;  %v5443_v22 = vmax.f32 %v5365_v18, 0.0  ;;  %v5367_v40 = vadd.f32 %v19587_v28, %v5234_v15  ;;  %v5237_v39 = vpop.f32.mrf.mxu1  ;;  %v14294_v28 = vld [vmem:[%s23603_s4 + $0x60] ss:$12 sps:$4 sm:$0xff]  }
 0x4cc   :  { %v19677_v11 = vsel %vm7437_vm8, %v24895_v63, %v19609_v53  ;;  %12033 = vmatprep.mubr.msk.bf16.mxu1 %vm5959_vm7, %v5630_v31  ;;  %12043 = vmatprep.mubr.msk.bf16.mxu0 %vm5959_vm7, %v5630_v31  ;;  %v5622_v44 = vsel %vm5590_vm6, %v5617_v33, %v19654_v38  ;;  %v5115_v42 = vadd.f32 %v19464_v35, %v19516_v57  ;;  %v19695_v29 = vpop.f32.mrf.mxu0  ;;  %v7452_v0 = vrot.slane %v5631_v32, 1  ;;  %v14297_v35 = vld [vmem:[%s23603_s4 + $0x68] ss:$12 sps:$4 sm:$0xff]  }
 0x4cd   :  { %v5238_v12 = vadd.f32 %v5237_v39, %v5105_v14  ;;  %6043 = vmatmul.mubr.bf16.gmra.mxu1 %v5622_v44  ;;  %6174 = vmatmul.mubr.bf16.gmra.mxu0 %v5622_v44  ;;  %v19700_v3 = vor.u32 %v7457_v50, %v7456_v37  ;;  %v5442_v61 = vmax.f32 %v5363_v43, 0.0  ;;  %v19704_v6 = vpack.c.bf16 %v5443_v22, %v5441_v58  ;;  %v5239_v18 = vpop.f32.mrf.mxu1  ;;  %v14300_v43 = vld [vmem:[%s23603_s4 + $0x4c] ss:$12 sps:$4 sm:$0xff]  }
 0x4ce   :  { %v5444_v33 = vmax.f32 %v5367_v40, 0.0  ;;  %6480 = vmatpush1.bf16.msra.mxu1 %v14290_v1  ;;  %6613 = vmatpush1.bf16.msra.mxu0 %v14293_v13  ;;  %v7453_v14 = vrot.slane %v5619_v30, 2  ;;  %v5117_v15 = vadd.f32 %v19466_v25, %v19520_v20  ;;  %v5240_v63 = vadd.f32 %v5239_v18, %v5107_v27  ;;  %v19713_v31 = vpop.f32.mrf.mxu0 }
 0x4cf   :  { %6481 = vmatprep.subr.bf16.mxu1 %v14296_v51  ;;  %6614 = vmatprep.subr.bf16.mxu0 %v24736_v49  ;;  %v19722_v1 = vsel %vm7437_vm8, %v19607_v26, %v19700_v3  ;;  %v19726_v30 = vadd.f32 %v19468_v23, %v19516_v57  ;;  %v5371_v27 = vadd.f32 %v19605_v48, %v5238_v12  ;;  %v5241_v13 = vpop.f32.mrf.mxu1  ;;  %v5635_v51 = vshll.u32 %v19704_v6, 16 }
 0x4d0   :  { %v19728_v25 = vpack.c.bf16 %v5444_v33, %v5442_v61  ;;  %v19734_v37 = vadd.f32 %v19470_v16, %v19520_v20  ;;  %v19738_v50 = vadd.f32 %v19472_v2, %v19516_v57  ;;  %v5242_v26 = vadd.f32 %v5241_v13, %v19643_v54  ;;  %v19741_v58 = vpop.f32.mrf.mxu0  ;;  %v14298_v54 = vld [vmem:[%s23603_s4 + $0x48] ss:$12 sps:$4 sm:$0xff]  }
 0x4d1   :  { %v19743_v23 = vor.u32 %v7453_v14, %v7452_v0  ;;  %v19747_v48 = vadd.f32 %v19474_v59, %v19520_v20  ;;  %v19751_v22 = vadd.f32 %v19479_v56, %v19516_v57  ;;  %v5373_v16 = vadd.f32 %v19626_v41, %v5240_v63  ;;  %v5243_v40 = vpop.f32.mrf.mxu1  ;;  %v14301_v59 = vld [vmem:[%s23603_s4 + $0x50] ss:$12 sps:$4 sm:$0xff]  }
 0x4d2   :  { %v5643_v2 = vshll.u32 %v19728_v25, 16  ;;  %6482 = vmatpush1.bf16.msra.mxu1 %v14294_v28  ;;  %6615 = vmatpush1.bf16.msra.mxu0 %v14297_v35  ;;  %v5375_v39 = vadd.f32 %v19648_v9, %v5242_v26  ;;  %v5244_v44 = vadd.f32 %v5243_v40, %v5111_v7  ;;  %v19762_v56 = vpop.f32.mrf.mxu0  ;;  %v5633_v41 = vor.u32 %v5631_v32, %v19654_v38  ;;  %v14304_v35 = vld [vmem:[%s23603_s4 + $0x34] ss:$12 sps:$4 sm:$0xff]  }
 0x4d3   :  { %v19769_v12 = vrot.slane %v5635_v51, 1  ;;  %6483 = vmatprep.subr.bf16.mxu1 %v14300_v43  ;;  %6616 = vmatprep.subr.bf16.mxu0 %v24736_v49  ;;  %v5445_v28 = vmax.f32 %v5371_v27, 0.0  ;;  %v5641_v9 = vor.u32 %v5639_v60, %v19659_v62  ;;  %v5655_v61 = vshrl.u32 %v19728_v25, 16  ;;  %v14302_v43 = vld [vmem:[%s23603_s4 + $0x30] ss:$12 sps:$4 sm:$0xff]   ;;  %v19816_v40 = vld [vmem:[%s23603_s4 + $0x120] sm:$0xff] }
 0x4d4   :  { %v5247_v0 = vpop.f32.mrf.mxu1  ;;  %v5645_v7 = vrot.slane %v5643_v2, 1  ;;  %v5447_v33 = vmax.f32 %v5375_v39, 0.0  ;;  %v5377_v18 = vadd.f32 %v19663_v24, %v5244_v44  ;;  %v19785_v14 = vsel %vm7437_vm8, %v19609_v53, %v19743_v23  ;;  %v14305_v53 = vld [vmem:[%s23603_s4 + $0x38] ss:$12 sps:$4 sm:$0xff]  }
 0x4d5   :  { %v5248_v38 = vadd.f32 %v5247_v0, %v5115_v42  ;;  %v19777_v32 = vpop.f32.mrf.mxu0  ;;  %v19789_v60 = vadd.f32 %v19481_v17, %v19520_v20  ;;  %v19793_v62 = vadd.f32 %v19483_v46, %v19516_v57  ;;  %v5446_v24 = vmax.f32 %v5373_v16, 0.0  ;;  %v14308_v16 = vld [vmem:[%s23603_s4 + $0x1c] ss:$12 sps:$4 sm:$0xff]  }
 0x4d6   :  { %v5249_v42 = vpop.f32.mrf.mxu1  ;;  %v5646_v63 = vsel %vm5590_vm6, %v5641_v9, %v5645_v7  ;;  %6484 = vmatpush1.bf16.msra.mxu1 %v14298_v54  ;;  %6617 = vmatpush1.bf16.msra.mxu0 %v14301_v59  ;;  %v19802_v17 = vpack.c.bf16 %v5447_v33, %v5445_v28  ;;  %v5448_v27 = vmax.f32 %v5377_v18, 0.0  ;;  %v5638_v46 = vsel %vm5590_vm6, %v5633_v41, %v19769_v12 }
 0x4d7   :  { %v5250_v13 = vadd.f32 %v5249_v42, %v5117_v15  ;;  %12034 = vmatprep.mubr.msk.bf16.mxu1 %vm5959_vm7, %v5646_v63  ;;  %12044 = vmatprep.mubr.msk.bf16.mxu0 %vm5959_vm7, %v5646_v63  ;;  %v19808_v26 = vpop.f32.mrf.mxu0  ;;  %v19820_v15 = vadd.f32 %v19485_v21, %v19520_v20  ;;  %v19824_v54 = vadd.f32 %v19487_v5, %v19516_v57  ;;  %v7464_v39 = vrot.slane %v5655_v61, 1  ;;  %v14312_v42 = vld [vmem:[%s23603_s4 + $0x4] ss:$12 sps:$4 sm:$0xff]  }
 0x4d8   :  { %v5251_v59 = vpop.f32.mrf.mxu1  ;;  %6053 = vmatmul.mubr.bf16.gmra.mxu1 %v5638_v46  ;;  %6182 = vmatmul.mubr.bf16.gmra.mxu0 %v5638_v46  ;;  %v7465_v44 = vrot.slane %v5643_v2, 2  ;;  %v19826_v41 = vpack.c.bf16 %v5448_v27, %v5446_v24  ;;  %v5381_v28 = vadd.f32 %v19695_v29, %v5248_v38  ;;  %v19835_v21 = vadd.f32 %v19489_v52, %v19520_v20  ;;  %v14306_v29 = vld [vmem:[%s23603_s4 + $0x18] ss:$12 sps:$4 sm:$0xff]  }
 0x4d9   :  { %v5252_v0 = vadd.f32 %v5251_v59, %v19726_v30  ;;  %v19830_v9 = vpop.f32.mrf.mxu0  ;;  %6485 = vmatprep.subr.bf16.mxu1 %v14304_v35  ;;  %6618 = vmatprep.subr.bf16.mxu0 %v24736_v49  ;;  %v19839_v5 = vadd.f32 %v19491_v10, %v19516_v57  ;;  %v5651_v33 = vshll.u32 %v19802_v17, 16  ;;  %v14309_v30 = vld [vmem:[%s23603_s4 + $0x20] ss:$12 sps:$4 sm:$0xff]   ;;  %v12089_v52 = vcombine.high %v19816_v40, %v19816_v40 }
 0x4da   :  { %v5253_v2 = vpop.f32.mrf.mxu1  ;;  %6486 = vmatpush1.bf16.msra.mxu1 %v14302_v43  ;;  %6619 = vmatpush1.bf16.msra.mxu0 %v14305_v53  ;;  %v5383_v18 = vadd.f32 %v19713_v31, %v5250_v13  ;;  %v5659_v24 = vshll.u32 %v19826_v41, 16  ;;  %v5657_v63 = vor.u32 %v5655_v61, %v5645_v7  ;;  %v5647_v43 = vshrl.u32 %v19704_v6, 16 }
 0x4db   :  { %v5385_v10 = vadd.f32 %v19741_v58, %v5252_v0  ;;  %v5254_v38 = vadd.f32 %v5253_v2, %v19734_v37  ;;  %v19853_v35 = vpop.f32.mrf.mxu0  ;;  %6487 = vmatprep.subr.bf16.mxu1 %v14308_v16  ;;  %6620 = vmatprep.subr.bf16.mxu0 %v24736_v49  ;;  %v5653_v31 = vrot.slane %v5651_v33, 1  ;;  %v14316_v37 = vld [vmem:[%s23603_s4 + $0x128] ss:$0 sps:$4 sm:$0xff]   ;;  %v19866_v58 = vor.u32 %v7465_v44, %v7464_v39  ;;  %v14310_v39 = vld [vmem:[%s23603_s4] ss:$12 sps:$4 sm:$0xff]  }
 0x4dc   :  { %v5449_v53 = vmax.f32 %v5381_v28, 0.0  ;;  %v5661_v16 = vrot.slane %v5659_v24, 1  ;;  %v5649_v61 = vor.u32 %v5647_v43, %v19769_v12  ;;  %v12088_v44 = vcombine.low %v19816_v40, %v19816_v40 }
 0x4dd   :  { %v5451_v27 = vmax.f32 %v5385_v10, 0.0  ;;  %v5387_v13 = vadd.f32 %v19762_v56, %v5254_v38  ;;  %v5257_v46 = vpop.f32.mrf.mxu1  ;;  %v19873_v59 = vpop.f32.mrf.mxu0  ;;  %v14313_v56 = vld [vmem:[%s23603_s4 + $0x8] ss:$12 sps:$4 sm:$0xff]   ;;  %v5450_v28 = vmax.f32 %v5383_v18, 0.0  ;;  %v6473_v10 = vsel %vm5990_vm5, %v14316_v37, 0 }
 0x4de   :  { %v5258_v7 = vadd.f32 %v5257_v46, %v19738_v50  ;;  %6488 = vmatpush1.bf16.msra.mxu1 %v14306_v29  ;;  %6621 = vmatpush1.bf16.msra.mxu0 %v14309_v30  ;;  %v5662_v2 = vsel %vm5590_vm6, %v5657_v63, %v5661_v16  ;;  %v19889_v29 = vadd.f32 %v19493_v36, %v19520_v20 }
 0x4df   :  { %v19883_v0 = vpack.c.bf16 %v5451_v27, %v5449_v53  ;;  %v5452_v50 = vmax.f32 %v5387_v13, 0.0  ;;  %v5259_v12 = vpop.f32.mrf.mxu1  ;;  %6489 = vmatprep.subr.bf16.mxu1 %v14312_v42  ;;  %6622 = vmatprep.subr.bf16.mxu0 %v24736_v49  ;;  %v5654_v40 = vsel %vm5590_vm6, %v5649_v61, %v5653_v31  ;;  %v19895_v18 = vpop.f32.mrf.mxu0  ;;  %v5671_v13 = vshrl.u32 %v19826_v41, 16 }
 0x4e0   :  { %v5260_v30 = vadd.f32 %v5259_v12, %v19747_v48  ;;  %12035 = vmatprep.mubr.msk.bf16.mxu1 %vm5959_vm7, %v5662_v2  ;;  %12045 = vmatprep.mubr.msk.bf16.mxu0 %vm5959_vm7, %v5662_v2  ;;  %v5391_v42 = vadd.f32 %v19777_v32, %v5258_v7  ;;  %v7460_v48 = vrot.slane %v5647_v43, 1  ;;  %v19909_v37 = vsel %vm7437_vm8, %v19700_v3, %v19866_v58  ;;  %v14319_v3 = vld [vmem:[%s23603_s4 + $0x10c] ss:$12 sps:$4 sm:$0xff]  }
 0x4e1   :  { %v19898_v38 = vpack.c.bf16 %v5452_v50, %v5450_v28  ;;  %v5261_v63 = vpop.f32.mrf.mxu1  ;;  %6063 = vmatmul.mubr.bf16.gmra.mxu1 %v5654_v40  ;;  %6190 = vmatmul.mubr.bf16.gmra.mxu0 %v5654_v40  ;;  %v5667_v36 = vshll.u32 %v19883_v0, 16  ;;  %v19903_v27 = vpop.f32.mrf.mxu0  ;;  %v7461_v32 = vrot.slane %v5635_v51, 2  ;;  %v6467_v61 = vsel %vm5990_vm5, %v12088_v44, 0 }
 0x4e2   :  { %v5262_v53 = vadd.f32 %v5261_v63, %v19751_v22  ;;  %6490 = vmatpush1.bf16.msra.mxu1 %v14310_v39  ;;  %6623 = vmatpush1.bf16.msra.mxu0 %v14313_v56  ;;  %v5393_v46 = vadd.f32 %v19808_v26, %v5260_v30  ;;  %v5663_v22 = vshrl.u32 %v19802_v17, 16  ;;  %v19924_v51 = vadd.f32 %v19495_v34, %v19516_v57 }
 0x4e3   :  { %v5263_v7 = vpop.f32.mrf.mxu1  ;;  %v5675_v43 = vshll.u32 %v19898_v38, 16  ;;  %12091 = vmatprep.subr.msk.bf16.mxu1 %vm5990_vm5, %v12089_v52  ;;  %6630 = vmatprep.subr.bf16.mxu0 %v24736_v49  ;;  %v19928_v56 = vpop.f32.mrf.mxu0  ;;  %v19932_v52 = vrot.slane %v5667_v36, 1  ;;  %v5453_v28 = vmax.f32 %v5391_v42, 0.0  ;;  %v5673_v44 = vor.u32 %v5671_v13, %v5661_v16 }
 0x4e4   :  { %v5395_v26 = vadd.f32 %v19830_v9, %v5262_v53  ;;  %v5264_v39 = vadd.f32 %v5263_v7, %v19789_v60  ;;  %v5665_v12 = vor.u32 %v5663_v22, %v5653_v31  ;;  %v14317_v60 = vld [vmem:[%s23603_s4 + $0x108] ss:$12 sps:$4 sm:$0xff]   ;;  %v14320_v9 = vld [vmem:[%s23603_s4 + $0x110] ss:$12 sps:$4 sm:$0xff]   ;;  %v19943_v40 = vor.u32 %v7461_v32, %v7460_v48 }
 0x4e5   :  { %v5677_v50 = vrot.slane %v5675_v43, 1  ;;  %v7472_v16 = vrot.slane %v5671_v13, 1  ;;  %v5454_v42 = vmax.f32 %v5393_v46, 0.0  ;;  %v7473_v53 = vrot.slane %v5659_v24, 2 }
 0x4e6   :  { %v5455_v2 = vmax.f32 %v5395_v26, 0.0  ;;  %v5397_v34 = vadd.f32 %v19853_v35, %v5264_v39  ;;  %6498 = vmatpush2.bf16.msra.mxu1 %v6467_v61  ;;  %6631 = vmatpush2.bf16.msra.mxu0 %v6473_v10  ;;  %v19947_v35 = vpop.f32.mrf.mxu0  ;;  %v14323_v10 = vld [vmem:[%s23603_s4 + $0xf4] ss:$12 sps:$4 sm:$0xff]   ;;  %v19964_v46 = vsel %vm7437_vm8, %v19743_v23, %v19943_v40  ;;  %v19968_v7 = vadd.f32 %v19497_v19, %v19520_v20 }
 0x4e7   :  { %v5678_v63 = vsel %vm5590_vm6, %v5673_v44, %v5677_v50  ;;  %6499 = vmatprep.subr.bf16.mxu1 %v14319_v3  ;;  %6632 = vmatprep.subr.bf16.mxu0 %v24736_v49  ;;  %v19973_v3 = vor.u32 %v7473_v53, %v7472_v16  ;;  %v24896_v26 = vld [vmem:[#allocation8_spill] sm:$0xff] }
 0x4e8   :  { %v5267_v30 = vpop.f32.mrf.mxu1  ;;  %v19955_v48 = vpack.c.bf16 %v5455_v2, %v5453_v28  ;;  %v5456_v13 = vmax.f32 %v5397_v34, 0.0  ;;  %12036 = vmatprep.mubr.msk.bf16.mxu1 %vm5959_vm7, %v5678_v63  ;;  %12046 = vmatprep.mubr.msk.bf16.mxu0 %vm5959_vm7, %v5678_v63  ;;  %v19971_v61 = vpop.f32.mrf.mxu0  ;;  %v19977_v39 = vadd.f32 %v24896_v26, %v19516_v57  ;;  %v5679_v63 = vshrl.u32 %v19883_v0, 16 }
 0x4e9   :  { %v5268_v31 = vadd.f32 %v5267_v30, %v19793_v62  ;;  %v5670_v62 = vsel %vm5590_vm6, %v5665_v12, %v19932_v52  ;;  %v14324_v12 = vld [vmem:[%s23603_s4 + $0xf8] ss:$12 sps:$4 sm:$0xff]   ;;  %v19999_v30 = vsel %vm7437_vm8, %v19866_v58, %v19973_v3 }
 0x4ea   :  { %v5269_v32 = vpop.f32.mrf.mxu1  ;;  %6073 = vmatmul.mubr.bf16.gmra.mxu1 %v5670_v62  ;;  %6198 = vmatmul.mubr.bf16.gmra.mxu0 %v5670_v62  ;;  %v19979_v28 = vpack.c.bf16 %v5456_v13, %v5454_v42  ;;  %v5683_v19 = vshll.u32 %v19955_v48, 16  ;;  %v19990_v34 = vpop.f32.mrf.mxu0  ;;  %v5687_v42 = vshrl.u32 %v19898_v38, 16  ;;  %v5681_v26 = vor.u32 %v5679_v63, %v19932_v52 }
 0x4eb   :  { %v5270_v24 = vadd.f32 %v5269_v32, %v19820_v15  ;;  %v5401_v23 = vadd.f32 %v19873_v59, %v5268_v31  ;;  %6500 = vmatpush2.bf16.msra.mxu1 %v14317_v60  ;;  %6633 = vmatpush2.bf16.msra.mxu0 %v14320_v9  ;;  %v14321_v15 = vld [vmem:[%s23603_s4 + $0xf0] ss:$12 sps:$4 sm:$0xff]   ;;  %v7468_v60 = vrot.slane %v5663_v22, 1  ;;  %v7469_v9 = vrot.slane %v5651_v33, 2 }
 0x4ec   :  { %v5271_v44 = vpop.f32.mrf.mxu1  ;;  %6501 = vmatprep.subr.bf16.mxu1 %v14323_v10  ;;  %6634 = vmatprep.subr.bf16.mxu0 %v24736_v49  ;;  %v14327_v59 = vld [vmem:[%s23603_s4 + $0xdc] ss:$12 sps:$4 sm:$0xff]   ;;  %v5691_v31 = vshll.u32 %v19979_v28, 16  ;;  %v24897_v10 = vld [vmem:[#allocation92_spill] sm:$0xff]  ;;  %v20015_v33 = vrot.slane %v5683_v19, 1  ;;  %v5416_v32 = vpop.f32.mrf.mxu0  ;;  %v5689_v62 = vor.u32 %v5687_v42, %v5677_v50 }
 0x4ed   :  { %v5272_v2 = vadd.f32 %v5271_v44, %v19824_v54  ;;  %v5403_v54 = vadd.f32 %v19895_v18, %v5270_v24  ;;  %v20009_v53 = vadd.f32 %v24897_v10, %v19520_v20  ;;  %v5457_v18 = vmax.f32 %v5401_v23, 0.0  ;;  %v14325_v23 = vld [vmem:[%s23603_s4 + $0xd8] ss:$12 sps:$4 sm:$0xff]   ;;  %v14328_v50 = vld [vmem:[%s23603_s4 + $0xe0] ss:$12 sps:$4 sm:$0xff]  }
 0x4ee   :  { %v5273_v16 = vpop.f32.mrf.mxu1  ;;  %v20019_v24 = vrot.slane %v5691_v31, 1 }
 0x4ef   :  { %v5405_v58 = vadd.f32 %v19903_v27, %v5272_v2  ;;  %v5274_v22 = vadd.f32 %v5273_v16, %v19835_v21  ;;  %6502 = vmatpush2.bf16.msra.mxu1 %v14321_v15  ;;  %6635 = vmatpush2.bf16.msra.mxu0 %v14324_v12  ;;  %v20031_v2 = vor.u32 %v7469_v9, %v7468_v60  ;;  %v5458_v52 = vmax.f32 %v5403_v54, 0.0 }
 0x4f0   :  { %v5277_v13 = vpop.f32.mrf.mxu1  ;;  %6503 = vmatprep.subr.bf16.mxu1 %v14327_v59  ;;  %6636 = vmatprep.subr.bf16.mxu0 %v24736_v49  ;;  %v7480_v12 = vrot.slane %v5687_v42, 1  ;;  %v7481_v59 = vrot.slane %v5675_v43, 2  ;;  %v5686_v60 = vsel %vm5590_vm6, %v5681_v26, %v20015_v33  ;;  %v5420_v42 = vpop.f32.mrf.mxu0 }
 0x4f1   :  { %v5459_v44 = vmax.f32 %v5405_v58, 0.0  ;;  %v5407_v27 = vadd.f32 %v19928_v56, %v5274_v22  ;;  %v5278_v21 = vadd.f32 %v5277_v13, %v19839_v5  ;;  %v5694_v56 = vsel %vm5590_vm6, %v5689_v62, %v20019_v24  ;;  %v14331_v5 = vld [vmem:[%s23603_s4 + $0xc4] ss:$12 sps:$4 sm:$0xff]  }
 0x4f2   :  { %v5279_v15 = vpop.f32.mrf.mxu1  ;;  %12037 = vmatprep.mubr.msk.bf16.mxu1 %vm5959_vm7, %v5694_v56  ;;  %12047 = vmatprep.mubr.msk.bf16.mxu0 %vm5959_vm7, %v5694_v56  ;;  %v20051_v43 = vsel %vm7437_vm8, %v19943_v40, %v20031_v2  ;;  %v20053_v22 = vor.u32 %v7481_v59, %v7480_v12  ;;  %v14332_v40 = vld [vmem:[%s23603_s4 + $0xc8] ss:$12 sps:$4 sm:$0xff]   ;;  %v5422_v12 = vpop.f32.mrf.mxu0 }
 0x4f3   :  { %v20040_v16 = vpack.c.bf16 %v5459_v44, %v5457_v18  ;;  %v5460_v10 = vmax.f32 %v5407_v27, 0.0  ;;  %v5280_v58 = vadd.f32 %v5279_v15, %v19889_v29  ;;  %v5411_v9 = vadd.f32 %v19947_v35, %v5278_v21  ;;  %6083 = vmatmul.mubr.bf16.gmra.mxu1 %v5686_v60  ;;  %6206 = vmatmul.mubr.bf16.gmra.mxu0 %v5686_v60  ;;  %v24899_v29 = vld [vmem:[#allocation74_spill] sm:$0xff] }
 0x4f4   :  { %v5281_v54 = vpop.f32.mrf.mxu1  ;;  %v5159_v18 = vadd.f32 %v24899_v29, %v19516_v57  ;;  %6504 = vmatpush2.bf16.msra.mxu1 %v14325_v23  ;;  %6637 = vmatpush2.bf16.msra.mxu0 %v14328_v50  ;;  %v14329_v35 = vld [vmem:[%s23603_s4 + $0xc0] ss:$12 sps:$4 sm:$0xff]   ;;  %v5703_v44 = vshrl.u32 %v19979_v28, 16  ;;  %v5695_v27 = vshrl.u32 %v19955_v48, 16  ;;  %v20076_v21 = vsel %vm7437_vm8, %v19973_v3, %v20053_v22 }
 0x4f5   :  { %24898 = vst [vmem:[#allocation10_spill] sm:$0xff] %v20040_v16  ;;  %v20057_v13 = vpack.c.bf16 %v5460_v10, %v5458_v52  ;;  %v5282_v62 = vadd.f32 %v5281_v54, %v19924_v51  ;;  %v5699_v57 = vshll.u32 %v20040_v16, 16  ;;  %6505 = vmatprep.subr.bf16.mxu1 %v14331_v5  ;;  %6638 = vmatprep.subr.bf16.mxu0 %v24736_v49  ;;  %v14335_v51 = vld [vmem:[%s23603_s4 + $0x304] ss:$12 sps:$4 sm:$0xff]   ;;  %v5461_v56 = vmax.f32 %v5411_v9, 0.0 }
 0x4f6   :  { %v5283_v26 = vpop.f32.mrf.mxu1  ;;  %v5413_v23 = vadd.f32 %v19971_v61, %v5280_v58  ;;  %v7476_v10 = vrot.slane %v5679_v63, 1  ;;  %v7477_v60 = vrot.slane %v5667_v36, 2  ;;  %v5705_v29 = vor.u32 %v5703_v44, %v20019_v24 }
 0x4f7   :  { %v5415_v50 = vadd.f32 %v19990_v34, %v5282_v62  ;;  %v5284_v52 = vadd.f32 %v5283_v26, %v19968_v7  ;;  %v5707_v15 = vshll.u32 %v20057_v13, 16  ;;  %v5701_v59 = vrot.slane %v5699_v57, 1  ;;  %v24900_v7 = vld [vmem:[#allocation11_spill] sm:$0xff] }
 0x4f8   :  { %v5287_v5 = vpop.f32.mrf.mxu1  ;;  %6506 = vmatpush2.bf16.msra.mxu1 %v14329_v35  ;;  %6639 = vmatpush2.bf16.msra.mxu0 %v14332_v40  ;;  %v5161_v58 = vadd.f32 %v24900_v7, %v19520_v20  ;;  %v5697_v63 = vor.u32 %v5695_v27, %v20015_v33  ;;  %v5462_v36 = vmax.f32 %v5413_v23, 0.0  ;;  %v5424_v40 = vpop.f32.mrf.mxu0  ;;  %v7489_v23 = vrot.slane %v5691_v31, 2 }
 0x4f9   :  { %v5463_v3 = vmax.f32 %v5415_v50, 0.0  ;;  %v5417_v54 = vadd.f32 %v5416_v32, %v5284_v52  ;;  %v5288_v61 = vadd.f32 %v5287_v5, %v19977_v39  ;;  %v5709_v34 = vrot.slane %v5707_v15, 1  ;;  %7080 = vmatprep.subr.bf16.mxu1 %v14335_v51  ;;  %7213 = vmatprep.subr.bf16.mxu0 %v24736_v49 }
 0x4fa   :  { %v5289_v9 = vpop.f32.mrf.mxu1  ;;  %v5702_v24 = vsel %vm5590_vm6, %v5697_v63, %v5701_v59  ;;  %v7478_v50 = vor.u32 %v7477_v60, %v7476_v10  ;;  %v7488_v51 = vrot.slane %v5703_v44, 1  ;;  %v5711_v31 = vshrl.u32 %v20040_v16, 16 }
 0x4fb   :  { %v20096_v39 = vpack.c.bf16 %v5463_v3, %v5461_v56  ;;  %v5464_v32 = vmax.f32 %v5417_v54, 0.0  ;;  %v5290_v62 = vadd.f32 %v5289_v9, %v20009_v53  ;;  %v5421_v35 = vadd.f32 %v5420_v42, %v5288_v61  ;;  %v5426_v54 = vpop.f32.mrf.mxu0 }
 0x4fc   :  { %v5291_v26 = vpop.f32.mrf.mxu1  ;;  %v5710_v20 = vsel %vm5590_vm6, %v5705_v29, %v5709_v34  ;;  %v5719_v42 = vshrl.u32 %v20057_v13, 16  ;;  %v20111_v5 = vsel %vm7437_vm8, %v20031_v2, %v7478_v50  ;;  %v7484_v2 = vrot.slane %v5695_v27, 1 }
 0x4fd   :  { %v20101_v52 = vpack.c.bf16 %v5464_v32, %v5462_v36  ;;  %v5292_v33 = vadd.f32 %v5291_v26, %v5159_v18  ;;  %12038 = vmatprep.mubr.msk.bf16.mxu1 %vm5959_vm7, %v5710_v20  ;;  %12048 = vmatprep.mubr.msk.bf16.mxu0 %vm5959_vm7, %v5710_v20  ;;  %v5715_v56 = vshll.u32 %v20096_v39, 16  ;;  %v5423_v18 = vadd.f32 %v5422_v12, %v5290_v62 }
 0x4fe   :  { %6093 = vmatmul.mubr.bf16.gmra.mxu1 %v5702_v24  ;;  %6214 = vmatmul.mubr.bf16.gmra.mxu0 %v5702_v24  ;;  %v5293_v53 = vpop.f32.mrf.mxu1  ;;  %v5465_v44 = vmax.f32 %v5421_v35, 0.0  ;;  %v5721_v61 = vor.u32 %v5719_v42, %v5709_v34  ;;  %v7490_v36 = vor.u32 %v7489_v23, %v7488_v51  ;;  %v5713_v32 = vor.u32 %v5711_v31, %v5701_v59 }
 0x4ff   :  { %v5425_v10 = vadd.f32 %v5424_v40, %v5292_v33  ;;  %v5294_v60 = vadd.f32 %v5293_v53, %v5161_v58  ;;  %v5723_v3 = vshll.u32 %v20101_v52, 16  ;;  %v5717_v7 = vrot.slane %v5715_v56, 1 }
 0x500   :  { %v5727_v26 = vshrl.u32 %v20096_v39, 16  ;;  %v5466_v12 = vmax.f32 %v5423_v18, 0.0  ;;  %v20125_v34 = vsel %vm7437_vm8, %v20053_v22, %v7490_v36  ;;  %v7485_v59 = vrot.slane %v5683_v19, 2 }
 0x501   :  { %v5467_v9 = vmax.f32 %v5425_v10, 0.0  ;;  %v5427_v29 = vadd.f32 %v5426_v54, %v5294_v60  ;;  %v5725_v63 = vrot.slane %v5723_v3, 1  ;;  %v7496_v40 = vrot.slane %v5719_v42, 1 }
 0x502   :  { %v7497_v27 = vrot.slane %v5707_v15, 2  ;;  %v5718_v24 = vsel %vm5590_vm6, %v5713_v32, %v5717_v7  ;;  %v5735_v33 = vshrl.u32 %v20101_v52, 16  ;;  %v7486_v23 = vor.u32 %v7485_v59, %v7484_v2 }
 0x503   :  { %v20118_v58 = vpack.c.bf16 %v5467_v9, %v5465_v44  ;;  %v5468_v62 = vmax.f32 %v5427_v29, 0.0  ;;  %v5726_v35 = vsel %vm5590_vm6, %v5721_v61, %v5725_v63  ;;  %v7492_v53 = vrot.slane %v5711_v31, 1 }
 0x504   :  { %12039 = vmatprep.mubr.msk.bf16.mxu1 %vm5959_vm7, %v5726_v35  ;;  %12049 = vmatprep.mubr.msk.bf16.mxu0 %vm5959_vm7, %v5726_v35  ;;  %v7498_v22 = vor.u32 %v7497_v27, %v7496_v40  ;;  %v7493_v19 = vrot.slane %v5699_v57, 2  ;;  %v20142_v10 = vsel %vm7437_vm8, %v7478_v50, %v7486_v23  ;;  %v5737_v54 = vor.u32 %v5735_v33, %v5725_v63 }
 0x505   :  { %24901 = vst [vmem:[#allocation94_spill] sm:$0xff] %v20118_v58  ;;  %v20131_v20 = vpack.c.bf16 %v5468_v62, %v5466_v12  ;;  %v5731_v51 = vshll.u32 %v20118_v58, 16  ;;  %v5743_v18 = vshrl.u32 %v20118_v58, 16  ;;  %v5729_v9 = vor.u32 %v5727_v26, %v5717_v7 }
 0x506   :  { %6103 = vmatmul.mubr.bf16.gmra.mxu1 %v5718_v24  ;;  %6222 = vmatmul.mubr.bf16.gmra.mxu0 %v5718_v24  ;;  %v20145_v60 = vsel %vm7437_vm8, %v7490_v36, %v7498_v22  ;;  %v7494_v44 = vor.u32 %v7493_v19, %v7492_v53  ;;  %v7504_v57 = vrot.slane %v5735_v33, 1  ;;  %v7505_v32 = vrot.slane %v5723_v3, 2  ;;  %v14333_v53 = vld [vmem:[%s23603_s4 + $0x300] ss:$12 sps:$4 sm:$0xff]   ;;  %v14336_v19 = vld [vmem:[%s23603_s4 + $0x308] ss:$12 sps:$4 sm:$0xff]  }
 0x507   :  { %v5739_v42 = vshll.u32 %v20131_v20, 16  ;;  %v5746_v15 = vshrl.u32 %v20131_v20, 16  ;;  %v5733_v31 = vrot.slane %v5731_v51, 1  ;;  %v7500_v2 = vrot.slane %v5727_v26, 1 }
 0x508   :  { %v20148_v29 = vsel %vm7437_vm8, %v7486_v23, %v7494_v44  ;;  %v7501_v35 = vrot.slane %v5715_v56, 2  ;;  %v7506_v36 = vor.u32 %v7505_v32, %v7504_v57  ;;  %v7508_v59 = vrot.slane %v5743_v18, 1  ;;  %v14345_v57 = vld [vmem:[%s23603_s4 + $0x2b8] ss:$12 sps:$4 sm:$0xff]   ;;  %v14348_v32 = vld [vmem:[%s23603_s4 + $0x2c0] ss:$12 sps:$4 sm:$0xff]  }
 0x509   :  { %v5741_v61 = vrot.slane %v5739_v42, 1  ;;  %v7512_v50 = vrot.slane %v5746_v15, 1  ;;  %v7513_v63 = vrot.slane %v5739_v42, 2  ;;  %v7509_v7 = vrot.slane %v5731_v51, 2  ;;  %v14339_v42 = vld [vmem:[%s23603_s4 + $0x2ec] ss:$12 sps:$4 sm:$0xff]  }
 0x50a   :  { %v5734_v40 = vsel %vm5590_vm6, %v5729_v9, %v5733_v31  ;;  %v7502_v27 = vor.u32 %v7501_v35, %v7500_v2  ;;  %v20155_v3 = vsel %vm7437_vm8, %v7498_v22, %v7506_v36  ;;  %v5745_v23 = vor.u32 %v5743_v18, %v5733_v31  ;;  %v24902_v22 = vld [vmem:[#allocation41_spill] sm:$0xff]  ;;  %v14337_v18 = vld [vmem:[%s23603_s4 + $0x2e8] ss:$12 sps:$4 sm:$0xff]   ;;  %v14351_v2 = vld [vmem:[%s23603_s4 + $0x2a4] ss:$12 sps:$4 sm:$0xff]  }
 0x50b   :  { %v5742_v12 = vsel %vm5590_vm6, %v5737_v54, %v5741_v61  ;;  %v5748_v62 = vor.u32 %v5746_v15, %v5741_v61  ;;  %v20157_v26 = vor.u32 %v7513_v63, %v7512_v50  ;;  %v20159_v56 = vor.u32 %v7509_v7, %v7508_v59  ;;  %v24903_v15 = vld [vmem:[#allocation9_spill] sm:$0xff]  ;;  %v14343_v54 = vld [vmem:[%s23603_s4 + $0x2d4] ss:$12 sps:$4 sm:$0xff]  }
 0x50c   :  { %12040 = vmatprep.mubr.msk.bf16.mxu1 %vm5959_vm7, %v5742_v12  ;;  %12050 = vmatprep.mubr.msk.bf16.mxu0 %vm5959_vm7, %v5742_v12  ;;  %v20164_v24 = vsel %vm7437_vm8, %v7494_v44, %v7502_v27  ;;  %v14340_v44 = vld [vmem:[%s23603_s4 + $0x2f0] ss:$12 sps:$4 sm:$0xff]   ;;  %v14344_v9 = vld [vmem:[%s23603_s4 + $0x2d8] ss:$12 sps:$4 sm:$0xff]   ;;  %v14349_v12 = vld [vmem:[%s23603_s4 + $0x2a0] ss:$12 sps:$4 sm:$0xff]  }
 0x50d   :  { %v20168_v33 = vsel %vm7437_vm8, %v7506_v36, %v20157_v26  ;;  %v20172_v51 = vsel %vm7437_vm8, %v7502_v27, %v20159_v56  ;;  %v14341_v61 = vld [vmem:[%s23603_s4 + $0x2d0] ss:$12 sps:$4 sm:$0xff]   ;;  %v14355_v35 = vld [vmem:[%s23603_s4 + $0x28c] ss:$12 sps:$4 sm:$0xff]   ;;  %v14353_v50 = vld [vmem:[%s23603_s4 + $0x288] ss:$12 sps:$4 sm:$0xff]  }
 0x50e   :  { %6113 = vmatmul.mubr.bf16.gmra.mxu1 %v5734_v40  ;;  %6230 = vmatmul.mubr.bf16.gmra.mxu0 %v5734_v40  ;;  %v14347_v31 = vld [vmem:[%s23603_s4 + $0x2bc] ss:$12 sps:$4 sm:$0xff]   ;;  %v14359_v63 = vld [vmem:[%s23603_s4 + $0x274] ss:$12 sps:$4 sm:$0xff]   ;;  %v14360_v7 = vld [vmem:[%s23603_s4 + $0x278] ss:$12 sps:$4 sm:$0xff]  }
 0x50f   :  { %12041 = vmatprep.mubr.msk.bf16.mxu1 %vm5959_vm7, %v5748_v62  ;;  %12051 = vmatprep.mubr.msk.bf16.mxu0 %vm5959_vm7, %v5748_v62  ;;  %v14352_v62 = vld [vmem:[%s23603_s4 + $0x2a8] ss:$12 sps:$4 sm:$0xff]   ;;  %v14356_v36 = vld [vmem:[%s23603_s4 + $0x290] ss:$12 sps:$4 sm:$0xff]  }
 0x510   :  { %v14357_v59 = vld [vmem:[%s23603_s4 + $0x270] ss:$12 sps:$4 sm:$0xff]  }
 0x511   :  { %v14363_v40 = vld [vmem:[%s23603_s4 + $0x25c] ss:$12 sps:$4 sm:$0xff]  }
 0x512   :  { %v12160_v27 = vld [vmem:[%s23603_s4 + $0x378] sm:$0xff] }
 0x516   :  { %6123 = vmatmul.mubr.bf16.gmra.mxu1 %v5745_v23  ;;  %6238 = vmatmul.mubr.bf16.gmra.mxu0 %v5745_v23  ;;  %v14361_v23 = vld [vmem:[%s23603_s4 + $0x258] ss:$12 sps:$4 sm:$0xff]  }
 0x517   :  { %12092 = vmatprep.mubr.msk.bf16.mxu1 %vm5959_vm7, %v24902_v22  ;;  %12102 = vmatprep.mubr.msk.bf16.mxu0 %vm5959_vm7, %v24902_v22 }
 0x51e   :  { %6508 = vmatmul.mubr.bf16.vlgmr.msra.gmra.mxu1 %v24903_v15  ;;  %6641 = vmatmul.mubr.bf16.vlgmr.msra.gmra.mxu0 %v24903_v15 }
 0x51f   :  { %12093 = vmatprep.mubr.msk.bf16.mxu1 %vm5959_vm7, %v19568_v55  ;;  %12103 = vmatprep.mubr.msk.bf16.mxu0 %vm5959_vm7, %v19568_v55 }
 0x520   :  { %7081 = vmatpush1.bf16.msra.mxu1 %v14333_v53  ;;  %7214 = vmatpush1.bf16.msra.mxu0 %v14336_v19  ;;  %v14364_v53 = vld [vmem:[%s23603_s4 + $0x260] ss:$12 sps:$4 sm:$0xff]   ;;  %v12199_v19 = vcombine.high %v12160_v27, %v12160_v27 }
 0x521   :  { %7082 = vmatprep.subr.bf16.mxu1 %v14339_v42  ;;  %7215 = vmatprep.subr.bf16.mxu0 %v24736_v49  ;;  %v12198_v42 = vcombine.low %v12160_v27, %v12160_v27 }
 0x524   :  { %7083 = vmatpush1.bf16.msra.mxu1 %v14337_v18  ;;  %7216 = vmatpush1.bf16.msra.mxu0 %v14340_v44  ;;  %v14367_v18 = vld [vmem:[%s23603_s4 + $0x380] ss:$0 sps:$4 sm:$0xff]   ;;  %v7072_v44 = vsel %vm5990_vm5, %v12198_v42, 0  ;;  %v14384_v42 = vld [vmem:[%s23603_s4 + $0x42c] ss:$12 sps:$4 sm:$0xff]  }
 0x525   :  { %7084 = vmatprep.subr.bf16.mxu1 %v14343_v54  ;;  %7217 = vmatprep.subr.bf16.mxu0 %v24736_v49  ;;  %v7078_v54 = vsel %vm5990_vm5, %v14367_v18, 0  ;;  %v14387_v18 = vld [vmem:[%s23603_s4 + $0x434] ss:$12 sps:$4 sm:$0xff]  }
 0x526   :  { %6518 = vmatmul.mubr.bf16.gmra.mxu1 %v19560_v45  ;;  %6649 = vmatmul.mubr.bf16.gmra.mxu0 %v19560_v45 }
 0x527   :  { %12094 = vmatprep.mubr.msk.bf16.mxu1 %vm5959_vm7, %v19615_v4  ;;  %12104 = vmatprep.mubr.msk.bf16.mxu0 %vm5959_vm7, %v19615_v4 }
 0x528   :  { %7085 = vmatpush1.bf16.msra.mxu1 %v14341_v61  ;;  %7218 = vmatpush1.bf16.msra.mxu0 %v14344_v9  ;;  %v14370_v61 = vld [vmem:[%s23603_s4 + $0x364] ss:$12 sps:$4 sm:$0xff]   ;;  %v14368_v9 = vld [vmem:[%s23603_s4 + $0x360] ss:$12 sps:$4 sm:$0xff]  }
 0x529   :  { %7086 = vmatprep.subr.bf16.mxu1 %v14347_v31  ;;  %7219 = vmatprep.subr.bf16.mxu0 %v24736_v49  ;;  %v14371_v31 = vld [vmem:[%s23603_s4 + $0x368] ss:$12 sps:$4 sm:$0xff]  }
 0x52c   :  { %7087 = vmatpush1.bf16.msra.mxu1 %v14345_v57  ;;  %7220 = vmatpush1.bf16.msra.mxu0 %v14348_v32  ;;  %v14374_v57 = vld [vmem:[%s23603_s4 + $0x34c] ss:$12 sps:$4 sm:$0xff]   ;;  %v14372_v32 = vld [vmem:[%s23603_s4 + $0x348] ss:$12 sps:$4 sm:$0xff]  }
 0x52d   :  { %7088 = vmatprep.subr.bf16.mxu1 %v14351_v2  ;;  %7221 = vmatprep.subr.bf16.mxu0 %v24736_v49  ;;  %v14375_v2 = vld [vmem:[%s23603_s4 + $0x350] ss:$12 sps:$4 sm:$0xff]  }
 0x52e   :  { %6528 = vmatmul.mubr.bf16.gmra.mxu1 %v19600_v8  ;;  %6657 = vmatmul.mubr.bf16.gmra.mxu0 %v19600_v8 }
 0x52f   :  { %12095 = vmatprep.mubr.msk.bf16.mxu1 %vm5959_vm7, %v19728_v25  ;;  %12105 = vmatprep.mubr.msk.bf16.mxu0 %vm5959_vm7, %v19728_v25 }
 0x530   :  { %7089 = vmatpush1.bf16.msra.mxu1 %v14349_v12  ;;  %7222 = vmatpush1.bf16.msra.mxu0 %v14352_v62  ;;  %v14378_v12 = vld [vmem:[%s23603_s4 + $0x334] ss:$12 sps:$4 sm:$0xff]   ;;  %v14376_v62 = vld [vmem:[%s23603_s4 + $0x330] ss:$12 sps:$4 sm:$0xff]  }
 0x531   :  { %7090 = vmatprep.subr.bf16.mxu1 %v14355_v35  ;;  %7223 = vmatprep.subr.bf16.mxu0 %v24736_v49  ;;  %v14379_v35 = vld [vmem:[%s23603_s4 + $0x338] ss:$12 sps:$4 sm:$0xff]  }
 0x534   :  { %7091 = vmatpush1.bf16.msra.mxu1 %v14353_v50  ;;  %7224 = vmatpush1.bf16.msra.mxu0 %v14356_v36  ;;  %v14382_v50 = vld [vmem:[%s23603_s4 + $0x31c] ss:$12 sps:$4 sm:$0xff]   ;;  %v14380_v36 = vld [vmem:[%s23603_s4 + $0x318] ss:$12 sps:$4 sm:$0xff]  }
 0x535   :  { %7092 = vmatprep.subr.bf16.mxu1 %v14359_v63  ;;  %7225 = vmatprep.subr.bf16.mxu0 %v24736_v49  ;;  %v14383_v63 = vld [vmem:[%s23603_s4 + $0x320] ss:$12 sps:$4 sm:$0xff]  }
 0x536   :  { %6538 = vmatmul.mubr.bf16.gmra.mxu1 %v19704_v6  ;;  %6665 = vmatmul.mubr.bf16.gmra.mxu0 %v19704_v6 }
 0x537   :  { %12096 = vmatprep.mubr.msk.bf16.mxu1 %vm5959_vm7, %v19826_v41  ;;  %12106 = vmatprep.mubr.msk.bf16.mxu0 %vm5959_vm7, %v19826_v41 }
 0x538   :  { %7093 = vmatpush1.bf16.msra.mxu1 %v14357_v59  ;;  %7226 = vmatpush1.bf16.msra.mxu0 %v14360_v7  ;;  %v14386_v59 = vld [vmem:[%s23603_s4 + $0x430] ss:$12 sps:$4 sm:$0xff]   ;;  %v6797_v7 = vrot.slane %v19568_v55, 1 }
 0x539   :  { %7094 = vmatprep.subr.bf16.mxu1 %v14363_v40  ;;  %7227 = vmatprep.subr.bf16.mxu0 %v24736_v49  ;;  %v6796_v40 = vrot.slane %v24902_v22, 1 }
 0x53b   :  { %v6798_v27 = vsel %vm6792_vm9, %v6796_v40, %v6797_v7  ;;  %v14402_v40 = vld [vmem:[%s23603_s4 + $0x3d0] ss:$12 sps:$4 sm:$0xff]  }
 0x53c   :  { %7095 = vmatpush1.bf16.msra.mxu1 %v14361_v23  ;;  %7228 = vmatpush1.bf16.msra.mxu0 %v14364_v53  ;;  %v6794_v23 = vrot.slane %v19560_v45, 1  ;;  %v6801_v53 = vrot.slane %v19615_v4, 1 }
 0x53d   :  { %12201 = vmatprep.subr.msk.bf16.mxu1 %vm5990_vm5, %v12199_v19  ;;  %7235 = vmatprep.subr.bf16.mxu0 %v24736_v49  ;;  %v6793_v19 = vrot.slane %v24903_v15, 1 }
 0x53e   :  { %6548 = vmatmul.mubr.bf16.gmra.mxu1 %v19802_v17  ;;  %6673 = vmatmul.mubr.bf16.gmra.mxu0 %v19802_v17 }
 0x53f   :  { %12097 = vmatprep.mubr.msk.bf16.mxu1 %vm5959_vm7, %v19898_v38  ;;  %12107 = vmatprep.mubr.msk.bf16.mxu0 %vm5959_vm7, %v19898_v38 }
 0x540   :  { %7103 = vmatpush2.bf16.msra.mxu1 %v7072_v44  ;;  %7236 = vmatpush2.bf16.msra.mxu0 %v7078_v54  ;;  %v6795_v44 = vsel %vm6792_vm9, %v6793_v19, %v6794_v23  ;;  %v14390_v54 = vld [vmem:[%s23603_s4 + $0x418] ss:$12 sps:$4 sm:$0xff]  }
 0x541   :  { %7104 = vmatprep.subr.bf16.mxu1 %v14370_v61  ;;  %7237 = vmatprep.subr.bf16.mxu0 %v24736_v49  ;;  %v6802_v61 = vsel %vm6792_vm9, %v6797_v7, %v6801_v53  ;;  %v6803_v7 = vrot.slane %v19704_v6, 1 }
 0x544   :  { %7105 = vmatpush2.bf16.msra.mxu1 %v14368_v9  ;;  %7238 = vmatpush2.bf16.msra.mxu0 %v14371_v31  ;;  %v14388_v9 = vld [vmem:[%s23603_s4 + $0x414] ss:$12 sps:$4 sm:$0xff]   ;;  %v14391_v31 = vld [vmem:[%s23603_s4 + $0x41c] ss:$12 sps:$4 sm:$0xff]  }
 0x545   :  { %7106 = vmatprep.subr.bf16.mxu1 %v14374_v57  ;;  %7239 = vmatprep.subr.bf16.mxu0 %v24736_v49  ;;  %v6799_v57 = vrot.slane %v19600_v8, 1 }
 0x546   :  { %6558 = vmatmul.mubr.bf16.gmra.mxu1 %v19883_v0  ;;  %6681 = vmatmul.mubr.bf16.gmra.mxu0 %v19883_v0 }
 0x547   :  { %12098 = vmatprep.mubr.msk.bf16.mxu1 %vm5959_vm7, %v19979_v28  ;;  %12108 = vmatprep.mubr.msk.bf16.mxu0 %vm5959_vm7, %v19979_v28  ;;  %v6804_v19 = vsel %vm6792_vm9, %v6799_v57, %v6803_v7 }
 0x548   :  { %7107 = vmatpush2.bf16.msra.mxu1 %v14372_v32  ;;  %7240 = vmatpush2.bf16.msra.mxu0 %v14375_v2  ;;  %v14394_v32 = vld [vmem:[%s23603_s4 + $0x400] ss:$12 sps:$4 sm:$0xff]   ;;  %v6805_v2 = vrot.slane %v19728_v25, 1 }
 0x549   :  { %7108 = vmatprep.subr.bf16.mxu1 %v14378_v12  ;;  %7241 = vmatprep.subr.bf16.mxu0 %v24736_v49  ;;  %v14392_v12 = vld [vmem:[%s23603_s4 + $0x3fc] ss:$12 sps:$4 sm:$0xff]  }
 0x54c   :  { %7109 = vmatpush2.bf16.msra.mxu1 %v14376_v62  ;;  %7242 = vmatpush2.bf16.msra.mxu0 %v14379_v35  ;;  %v14395_v62 = vld [vmem:[%s23603_s4 + $0x404] ss:$12 sps:$4 sm:$0xff]   ;;  %v6800_v35 = vsel %vm6792_vm9, %v6794_v23, %v6799_v57  ;;  %v14400_v23 = vld [vmem:[%s23603_s4 + $0x3cc] ss:$12 sps:$4 sm:$0xff]   ;;  %v14408_v57 = vld [vmem:[%s23603_s4 + $0x39c] ss:$12 sps:$4 sm:$0xff]  }
 0x54d   :  { %7110 = vmatprep.subr.bf16.mxu1 %v14382_v50  ;;  %7243 = vmatprep.subr.bf16.mxu0 %v24736_v49  ;;  %v14398_v50 = vld [vmem:[%s23603_s4 + $0x3e8] ss:$12 sps:$4 sm:$0xff]  }
 0x54e   :  { %6568 = vmatmul.mubr.bf16.gmra.mxu1 %v19955_v48  ;;  %6689 = vmatmul.mubr.bf16.gmra.mxu0 %v19955_v48 }
 0x54f   :  { %12099 = vmatprep.mubr.msk.bf16.mxu1 %vm5959_vm7, %v20057_v13  ;;  %12109 = vmatprep.mubr.msk.bf16.mxu0 %vm5959_vm7, %v20057_v13 }
 0x550   :  { %7111 = vmatpush2.bf16.msra.mxu1 %v14380_v36  ;;  %7244 = vmatpush2.bf16.msra.mxu0 %v14383_v63  ;;  %v6806_v36 = vsel %vm6792_vm9, %v6801_v53, %v6805_v2  ;;  %v14396_v63 = vld [vmem:[%s23603_s4 + $0x3e4] ss:$12 sps:$4 sm:$0xff]   ;;  %v14403_v53 = vld [vmem:[%s23603_s4 + $0x3d4] ss:$12 sps:$4 sm:$0xff]  }
 0x551   :  { %7765 = vmatprep.subr.bf16.mxu1 %v14386_v59  ;;  %7898 = vmatprep.subr.bf16.mxu0 %v24736_v49  ;;  %v14399_v59 = vld [vmem:[%s23603_s4 + $0x3ec] ss:$12 sps:$4 sm:$0xff]  }
 0x556   :  { %6578 = vmatmul.mubr.bf16.gmra.mxu1 %v20040_v16  ;;  %6697 = vmatmul.mubr.bf16.gmra.mxu0 %v20040_v16 }
 0x557   :  { %12100 = vmatprep.mubr.msk.bf16.mxu1 %vm5959_vm7, %v20101_v52  ;;  %12110 = vmatprep.mubr.msk.bf16.mxu0 %vm5959_vm7, %v20101_v52 }
 0x55e   :  { %6588 = vmatmul.mubr.bf16.gmra.mxu1 %v20096_v39  ;;  %6705 = vmatmul.mubr.bf16.gmra.mxu0 %v20096_v39 }
 0x55f   :  { %12101 = vmatprep.mubr.msk.bf16.mxu1 %vm5959_vm7, %v20131_v20  ;;  %12111 = vmatprep.mubr.msk.bf16.mxu0 %vm5959_vm7, %v20131_v20 }
 0x566   :  { %6598 = vmatmul.mubr.bf16.gmra.mxu1 %v20118_v58  ;;  %6713 = vmatmul.mubr.bf16.gmra.mxu0 %v20118_v58 }
 0x567   :  { %12202 = vmatprep.mubr.msk.bf16.mxu1 %vm5959_vm7, %v6798_v27  ;;  %12212 = vmatprep.mubr.msk.bf16.mxu0 %vm5959_vm7, %v6798_v27  ;;  %v6809_v27 = vrot.slane %v19826_v41, 1 }
 0x56e   :  { %7113 = vmatmul.mubr.bf16.vlgmr.msra.gmra.mxu1 %v6795_v44  ;;  %7246 = vmatmul.mubr.bf16.vlgmr.msra.gmra.mxu0 %v6795_v44  ;;  %v14404_v44 = vld [vmem:[%s23603_s4 + $0x3b4] ss:$12 sps:$4 sm:$0xff]  }
 0x56f   :  { %12203 = vmatprep.mubr.msk.bf16.mxu1 %vm5959_vm7, %v6802_v61  ;;  %12213 = vmatprep.mubr.msk.bf16.mxu0 %vm5959_vm7, %v6802_v61  ;;  %v6807_v61 = vrot.slane %v19802_v17, 1 }
 0x570   :  { %7766 = vmatpush1.bf16.msra.mxu1 %v14384_v42  ;;  %7899 = vmatpush1.bf16.msra.mxu0 %v14387_v18  ;;  %v14406_v42 = vld [vmem:[%s23603_s4 + $0x3b8] ss:$12 sps:$4 sm:$0xff]   ;;  %v6810_v18 = vsel %vm6792_vm9, %v6805_v2, %v6809_v27 }
 0x571   :  { %7767 = vmatprep.subr.bf16.mxu1 %v14390_v54  ;;  %7900 = vmatprep.subr.bf16.mxu0 %v24736_v49  ;;  %v14407_v54 = vld [vmem:[%s23603_s4 + $0x3bc] ss:$12 sps:$4 sm:$0xff]   ;;  %v6808_v2 = vsel %vm6792_vm9, %v6803_v7, %v6807_v61  ;;  %v14412_v7 = vld [vmem:[%s23603_s4 + $0x384] ss:$12 sps:$4 sm:$0xff]  }
 0x574   :  { %7768 = vmatpush1.bf16.msra.mxu1 %v14388_v9  ;;  %7901 = vmatpush1.bf16.msra.mxu0 %v14391_v31  ;;  %v14410_v9 = vld [vmem:[%s23603_s4 + $0x3a0] ss:$12 sps:$4 sm:$0xff]   ;;  %v6813_v31 = vrot.slane %v19898_v38, 1 }
 0x575   :  { %7769 = vmatprep.subr.bf16.mxu1 %v14394_v32  ;;  %7902 = vmatprep.subr.bf16.mxu0 %v24736_v49  ;;  %v14411_v32 = vld [vmem:[%s23603_s4 + $0x3a4] ss:$12 sps:$4 sm:$0xff]  }
 0x576   :  { %7123 = vmatmul.mubr.bf16.gmra.mxu1 %v6800_v35  ;;  %7254 = vmatmul.mubr.bf16.gmra.mxu0 %v6800_v35 }
 0x577   :  { %12204 = vmatprep.mubr.msk.bf16.mxu1 %vm5959_vm7, %v6806_v36  ;;  %12214 = vmatprep.mubr.msk.bf16.mxu0 %vm5959_vm7, %v6806_v36  ;;  %v12270_v36 = vld [vmem:[%s23603_s4 + $0x4a4] sm:$0xff] }
 0x578   :  { %7770 = vmatpush1.bf16.msra.mxu1 %v14392_v12  ;;  %7903 = vmatpush1.bf16.msra.mxu0 %v14395_v62  ;;  %v14414_v12 = vld [vmem:[%s23603_s4 + $0x388] ss:$12 sps:$4 sm:$0xff]   ;;  %v6814_v62 = vsel %vm6792_vm9, %v6809_v27, %v6813_v31  ;;  %v6811_v27 = vrot.slane %v19883_v0, 1 }
 0x579   :  { %7771 = vmatprep.subr.bf16.mxu1 %v14398_v50  ;;  %7904 = vmatprep.subr.bf16.mxu0 %v24736_v49 }
 0x57c   :  { %7772 = vmatpush1.bf16.msra.mxu1 %v14396_v63  ;;  %7905 = vmatpush1.bf16.msra.mxu0 %v14399_v59 }
 0x57d   :  { %7773 = vmatprep.subr.bf16.mxu1 %v14402_v40  ;;  %7906 = vmatprep.subr.bf16.mxu0 %v24736_v49  ;;  %v14415_v40 = vld [vmem:[%s23603_s4 + $0x38c] ss:$12 sps:$4 sm:$0xff]  }
 0x57e   :  { %7133 = vmatmul.mubr.bf16.gmra.mxu1 %v6804_v19  ;;  %7262 = vmatmul.mubr.bf16.gmra.mxu0 %v6804_v19  ;;  %v14418_v19 = vld [vmem:[%s23603_s4 + $0x4ac] ss:$0 sps:$4 sm:$0xff]  }
 0x57f   :  { %12205 = vmatprep.mubr.msk.bf16.mxu1 %vm5959_vm7, %v6810_v18  ;;  %12215 = vmatprep.mubr.msk.bf16.mxu0 %vm5959_vm7, %v6810_v18 }
 0x580   :  { %7774 = vmatpush1.bf16.msra.mxu1 %v14400_v23  ;;  %7907 = vmatpush1.bf16.msra.mxu0 %v14403_v53  ;;  %v12309_v23 = vcombine.high %v12270_v36, %v12270_v36  ;;  %v12308_v53 = vcombine.low %v12270_v36, %v12270_v36 }
 0x581   :  { %7775 = vmatprep.subr.bf16.mxu1 %v14406_v42  ;;  %7908 = vmatprep.subr.bf16.mxu0 %v24736_v49  ;;  %v6817_v42 = vrot.slane %v19979_v28, 1 }
 0x584   :  { %7776 = vmatpush1.bf16.msra.mxu1 %v14404_v44  ;;  %7909 = vmatpush1.bf16.msra.mxu0 %v14407_v54  ;;  %v20461_v35 = vpop.f32.mrf.mxu1  ;;  %v20463_v50 = vpop.f32.mrf.mxu0 }
 0x585   :  { %7777 = vmatprep.subr.bf16.mxu1 %v14410_v9  ;;  %7910 = vmatprep.subr.bf16.mxu0 %v24736_v49 }
 0x586   :  { %7143 = vmatmul.mubr.bf16.gmra.mxu1 %v6808_v2  ;;  %7270 = vmatmul.mubr.bf16.gmra.mxu0 %v6808_v2  ;;  %v20470_v63 = vpop.f32.mrf.mxu1  ;;  %v6169_v59 = vpop.f32.mrf.mxu0  ;;  %v7763_v2 = vsel %vm5990_vm5, %v14418_v19, 0  ;;  %v6821_v19 = vrot.slane %v20057_v13, 1 }
 0x587   :  { %12206 = vmatprep.mubr.msk.bf16.mxu1 %vm5959_vm7, %v6814_v62  ;;  %12216 = vmatprep.mubr.msk.bf16.mxu0 %vm5959_vm7, %v6814_v62  ;;  %v6818_v62 = vsel %vm6792_vm9, %v6813_v31, %v6817_v42  ;;  %v14419_v59 = vld [vmem:[%s23603_s4 + $0x48c] ss:$12 sps:$4 sm:$0xff]   ;;  %v6815_v31 = vrot.slane %v19955_v48, 1 }
 0x588   :  { %7778 = vmatpush1.bf16.msra.mxu1 %v14408_v57  ;;  %7911 = vmatpush1.bf16.msra.mxu0 %v14411_v32  ;;  %v20484_v18 = vpop.f32.mrf.mxu1  ;;  %v20486_v44 = vpop.f32.mrf.mxu0  ;;  %v6812_v57 = vsel %vm6792_vm9, %v6807_v61, %v6811_v27  ;;  %v7757_v32 = vsel %vm5990_vm5, %v12308_v53, 0  ;;  %v14425_v53 = vld [vmem:[%s23603_s4 + $0x478] ss:$12 sps:$4 sm:$0xff]  }
 0x589   :  { %7779 = vmatprep.subr.bf16.mxu1 %v14414_v12  ;;  %7912 = vmatprep.subr.bf16.mxu0 %v24736_v49  ;;  %v14421_v12 = vld [vmem:[%s23603_s4 + $0x490] ss:$12 sps:$4 sm:$0xff]  }
 0x58a   :  { %v20488_v54 = vpop.f32.mrf.mxu1  ;;  %v6172_v9 = vpop.f32.mrf.mxu0 }
 0x58c   :  { %7780 = vmatpush1.bf16.msra.mxu1 %v14412_v7  ;;  %7913 = vmatpush1.bf16.msra.mxu0 %v14415_v40  ;;  %v14422_v7 = vld [vmem:[%s23603_s4 + $0x494] ss:$12 sps:$4 sm:$0xff]  }
 0x58d   :  { %12311 = vmatprep.subr.msk.bf16.mxu1 %vm5990_vm5, %v12309_v23  ;;  %7920 = vmatprep.subr.bf16.mxu0 %v24736_v49  ;;  %v20501_v61 = vpop.f32.mrf.mxu1  ;;  %v20503_v36 = vpop.f32.mrf.mxu0 }
 0x58e   :  { %7153 = vmatmul.mubr.bf16.gmra.mxu1 %v6812_v57  ;;  %7278 = vmatmul.mubr.bf16.gmra.mxu0 %v6812_v57 }
 0x58f   :  { %12207 = vmatprep.mubr.msk.bf16.mxu1 %vm5959_vm7, %v6818_v62  ;;  %12217 = vmatprep.mubr.msk.bf16.mxu0 %vm5959_vm7, %v6818_v62  ;;  %v20512_v40 = vpop.f32.mrf.mxu1  ;;  %v6177_v23 = vpop.f32.mrf.mxu0 }
 0x590   :  { %7788 = vmatpush2.bf16.msra.mxu1 %v7757_v32  ;;  %7921 = vmatpush2.bf16.msra.mxu0 %v7763_v2  ;;  %v14423_v32 = vld [vmem:[%s23603_s4 + $0x474] ss:$12 sps:$4 sm:$0xff]   ;;  %v14426_v2 = vld [vmem:[%s23603_s4 + $0x47c] ss:$12 sps:$4 sm:$0xff]  }
 0x591   :  { %7789 = vmatprep.subr.bf16.mxu1 %v14421_v12  ;;  %7922 = vmatprep.subr.bf16.mxu0 %v24736_v49  ;;  %v20519_v9 = vpop.f32.mrf.mxu1  ;;  %v20521_v57 = vpop.f32.mrf.mxu0  ;;  %v6816_v12 = vsel %vm6792_vm9, %v6811_v27, %v6815_v31  ;;  %v14429_v23 = vld [vmem:[%s23603_s4 + $0x460] ss:$12 sps:$4 sm:$0xff]   ;;  %v14427_v27 = vld [vmem:[%s23603_s4 + $0x45c] ss:$12 sps:$4 sm:$0xff]  }
 0x592   :  { %24904 = vst [vmem:[#allocation61_spill] sm:$0xff] %v20521_v57 }
 0x593   :  { %v6180_v62 = vpop.f32.mrf.mxu0 }
 0x594   :  { %7790 = vmatpush2.bf16.msra.mxu1 %v14419_v59  ;;  %7923 = vmatpush2.bf16.msra.mxu0 %v14422_v7  ;;  %v6822_v59 = vsel %vm6792_vm9, %v6817_v42, %v6821_v19  ;;  %v20535_v7 = vpop.f32.mrf.mxu1  ;;  %v14433_v42 = vld [vmem:[%s23603_s4 + $0x448] ss:$12 sps:$4 sm:$0xff]  }
 0x595   :  { %7791 = vmatprep.subr.bf16.mxu1 %v14425_v53  ;;  %7924 = vmatprep.subr.bf16.mxu0 %v24736_v49  ;;  %24905 = vst [vmem:[#allocation78_spill] sm:$0xff] %v20535_v7  ;;  %v14430_v53 = vld [vmem:[%s23603_s4 + $0x464] ss:$12 sps:$4 sm:$0xff]  }
 0x596   :  { %7163 = vmatmul.mubr.bf16.gmra.mxu1 %v6816_v12  ;;  %7286 = vmatmul.mubr.bf16.gmra.mxu0 %v6816_v12  ;;  %v6819_v12 = vrot.slane %v20040_v16, 1  ;;  %v14434_v16 = vld [vmem:[%s23603_s4 + $0x44c] ss:$12 sps:$4 sm:$0xff]  }
 0x597   :  { %12208 = vmatprep.mubr.msk.bf16.mxu1 %vm5959_vm7, %v6822_v59  ;;  %12218 = vmatprep.mubr.msk.bf16.mxu0 %vm5959_vm7, %v6822_v59 }
 0x598   :  { %7792 = vmatpush2.bf16.msra.mxu1 %v14423_v32  ;;  %7925 = vmatpush2.bf16.msra.mxu0 %v14426_v2  ;;  %v20550_v62 = vpop.f32.mrf.mxu1  ;;  %v20552_v32 = vpop.f32.mrf.mxu0  ;;  %v6825_v2 = vrot.slane %v20101_v52, 1  ;;  %v6820_v57 = vsel %vm6792_vm9, %v6815_v31, %v6819_v12 }
 0x599   :  { %7793 = vmatprep.subr.bf16.mxu1 %v14429_v23  ;;  %7926 = vmatprep.subr.bf16.mxu0 %v24736_v49  ;;  %24906 = vst [vmem:[#allocation48_spill] sm:$0xff] %v20550_v62  ;;  %24907 = vst [vmem:[#allocation43_spill] sm:$0xff] %v20552_v32  ;;  %v14431_v23 = vld [vmem:[%s23603_s4 + $0x444] ss:$12 sps:$4 sm:$0xff]   ;;  %v6823_v32 = vrot.slane %v20096_v39, 1 }
 0x59a   :  { %v20555_v59 = vpop.f32.mrf.mxu1  ;;  %v6185_v7 = vpop.f32.mrf.mxu0 }
 0x59b   :  { %24908 = vst [vmem:[#allocation62_spill] sm:$0xff] %v20555_v59  ;;  %v14437_v59 = vld [vmem:[%s23603_s4 + $0x55c] ss:$12 sps:$4 sm:$0xff]   ;;  %v6826_v7 = vsel %vm6792_vm9, %v6821_v19, %v6825_v2  ;;  %v6829_v19 = vrot.slane %v20131_v20, 1 }
 0x59c   :  { %7794 = vmatpush2.bf16.msra.mxu1 %v14427_v27  ;;  %7927 = vmatpush2.bf16.msra.mxu0 %v14430_v53  ;;  %v20569_v27 = vpop.f32.mrf.mxu1  ;;  %v20571_v53 = vpop.f32.mrf.mxu0 }
 0x59d   :  { %7795 = vmatprep.subr.bf16.mxu1 %v14433_v42  ;;  %7928 = vmatprep.subr.bf16.mxu0 %v24736_v49  ;;  %24909 = vst [vmem:[#allocation82_spill] sm:$0xff] %v20569_v27  ;;  %24910 = vst [vmem:[#allocation44_spill] sm:$0xff] %v20571_v53  ;;  %v6824_v53 = vsel %vm6792_vm9, %v6819_v12, %v6823_v32  ;;  %v6827_v12 = vrot.slane %v20118_v58, 1 }
 0x59e   :  { %7173 = vmatmul.mubr.bf16.gmra.mxu1 %v6820_v57  ;;  %7294 = vmatmul.mubr.bf16.gmra.mxu0 %v6820_v57  ;;  %v20575_v31 = vpop.f32.mrf.mxu1  ;;  %v6188_v42 = vpop.f32.mrf.mxu0 }
 0x59f   :  { %12209 = vmatprep.mubr.msk.bf16.mxu1 %vm5959_vm7, %v6826_v7  ;;  %12219 = vmatprep.mubr.msk.bf16.mxu0 %vm5959_vm7, %v6826_v7  ;;  %24911 = vst [vmem:[#allocation55_spill] sm:$0xff] %v20575_v31 }
 0x5a0   :  { %7796 = vmatpush2.bf16.msra.mxu1 %v14431_v23  ;;  %7929 = vmatpush2.bf16.msra.mxu0 %v14434_v16  ;;  %v6830_v16 = vsel %vm6792_vm9, %v6825_v2, %v6829_v19 }
 0x5a1   :  { %8410 = vmatprep.subr.bf16.mxu1 %v14437_v59  ;;  %8543 = vmatprep.subr.bf16.mxu0 %v24736_v49  ;;  %v20580_v57 = vpop.f32.mrf.mxu1  ;;  %v20582_v27 = vpop.f32.mrf.mxu0 }
 0x5a2   :  { %24912 = vst [vmem:[#allocation75_spill] sm:$0xff] %v20582_v27 }
 0x5a3   :  { %v20585_v62 = vpop.f32.mrf.mxu1  ;;  %v6193_v7 = vpop.f32.mrf.mxu0 }
 0x5a4   :  { %24913 = vst [vmem:[#allocation46_spill] sm:$0xff] %v20585_v62 }
 0x5a5   :  { %v20590_v59 = vpop.f32.mrf.mxu1  ;;  %v20592_v23 = vpop.f32.mrf.mxu0 }
 0x5a6   :  { %7183 = vmatmul.mubr.bf16.gmra.mxu1 %v6824_v53  ;;  %7302 = vmatmul.mubr.bf16.gmra.mxu0 %v6824_v53  ;;  %v6828_v53 = vsel %vm6792_vm9, %v6823_v32, %v6827_v12 }
 0x5a7   :  { %12210 = vmatprep.mubr.msk.bf16.mxu1 %vm5959_vm7, %v6830_v16  ;;  %12220 = vmatprep.mubr.msk.bf16.mxu0 %vm5959_vm7, %v6830_v16  ;;  %v20594_v42 = vpop.f32.mrf.mxu1  ;;  %v6196_v31 = vpop.f32.mrf.mxu0 }
 0x5a8   :  { %24914 = vst [vmem:[#allocation83_spill] sm:$0xff] %v20594_v42 }
 0x5aa   :  { %v20597_v27 = vpop.f32.mrf.mxu1  ;;  %v20599_v7 = vpop.f32.mrf.mxu0 }
 0x5ab   :  { %24915 = vst [vmem:[#allocation68_spill] sm:$0xff] %v20597_v27  ;;  %24916 = vst [vmem:[#allocation77_spill] sm:$0xff] %v20599_v7 }
 0x5ac   :  { %v20602_v2 = vpop.f32.mrf.mxu1  ;;  %v6201_v62 = vpop.f32.mrf.mxu0 }
 0x5ad   :  { %24917 = vst [vmem:[#allocation12_spill] sm:$0xff] %v20602_v2 }
 0x5ae   :  { %7193 = vmatmul.mubr.bf16.gmra.mxu1 %v6828_v53  ;;  %7310 = vmatmul.mubr.bf16.gmra.mxu0 %v6828_v53  ;;  %v20606_v16 = vpop.f32.mrf.mxu1  ;;  %v20608_v31 = vpop.f32.mrf.mxu0 }
 0x5af   :  { %12211 = vmatprep.mubr.msk.bf16.mxu1 %vm5959_vm7, %v6829_v19  ;;  %12221 = vmatprep.mubr.msk.bf16.mxu0 %vm5959_vm7, %v6829_v19  ;;  %24918 = vst [vmem:[#allocation14_spill] sm:$0xff] %v20606_v16  ;;  %24919 = vst [vmem:[#allocation84_spill] sm:$0xff] %v20608_v31 }
 0x5b0   :  { %v20610_v42 = vpop.f32.mrf.mxu1  ;;  %v6204_v27 = vpop.f32.mrf.mxu0 }
 0x5b1   :  { %24920 = vst [vmem:[#allocation16_spill] sm:$0xff] %v20610_v42 }
 0x5b3   :  { %v20612_v58 = vpop.f32.mrf.mxu1  ;;  %v20614_v7 = vpop.f32.mrf.mxu0 }
 0x5b4   :  { %24921 = vst [vmem:[#allocation49_spill] sm:$0xff] %v20612_v58  ;;  %24922 = vst [vmem:[#allocation26_spill] sm:$0xff] %v20614_v7 }
 0x5b5   :  { %v20616_v62 = vpop.f32.mrf.mxu1  ;;  %v6209_v32 = vpop.f32.mrf.mxu0 }
 0x5b6   :  { %7203 = vmatmul.mubr.bf16.gmra.mxu1 %v6827_v12  ;;  %7318 = vmatmul.mubr.bf16.gmra.mxu0 %v6827_v12  ;;  %24923 = vst [vmem:[#allocation50_spill] sm:$0xff] %v20616_v62  ;;  %v14435_v12 = vld [vmem:[%s23603_s4 + $0x558] ss:$12 sps:$4 sm:$0xff]   ;;  %v14438_v32 = vld [vmem:[%s23603_s4 + $0x560] ss:$12 sps:$4 sm:$0xff]  }
 0x5b7   :  { %12312 = vmatprep.mubr.msk.bf16.mxu1 %vm5959_vm7, %v19637_v47  ;;  %12322 = vmatprep.mubr.msk.bf16.mxu0 %vm5959_vm7, %v19637_v47  ;;  %v20622_v19 = vpop.f32.mrf.mxu1  ;;  %v20624_v53 = vpop.f32.mrf.mxu0  ;;  %v14441_v62 = vld [vmem:[%s23603_s4 + $0x544] ss:$12 sps:$4 sm:$0xff]  }
 0x5b8   :  { %24924 = vst [vmem:[#allocation2_spill] sm:$0xff] %v20622_v19  ;;  %24925 = vst [vmem:[#allocation51_spill] sm:$0xff] %v20624_v53 }
 0x5b9   :  { %v20626_v27 = vpop.f32.mrf.mxu1  ;;  %v6212_v42 = vpop.f32.mrf.mxu0 }
 0x5ba   :  { %24926 = vst [vmem:[#allocation28_spill] sm:$0xff] %v20626_v27 }
 0x5be   :  { %v20637_v47 = vpop.f32.mrf.mxu1  ;;  %v20639_v19 = vpop.f32.mrf.mxu0  ;;  %7798 = vmatmul.mubr.bf16.vlgmr.msra.gmra.mxu1 %v19677_v11  ;;  %7931 = vmatmul.mubr.bf16.vlgmr.msra.gmra.mxu0 %v19677_v11  ;;  %v14445_v11 = vld [vmem:[%s23603_s4 + $0x52c] ss:$12 sps:$4 sm:$0xff]  }
 0x5bf   :  { %24927 = vst [vmem:[#allocation87_spill] sm:$0xff] %v20637_v47  ;;  %24928 = vst [vmem:[#allocation88_spill] sm:$0xff] %v20639_v19  ;;  %12313 = vmatprep.mubr.msk.bf16.mxu1 %vm5959_vm7, %v19722_v1  ;;  %12323 = vmatprep.mubr.msk.bf16.mxu0 %vm5959_vm7, %v19722_v1  ;;  %v14439_v47 = vld [vmem:[%s23603_s4 + $0x540] ss:$12 sps:$4 sm:$0xff]   ;;  %v14442_v19 = vld [vmem:[%s23603_s4 + $0x548] ss:$12 sps:$4 sm:$0xff]  }
 0x5c0   :  { %v20647_v42 = vpop.f32.mrf.mxu1  ;;  %v6217_v27 = vpop.f32.mrf.mxu0  ;;  %8411 = vmatpush1.bf16.msra.mxu1 %v14435_v12  ;;  %8544 = vmatpush1.bf16.msra.mxu0 %v14438_v32 }
 0x5c1   :  { %24929 = vst [vmem:[#allocation52_spill] sm:$0xff] %v20647_v42  ;;  %8412 = vmatprep.subr.bf16.mxu1 %v14441_v62  ;;  %8545 = vmatprep.subr.bf16.mxu0 %v24736_v49  ;;  %v14443_v42 = vld [vmem:[%s23603_s4 + $0x528] ss:$12 sps:$4 sm:$0xff]   ;;  %v14446_v62 = vld [vmem:[%s23603_s4 + $0x530] ss:$12 sps:$4 sm:$0xff]  }
 0x5c2   :  { %v20659_v1 = vpop.f32.mrf.mxu1  ;;  %v20661_v27 = vpop.f32.mrf.mxu0 }
 0x5c3   :  { %24930 = vst [vmem:[#allocation95_spill] sm:$0xff] %v20659_v1  ;;  %24931 = vst [vmem:[#allocation64_spill] sm:$0xff] %v20661_v27  ;;  %v14449_v27 = vld [vmem:[%s23603_s4 + $0x514] ss:$12 sps:$4 sm:$0xff]  }
 0x5c4   :  { %v20663_v12 = vpop.f32.mrf.mxu1  ;;  %v6220_v32 = vpop.f32.mrf.mxu0  ;;  %8413 = vmatpush1.bf16.msra.mxu1 %v14439_v47  ;;  %8546 = vmatpush1.bf16.msra.mxu0 %v14442_v19 }
 0x5c5   :  { %24932 = vst [vmem:[#allocation76_spill] sm:$0xff] %v20663_v12  ;;  %8414 = vmatprep.subr.bf16.mxu1 %v14445_v11  ;;  %8547 = vmatprep.subr.bf16.mxu0 %v24736_v49  ;;  %v14447_v11 = vld [vmem:[%s23603_s4 + $0x510] ss:$12 sps:$4 sm:$0xff]   ;;  %v14450_v12 = vld [vmem:[%s23603_s4 + $0x518] ss:$12 sps:$4 sm:$0xff]  }
 0x5c6   :  { %v20675_v1 = vpop.f32.mrf.mxu1  ;;  %v20677_v32 = vpop.f32.mrf.mxu0  ;;  %7808 = vmatmul.mubr.bf16.gmra.mxu1 %v19785_v14  ;;  %7939 = vmatmul.mubr.bf16.gmra.mxu0 %v19785_v14  ;;  %v14453_v14 = vld [vmem:[%s23603_s4 + $0x4fc] ss:$12 sps:$4 sm:$0xff]  }
 0x5c7   :  { %24933 = vst [vmem:[#allocation19_spill] sm:$0xff] %v20675_v1  ;;  %24934 = vst [vmem:[#allocation15_spill] sm:$0xff] %v20677_v32  ;;  %12314 = vmatprep.mubr.msk.bf16.mxu1 %vm5959_vm7, %v19909_v37  ;;  %12324 = vmatprep.mubr.msk.bf16.mxu0 %vm5959_vm7, %v19909_v37  ;;  %v14482_v32 = vld [vmem:[%s23603_s4 + $0x570] ss:$12 sps:$4 sm:$0xff]  }
 0x5c8   :  { %v20685_v19 = vpop.f32.mrf.mxu1  ;;  %v6225_v47 = vpop.f32.mrf.mxu0  ;;  %8415 = vmatpush1.bf16.msra.mxu1 %v14443_v42  ;;  %8548 = vmatpush1.bf16.msra.mxu0 %v14446_v62 }
 0x5c9   :  { %24935 = vst [vmem:[#allocation36_spill] sm:$0xff] %v20685_v19  ;;  %8416 = vmatprep.subr.bf16.mxu1 %v14449_v27  ;;  %8549 = vmatprep.subr.bf16.mxu0 %v24736_v49  ;;  %v14451_v19 = vld [vmem:[%s23603_s4 + $0x4f8] ss:$12 sps:$4 sm:$0xff]   ;;  %v14454_v27 = vld [vmem:[%s23603_s4 + $0x500] ss:$12 sps:$4 sm:$0xff]  }
 0x5ca   :  { %v20697_v37 = vpop.f32.mrf.mxu1  ;;  %v20699_v47 = vpop.f32.mrf.mxu0 }
 0x5cb   :  { %24936 = vst [vmem:[#allocation98_spill] sm:$0xff] %v20697_v37  ;;  %24937 = vst [vmem:[#allocation96_spill] sm:$0xff] %v20699_v47  ;;  %v14457_v47 = vld [vmem:[%s23603_s4 + $0x4e4] ss:$12 sps:$4 sm:$0xff]  }
 0x5cc   :  { %v20701_v42 = vpop.f32.mrf.mxu1  ;;  %v6228_v62 = vpop.f32.mrf.mxu0  ;;  %8417 = vmatpush1.bf16.msra.mxu1 %v14447_v11  ;;  %8550 = vmatpush1.bf16.msra.mxu0 %v14450_v12 }
 0x5cd   :  { %24938 = vst [vmem:[#allocation80_spill] sm:$0xff] %v20701_v42  ;;  %8418 = vmatprep.subr.bf16.mxu1 %v14453_v14  ;;  %8551 = vmatprep.subr.bf16.mxu0 %v24736_v49  ;;  %v14455_v14 = vld [vmem:[%s23603_s4 + $0x4e0] ss:$12 sps:$4 sm:$0xff]   ;;  %v14458_v42 = vld [vmem:[%s23603_s4 + $0x4e8] ss:$12 sps:$4 sm:$0xff]  }
 0x5ce   :  { %v20713_v37 = vpop.f32.mrf.mxu1  ;;  %v20715_v62 = vpop.f32.mrf.mxu0  ;;  %7818 = vmatmul.mubr.bf16.gmra.mxu1 %v19964_v46  ;;  %7947 = vmatmul.mubr.bf16.gmra.mxu0 %v19964_v46  ;;  %v14461_v46 = vld [vmem:[%s23603_s4 + $0x4cc] ss:$12 sps:$4 sm:$0xff]  }
 0x5cf   :  { %24939 = vst [vmem:[#allocation45_spill] sm:$0xff] %v20713_v37  ;;  %24940 = vst [vmem:[#allocation79_spill] sm:$0xff] %v20715_v62  ;;  %12315 = vmatprep.mubr.msk.bf16.mxu1 %vm5959_vm7, %v19999_v30  ;;  %12325 = vmatprep.mubr.msk.bf16.mxu0 %vm5959_vm7, %v19999_v30  ;;  %v14472_v62 = vld [vmem:[%s23603_s4 + $0x5bc] ss:$12 sps:$4 sm:$0xff]  }
 0x5d0   :  { %v20723_v12 = vpop.f32.mrf.mxu1  ;;  %v6233_v11 = vpop.f32.mrf.mxu0  ;;  %8419 = vmatpush1.bf16.msra.mxu1 %v14451_v19  ;;  %8552 = vmatpush1.bf16.msra.mxu0 %v14454_v27  ;;  %v14481_v37 = vld [vmem:[%s23603_s4 + $0x590] ss:$12 sps:$4 sm:$0xff]  }
 0x5d1   :  { %24941 = vst [vmem:[#allocation20_spill] sm:$0xff] %v20723_v12  ;;  %8420 = vmatprep.subr.bf16.mxu1 %v14457_v47  ;;  %8553 = vmatprep.subr.bf16.mxu0 %v24736_v49  ;;  %v14459_v12 = vld [vmem:[%s23603_s4 + $0x4c8] ss:$12 sps:$4 sm:$0xff]   ;;  %v14462_v47 = vld [vmem:[%s23603_s4 + $0x4d0] ss:$12 sps:$4 sm:$0xff]  }
 0x5d2   :  { %v20735_v30 = vpop.f32.mrf.mxu1  ;;  %v20737_v11 = vpop.f32.mrf.mxu0 }
 0x5d3   :  { %24942 = vst [vmem:[#allocation97_spill] sm:$0xff] %v20735_v30  ;;  %24943 = vst [vmem:[#allocation69_spill] sm:$0xff] %v20737_v11  ;;  %v14465_v11 = vld [vmem:[%s23603_s4 + $0x4b4] ss:$12 sps:$4 sm:$0xff]  }
 0x5d4   :  { %v20739_v19 = vpop.f32.mrf.mxu1  ;;  %v6236_v27 = vpop.f32.mrf.mxu0  ;;  %8421 = vmatpush1.bf16.msra.mxu1 %v14455_v14  ;;  %8554 = vmatpush1.bf16.msra.mxu0 %v14458_v42  ;;  %v12380_v42 = vld [vmem:[%s23603_s4 + $0x5d0] sm:$0xff] }
 0x5d5   :  { %24944 = vst [vmem:[#allocation56_spill] sm:$0xff] %v20739_v19  ;;  %8422 = vmatprep.subr.bf16.mxu1 %v14461_v46  ;;  %8555 = vmatprep.subr.bf16.mxu0 %v24736_v49  ;;  %v14463_v19 = vld [vmem:[%s23603_s4 + $0x4b0] ss:$12 sps:$4 sm:$0xff]  }
 0x5d6   :  { %v20751_v30 = vpop.f32.mrf.mxu1  ;;  %v20753_v27 = vpop.f32.mrf.mxu0  ;;  %7828 = vmatmul.mubr.bf16.gmra.mxu1 %v20051_v43  ;;  %7955 = vmatmul.mubr.bf16.gmra.mxu0 %v20051_v43  ;;  %v14466_v43 = vld [vmem:[%s23603_s4 + $0x4b8] ss:$12 sps:$4 sm:$0xff]  }
 0x5d7   :  { %24945 = vst [vmem:[#allocation63_spill] sm:$0xff] %v20751_v30  ;;  %24946 = vst [vmem:[#allocation24_spill] sm:$0xff] %v20753_v27  ;;  %12316 = vmatprep.mubr.msk.bf16.mxu1 %vm5959_vm7, %v20076_v21  ;;  %12326 = vmatprep.mubr.msk.bf16.mxu0 %vm5959_vm7, %v20076_v21  ;;  %v12419_v27 = vcombine.high %v12380_v42, %v12380_v42  ;;  %v12418_v30 = vcombine.low %v12380_v42, %v12380_v42  ;;  %v14469_v21 = vld [vmem:[%s23603_s4 + $0x5d8] ss:$0 sps:$4 sm:$0xff]  }
 0x5d8   :  { %v20764_v14 = vpop.f32.mrf.mxu1  ;;  %v6241_v46 = vpop.f32.mrf.mxu0  ;;  %8423 = vmatpush1.bf16.msra.mxu1 %v14459_v12  ;;  %8556 = vmatpush1.bf16.msra.mxu0 %v14462_v47  ;;  %v8408_v42 = vsel %vm5990_vm5, %v14469_v21, 0 }
 0x5d9   :  { %24947 = vst [vmem:[#allocation81_spill] sm:$0xff] %v20764_v14  ;;  %8424 = vmatprep.subr.bf16.mxu1 %v14465_v11  ;;  %8557 = vmatprep.subr.bf16.mxu0 %v24736_v49  ;;  %v8402_v11 = vsel %vm5990_vm5, %v12418_v30, 0 }
 0x5da   :  { %v20776_v46 = vpop.f32.mrf.mxu1  ;;  %v20778_v12 = vpop.f32.mrf.mxu0 }
 0x5db   :  { %24948 = vst [vmem:[#allocation57_spill] sm:$0xff] %v20776_v46  ;;  %24949 = vst [vmem:[#allocation22_spill] sm:$0xff] %v20778_v12 }
 0x5dc   :  { %v20780_v47 = vpop.f32.mrf.mxu1  ;;  %v6244_v14 = vpop.f32.mrf.mxu0  ;;  %8425 = vmatpush1.bf16.msra.mxu1 %v14463_v19  ;;  %8558 = vmatpush1.bf16.msra.mxu0 %v14466_v43 }
 0x5dd   :  { %24950 = vst [vmem:[#allocation59_spill] sm:$0xff] %v20780_v47  ;;  %12421 = vmatprep.subr.msk.bf16.mxu1 %vm5990_vm5, %v12419_v27  ;;  %8565 = vmatprep.subr.bf16.mxu0 %v24736_v49  ;;  %v14470_v27 = vld [vmem:[%s23603_s4 + $0x5b8] ss:$12 sps:$4 sm:$0xff]   ;;  %v14473_v14 = vld [vmem:[%s23603_s4 + $0x5c0] ss:$12 sps:$4 sm:$0xff]  }
 0x5de   :  { %v20789_v46 = vpop.f32.mrf.mxu1  ;;  %v20791_v12 = vpop.f32.mrf.mxu0  ;;  %7838 = vmatmul.mubr.bf16.gmra.mxu1 %v20111_v5  ;;  %7963 = vmatmul.mubr.bf16.gmra.mxu0 %v20111_v5  ;;  %v14476_v5 = vld [vmem:[%s23603_s4 + $0x5a4] ss:$12 sps:$4 sm:$0xff]  }
 0x5df   :  { %12317 = vmatprep.mubr.msk.bf16.mxu1 %vm5959_vm7, %v20125_v34  ;;  %12327 = vmatprep.mubr.msk.bf16.mxu0 %vm5959_vm7, %v20125_v34 }
 0x5e0   :  { %v20799_v30 = vpop.f32.mrf.mxu1  ;;  %v6644_v19 = vpop.f32.mrf.mxu0  ;;  %8433 = vmatpush2.bf16.msra.mxu1 %v8402_v11  ;;  %8566 = vmatpush2.bf16.msra.mxu0 %v8408_v42  ;;  %v14474_v42 = vld [vmem:[%s23603_s4 + $0x5a0] ss:$12 sps:$4 sm:$0xff]  }
 0x5e1   :  { %8434 = vmatprep.subr.bf16.mxu1 %v14472_v62  ;;  %8567 = vmatprep.subr.bf16.mxu0 %v24736_v49  ;;  %v14477_v62 = vld [vmem:[%s23603_s4 + $0x5a8] ss:$12 sps:$4 sm:$0xff]   ;;  %v14480_v19 = vld [vmem:[%s23603_s4 + $0x58c] ss:$12 sps:$4 sm:$0xff]  }
 0x5e2   :  { %v20811_v34 = vpop.f32.mrf.mxu1  ;;  %v20813_v43 = vpop.f32.mrf.mxu0 }
 0x5e4   :  { %v20815_v21 = vpop.f32.mrf.mxu1  ;;  %v6647_v11 = vpop.f32.mrf.mxu0  ;;  %8435 = vmatpush2.bf16.msra.mxu1 %v14470_v27  ;;  %8568 = vmatpush2.bf16.msra.mxu0 %v14473_v14 }
 0x5e5   :  { %8436 = vmatprep.subr.bf16.mxu1 %v14476_v5  ;;  %8569 = vmatprep.subr.bf16.mxu0 %v24736_v49  ;;  %v14478_v5 = vld [vmem:[%s23603_s4 + $0x588] ss:$12 sps:$4 sm:$0xff]  }
 0x5e6   :  { %v20827_v47 = vpop.f32.mrf.mxu1  ;;  %v20829_v11 = vpop.f32.mrf.mxu0  ;;  %7848 = vmatmul.mubr.bf16.gmra.mxu1 %v20142_v10  ;;  %7971 = vmatmul.mubr.bf16.gmra.mxu0 %v20142_v10  ;;  %v14484_v10 = vld [vmem:[%s23603_s4 + $0x574] ss:$12 sps:$4 sm:$0xff]  }
 0x5e7   :  { %12318 = vmatprep.mubr.msk.bf16.mxu1 %vm5959_vm7, %v20145_v60  ;;  %12328 = vmatprep.mubr.msk.bf16.mxu0 %vm5959_vm7, %v20145_v60 }
 0x5e8   :  { %v20837_v27 = vpop.f32.mrf.mxu1  ;;  %v6652_v14 = vpop.f32.mrf.mxu0  ;;  %8437 = vmatpush2.bf16.msra.mxu1 %v14474_v42  ;;  %8570 = vmatpush2.bf16.msra.mxu0 %v14477_v62 }
 0x5e9   :  { %8438 = vmatprep.subr.bf16.mxu1 %v14480_v19  ;;  %8571 = vmatprep.subr.bf16.mxu0 %v24736_v49  ;;  %v14485_v19 = vld [vmem:[%s23603_s4 + $0x578] ss:$12 sps:$4 sm:$0xff]  }
 0x5ea   :  { %v20849_v60 = vpop.f32.mrf.mxu1  ;;  %v20851_v14 = vpop.f32.mrf.mxu0 }
 0x5ec   :  { %v20853_v42 = vpop.f32.mrf.mxu1  ;;  %v6655_v62 = vpop.f32.mrf.mxu0  ;;  %8439 = vmatpush2.bf16.msra.mxu1 %v14478_v5  ;;  %8572 = vmatpush2.bf16.msra.mxu0 %v14481_v37 }
 0x5ed   :  { %8440 = vmatprep.subr.bf16.mxu1 %v14484_v10  ;;  %8573 = vmatprep.subr.bf16.mxu0 %v24736_v49 }
 0x5ee   :  { %v20862_v1 = vpop.f32.mrf.mxu1  ;;  %v20864_v53 = vpop.f32.mrf.mxu0  ;;  %7858 = vmatmul.mubr.bf16.gmra.mxu1 %v20148_v29  ;;  %7979 = vmatmul.mubr.bf16.gmra.mxu0 %v20148_v29 }
 0x5ef   :  { %12319 = vmatprep.mubr.msk.bf16.mxu1 %vm5959_vm7, %v20155_v3  ;;  %12329 = vmatprep.mubr.msk.bf16.mxu0 %vm5959_vm7, %v20155_v3 }
 0x5f0   :  { %v20872_v37 = vpop.f32.mrf.mxu1  ;;  %v6660_v5 = vpop.f32.mrf.mxu0  ;;  %8441 = vmatpush2.bf16.msra.mxu1 %v14482_v32  ;;  %8574 = vmatpush2.bf16.msra.mxu0 %v14485_v19 }
 0x5f1   :  { %10149 = vmatprep.subr.bf16.mxu0 %v24736_v49 }
 0x5f2   :  { %v20875_v10 = vpop.f32.mrf.mxu1  ;;  %v20877_v62 = vpop.f32.mrf.mxu0 }
 0x5f4   :  { %v20879_v7 = vpop.f32.mrf.mxu1  ;;  %v6663_v29 = vpop.f32.mrf.mxu0 }
 0x5f5   :  { %24951 = vst [vmem:[#allocation99_spill] sm:$0xff] %v20879_v7 }
 0x5f6   :  { %v20881_v58 = vpop.f32.mrf.mxu1  ;;  %v20883_v31 = vpop.f32.mrf.mxu0  ;;  %7868 = vmatmul.mubr.bf16.gmra.mxu1 %v20164_v24  ;;  %7987 = vmatmul.mubr.bf16.gmra.mxu0 %v20164_v24 }
 0x5f7   :  { %12320 = vmatprep.mubr.msk.bf16.mxu1 %vm5959_vm7, %v20168_v33  ;;  %12330 = vmatprep.mubr.msk.bf16.mxu0 %vm5959_vm7, %v20168_v33 }
 0x5f8   :  { %v20891_v3 = vpop.f32.mrf.mxu1  ;;  %v6668_v32 = vpop.f32.mrf.mxu0 }
 0x5fa   :  { %v20893_v19 = vpop.f32.mrf.mxu1  ;;  %v20895_v5 = vpop.f32.mrf.mxu0 }
 0x5fb   :  { %24952 = vst [vmem:[#allocation58_spill] sm:$0xff] %v20895_v5 }
 0x5fc   :  { %v20897_v29 = vpop.f32.mrf.mxu1  ;;  %v6671_v49 = vpop.f32.mrf.mxu0 }
 0x5fd   :  { %24953 = vst [vmem:[#allocation25_spill] sm:$0xff] %v20897_v29  ;;  %v8127_v29 = vrot.slane %v19568_v55, 2 }
 0x5fe   :  { %v20899_v7 = vpop.f32.mrf.mxu1  ;;  %v20901_v16 = vpop.f32.mrf.mxu0  ;;  %7878 = vmatmul.mubr.bf16.gmra.mxu1 %v20172_v51  ;;  %7995 = vmatmul.mubr.bf16.gmra.mxu0 %v20172_v51  ;;  %v8126_v51 = vrot.slane %v24902_v22, 2  ;;  %v8124_v22 = vrot.slane %v19560_v45, 2 }
 0x5ff   :  { %24954 = vst [vmem:[#allocation21_spill] sm:$0xff] %v20899_v7  ;;  %24955 = vst [vmem:[#allocation27_spill] sm:$0xff] %v20901_v16  ;;  %12321 = vmatprep.mubr.msk.bf16.mxu1 %vm5959_vm7, %v20157_v26  ;;  %12331 = vmatprep.mubr.msk.bf16.mxu0 %vm5959_vm7, %v20157_v26 }
 0x600   :  { %v20909_v24 = vpop.f32.mrf.mxu1  ;;  %v6676_v33 = vpop.f32.mrf.mxu0  ;;  %v8128_v26 = vsel %vm8122_vm10, %v8126_v51, %v8127_v29 }
 0x602   :  { %v20911_v32 = vpop.f32.mrf.mxu1  ;;  %v20913_v49 = vpop.f32.mrf.mxu0 }
 0x603   :  { %24956 = vst [vmem:[#allocation100_spill] sm:$0xff] %v20911_v32  ;;  %24957 = vst [vmem:[#allocation23_spill] sm:$0xff] %v20913_v49 }
 0x604   :  { %v20916_v2 = vpop.f32.mrf.mxu1  ;;  %v6679_v16 = vpop.f32.mrf.mxu0 }
 0x605   :  { %24958 = vst [vmem:[#allocation101_spill] sm:$0xff] %v20916_v2 }
 0x606   :  { %v20919_v7 = vpop.f32.mrf.mxu1  ;;  %v20921_v5 = vpop.f32.mrf.mxu0  ;;  %7888 = vmatmul.mubr.bf16.gmra.mxu1 %v20159_v56  ;;  %8003 = vmatmul.mubr.bf16.gmra.mxu0 %v20159_v56 }
 0x607   :  { %24959 = vst [vmem:[#allocation60_spill] sm:$0xff] %v20919_v7  ;;  %24960 = vst [vmem:[#allocation18_spill] sm:$0xff] %v20921_v5  ;;  %12422 = vmatprep.mubr.msk.bf16.mxu1 %vm5959_vm7, %v8128_v26  ;;  %12432 = vmatprep.mubr.msk.bf16.mxu0 %vm5959_vm7, %v8128_v26  ;;  %v8131_v5 = vrot.slane %v19615_v4, 2  ;;  %v8123_v7 = vrot.slane %v24903_v15, 2 }
 0x608   :  { %v20928_v55 = vpop.f32.mrf.mxu1  ;;  %v6684_v16 = vpop.f32.mrf.mxu0 }
 0x609   :  { %v8125_v49 = vsel %vm8122_vm10, %v8123_v7, %v8124_v22  ;;  %v8132_v45 = vsel %vm8122_vm10, %v8127_v29, %v8131_v5  ;;  %v8129_v16 = vrot.slane %v19600_v8, 2 }
 0x60a   :  { %v20931_v33 = vpop.f32.mrf.mxu1  ;;  %v20933_v2 = vpop.f32.mrf.mxu0 }
 0x60b   :  { %24961 = vst [vmem:[#allocation30_spill] sm:$0xff] %v20933_v2  ;;  %v8130_v29 = vsel %vm8122_vm10, %v8124_v22, %v8129_v16 }
 0x60c   :  { %v20937_v56 = vpop.f32.mrf.mxu1  ;;  %v6687_v51 = vpop.f32.mrf.mxu0 }
 0x60d   :  { %24962 = vst [vmem:[#allocation102_spill] sm:$0xff] %v20937_v56  ;;  %v8135_v56 = vrot.slane %v19728_v25, 2 }
 0x60e   :  { %v20940_v32 = vpop.f32.mrf.mxu1  ;;  %v20942_v26 = vpop.f32.mrf.mxu0  ;;  %8443 = vmatmul.mubr.bf16.vlgmr.msra.gmra.mxu1 %v8125_v49  ;;  %8576 = vmatmul.mubr.bf16.vlgmr.msra.gmra.mxu0 %v8125_v49 }
 0x60f   :  { %24963 = vst [vmem:[#allocation103_spill] sm:$0xff] %v20940_v32  ;;  %24964 = vst [vmem:[#allocation29_spill] sm:$0xff] %v20942_v26  ;;  %12423 = vmatprep.mubr.msk.bf16.mxu1 %vm5959_vm7, %v8132_v45  ;;  %12433 = vmatprep.mubr.msk.bf16.mxu0 %vm5959_vm7, %v8132_v45  ;;  %v8136_v45 = vsel %vm8122_vm10, %v8131_v5, %v8135_v56 }
 0x610   :  { %v20947_v4 = vpop.f32.mrf.mxu1  ;;  %v6692_v15 = vpop.f32.mrf.mxu0 }
 0x611   :  { %v8133_v15 = vrot.slane %v19704_v6, 2 }
 0x612   :  { %v20950_v51 = vpop.f32.mrf.mxu1  ;;  %v20952_v7 = vpop.f32.mrf.mxu0 }
 0x613   :  { %24965 = vst [vmem:[#allocation3_spill] sm:$0xff] %v20952_v7  ;;  %v8134_v5 = vsel %vm8122_vm10, %v8129_v16, %v8133_v15 }
 0x614   :  { %v20955_v26 = vpop.f32.mrf.mxu1  ;;  %v6695_v49 = vpop.f32.mrf.mxu0 }
 0x615   :  { %24966 = vst [vmem:[#allocation85_spill] sm:$0xff] %v20955_v26  ;;  %v8139_v26 = vrot.slane %v19826_v41, 2 }
 0x616   :  { %v20958_v32 = vpop.f32.mrf.mxu1  ;;  %v20960_v2 = vpop.f32.mrf.mxu0  ;;  %8453 = vmatmul.mubr.bf16.gmra.mxu1 %v8130_v29  ;;  %8584 = vmatmul.mubr.bf16.gmra.mxu0 %v8130_v29 }
 0x617   :  { %24967 = vst [vmem:[#allocation42_spill] sm:$0xff] %v20958_v32  ;;  %24968 = vst [vmem:[#allocation5_spill] sm:$0xff] %v20960_v2  ;;  %12424 = vmatprep.mubr.msk.bf16.mxu1 %vm5959_vm7, %v8136_v45  ;;  %12434 = vmatprep.mubr.msk.bf16.mxu0 %vm5959_vm7, %v8136_v45  ;;  %v8140_v45 = vsel %vm8122_vm10, %v8135_v56, %v8139_v26 }
 0x618   :  { %v20965_v8 = vpop.f32.mrf.mxu1  ;;  %v6700_v25 = vpop.f32.mrf.mxu0 }
 0x619   :  { %v8137_v25 = vrot.slane %v19802_v17, 2 }
 0x61a   :  { %v20968_v49 = vpop.f32.mrf.mxu1  ;;  %v20970_v22 = vpop.f32.mrf.mxu0 }
 0x61b   :  { %24969 = vst [vmem:[#allocation4_spill] sm:$0xff] %v20970_v22  ;;  %v8138_v56 = vsel %vm8122_vm10, %v8133_v15, %v8137_v25 }
 0x61c   :  { %v20973_v2 = vpop.f32.mrf.mxu1  ;;  %v6703_v29 = vpop.f32.mrf.mxu0 }
 0x61d   :  { %24970 = vst [vmem:[#allocation86_spill] sm:$0xff] %v20973_v2  ;;  %v8143_v2 = vrot.slane %v19898_v38, 2 }
 0x61e   :  { %v20976_v32 = vpop.f32.mrf.mxu1  ;;  %v20978_v7 = vpop.f32.mrf.mxu0  ;;  %8463 = vmatmul.mubr.bf16.gmra.mxu1 %v8134_v5  ;;  %8592 = vmatmul.mubr.bf16.gmra.mxu0 %v8134_v5 }
 0x61f   :  { %24971 = vst [vmem:[#allocation93_spill] sm:$0xff] %v20976_v32  ;;  %24972 = vst [vmem:[#allocation53_spill] sm:$0xff] %v20978_v7  ;;  %12425 = vmatprep.mubr.msk.bf16.mxu1 %vm5959_vm7, %v8140_v45  ;;  %12435 = vmatprep.mubr.msk.bf16.mxu0 %vm5959_vm7, %v8140_v45  ;;  %v8144_v45 = vsel %vm8122_vm10, %v8139_v26, %v8143_v2  ;;  %v6510_v26 = vadd.f32 %v20789_v46, %v20461_v35 }
 0x620   :  { %v20983_v6 = vpop.f32.mrf.mxu1  ;;  %v6708_v41 = vpop.f32.mrf.mxu0  ;;  %v6514_v46 = vadd.f32 %v20811_v34, %v20484_v18  ;;  %v6651_v34 = vadd.f32 %v20829_v11, %v20503_v36  ;;  %v24980_v11 = vld [vmem:[#allocation61_spill] sm:$0xff] }
 0x621   :  { %v8141_v41 = vrot.slane %v19883_v0, 2 }
 0x622   :  { %v20986_v29 = vpop.f32.mrf.mxu1  ;;  %v20988_v16 = vpop.f32.mrf.mxu0 }
 0x624   :  { %v20991_v7 = vpop.f32.mrf.mxu1  ;;  %v6711_v5 = vpop.f32.mrf.mxu0 }
 0x625   :  { %24973 = vst [vmem:[#allocation70_spill] sm:$0xff] %v20991_v7  ;;  %v8147_v7 = vrot.slane %v19979_v28, 2  ;;  %v6512_v28 = vadd.f32 %v20799_v30, %v20470_v63  ;;  %v8145_v63 = vrot.slane %v19955_v48, 2 }
 0x626   :  { %v20994_v32 = vpop.f32.mrf.mxu1  ;;  %v20996_v22 = vpop.f32.mrf.mxu0  ;;  %8473 = vmatmul.mubr.bf16.gmra.mxu1 %v8138_v56  ;;  %8600 = vmatmul.mubr.bf16.gmra.mxu0 %v8138_v56 }
 0x627   :  { %24974 = vst [vmem:[#allocation13_spill] sm:$0xff] %v20994_v32  ;;  %24975 = vst [vmem:[#allocation17_spill] sm:$0xff] %v20996_v22  ;;  %12426 = vmatprep.mubr.msk.bf16.mxu1 %vm5959_vm7, %v8144_v45  ;;  %12436 = vmatprep.mubr.msk.bf16.mxu0 %vm5959_vm7, %v8144_v45  ;;  %v6643_v45 = vadd.f32 %v20791_v12, %v20463_v50  ;;  %v8148_v0 = vsel %vm8122_vm10, %v8143_v2, %v8147_v7 }
 0x628   :  { %v21001_v17 = vpop.f32.mrf.mxu1  ;;  %v6716_v38 = vpop.f32.mrf.mxu0  ;;  %v6646_v12 = vadd.f32 %v20813_v43, %v20486_v44  ;;  %v6520_v44 = vadd.f32 %v20827_v47, %v20501_v61  ;;  %v8146_v43 = vsel %vm8122_vm10, %v8141_v41, %v8145_v63  ;;  %v6524_v47 = vadd.f32 %v20849_v60, %v20519_v9  ;;  %v24983_v60 = vld [vmem:[#allocation48_spill] sm:$0xff] }
 0x629   :  { %24976 = vst [vmem:[#allocation47_spill] sm:$0xff] %v21001_v17  ;;  %v8142_v17 = vsel %vm8122_vm10, %v8137_v25, %v8141_v41  ;;  %v6654_v41 = vadd.f32 %v20851_v14, %v24980_v11  ;;  %v6530_v14 = vadd.f32 %v20862_v1, %v24983_v60  ;;  %v24987_v11 = vld [vmem:[#allocation44_spill] sm:$0xff]  ;;  %v24988_v60 = vld [vmem:[#allocation75_spill] sm:$0xff] }
 0x62a   :  { %v21004_v5 = vpop.f32.mrf.mxu1  ;;  %v21006_v15 = vpop.f32.mrf.mxu0 }
 0x62b   :  { %24977 = vst [vmem:[#allocation34_spill] sm:$0xff] %v21006_v15 }
 0x62c   :  { %v21009_v22 = vpop.f32.mrf.mxu1  ;;  %v6719_v56 = vpop.f32.mrf.mxu0 }
 0x62d   :  { %24978 = vst [vmem:[#allocation31_spill] sm:$0xff] %v21009_v22 }
 0x62e   :  { %v7114_v38 = vpop.f32.mrf.mxu1  ;;  %v7247_v32 = vpop.f32.mrf.mxu0  ;;  %8483 = vmatmul.mubr.bf16.gmra.mxu1 %v8142_v17  ;;  %8608 = vmatmul.mubr.bf16.gmra.mxu0 %v8142_v17  ;;  %v6516_v17 = vadd.f32 %v20815_v21, %v20488_v54  ;;  %v6522_v21 = vadd.f32 %v20837_v27, %v20512_v40 }
 0x62f   :  { %v21019_v15 = vadd.f32 %v7114_v38, %v6510_v26  ;;  %v21021_v56 = vadd.f32 %v7247_v32, %v6643_v45  ;;  %12427 = vmatprep.mubr.msk.bf16.mxu1 %vm5959_vm7, %v8148_v0  ;;  %12437 = vmatprep.mubr.msk.bf16.mxu0 %vm5959_vm7, %v8148_v0  ;;  %v8151_v32 = vrot.slane %v20057_v13, 2 }
 0x630   :  { %v7116_v35 = vpop.f32.mrf.mxu1  ;;  %v7249_v50 = vpop.f32.mrf.mxu0 }
 0x631   :  { %v21029_v2 = vadd.f32 %v7116_v35, %v6512_v28  ;;  %v8152_v54 = vsel %vm8122_vm10, %v8147_v7, %v8151_v32  ;;  %v24981_v50 = vld [vmem:[#allocation10_spill] sm:$0xff] }
 0x632   :  { %v7118_v30 = vpop.f32.mrf.mxu1  ;;  %v7250_v25 = vpop.f32.mrf.mxu0  ;;  %v8149_v40 = vrot.slane %v24981_v50, 2 }
 0x633   :  { %v21035_v26 = vadd.f32 %v7118_v30, %v6514_v46  ;;  %v21037_v45 = vadd.f32 %v7250_v25, %v6646_v12  ;;  %v8155_v12 = vrot.slane %v20101_v52, 2  ;;  %v24982_v30 = vld [vmem:[#allocation78_spill] sm:$0xff] }
 0x634   :  { %v7120_v38 = vpop.f32.mrf.mxu1  ;;  %v7252_v18 = vpop.f32.mrf.mxu0  ;;  %v6526_v25 = vadd.f32 %v20853_v42, %v24982_v30 }
 0x635   :  { %v21043_v48 = vadd.f32 %v7120_v38, %v6516_v17  ;;  %v8156_v42 = vsel %vm8122_vm10, %v8151_v32, %v8155_v12 }
 0x636   :  { %v7124_v13 = vpop.f32.mrf.mxu1  ;;  %v7255_v0 = vpop.f32.mrf.mxu0  ;;  %8493 = vmatmul.mubr.bf16.gmra.mxu1 %v8146_v43  ;;  %8616 = vmatmul.mubr.bf16.gmra.mxu0 %v8146_v43 }
 0x637   :  { %24979 = vst [vmem:[#allocation32_spill] sm:$0xff] %v21043_v48  ;;  %v21049_v28 = vadd.f32 %v7124_v13, %v6520_v44  ;;  %v21051_v35 = vadd.f32 %v7255_v0, %v6651_v34  ;;  %12428 = vmatprep.mubr.msk.bf16.mxu1 %vm5959_vm7, %v8152_v54  ;;  %12438 = vmatprep.mubr.msk.bf16.mxu0 %vm5959_vm7, %v8152_v54  ;;  %v24984_v44 = vld [vmem:[#allocation43_spill] sm:$0xff]  ;;  %v24985_v54 = vld [vmem:[#allocation62_spill] sm:$0xff] }
 0x638   :  { %v7126_v61 = vpop.f32.mrf.mxu1  ;;  %v7257_v36 = vpop.f32.mrf.mxu0  ;;  %v6659_v34 = vadd.f32 %v20864_v53, %v24984_v44  ;;  %v8150_v13 = vsel %vm8122_vm10, %v8145_v63, %v8149_v40  ;;  %v24986_v63 = vld [vmem:[#allocation82_spill] sm:$0xff] }
 0x639   :  { %v21059_v7 = vadd.f32 %v7126_v61, %v6522_v21  ;;  %v6532_v21 = vadd.f32 %v20872_v37, %v24985_v54  ;;  %v8153_v37 = vrot.slane %v20096_v39, 2  ;;  %v24991_v54 = vld [vmem:[#allocation94_spill] sm:$0xff] }
 0x63a   :  { %v7128_v27 = vpop.f32.mrf.mxu1  ;;  %v7258_v46 = vpop.f32.mrf.mxu0 }
 0x63b   :  { %v21065_v17 = vadd.f32 %v7128_v27, %v6524_v47  ;;  %v21067_v38 = vadd.f32 %v7258_v46, %v6654_v41  ;;  %v6534_v47 = vadd.f32 %v20875_v10, %v24986_v63  ;;  %v6662_v41 = vadd.f32 %v20877_v62, %v24987_v11 }
 0x63c   :  { %v7130_v18 = vpop.f32.mrf.mxu1  ;;  %v7260_v9 = vpop.f32.mrf.mxu0  ;;  %v8159_v46 = vrot.slane %v20131_v20, 2  ;;  %v6540_v10 = vadd.f32 %v20881_v58, %v20580_v57  ;;  %v6667_v62 = vadd.f32 %v20883_v31, %v24988_v60  ;;  %v6544_v31 = vadd.f32 %v20893_v19, %v20590_v59  ;;  %v24994_v59 = vld [vmem:[#allocation77_spill] sm:$0xff]  ;;  %v24995_v19 = vld [vmem:[#allocation27_spill] sm:$0xff] }
 0x63d   :  { %v21073_v43 = vadd.f32 %v7130_v18, %v6526_v25 }
 0x63e   :  { %v7134_v52 = vpop.f32.mrf.mxu1  ;;  %v7263_v0 = vpop.f32.mrf.mxu0  ;;  %8503 = vmatmul.mubr.bf16.gmra.mxu1 %v8150_v13  ;;  %8624 = vmatmul.mubr.bf16.gmra.mxu0 %v8150_v13  ;;  %v8160_v20 = vsel %vm8122_vm10, %v8155_v12, %v8159_v46 }
 0x63f   :  { %v21079_v61 = vadd.f32 %v7134_v52, %v6530_v14  ;;  %v21081_v36 = vadd.f32 %v7263_v0, %v6659_v34  ;;  %12429 = vmatprep.mubr.msk.bf16.mxu1 %vm5959_vm7, %v8156_v42  ;;  %12439 = vmatprep.mubr.msk.bf16.mxu0 %vm5959_vm7, %v8156_v42  ;;  %v8154_v14 = vsel %vm8122_vm10, %v8149_v40, %v8153_v37  ;;  %v24989_v34 = vld [vmem:[#allocation46_spill] sm:$0xff] }
 0x640   :  { %v7136_v53 = vpop.f32.mrf.mxu1  ;;  %v7265_v1 = vpop.f32.mrf.mxu0  ;;  %v6542_v13 = vadd.f32 %v20891_v3, %v24989_v34  ;;  %v24990_v40 = vld [vmem:[#allocation58_spill] sm:$0xff]  ;;  %v8157_v3 = vrot.slane %v24991_v54, 2 }
 0x641   :  { %v21089_v32 = vadd.f32 %v7136_v53, %v6532_v21  ;;  %v6670_v42 = vadd.f32 %v24990_v40, %v20592_v23 }
 0x642   :  { %v7138_v50 = vpop.f32.mrf.mxu1  ;;  %v7266_v27 = vpop.f32.mrf.mxu0  ;;  %v8158_v23 = vsel %vm8122_vm10, %v8153_v37, %v8157_v3 }
 0x643   :  { %v21093_v30 = vadd.f32 %v7138_v50, %v6534_v47  ;;  %v21095_v25 = vadd.f32 %v7266_v27, %v6662_v41  ;;  %v24992_v41 = vld [vmem:[#allocation68_spill] sm:$0xff]  ;;  %v24993_v50 = vld [vmem:[#allocation21_spill] sm:$0xff] }
 0x644   :  { %v21097_v18 = vpop.f32.mrf.mxu1  ;;  %v7268_v9 = vpop.f32.mrf.mxu0  ;;  %v6550_v27 = vadd.f32 %v24993_v50, %v24992_v41  ;;  %v25002_v50 = vld [vmem:[#allocation60_spill] sm:$0xff] }
 0x645   :  { %v6675_v9 = vadd.f32 %v24995_v19, %v24994_v59  ;;  %v25003_v59 = vld [vmem:[#allocation26_spill] sm:$0xff] }
 0x646   :  { %v7144_v39 = vpop.f32.mrf.mxu1  ;;  %v7271_v44 = vpop.f32.mrf.mxu0  ;;  %8513 = vmatmul.mubr.bf16.gmra.mxu1 %v8154_v14  ;;  %8632 = vmatmul.mubr.bf16.gmra.mxu0 %v8154_v14  ;;  %v25004_v19 = vld [vmem:[#allocation18_spill] sm:$0xff] }
 0x647   :  { %v21107_v52 = vadd.f32 %v7144_v39, %v6540_v10  ;;  %v21109_v0 = vadd.f32 %v7271_v44, %v6667_v62  ;;  %12430 = vmatprep.mubr.msk.bf16.mxu1 %vm5959_vm7, %v8160_v20  ;;  %12440 = vmatprep.mubr.msk.bf16.mxu0 %vm5959_vm7, %v8160_v20  ;;  %v24996_v62 = vld [vmem:[#allocation12_spill] sm:$0xff] }
 0x648   :  { %v7146_v58 = vpop.f32.mrf.mxu1  ;;  %v7273_v57 = vpop.f32.mrf.mxu0  ;;  %v6552_v14 = vadd.f32 %v20909_v24, %v24996_v62 }
 0x649   :  { %v21117_v12 = vadd.f32 %v7146_v58, %v6542_v13  ;;  %v24997_v13 = vld [vmem:[#allocation14_spill] sm:$0xff]  ;;  %v24998_v58 = vld [vmem:[#allocation100_spill] sm:$0xff] }
 0x64a   :  { %v7148_v21 = vpop.f32.mrf.mxu1  ;;  %v7274_v53 = vpop.f32.mrf.mxu0  ;;  %v6554_v37 = vadd.f32 %v24998_v58, %v24997_v13  ;;  %v24999_v57 = vld [vmem:[#allocation84_spill] sm:$0xff]  ;;  %v25006_v58 = vld [vmem:[#allocation2_spill] sm:$0xff] }
 0x64b   :  { %v21120_v1 = vadd.f32 %v7148_v21, %v6544_v31  ;;  %v21122_v63 = vadd.f32 %v7274_v53, %v6670_v42  ;;  %v25000_v31 = vld [vmem:[#allocation23_spill] sm:$0xff] }
 0x64c   :  { %v21124_v47 = vpop.f32.mrf.mxu1  ;;  %v7276_v11 = vpop.f32.mrf.mxu0  ;;  %v6678_v40 = vadd.f32 %v25000_v31, %v24999_v57  ;;  %v25007_v57 = vld [vmem:[#allocation51_spill] sm:$0xff]  ;;  %v25008_v31 = vld [vmem:[#allocation30_spill] sm:$0xff] }
 0x64e   :  { %v7154_v10 = vpop.f32.mrf.mxu1  ;;  %v7279_v60 = vpop.f32.mrf.mxu0  ;;  %8523 = vmatmul.mubr.bf16.gmra.mxu1 %v8158_v23  ;;  %8640 = vmatmul.mubr.bf16.gmra.mxu0 %v8158_v23 }
 0x64f   :  { %v21133_v39 = vadd.f32 %v7154_v10, %v6550_v27  ;;  %v21135_v44 = vadd.f32 %v7279_v60, %v6675_v9  ;;  %12431 = vmatprep.mubr.msk.bf16.mxu1 %vm5959_vm7, %v8159_v46  ;;  %12441 = vmatprep.mubr.msk.bf16.mxu0 %vm5959_vm7, %v8159_v46  ;;  %v25001_v46 = vld [vmem:[#allocation49_spill] sm:$0xff]  ;;  %v6683_v9 = vadd.f32 %v25004_v19, %v25003_v59  ;;  %v25005_v60 = vld [vmem:[#allocation50_spill] sm:$0xff]  ;;  %v25010_v59 = vld [vmem:[#allocation103_spill] sm:$0xff] }
 0x650   :  { %v7156_v20 = vpop.f32.mrf.mxu1  ;;  %v7281_v34 = vpop.f32.mrf.mxu0  ;;  %v6560_v27 = vadd.f32 %v25002_v50, %v25001_v46  ;;  %v6562_v62 = vadd.f32 %v20928_v55, %v25005_v60 }
 0x651   :  { %v21143_v42 = vadd.f32 %v7156_v20, %v6552_v14 }
 0x652   :  { %v7158_v54 = vpop.f32.mrf.mxu1  ;;  %v7282_v24 = vpop.f32.mrf.mxu0 }
 0x653   :  { %v21145_v21 = vadd.f32 %v7158_v54, %v6554_v37  ;;  %v21147_v53 = vadd.f32 %v7282_v24, %v6678_v40  ;;  %v6564_v37 = vadd.f32 %v20931_v33, %v25006_v58  ;;  %v6686_v40 = vadd.f32 %v25008_v31, %v25007_v57  ;;  %v25014_v31 = vld [vmem:[#allocation95_spill] sm:$0xff] }
 0x654   :  { %v21149_v11 = vpop.f32.mrf.mxu1  ;;  %v7284_v41 = vpop.f32.mrf.mxu0 }
 0x656   :  { %v7164_v23 = vpop.f32.mrf.mxu1  ;;  %v7287_v10 = vpop.f32.mrf.mxu0  ;;  %8533 = vmatmul.mubr.bf16.gmra.mxu1 %v8157_v3  ;;  %8648 = vmatmul.mubr.bf16.gmra.mxu0 %v8157_v3 }
 0x657   :  { %v21157_v14 = vadd.f32 %v7164_v23, %v6560_v27  ;;  %v21159_v20 = vadd.f32 %v7287_v10, %v6683_v9  ;;  %v25009_v27 = vld [vmem:[#allocation87_spill] sm:$0xff]  ;;  %v25011_v9 = vld [vmem:[#allocation88_spill] sm:$0xff]  ;;  %v25012_v23 = vld [vmem:[#allocation29_spill] sm:$0xff] }
 0x658   :  { %v7166_v34 = vpop.f32.mrf.mxu1  ;;  %v7289_v13 = vpop.f32.mrf.mxu0  ;;  %v6570_v19 = vadd.f32 %v25010_v59, %v25009_v27  ;;  %v6691_v33 = vadd.f32 %v25012_v23, %v25011_v9 }
 0x659   :  { %v21165_v54 = vadd.f32 %v7166_v34, %v6562_v62  ;;  %v25013_v13 = vld [vmem:[#allocation52_spill] sm:$0xff] }
 0x65a   :  { %v7168_v24 = vpop.f32.mrf.mxu1  ;;  %v7290_v41 = vpop.f32.mrf.mxu0  ;;  %v6572_v62 = vadd.f32 %v20947_v4, %v25013_v13  ;;  %v25022_v13 = vld [vmem:[#allocation15_spill] sm:$0xff] }
 0x65b   :  { %v21167_v3 = vadd.f32 %v7168_v24, %v6564_v37  ;;  %v21169_v46 = vadd.f32 %v7290_v41, %v6686_v40  ;;  %v6574_v40 = vadd.f32 %v20950_v51, %v25014_v31  ;;  %v25015_v24 = vld [vmem:[#allocation64_spill] sm:$0xff]  ;;  %v25016_v41 = vld [vmem:[#allocation3_spill] sm:$0xff] }
 0x65c   :  { %v21171_v55 = vpop.f32.mrf.mxu1  ;;  %v7292_v50 = vpop.f32.mrf.mxu0 }
 0x65d   :  { %v6694_v50 = vadd.f32 %v25016_v41, %v25015_v24  ;;  %v25024_v24 = vld [vmem:[#allocation36_spill] sm:$0xff] }
 0x65e   :  { %v7174_v10 = vpop.f32.mrf.mxu1  ;;  %v7295_v60 = vpop.f32.mrf.mxu0 }
 0x65f   :  { %v21179_v34 = vadd.f32 %v7174_v10, %v6570_v19  ;;  %v21181_v58 = vadd.f32 %v7295_v60, %v6691_v33  ;;  %v25020_v33 = vld [vmem:[#allocation19_spill] sm:$0xff]  ;;  %v25021_v10 = vld [vmem:[#allocation42_spill] sm:$0xff] }
 0x660   :  { %v7176_v37 = vpop.f32.mrf.mxu1  ;;  %v7297_v57 = vpop.f32.mrf.mxu0  ;;  %v6580_v60 = vadd.f32 %v25021_v10, %v25020_v33 }
 0x661   :  { %v21187_v27 = vadd.f32 %v7176_v37, %v6572_v62  ;;  %v25023_v57 = vld [vmem:[#allocation5_spill] sm:$0xff]  ;;  %v6582_v62 = vadd.f32 %v20965_v8, %v25024_v24  ;;  %v25033_v24 = vld [vmem:[#allocation79_spill] sm:$0xff] }
 0x662   :  { %v7178_v59 = vpop.f32.mrf.mxu1  ;;  %v7298_v9 = vpop.f32.mrf.mxu0  ;;  %v6699_v51 = vadd.f32 %v25023_v57, %v25022_v13 }
 0x663   :  { %v21189_v23 = vadd.f32 %v7178_v59, %v6574_v40  ;;  %v21191_v48 = vadd.f32 %v7298_v9, %v6694_v50  ;;  %v25026_v59 = vld [vmem:[#allocation98_spill] sm:$0xff] }
 0x664   :  { %v21193_v4 = vpop.f32.mrf.mxu1  ;;  %v7300_v19 = vpop.f32.mrf.mxu0  ;;  %v6584_v9 = vadd.f32 %v20968_v49, %v25026_v59 }
 0x665   :  { %25017 = vst [vmem:[#allocation35_spill] sm:$0xff] %v21189_v23  ;;  %25018 = vst [vmem:[#allocation89_spill] sm:$0xff] %v21191_v48  ;;  %v25027_v19 = vld [vmem:[#allocation96_spill] sm:$0xff] }
 0x666   :  { %25019 = vst [vmem:[#allocation91_spill] sm:$0xff] %v21193_v4  ;;  %v7184_v31 = vpop.f32.mrf.mxu1  ;;  %v7303_v22 = vpop.f32.mrf.mxu0  ;;  %v25028_v48 = vld [vmem:[#allocation4_spill] sm:$0xff] }
 0x667   :  { %v21201_v37 = vadd.f32 %v7184_v31, %v6580_v60  ;;  %v21203_v40 = vadd.f32 %v7303_v22, %v6699_v51  ;;  %v6702_v33 = vadd.f32 %v25028_v48, %v25027_v19  ;;  %v25031_v60 = vld [vmem:[#allocation45_spill] sm:$0xff]  ;;  %v25035_v48 = vld [vmem:[#allocation20_spill] sm:$0xff] }
 0x668   :  { %v7186_v41 = vpop.f32.mrf.mxu1  ;;  %v7305_v50 = vpop.f32.mrf.mxu0  ;;  %v25032_v51 = vld [vmem:[#allocation93_spill] sm:$0xff] }
 0x669   :  { %25025 = vst [vmem:[#allocation90_spill] sm:$0xff] %v21203_v40  ;;  %v21209_v10 = vadd.f32 %v7186_v41, %v6582_v62  ;;  %v6590_v31 = vadd.f32 %v25032_v51, %v25031_v60  ;;  %v25034_v50 = vld [vmem:[#allocation53_spill] sm:$0xff]  ;;  %v6592_v62 = vadd.f32 %v20983_v6, %v25035_v48  ;;  %v25045_v48 = vld [vmem:[#allocation24_spill] sm:$0xff] }
 0x66a   :  { %v7188_v13 = vpop.f32.mrf.mxu1  ;;  %v7306_v57 = vpop.f32.mrf.mxu0  ;;  %v6707_v49 = vadd.f32 %v25034_v50, %v25033_v24 }
 0x66b   :  { %v21211_v23 = vadd.f32 %v7188_v13, %v6584_v9  ;;  %v21213_v4 = vadd.f32 %v7306_v57, %v6702_v33  ;;  %v25037_v13 = vld [vmem:[#allocation97_spill] sm:$0xff] }
 0x66c   :  { %v21215_v8 = vpop.f32.mrf.mxu1  ;;  %v7308_v22 = vpop.f32.mrf.mxu0  ;;  %v6594_v57 = vadd.f32 %v20986_v29, %v25037_v13 }
 0x66d   :  { %25029 = vst [vmem:[#allocation33_spill] sm:$0xff] %v21211_v23  ;;  %25030 = vst [vmem:[#allocation66_spill] sm:$0xff] %v21213_v4  ;;  %v25038_v22 = vld [vmem:[#allocation69_spill] sm:$0xff] }
 0x66e   :  { %v7194_v59 = vpop.f32.mrf.mxu1  ;;  %v7311_v40 = vpop.f32.mrf.mxu0  ;;  %v6710_v60 = vadd.f32 %v20988_v16, %v25038_v22  ;;  %v25047_v16 = vld [vmem:[#allocation81_spill] sm:$0xff] }
 0x66f   :  { %v21223_v41 = vadd.f32 %v7194_v59, %v6590_v31  ;;  %v21225_v9 = vadd.f32 %v7311_v40, %v6707_v49  ;;  %v25043_v31 = vld [vmem:[#allocation63_spill] sm:$0xff]  ;;  %v25044_v49 = vld [vmem:[#allocation13_spill] sm:$0xff] }
 0x670   :  { %v7196_v19 = vpop.f32.mrf.mxu1  ;;  %v7313_v33 = vpop.f32.mrf.mxu0  ;;  %v6600_v59 = vadd.f32 %v25044_v49, %v25043_v31 }
 0x671   :  { %25036 = vst [vmem:[#allocation39_spill] sm:$0xff] %v21225_v9  ;;  %v21231_v51 = vadd.f32 %v7196_v19, %v6592_v62  ;;  %v25046_v33 = vld [vmem:[#allocation17_spill] sm:$0xff]  ;;  %v25048_v62 = vld [vmem:[#allocation47_spill] sm:$0xff] }
 0x672   :  { %v7198_v24 = vpop.f32.mrf.mxu1  ;;  %v7314_v50 = vpop.f32.mrf.mxu0  ;;  %v6715_v29 = vadd.f32 %v25046_v33, %v25045_v48  ;;  %v6602_v19 = vadd.f32 %v25048_v62, %v25047_v16 }
 0x673   :  { %25039 = vst [vmem:[#allocation7_spill] sm:$0xff] %v21231_v51  ;;  %v21233_v4 = vadd.f32 %v7198_v24, %v6594_v57  ;;  %v21235_v23 = vadd.f32 %v7314_v50, %v6710_v60  ;;  %v25049_v50 = vld [vmem:[#allocation57_spill] sm:$0xff] }
 0x674   :  { %v21237_v6 = vpop.f32.mrf.mxu1  ;;  %v7316_v40 = vpop.f32.mrf.mxu0 }
 0x675   :  { %25040 = vst [vmem:[#allocation54_spill] sm:$0xff] %v21233_v4  ;;  %25041 = vst [vmem:[#allocation65_spill] sm:$0xff] %v21235_v23  ;;  %v6604_v40 = vadd.f32 %v21004_v5, %v25049_v50  ;;  %v25050_v23 = vld [vmem:[#allocation22_spill] sm:$0xff] }
 0x676   :  { %25042 = vst [vmem:[#allocation6_spill] sm:$0xff] %v21237_v6  ;;  %v7204_v13 = vpop.f32.mrf.mxu1  ;;  %v7319_v9 = vpop.f32.mrf.mxu0  ;;  %v25051_v4 = vld [vmem:[#allocation34_spill] sm:$0xff] }
 0x677   :  { %v21245_v22 = vadd.f32 %v7204_v13, %v6600_v59  ;;  %v21247_v57 = vadd.f32 %v7319_v9, %v6715_v29  ;;  %v6718_v31 = vadd.f32 %v25051_v4, %v25050_v23 }
 0x678   :  { %v7206_v60 = vpop.f32.mrf.mxu1  ;;  %v7321_v24 = vpop.f32.mrf.mxu0 }
 0x679   :  { %v21253_v49 = vadd.f32 %v7206_v60, %v6602_v19 }
 0x67a   :  { %v7208_v48 = vpop.f32.mrf.mxu1  ;;  %v7322_v33 = vpop.f32.mrf.mxu0 }
 0x67b   :  { %v21255_v6 = vadd.f32 %v7208_v48, %v6604_v40  ;;  %v21257_v51 = vadd.f32 %v7322_v33, %v6718_v31 }
 0x67c   :  { %v21259_v59 = vpop.f32.mrf.mxu1  ;;  %v7324_v9 = vpop.f32.mrf.mxu0 }
 0x67e   :  { %v7799_v29 = vpop.f32.mrf.mxu1  ;;  %v7932_v13 = vpop.f32.mrf.mxu0 }
 0x67f   :  { %v21262_v16 = vadd.f32 %v7799_v29, %v21019_v15  ;;  %v21265_v5 = vadd.f32 %v7932_v13, %v21021_v56 }
 0x680   :  { %v7801_v23 = vpop.f32.mrf.mxu1  ;;  %v7934_v4 = vpop.f32.mrf.mxu0 }
 0x681   :  { %v21268_v62 = vadd.f32 %v7801_v23, %v21029_v2 }
 0x682   :  { %v7803_v19 = vpop.f32.mrf.mxu1  ;;  %v7935_v60 = vpop.f32.mrf.mxu0 }
 0x683   :  { %v21271_v24 = vadd.f32 %v7803_v19, %v21035_v26  ;;  %v21274_v50 = vadd.f32 %v7935_v60, %v21037_v45 }
 0x684   :  { %v21276_v40 = vpop.f32.mrf.mxu1  ;;  %v7937_v15 = vpop.f32.mrf.mxu0 }
 0x686   :  { %v7809_v31 = vpop.f32.mrf.mxu1  ;;  %v7940_v48 = vpop.f32.mrf.mxu0 }
 0x687   :  { %v21279_v56 = vadd.f32 %v7809_v31, %v21049_v28  ;;  %v21282_v33 = vadd.f32 %v7940_v48, %v21051_v35 }
 0x688   :  { %v7811_v2 = vpop.f32.mrf.mxu1  ;;  %v7942_v9 = vpop.f32.mrf.mxu0 }
 0x689   :  { %v21285_v29 = vadd.f32 %v7811_v2, %v21059_v7  ;;  %v25053_v2 = vld [vmem:[#allocation99_spill] sm:$0xff] }
 0x68a   :  { %v7813_v26 = vpop.f32.mrf.mxu1  ;;  %v7943_v13 = vpop.f32.mrf.mxu0 }
 0x68b   :  { %v21288_v45 = vadd.f32 %v7813_v26, %v21065_v17  ;;  %v21291_v23 = vadd.f32 %v7943_v13, %v21067_v38  ;;  %v25052_v17 = vld [vmem:[#allocation55_spill] sm:$0xff] }
 0x68c   :  { %v7815_v4 = vpop.f32.mrf.mxu1  ;;  %v7945_v19 = vpop.f32.mrf.mxu0  ;;  %v6536_v9 = vadd.f32 %v25053_v2, %v25052_v17  ;;  %v25054_v2 = vld [vmem:[#allocation83_spill] sm:$0xff] }
 0x68d   :  { %v21294_v28 = vadd.f32 %v7815_v4, %v21073_v43 }
 0x68e   :  { %v7819_v35 = vpop.f32.mrf.mxu1  ;;  %v7948_v60 = vpop.f32.mrf.mxu0  ;;  %v7342_v43 = vadd.f32 %v21097_v18, %v6536_v9 }
 0x68f   :  { %v21297_v15 = vadd.f32 %v7819_v35, %v21079_v61  ;;  %v21300_v7 = vadd.f32 %v7948_v60, %v21081_v36 }
 0x690   :  { %v7821_v31 = vpop.f32.mrf.mxu1  ;;  %v7950_v48 = vpop.f32.mrf.mxu0 }
 0x691   :  { %v21305_v38 = vadd.f32 %v7821_v31, %v21089_v32 }
 0x692   :  { %v7823_v26 = vpop.f32.mrf.mxu1  ;;  %v7951_v13 = vpop.f32.mrf.mxu0 }
 0x693   :  { %v21309_v4 = vadd.f32 %v7823_v26, %v21093_v30  ;;  %v21312_v61 = vadd.f32 %v7951_v13, %v21095_v25  ;;  %v25055_v30 = vld [vmem:[#allocation25_spill] sm:$0xff] }
 0x694   :  { %v7825_v36 = vpop.f32.mrf.mxu1  ;;  %v7953_v19 = vpop.f32.mrf.mxu0  ;;  %v6546_v9 = vadd.f32 %v25055_v30, %v25054_v2  ;;  %v25056_v30 = vld [vmem:[#allocation16_spill] sm:$0xff] }
 0x695   :  { %v21314_v35 = vadd.f32 %v7825_v36, %v7342_v43 }
 0x696   :  { %v7829_v60 = vpop.f32.mrf.mxu1  ;;  %v7956_v48 = vpop.f32.mrf.mxu0  ;;  %v7348_v43 = vadd.f32 %v21124_v47, %v6546_v9 }
 0x697   :  { %v21317_v17 = vadd.f32 %v7829_v60, %v21107_v52  ;;  %v21320_v32 = vadd.f32 %v7956_v48, %v21109_v0 }
 0x698   :  { %v7831_v31 = vpop.f32.mrf.mxu1  ;;  %v7958_v18 = vpop.f32.mrf.mxu0 }
 0x699   :  { %v21325_v25 = vadd.f32 %v7831_v31, %v21117_v12 }
 0x69a   :  { %v7833_v26 = vpop.f32.mrf.mxu1  ;;  %v7959_v13 = vpop.f32.mrf.mxu0 }
 0x69b   :  { %v21329_v36 = vadd.f32 %v7833_v26, %v21120_v1  ;;  %v21332_v52 = vadd.f32 %v7959_v13, %v21122_v63  ;;  %v25057_v1 = vld [vmem:[#allocation101_spill] sm:$0xff] }
 0x69c   :  { %v7835_v0 = vpop.f32.mrf.mxu1  ;;  %v7961_v19 = vpop.f32.mrf.mxu0  ;;  %v6556_v9 = vadd.f32 %v25057_v1, %v25056_v30  ;;  %v25058_v1 = vld [vmem:[#allocation28_spill] sm:$0xff] }
 0x69d   :  { %v21334_v60 = vadd.f32 %v7835_v0, %v7348_v43 }
 0x69e   :  { %v7839_v48 = vpop.f32.mrf.mxu1  ;;  %v7964_v18 = vpop.f32.mrf.mxu0  ;;  %v7354_v43 = vadd.f32 %v21149_v11, %v6556_v9 }
 0x69f   :  { %v21337_v2 = vadd.f32 %v7839_v48, %v21133_v39  ;;  %v21340_v12 = vadd.f32 %v7964_v18, %v21135_v44 }
 0x6a0   :  { %v7841_v31 = vpop.f32.mrf.mxu1  ;;  %v7966_v47 = vpop.f32.mrf.mxu0 }
 0x6a1   :  { %v21345_v63 = vadd.f32 %v7841_v31, %v21143_v42 }
 0x6a2   :  { %v7843_v26 = vpop.f32.mrf.mxu1  ;;  %v7967_v13 = vpop.f32.mrf.mxu0 }
 0x6a3   :  { %v21349_v0 = vadd.f32 %v7843_v26, %v21145_v21  ;;  %v21352_v39 = vadd.f32 %v7967_v13, %v21147_v53  ;;  %v25059_v21 = vld [vmem:[#allocation102_spill] sm:$0xff] }
 0x6a4   :  { %v7845_v44 = vpop.f32.mrf.mxu1  ;;  %v7969_v19 = vpop.f32.mrf.mxu0  ;;  %v6566_v9 = vadd.f32 %v25059_v21, %v25058_v1  ;;  %v25063_v21 = vld [vmem:[#allocation76_spill] sm:$0xff] }
 0x6a5   :  { %v21354_v48 = vadd.f32 %v7845_v44, %v7354_v43 }
 0x6a6   :  { %v7849_v18 = vpop.f32.mrf.mxu1  ;;  %v7972_v47 = vpop.f32.mrf.mxu0  ;;  %v7360_v43 = vadd.f32 %v21171_v55, %v6566_v9 }
 0x6a7   :  { %v21357_v30 = vadd.f32 %v7849_v18, %v21157_v14  ;;  %v21360_v42 = vadd.f32 %v7972_v47, %v21159_v20 }
 0x6a8   :  { %v7851_v31 = vpop.f32.mrf.mxu1  ;;  %v7974_v11 = vpop.f32.mrf.mxu0 }
 0x6a9   :  { %v21365_v53 = vadd.f32 %v7851_v31, %v21165_v54 }
 0x6aa   :  { %v7853_v26 = vpop.f32.mrf.mxu1  ;;  %v7975_v13 = vpop.f32.mrf.mxu0 }
 0x6ab   :  { %25060 = vst [vmem:[#allocation40_spill] sm:$0xff] %v21365_v53  ;;  %v21369_v44 = vadd.f32 %v7853_v26, %v21167_v3  ;;  %v21372_v14 = vadd.f32 %v7975_v13, %v21169_v46  ;;  %v25064_v3 = vld [vmem:[#allocation85_spill] sm:$0xff] }
 0x6ac   :  { %v7855_v20 = vpop.f32.mrf.mxu1  ;;  %v7977_v19 = vpop.f32.mrf.mxu0  ;;  %v6576_v9 = vadd.f32 %v25064_v3, %v25063_v21 }
 0x6ad   :  { %v21374_v18 = vadd.f32 %v7855_v20, %v7360_v43  ;;  %v25066_v43 = vld [vmem:[#allocation91_spill] sm:$0xff] }
 0x6ae   :  { %v7859_v47 = vpop.f32.mrf.mxu1  ;;  %v7980_v11 = vpop.f32.mrf.mxu0  ;;  %v7366_v20 = vadd.f32 %v25066_v43, %v6576_v9  ;;  %v25067_v19 = vld [vmem:[#allocation35_spill] sm:$0xff]  ;;  %v25072_v43 = vld [vmem:[#allocation80_spill] sm:$0xff] }
 0x6af   :  { %v21377_v1 = vadd.f32 %v7859_v47, %v21179_v34  ;;  %v21380_v54 = vadd.f32 %v7980_v11, %v21181_v58  ;;  %v25068_v34 = vld [vmem:[#allocation89_spill] sm:$0xff] }
 0x6b0   :  { %v7861_v31 = vpop.f32.mrf.mxu1  ;;  %v7982_v55 = vpop.f32.mrf.mxu0 }
 0x6b1   :  { %25061 = vst [vmem:[#allocation73_spill] sm:$0xff] %v21377_v1  ;;  %25062 = vst [vmem:[#allocation72_spill] sm:$0xff] %v21380_v54  ;;  %v21385_v46 = vadd.f32 %v7861_v31, %v21187_v27  ;;  %v25070_v27 = vld [vmem:[#allocation90_spill] sm:$0xff] }
 0x6b2   :  { %v7863_v26 = vpop.f32.mrf.mxu1  ;;  %v7983_v13 = vpop.f32.mrf.mxu0 }
 0x6b3   :  { %25065 = vst [vmem:[#allocation67_spill] sm:$0xff] %v21385_v46  ;;  %v21389_v53 = vadd.f32 %v7863_v26, %v25067_v19  ;;  %v21392_v47 = vadd.f32 %v7983_v13, %v25068_v34  ;;  %v25073_v26 = vld [vmem:[#allocation86_spill] sm:$0xff] }
 0x6b4   :  { %v7865_v58 = vpop.f32.mrf.mxu1  ;;  %v7985_v11 = vpop.f32.mrf.mxu0  ;;  %v6586_v19 = vadd.f32 %v25073_v26, %v25072_v43 }
 0x6b5   :  { %v21394_v54 = vadd.f32 %v7865_v58, %v7366_v20  ;;  %v25074_v58 = vld [vmem:[#allocation33_spill] sm:$0xff] }
 0x6b6   :  { %v7869_v55 = vpop.f32.mrf.mxu1  ;;  %v7988_v1 = vpop.f32.mrf.mxu0  ;;  %v7372_v20 = vadd.f32 %v21215_v8, %v6586_v19  ;;  %v25082_v19 = vld [vmem:[#allocation56_spill] sm:$0xff] }
 0x6b7   :  { %v21397_v21 = vadd.f32 %v7869_v55, %v21201_v37  ;;  %v21400_v31 = vadd.f32 %v7988_v1, %v25070_v27  ;;  %v25076_v37 = vld [vmem:[#allocation66_spill] sm:$0xff] }
 0x6b8   :  { %v7871_v3 = vpop.f32.mrf.mxu1  ;;  %v7990_v9 = vpop.f32.mrf.mxu0 }
 0x6b9   :  { %25069 = vst [vmem:[#allocation71_spill] sm:$0xff] %v21397_v21  ;;  %25071 = vst [vmem:[#allocation37_spill] sm:$0xff] %v21400_v31  ;;  %v21405_v13 = vadd.f32 %v7871_v3, %v21209_v10  ;;  %v25080_v10 = vld [vmem:[#allocation39_spill] sm:$0xff] }
 0x6ba   :  { %v7873_v34 = vpop.f32.mrf.mxu1  ;;  %v7991_v11 = vpop.f32.mrf.mxu0 }
 0x6bb   :  { %v21409_v46 = vadd.f32 %v7873_v34, %v25074_v58  ;;  %v21412_v55 = vadd.f32 %v7991_v11, %v25076_v37  ;;  %v25083_v34 = vld [vmem:[#allocation70_spill] sm:$0xff] }
 0x6bc   :  { %v7875_v1 = vpop.f32.mrf.mxu1  ;;  %v7993_v27 = vpop.f32.mrf.mxu0  ;;  %v6596_v58 = vadd.f32 %v25083_v34, %v25082_v19 }
 0x6bd   :  { %25075 = vst [vmem:[#allocation8_spill] sm:$0xff] %v21409_v46  ;;  %25077 = vst [vmem:[#allocation92_spill] sm:$0xff] %v21412_v55  ;;  %v21414_v21 = vadd.f32 %v7875_v1, %v7372_v20  ;;  %v25084_v46 = vld [vmem:[#allocation7_spill] sm:$0xff]  ;;  %v25085_v20 = vld [vmem:[#allocation6_spill] sm:$0xff] }
 0x6be   :  { %v7879_v9 = vpop.f32.mrf.mxu1  ;;  %v7996_v31 = vpop.f32.mrf.mxu0  ;;  %v7378_v1 = vadd.f32 %v25085_v20, %v6596_v58  ;;  %v25086_v55 = vld [vmem:[#allocation54_spill] sm:$0xff]  ;;  %v25090_v58 = vld [vmem:[#allocation59_spill] sm:$0xff] }
 0x6bf   :  { %25078 = vst [vmem:[#allocation74_spill] sm:$0xff] %v21414_v21  ;;  %v21417_v43 = vadd.f32 %v7879_v9, %v21223_v41  ;;  %v21420_v3 = vadd.f32 %v7996_v31, %v25080_v10  ;;  %v25088_v41 = vld [vmem:[#allocation65_spill] sm:$0xff] }
 0x6c0   :  { %v7881_v26 = vpop.f32.mrf.mxu1  ;;  %v7998_v8 = vpop.f32.mrf.mxu0 }
 0x6c1   :  { %25079 = vst [vmem:[#allocation11_spill] sm:$0xff] %v21417_v43  ;;  %25081 = vst [vmem:[#allocation41_spill] sm:$0xff] %v21420_v3  ;;  %v21425_v11 = vadd.f32 %v7881_v26, %v25084_v46 }
 0x6c2   :  { %v7883_v37 = vpop.f32.mrf.mxu1  ;;  %v7999_v27 = vpop.f32.mrf.mxu0 }
 0x6c3   :  { %v21429_v21 = vadd.f32 %v7883_v37, %v25086_v55  ;;  %v21432_v9 = vadd.f32 %v7999_v27, %v25088_v41  ;;  %v25091_v55 = vld [vmem:[#allocation31_spill] sm:$0xff] }
 0x6c4   :  { %v7885_v31 = vpop.f32.mrf.mxu1  ;;  %v8001_v10 = vpop.f32.mrf.mxu0  ;;  %v6606_v37 = vadd.f32 %v25091_v55, %v25090_v58 }
 0x6c5   :  { %25087 = vst [vmem:[#allocation9_spill] sm:$0xff] %v21429_v21  ;;  %v21434_v3 = vadd.f32 %v7885_v31, %v7378_v1 }
 0x6c6   :  { %v7889_v8 = vpop.f32.mrf.mxu1  ;;  %v8004_v43 = vpop.f32.mrf.mxu0  ;;  %v7384_v1 = vadd.f32 %v21259_v59, %v6606_v37  ;;  %v25093_v37 = vld [vmem:[#allocation32_spill] sm:$0xff] }
 0x6c7   :  { %25089 = vst [vmem:[#allocation61_spill] sm:$0xff] %v21434_v3  ;;  %v21437_v19 = vadd.f32 %v7889_v8, %v21245_v22  ;;  %v21440_v46 = vadd.f32 %v8004_v43, %v21247_v57 }
 0x6c8   :  { %v7891_v26 = vpop.f32.mrf.mxu1  ;;  %v8006_v34 = vpop.f32.mrf.mxu0 }
 0x6c9   :  { %v21445_v27 = vadd.f32 %v7891_v26, %v21253_v49 }
 0x6ca   :  { %v7893_v20 = vpop.f32.mrf.mxu1  ;;  %v8007_v41 = vpop.f32.mrf.mxu0 }
 0x6cb   :  { %v21449_v31 = vadd.f32 %v7893_v20, %v21255_v6  ;;  %v21452_v22 = vadd.f32 %v8007_v41, %v21257_v51  ;;  %v8015_v20 = vadd.f32 %v21276_v40, %v25093_v37 }
 0x6cc   :  { %v7895_v57 = vpop.f32.mrf.mxu1  ;;  %v8009_v43 = vpop.f32.mrf.mxu0 }
 0x6cd   :  { %25092 = vst [vmem:[#allocation10_spill] sm:$0xff] %v21449_v31  ;;  %v21454_v10 = vadd.f32 %v7895_v57, %v7384_v1 }
 0x6ce   :  { %v8444_v8 = vpop.f32.mrf.mxu1  ;;  %v8577_v34 = vpop.f32.mrf.mxu0 }
 0x6cf   :  { %v21457_v58 = vadd.f32 %v8444_v8, %v21262_v16  ;;  %v21460_v49 = vadd.f32 %v8577_v34, %v21265_v5  ;;  %v25094_v34 = vld [vmem:[#allocation38_spill] sm:$0xff] }
 0x6d0   :  { %v8446_v26 = vpop.f32.mrf.mxu1  ;;  %v8579_v59 = vpop.f32.mrf.mxu0 }
 0x6d1   :  { %v21463_v6 = vadd.f32 %v8446_v26, %v21268_v62  ;;  %v8728_v62 = vsub.s32 2, %v25094_v34  ;;  %v8716_v26 = vld [vmem:[%s23605_s5] sm:$0x7] }
 0x6d2   :  { %v8448_v55 = vpop.f32.mrf.mxu1  ;;  %v8580_v51 = vpop.f32.mrf.mxu0 }
 0x6d3   :  { %v21468_v41 = vadd.f32 %v8448_v55, %v21271_v24  ;;  %v21471_v1 = vadd.f32 %v8580_v51, %v21274_v50  ;;  %v25095_v50 = vsub.s32 0, %v25094_v34 }
 0x6d4   :  { %v8450_v16 = vpop.f32.mrf.mxu1  ;;  %v8582_v57 = vpop.f32.mrf.mxu0 }
 0x6d5   :  { %v21473_v5 = vadd.f32 %v8450_v16, %v8015_v20  ;;  %v21482_v51 = vrot.slane %v8716_v26, %v25095_v50  ;;  %v21484_v20 = vrot.slane %v8716_v26, %v8728_v62  ;;  %v25097_v62 = vsub.s32 1, %v25094_v34 }
 0x6d6   :  { %v8454_v43 = vpop.f32.mrf.mxu1  ;;  %v8585_v8 = vpop.f32.mrf.mxu0 }
 0x6d7   :  { %v8662_v24 = vadd.f32 %v8454_v43, %v21279_v56  ;;  %v8664_v21 = vadd.f32 %v8585_v8, %v21282_v33  ;;  %v21500_v50 = vrot.slane %v8716_v26, %v25097_v62 }
 0x6d8   :  { %v8456_v59 = vpop.f32.mrf.mxu1  ;;  %v8587_v40 = vpop.f32.mrf.mxu0 }
 0x6d9   :  { %v21492_v40 = vadd.f32 %v21482_v51, %v8662_v24  ;;  %v21507_v33 = vadd.f32 %v21484_v20, %v8664_v21 }
 0x6da   :  { %v8458_v55 = vpop.f32.mrf.mxu1  ;;  %v8588_v37 = vpop.f32.mrf.mxu0 }
 0x6db   :  { %v21487_v16 = vadd.f32 %v8458_v55, %v21288_v45  ;;  %v8667_v57 = vadd.f32 %v8588_v37, %v21291_v23  ;;  %25096 = vst [vmem:[#allocation78_spill] sm:$0xff] %v21492_v40 }
 0x6dc   :  { %v8460_v31 = vpop.f32.mrf.mxu1  ;;  %v8590_v3 = vpop.f32.mrf.mxu0 }
 0x6dd   :  { %v21495_v56 = vadd.f32 %v21484_v20, %v8667_v57  ;;  %v8666_v43 = vadd.f32 %v8460_v31, %v21294_v28  ;;  %v8663_v28 = vadd.f32 %v8456_v59, %v21285_v29 }
 0x6de   :  { %v8464_v45 = vpop.f32.mrf.mxu1  ;;  %v8593_v55 = vpop.f32.mrf.mxu0 }
 0x6df   :  { %v21504_v23 = vpack.i.bf16 %v21492_v40, %v21495_v56  ;;  %v21510_v3 = vadd.f32 %v21500_v50, %v8666_v43  ;;  %v8668_v31 = vadd.f32 %v8464_v45, %v21297_v15  ;;  %v21525_v15 = vadd.f32 %v21500_v50, %v8663_v28 }
 0x6e0   :  { %v8466_v8 = vpop.f32.mrf.mxu1  ;;  %v8595_v24 = vpop.f32.mrf.mxu0 }
 0x6e1   :  { %25098 = vst [vmem:[#allocation48_spill] sm:$0xff] %v21510_v3  ;;  %13559 = vrot.lane.b32.xlu1 %v21504_v23, %s14714_s29  ;;  %v21518_v34 = vpack.i.bf16 %v21510_v3, %v21507_v33  ;;  %25099 = vst [vmem:[#allocation43_spill] sm:$0xff] %v21525_v15  ;;  %v21528_v59 = vadd.f32 %v21482_v51, %v8668_v31  ;;  %v8670_v31 = vadd.f32 %v8593_v55, %v21300_v7 }
 0x6e2   :  { %v8468_v26 = vpop.f32.mrf.mxu1  ;;  %v8596_v37 = vpop.f32.mrf.mxu0  ;;  %v8669_v7 = vadd.f32 %v8466_v8, %v21305_v38 }
 0x6e3   :  { %v8671_v21 = vadd.f32 %v8468_v26, %v21309_v4  ;;  %v8673_v57 = vadd.f32 %v8596_v37, %v21312_v61  ;;  %13564 = vrot.lane.b32.xlu0 %v21518_v34, %s14714_s29  ;;  %25100 = vst [vmem:[#allocation62_spill] sm:$0xff] %v21528_v59 }
 0x6e4   :  { %v8470_v43 = vpop.f32.mrf.mxu1  ;;  %v8598_v29 = vpop.f32.mrf.mxu0  ;;  %v21565_v38 = vadd.f32 %v21500_v50, %v8669_v7 }
 0x6e5   :  { %v21531_v62 = vadd.f32 %v21482_v51, %v8671_v21  ;;  %v21534_v45 = vadd.f32 %v21484_v20, %v8673_v57  ;;  %v8672_v28 = vadd.f32 %v8470_v43, %v21314_v35  ;;  %v21550_v35 = vadd.f32 %v21484_v20, %v8670_v31 }
 0x6e6   :  { %v8474_v4 = vpop.f32.mrf.mxu1  ;;  %v8601_v24 = vpop.f32.mrf.mxu0 }
 0x6e7   :  { %25101 = vst [vmem:[#allocation82_spill] sm:$0xff] %v21531_v62  ;;  %v13573_v61 = vpack.i.bf16 %v21525_v15, %v21531_v62  ;;  %v13568_v26 = vpack.i.bf16 %v21528_v59, %v21534_v45  ;;  %v21545_v40 = vadd.f32 %v21500_v50, %v8672_v28  ;;  %v8674_v55 = vadd.f32 %v8474_v4, %v21317_v17 }
 0x6e8   :  { %v8476_v37 = vpop.f32.mrf.mxu1  ;;  %v8603_v29 = vpop.f32.mrf.mxu0 }
 0x6e9   :  { %13574 = vrot.lane.b32.xlu0 %v13573_v61, %s14714_s29  ;;  %13569 = vrot.lane.b32.xlu1 %v13568_v26, %s14714_s29  ;;  %v21568_v17 = vadd.f32 %v21482_v51, %v8674_v55 }
 0x6ea   :  { %v8478_v21 = vpop.f32.mrf.mxu1  ;;  %v8604_v57 = vpop.f32.mrf.mxu0 }
 0x6eb   :  { %v8677_v62 = vadd.f32 %v8478_v21, %v21329_v36  ;;  %v8679_v15 = vadd.f32 %v8604_v57, %v21332_v52  ;;  %v13593_v36 = vpack.i.bf16 %v21545_v40, %v21550_v35  ;;  %25103 = vst [vmem:[#allocation75_spill] sm:$0xff] %v21568_v17  ;;  %v8676_v57 = vadd.f32 %v8601_v24, %v21320_v32 }
 0x6ec   :  { %v8480_v59 = vpop.f32.mrf.mxu1  ;;  %v8606_v3 = vpop.f32.mrf.mxu0  ;;  %v8675_v32 = vadd.f32 %v8476_v37, %v21325_v25 }
 0x6ed   :  { %13579 = vrot.lane.b32.xlu0 %v13568_v26, %s14715_s30  ;;  %13584 = vrot.lane.b32.xlu1 %v13573_v61, %s14715_s30  ;;  %v21559_v52 = vadd.f32 %v21482_v51, %v8677_v62  ;;  %v21562_v3 = vadd.f32 %v21484_v20, %v8679_v15  ;;  %v8678_v61 = vadd.f32 %v8480_v59, %v21334_v60 }
 0x6ee   :  { %v8484_v43 = vpop.f32.mrf.mxu1  ;;  %v8609_v28 = vpop.f32.mrf.mxu0  ;;  %v21588_v59 = vadd.f32 %v21484_v20, %v8676_v57  ;;  %v21603_v25 = vadd.f32 %v21500_v50, %v8675_v32 }
 0x6ef   :  { %25102 = vst [vmem:[#allocation44_spill] sm:$0xff] %v21559_v52  ;;  %v13603_v62 = vpack.i.bf16 %v21565_v38, %v21559_v52  ;;  %v13598_v15 = vpack.i.bf16 %v21568_v17, %v21562_v3  ;;  %v8680_v24 = vadd.f32 %v8484_v43, %v21337_v2 }
 0x6f0   :  { %v8486_v29 = vpop.f32.mrf.mxu1  ;;  %v8611_v31 = vpop.f32.mrf.mxu0 }
 0x6f1   :  { %13589 = vrot.lane.b32.xlu0 %v13593_v36, %s14714_s29  ;;  %13594 = vrot.lane.b32.xlu1 %v13593_v36, %s14715_s30  ;;  %v21581_v36 = vadd.f32 %v21500_v50, %v8678_v61  ;;  %v21606_v2 = vadd.f32 %v21482_v51, %v8680_v24 }
 0x6f2   :  { %v8488_v8 = vpop.f32.mrf.mxu1  ;;  %v8612_v4 = vpop.f32.mrf.mxu0 }
 0x6f3   :  { %v8683_v31 = vadd.f32 %v8488_v8, %v21349_v0  ;;  %v8685_v52 = vadd.f32 %v8612_v4, %v21352_v39  ;;  %v13623_v0 = vpack.i.bf16 %v21581_v36, %v21588_v59  ;;  %25104 = vst [vmem:[#allocation46_spill] sm:$0xff] %v21606_v2 }
 0x6f4   :  { %v8490_v26 = vpop.f32.mrf.mxu1  ;;  %v8614_v21 = vpop.f32.mrf.mxu0 }
 0x6f5   :  { %13604 = vrot.lane.b32.xlu0 %v13603_v62, %s14714_s29  ;;  %13599 = vrot.lane.b32.xlu1 %v13598_v15, %s14714_s29  ;;  %v21597_v39 = vadd.f32 %v21482_v51, %v8683_v31  ;;  %v21600_v8 = vadd.f32 %v21484_v20, %v8685_v52  ;;  %v8682_v31 = vadd.f32 %v8609_v28, %v21340_v12 }
 0x6f6   :  { %v8494_v7 = vpop.f32.mrf.mxu1  ;;  %v8617_v55 = vpop.f32.mrf.mxu0 }
 0x6f7   :  { %v13633_v43 = vpack.i.bf16 %v21603_v25, %v21597_v39  ;;  %v13628_v52 = vpack.i.bf16 %v21606_v2, %v21600_v8  ;;  %v8686_v12 = vadd.f32 %v8494_v7, %v21357_v30 }
 0x6f8   :  { %v21585_v17 = vpop.f32.mrf.mxu1  ;;  %v8619_v60 = vpop.f32.mrf.mxu0 }
 0x6f9   :  { %13609 = vrot.lane.b32.xlu0 %v13598_v15, %s14715_s30  ;;  %13614 = vrot.lane.b32.xlu1 %v13603_v62, %s14715_s30  ;;  %v8684_v62 = vadd.f32 %v8490_v26, %v21354_v48  ;;  %v21626_v48 = vadd.f32 %v21484_v20, %v8682_v31  ;;  %v8681_v26 = vadd.f32 %v8486_v29, %v21345_v63 }
 0x6fa   :  { %v8620_v61 = vpop.f32.mrf.mxu0  ;;  %v8498_v4 = vpop.f32.mrf.mxu1  ;;  %v21648_v30 = vadd.f32 %v21482_v51, %v8686_v12  ;;  %v8688_v31 = vadd.f32 %v8617_v55, %v21360_v42  ;;  %v25106_v55 = vld [vmem:[#allocation73_spill] sm:$0xff] }
 0x6fb   :  { %v21621_v32 = vadd.f32 %v21500_v50, %v8684_v62  ;;  %v8689_v24 = vadd.f32 %v8498_v4, %v21369_v44  ;;  %v21643_v63 = vadd.f32 %v21500_v50, %v8681_v26 }
 0x6fc   :  { %v8622_v21 = vpop.f32.mrf.mxu0  ;;  %v8500_v15 = vpop.f32.mrf.mxu1 }
 0x6fd   :  { %13619 = vrot.lane.b32.xlu0 %v13623_v0, %s14714_s29  ;;  %13624 = vrot.lane.b32.xlu1 %v13623_v0, %s14715_s30  ;;  %v8691_v0 = vadd.f32 %v8620_v61, %v21372_v14  ;;  %v13653_v62 = vpack.i.bf16 %v21621_v32, %v21626_v48  ;;  %v21635_v44 = vadd.f32 %v21482_v51, %v8689_v24 }
 0x6fe   :  { %v21610_v37 = vpop.f32.mrf.mxu0  ;;  %v8504_v21 = vpop.f32.mrf.mxu1 }
 0x6ff   :  { %v21638_v14 = vadd.f32 %v21484_v20, %v8691_v0  ;;  %v13663_v7 = vpack.i.bf16 %v21643_v63, %v21635_v44 }
 0x700   :  { %v8627_v57 = vpop.f32.mrf.mxu0  ;;  %v21640_v61 = vpop.f32.mrf.mxu1 }
 0x701   :  { %13634 = vrot.lane.b32.xlu0 %v13633_v43, %s14714_s29  ;;  %13629 = vrot.lane.b32.xlu1 %v13628_v52, %s14714_s29 }
 0x702   :  { %v8628_v60 = vpop.f32.mrf.mxu0 }
 0x704   :  { %v8630_v2 = vpop.f32.mrf.mxu0 }
 0x705   :  { %13639 = vrot.lane.b32.xlu0 %v13628_v52, %s14715_s30  ;;  %13644 = vrot.lane.b32.xlu1 %v13633_v43, %s14715_s30  ;;  %v8690_v2 = vadd.f32 %v8500_v15, %v21374_v18  ;;  %v13658_v43 = vpack.i.bf16 %v21648_v30, %v21638_v14  ;;  %v8508_v52 = vpop.f32.mrf.mxu1  ;;  %v8697_v18 = vadd.f32 %v8628_v60, %v21392_v47 }
 0x706   :  { %v8633_v28 = vpop.f32.mrf.mxu0  ;;  %v8695_v26 = vadd.f32 %v8508_v52, %v21389_v53 }
 0x707   :  { %v21661_v0 = vadd.f32 %v21500_v50, %v8690_v2  ;;  %v8510_v15 = vpop.f32.mrf.mxu1  ;;  %v21679_v60 = vadd.f32 %v21484_v20, %v8697_v18 }
 0x708   :  { %v8635_v4 = vpop.f32.mrf.mxu0  ;;  %v21676_v47 = vadd.f32 %v21482_v51, %v8695_v26  ;;  %v8696_v18 = vadd.f32 %v8510_v15, %v21394_v54 }
 0x709   :  { %13649 = vrot.lane.b32.xlu0 %v13653_v62, %s14714_s29  ;;  %13654 = vrot.lane.b32.xlu1 %v13653_v62, %s14715_s30  ;;  %v21666_v62 = vadd.f32 %v21484_v20, %v8688_v31  ;;  %v25105_v4 = vld [vmem:[#allocation40_spill] sm:$0xff]  ;;  %v8514_v52 = vpop.f32.mrf.mxu1 }
 0x70a   :  { %v8636_v29 = vpop.f32.mrf.mxu0  ;;  %v8687_v42 = vadd.f32 %v21585_v17, %v25105_v4  ;;  %25107 = vst [vmem:[#allocation58_spill] sm:$0xff] %v21676_v47 }
 0x70b   :  { %v13678_v53 = vpack.i.bf16 %v21661_v0, %v21666_v62 }
 0x70c   :  { %v8638_v57 = vpop.f32.mrf.mxu0 }
 0x70d   :  { %13664 = vrot.lane.b32.xlu0 %v13663_v7, %s14714_s29  ;;  %13659 = vrot.lane.b32.xlu1 %v13658_v43, %s14714_s29  ;;  %v8692_v57 = vadd.f32 %v8504_v21, %v25106_v55 }
 0x70e   :  { %v21658_v24 = vpop.f32.mrf.mxu0 }
 0x70f   :  { %v21689_v21 = vadd.f32 %v21482_v51, %v8692_v57 }
 0x710   :  { %v8643_v12 = vpop.f32.mrf.mxu0 }
 0x711   :  { %13669 = vrot.lane.b32.xlu0 %v13658_v43, %s14715_s30  ;;  %13674 = vrot.lane.b32.xlu1 %v13663_v7, %s14715_s30  ;;  %v21685_v43 = vadd.f32 %v21500_v50, %v8687_v42  ;;  %25108 = vst [vmem:[#allocation94_spill] sm:$0xff] %v21689_v21  ;;  %v8516_v12 = vpop.f32.mrf.mxu1  ;;  %v25109_v42 = vld [vmem:[#allocation72_spill] sm:$0xff] }
 0x712   :  { %v8644_v2 = vpop.f32.mrf.mxu0  ;;  %v8694_v55 = vadd.f32 %v21610_v37, %v25109_v42 }
 0x713   :  { %v21682_v31 = vadd.f32 %v8644_v2, %v21432_v9  ;;  %v13693_v26 = vpack.i.bf16 %v21685_v43, %v21676_v47  ;;  %v13688_v9 = vpack.i.bf16 %v21689_v21, %v21679_v60  ;;  %v21706_v2 = vadd.f32 %v21500_v50, %v8696_v18  ;;  %v8518_v54 = vpop.f32.mrf.mxu1  ;;  %v25112_v18 = vld [vmem:[#allocation8_spill] sm:$0xff] }
 0x714   :  { %v8646_v17 = vpop.f32.mrf.mxu0  ;;  %v8701_v47 = vadd.f32 %v8518_v54, %v25112_v18 }
 0x715   :  { %13679 = vrot.lane.b32.xlu0 %v13678_v53, %s14714_s29  ;;  %13684 = vrot.lane.b32.xlu1 %v13678_v53, %s14715_s30  ;;  %v8699_v53 = vadd.f32 %v8516_v12, %v21405_v13  ;;  %v21710_v17 = vadd.f32 %v21484_v20, %v8694_v55  ;;  %v8520_v13 = vpop.f32.mrf.mxu1  ;;  %v25113_v12 = vld [vmem:[#allocation71_spill] sm:$0xff] }
 0x716   :  { %v21692_v7 = vpop.f32.mrf.mxu0 }
 0x717   :  { %v13708_v37 = vpack.i.bf16 %v21706_v2, %v21710_v17  ;;  %v21718_v42 = vadd.f32 %v21500_v50, %v8699_v53 }
 0x718   :  { %v8651_v4 = vpop.f32.mrf.mxu0 }
 0x719   :  { %13694 = vrot.lane.b32.xlu0 %v13693_v26, %s14714_s29  ;;  %13689 = vrot.lane.b32.xlu1 %v13688_v9, %s14714_s29  ;;  %v25110_v4 = vld [vmem:[#allocation37_spill] sm:$0xff]  ;;  %25111 = vst [vmem:[#allocation68_spill] sm:$0xff] %v21718_v42 }
 0x71a   :  { %v21703_v57 = vpop.f32.mrf.mxu0  ;;  %v8700_v21 = vadd.f32 %v8633_v28, %v25110_v4  ;;  %v8524_v4 = vpop.f32.mrf.mxu1 }
 0x71c   :  { %v8654_v15 = vpop.f32.mrf.mxu0  ;;  %v21723_v55 = vadd.f32 %v21484_v20, %v8700_v21 }
 0x71d   :  { %13699 = vrot.lane.b32.xlu0 %v13688_v9, %s14715_s30  ;;  %13704 = vrot.lane.b32.xlu1 %v13693_v26, %s14715_s30  ;;  %v8698_v15 = vadd.f32 %v8514_v52, %v25113_v12  ;;  %v21730_v26 = vadd.f32 %v21482_v51, %v8701_v47  ;;  %v25114_v9 = vld [vmem:[#allocation74_spill] sm:$0xff]  ;;  %v25115_v52 = vld [vmem:[#allocation92_spill] sm:$0xff]  ;;  %v25116_v47 = vld [vmem:[#allocation11_spill] sm:$0xff] }
 0x71e   :  { %v13718_v28 = vpack.i.bf16 %v21723_v55, %v21718_v42  ;;  %v8702_v53 = vadd.f32 %v8520_v13, %v25114_v9  ;;  %v8703_v18 = vadd.f32 %v8636_v29, %v25115_v52  ;;  %v8704_v12 = vadd.f32 %v8524_v4, %v25116_v47  ;;  %v8526_v42 = vpop.f32.mrf.mxu1  ;;  %v25117_v13 = vld [vmem:[#allocation67_spill] sm:$0xff]  ;;  %v25118_v52 = vld [vmem:[#allocation41_spill] sm:$0xff] }
 0x71f   :  { %v21734_v54 = vadd.f32 %v21482_v51, %v8698_v15  ;;  %v8693_v9 = vadd.f32 %v21640_v61, %v25117_v13  ;;  %v8706_v61 = vadd.f32 %v21658_v24, %v25118_v52  ;;  %v21777_v24 = vadd.f32 %v21482_v51, %v21487_v16 }
 0x720   :  { %v21748_v15 = vadd.f32 %v21484_v20, %v8703_v18  ;;  %v21794_v16 = vadd.f32 %v21500_v50, %v21473_v5 }
 0x721   :  { %13709 = vrot.lane.b32.xlu0 %v13708_v37, %s14714_s29  ;;  %13714 = vrot.lane.b32.xlu1 %v13708_v37, %s14715_s30  ;;  %v13733_v21 = vpack.i.bf16 %v21730_v26, %v21734_v54  ;;  %v21742_v37 = vadd.f32 %v21500_v50, %v8702_v53  ;;  %v8705_v53 = vadd.f32 %v8526_v42, %v21425_v11  ;;  %v8528_v11 = vpop.f32.mrf.mxu1 }
 0x722   :  { %v21759_v4 = vadd.f32 %v21500_v50, %v8693_v9  ;;  %v21771_v47 = vadd.f32 %v21484_v20, %v8706_v61  ;;  %25120 = vst [vmem:[#allocation77_spill] sm:$0xff] %v21794_v16  ;;  %v21808_v61 = vadd.f32 %v21482_v51, %v21457_v58 }
 0x723   :  { %v13743_v29 = vpack.i.bf16 %v21748_v15, %v21742_v37  ;;  %v8530_v13 = vpop.f32.mrf.mxu1 }
 0x724   :  { %25123 = vst [vmem:[#allocation14_spill] sm:$0xff] %v21808_v61 }
 0x725   :  { %13719 = vrot.lane.b32.xlu0 %v13718_v28, %s14714_s29  ;;  %13724 = vrot.lane.b32.xlu1 %v13718_v28, %s14715_s30  ;;  %v21755_v28 = vadd.f32 %v21482_v51, %v8704_v12  ;;  %v21783_v12 = vadd.f32 %v21500_v50, %v21463_v6  ;;  %v21798_v6 = vadd.f32 %v21484_v20, %v21471_v1 }
 0x727   :  { %v13748_v18 = vpack.i.bf16 %v21759_v4, %v21755_v28  ;;  %25119 = vst [vmem:[#allocation21_spill] sm:$0xff] %v21783_v12  ;;  %v13763_v9 = vpack.i.bf16 %v21783_v12, %v21777_v24  ;;  %25121 = vst [vmem:[#allocation27_spill] sm:$0xff] %v21798_v6  ;;  %v25143_v12 = vld [vmem:[#allocation78_spill] sm:$0xff] }
 0x729   :  { %13734 = vrot.lane.b32.xlu0 %v13733_v21, %s14715_s30  ;;  %13729 = vrot.lane.b32.xlu1 %v13733_v21, %s14714_s29  ;;  %v21768_v21 = vadd.f32 %v21500_v50, %v8705_v53  ;;  %v21802_v53 = vadd.f32 %v21484_v20, %v21460_v49 }
 0x72b   :  { %v13758_v42 = vpack.i.bf16 %v21771_v47, %v21768_v21  ;;  %25122 = vst [vmem:[#allocation12_spill] sm:$0xff] %v21802_v53  ;;  %v13788_v5 = vpack.i.bf16 %v21794_v16, %v21802_v53  ;;  %v25142_v16 = vld [vmem:[#allocation82_spill] sm:$0xff] }
 0x72c   :  { %v25148_v53 = vld [vmem:[#allocation62_spill] sm:$0xff] }
 0x72d   :  { %13744 = vrot.lane.b32.xlu0 %v13743_v29, %s14715_s30  ;;  %13739 = vrot.lane.b32.xlu1 %v13743_v29, %s14714_s29  ;;  %v8534_v29 = vpop.f32.mrf.mxu1 }
 0x72e   :  { %v8710_v1 = vadd.f32 %v8534_v29, %v21437_v19  ;;  %v8712_v19 = vadd.f32 %v21692_v7, %v21440_v46  ;;  %v25129_v7 = vld [vmem:[#allocation10_spill] sm:$0xff] }
 0x72f   :  { %v8536_v52 = vpop.f32.mrf.mxu1 }
 0x730   :  { %v8711_v58 = vadd.f32 %v8536_v52, %v21445_v27  ;;  %v8715_v27 = vadd.f32 %v21703_v57, %v21452_v22  ;;  %v25127_v52 = vld [vmem:[#allocation61_spill] sm:$0xff]  ;;  %v21840_v46 = vadd.f32 %v21484_v20, %v8712_v19 }
 0x731   :  { %13749 = vrot.lane.b32.xlu0 %v13748_v18, %s14714_s29  ;;  %13754 = vrot.lane.b32.xlu1 %v13748_v18, %s14715_s30  ;;  %v8538_v49 = vpop.f32.mrf.mxu1  ;;  %v21824_v18 = vadd.f32 %v21482_v51, %v21468_v41 }
 0x732   :  { %v21833_v29 = vadd.f32 %v21500_v50, %v8711_v58  ;;  %25128 = vst [vmem:[#allocation49_spill] sm:$0xff] %v21840_v46  ;;  %v21848_v58 = vadd.f32 %v21484_v20, %v8715_v27 }
 0x733   :  { %25125 = vst [vmem:[#allocation84_spill] sm:$0xff] %v21824_v18 }
 0x734   :  { %25126 = vst [vmem:[#allocation23_spill] sm:$0xff] %v21833_v29  ;;  %25130 = vst [vmem:[#allocation60_spill] sm:$0xff] %v21848_v58 }
 0x735   :  { %13759 = vrot.lane.b32.xlu0 %v13758_v42, %s14714_s29  ;;  %13769 = vrot.lane.b32.xlu1 %v13758_v42, %s14715_s30  ;;  %v8540_v42 = vpop.f32.mrf.mxu1 }
 0x736   :  { %v8714_v41 = vadd.f32 %v8540_v42, %v21454_v10 }
 0x738   :  { %v21851_v22 = vadd.f32 %v21500_v50, %v8714_v41 }
 0x739   :  { %13764 = vrot.lane.b32.xlu0 %v13763_v9, %s14714_s29  ;;  %13774 = vrot.lane.b32.xlu1 %v21518_v34, %s14715_s30  ;;  %v13793_v34 = vpack.i.bf16 %v21808_v61, %v21798_v6 }
 0x73a   :  { %25131 = vst [vmem:[#allocation26_spill] sm:$0xff] %v21851_v22 }
 0x73d   :  { %13779 = vrot.lane.b32.xlu0 %v21504_v23, %s14715_s30  ;;  %13784 = vrot.lane.b32.xlu1 %v13763_v9, %s14715_s30  ;;  %v21819_v23 = vadd.f32 %v21482_v51, %v8710_v1  ;;  %v8708_v1 = vadd.f32 %v8530_v13, %v25127_v52  ;;  %v25134_v13 = vld [vmem:[#allocation9_spill] sm:$0xff] }
 0x73f   :  { %25124 = vst [vmem:[#allocation100_spill] sm:$0xff] %v21819_v23  ;;  %v13808_v9 = vpack.i.bf16 %v21819_v23, %v21824_v18  ;;  %v21854_v10 = vadd.f32 %v21500_v50, %v8708_v1 }
 0x741   :  { %13789 = vrot.lane.b32.xlu0 %v13788_v5, %s14714_s29  ;;  %13794 = vrot.lane.b32.xlu1 %v13793_v34, %s14714_s29  ;;  %25132 = vst [vmem:[#allocation18_spill] sm:$0xff] %v21854_v10  ;;  %v13828_v19 = vpack.i.bf16 %v21854_v10, %v21848_v58 }
 0x745   :  { %13804 = vrot.lane.b32.xlu0 %v13793_v34, %s14715_s30  ;;  %13799 = vrot.lane.b32.xlu1 %v13788_v5, %s14715_s30  ;;  %v8713_v5 = vadd.f32 %v8538_v49, %v25129_v7  ;;  %v13818_v34 = vpack.i.bf16 %v21840_v46, %v21833_v29  ;;  %v8707_v49 = vadd.f32 %v8528_v11, %v25134_v13  ;;  %v25141_v46 = vld [vmem:[#allocation43_spill] sm:$0xff] }
 0x747   :  { %v21858_v57 = vadd.f32 %v21482_v51, %v8713_v5  ;;  %v21869_v50 = vadd.f32 %v21482_v51, %v8707_v49 }
 0x749   :  { %13809 = vrot.lane.b32.xlu0 %v13808_v9, %s14714_s29  ;;  %13814 = vrot.lane.b32.xlu1 %v13808_v9, %s14715_s30  ;;  %25133 = vst [vmem:[#allocation50_spill] sm:$0xff] %v21858_v57  ;;  %v13833_v42 = vpack.i.bf16 %v21851_v22, %v21858_v57  ;;  %25135 = vst [vmem:[#allocation2_spill] sm:$0xff] %v21869_v50  ;;  %v21873_v9 = vadd.f32 %v21484_v20, %v21682_v31 }
 0x74b   :  { %25136 = vst [vmem:[#allocation51_spill] sm:$0xff] %v21873_v9  ;;  %v13848_v41 = vpack.i.bf16 %v21869_v50, %v21873_v9 }
 0x74d   :  { %13819 = vrot.lane.b32.xlu0 %v13818_v34, %s14714_s29  ;;  %13824 = vrot.lane.b32.xlu1 %v13818_v34, %s14715_s30 }
 0x751   :  { %13829 = vrot.lane.b32.xlu0 %v13828_v19, %s14714_s29  ;;  %13834 = vrot.lane.b32.xlu1 %v13833_v42, %s14714_s29 }
 0x753   :  { %v13560_v27 = vpop.permute.xlu1 %13559 }
 0x754   :  { %v13561_v52 = vunpack.i.l.bf16 %v13560_v27  ;;  %v13562_v7 = vunpack.i.h.bf16 %v13560_v27 }
 0x755   :  { %13844 = vrot.lane.b32.xlu0 %v13833_v42, %s14715_s30  ;;  %v21876_v11 = vpop.permute.xlu0 %13564  ;;  %13839 = vrot.lane.b32.xlu1 %v13828_v19, %s14715_s30 }
 0x756   :  { %v23955_v1 = vunpack.i.h.bf16 %v21876_v11  ;;  %v13566_v5 = vunpack.i.l.bf16 %v21876_v11  ;;  %v21902_v27 = vmax.f32 %v21495_v56, %v13561_v52 }
 0x758   :  { %v21885_v51 = vsel %vm3718_vm1, %v23955_v1, %v13561_v52  ;;  %25139 = vst [vmem:[#allocation103_spill] sm:$0xff] %v21902_v27  ;;  %v21905_v50 = vmax.f32 %v21507_v33, %v13566_v5 }
 0x759   :  { %25137 = vst [vmem:[#allocation30_spill] sm:$0xff] %v21885_v51  ;;  %13849 = vrot.lane.b32.xlu0 %v13848_v41, %s14714_s29  ;;  %13854 = vrot.lane.b32.xlu1 %v13848_v41, %s14715_s30 }
 0x75b   :  { %v13575_v20 = vpop.permute.xlu0 %13574  ;;  %v13570_v31 = vpop.permute.xlu1 %13569 }
 0x75c   :  { %v13577_v34 = vunpack.i.h.bf16 %v13575_v20  ;;  %v13571_v13 = vunpack.i.l.bf16 %v13570_v31  ;;  %v13572_v18 = vunpack.i.h.bf16 %v13570_v31 }
 0x75e   :  { %v21891_v49 = vsel %vm3718_vm1, %v13577_v34, %v13566_v5  ;;  %v21894_v19 = vsel %vm3718_vm1, %v13562_v7, %v13577_v34  ;;  %v9090_v9 = vmax.f32 %v21534_v45, %v13571_v13  ;;  %v13576_v34 = vunpack.i.l.bf16 %v13575_v20 }
 0x75f   :  { %v13580_v42 = vpop.permute.xlu0 %13579  ;;  %v21896_v1 = vpop.permute.xlu1 %13584 }
 0x760   :  { %v13581_v10 = vunpack.i.l.bf16 %v13580_v42 }
 0x762   :  { %v21899_v41 = vmax.f32 %v9090_v9, %v13581_v10  ;;  %v13586_v9 = vunpack.i.l.bf16 %v21896_v1 }
 0x763   :  { %v13590_v57 = vpop.permute.xlu0 %13589  ;;  %v13595_v22 = vpop.permute.xlu1 %13594 }
 0x764   :  { %25138 = vst [vmem:[#allocation87_spill] sm:$0xff] %v21899_v41  ;;  %v13592_v29 = vunpack.i.h.bf16 %v13590_v57  ;;  %v13591_v23 = vunpack.i.l.bf16 %v13590_v57  ;;  %v13597_v6 = vunpack.i.h.bf16 %v13595_v22  ;;  %v13596_v5 = vunpack.i.l.bf16 %v13595_v22 }
 0x766   :  { %v8983_v56 = vsel %vm3718_vm1, %v13576_v34, %v13592_v29  ;;  %v8984_v33 = vsel %vm3718_vm1, %v13592_v29, %v13571_v13  ;;  %v9087_v52 = vmax.f32 %v21550_v35, %v13591_v23  ;;  %v9264_v57 = vsel %vm4199_vm2, %v13597_v6, %v13581_v10 }
 0x767   :  { %v9088_v61 = vmax.f32 %v25142_v16, %v8983_v56  ;;  %v9089_v20 = vmax.f32 %v21545_v40, %v8984_v33  ;;  %v9263_v7 = vsel %vm4199_vm2, %v13586_v9, %v13597_v6  ;;  %v13605_v45 = vpop.permute.xlu0 %13604  ;;  %v21919_v31 = vpop.permute.xlu1 %13599  ;;  %v13582_v34 = vunpack.i.h.bf16 %v13580_v42 }
 0x768   :  { %v21923_v27 = vmax.f32 %v9087_v52, %v13596_v5  ;;  %v13607_v29 = vunpack.i.h.bf16 %v13605_v45  ;;  %v13601_v40 = vunpack.i.l.bf16 %v21919_v31  ;;  %v23972_v6 = vrot.slane %v21899_v41, 1 }
 0x769   :  { %v21926_v22 = vmax.f32 %v9088_v61, %v9263_v7  ;;  %v21928_v16 = vmax.f32 %v9089_v20, %v9264_v57  ;;  %v13606_v33 = vunpack.i.l.bf16 %v13605_v45  ;;  %v13602_v61 = vunpack.i.h.bf16 %v21919_v31 }
 0x76a   :  { %25144 = vst [vmem:[#allocation88_spill] sm:$0xff] %v21923_v27  ;;  %v23971_v10 = vrot.slane %v21923_v27, 1  ;;  %v8981_v13 = vsel %vm3718_vm1, %v13572_v18, %v13607_v29  ;;  %v8982_v9 = vsel %vm3718_vm1, %v13607_v29, %v13591_v23  ;;  %v9096_v31 = vmax.f32 %v21562_v3, %v13601_v40 }
 0x76b   :  { %25145 = vst [vmem:[#allocation29_spill] sm:$0xff] %v21926_v22  ;;  %25146 = vst [vmem:[#allocation52_spill] sm:$0xff] %v21928_v16  ;;  %v21938_v7 = vpop.permute.xlu0 %13609  ;;  %v13615_v52 = vpop.permute.xlu1 %13614  ;;  %v9085_v35 = vmax.f32 %v25148_v53, %v8981_v13  ;;  %v9086_v57 = vmax.f32 %v21565_v38, %v8982_v9 }
 0x76c   :  { %v21947_v23 = vsel %vm6792_vm9, %v23971_v10, %v23972_v6  ;;  %v13611_v29 = vunpack.i.l.bf16 %v21938_v7  ;;  %v13617_v56 = vunpack.i.h.bf16 %v13615_v52  ;;  %v13616_v6 = vunpack.i.l.bf16 %v13615_v52 }
 0x76d   :  { %25147 = vst [vmem:[#allocation95_spill] sm:$0xff] %v21947_v23 }
 0x76e   :  { %v21958_v10 = vmax.f32 %v9096_v31, %v13611_v29  ;;  %v9261_v18 = vsel %vm4199_vm2, %v13582_v34, %v13617_v56  ;;  %v9262_v45 = vsel %vm4199_vm2, %v13617_v56, %v13596_v5  ;;  %v25153_v5 = vld [vmem:[#allocation44_spill] sm:$0xff] }
 0x76f   :  { %v13620_v23 = vpop.permute.xlu0 %13619  ;;  %v13625_v3 = vpop.permute.xlu1 %13624  ;;  %v21962_v27 = vmax.f32 %v9085_v35, %v9261_v18  ;;  %v21964_v51 = vmax.f32 %v9086_v57, %v9262_v45 }
 0x770   :  { %25149 = vst [vmem:[#allocation64_spill] sm:$0xff] %v21958_v10  ;;  %v13622_v42 = vunpack.i.h.bf16 %v13620_v23  ;;  %v13621_v58 = vunpack.i.l.bf16 %v13620_v23  ;;  %v13627_v13 = vunpack.i.h.bf16 %v13625_v3  ;;  %v13626_v9 = vunpack.i.l.bf16 %v13625_v3 }
 0x771   :  { %25150 = vst [vmem:[#allocation3_spill] sm:$0xff] %v21964_v51  ;;  %v23977_v31 = vrot.slane %v21962_v27, 1  ;;  %v25151_v3 = vrot.slane %v21926_v22, 1 }
 0x772   :  { %v8987_v35 = vsel %vm3718_vm1, %v13606_v33, %v13622_v42  ;;  %v8988_v52 = vsel %vm3718_vm1, %v13622_v42, %v13601_v40  ;;  %v9093_v57 = vmax.f32 %v21588_v59, %v13621_v58  ;;  %v9268_v23 = vsel %vm4199_vm2, %v13627_v13, %v13611_v29 }
 0x773   :  { %v13635_v18 = vpop.permute.xlu0 %13634  ;;  %v21976_v45 = vpop.permute.xlu1 %13629  ;;  %v21983_v20 = vsel %vm6792_vm9, %v23977_v31, %v25151_v3  ;;  %v9094_v56 = vmax.f32 %v25153_v5, %v8987_v35  ;;  %v9095_v33 = vmax.f32 %v21581_v36, %v8988_v52  ;;  %v9267_v40 = vsel %vm4199_vm2, %v13616_v6, %v13627_v13 }
 0x774   :  { %25152 = vst [vmem:[#allocation19_spill] sm:$0xff] %v21983_v20  ;;  %v21990_v42 = vmax.f32 %v9093_v57, %v13626_v9  ;;  %v13637_v29 = vunpack.i.h.bf16 %v13635_v18  ;;  %v13636_v34 = vunpack.i.l.bf16 %v13635_v18  ;;  %v13631_v31 = vunpack.i.l.bf16 %v21976_v45 }
 0x775   :  { %v21992_v38 = vmax.f32 %v9094_v56, %v9267_v40  ;;  %v21994_v53 = vmax.f32 %v9095_v33, %v9268_v23  ;;  %v25157_v33 = vrot.slane %v21899_v41, 1  ;;  %v25161_v41 = vrot.slane %v21958_v10, 2 }
 0x776   :  { %25154 = vst [vmem:[#allocation42_spill] sm:$0xff] %v21990_v42  ;;  %v9511_v5 = vrot.slane %v21990_v42, 1  ;;  %v8985_v6 = vsel %vm3718_vm1, %v13602_v61, %v13637_v29  ;;  %v8986_v13 = vsel %vm3718_vm1, %v13637_v29, %v13621_v58  ;;  %v25159_v61 = vrot.slane %v21958_v10, 1  ;;  %v25160_v29 = vld [vmem:[#allocation75_spill] sm:$0xff] }
 0x777   :  { %25155 = vst [vmem:[#allocation15_spill] sm:$0xff] %v21992_v38  ;;  %25156 = vst [vmem:[#allocation5_spill] sm:$0xff] %v21994_v53  ;;  %v22002_v35 = vpop.permute.xlu0 %13639  ;;  %v13645_v52 = vpop.permute.xlu1 %13644  ;;  %v9091_v59 = vmax.f32 %v25160_v29, %v8985_v6  ;;  %v9092_v3 = vmax.f32 %v21603_v25, %v8986_v13  ;;  %v9102_v57 = vmax.f32 %v21600_v8, %v13631_v31  ;;  %v25163_v25 = vrot.slane %v21928_v16, 1 }
 0x778   :  { %v22011_v40 = vsel %vm6792_vm9, %v25157_v33, %v9511_v5  ;;  %v9518_v58 = vsel %vm6792_vm9, %v9511_v5, %v25159_v61  ;;  %v13641_v18 = vunpack.i.l.bf16 %v22002_v35  ;;  %v13647_v36 = vunpack.i.h.bf16 %v13645_v52 }
 0x779   :  { %25158 = vst [vmem:[#allocation36_spill] sm:$0xff] %v22011_v40  ;;  %v9671_v56 = vmax.f32 %v21990_v42, %v9518_v58  ;;  %v13646_v20 = vunpack.i.l.bf16 %v13645_v52  ;;  %v25162_v5 = vrot.slane %v21990_v42, 2  ;;  %v25164_v13 = vrot.slane %v21964_v51, 1 }
 0x77a   :  { %v22036_v61 = vmax.f32 %v9102_v57, %v13641_v18  ;;  %v25167_v23 = vunpack.i.h.bf16 %v21938_v7  ;;  %v9266_v42 = vsel %vm4199_vm2, %v13647_v36, %v13626_v9 }
 0x77b   :  { %v13650_v33 = vpop.permute.xlu0 %13649  ;;  %v22022_v22 = vpop.permute.xlu1 %13654  ;;  %v9756_v6 = vsel %vm8122_vm10, %v25162_v5, %v25161_v41  ;;  %v22034_v8 = vsel %vm6792_vm9, %v25164_v13, %v25163_v25  ;;  %v22050_v13 = vmax.f32 %v9092_v3, %v9266_v42  ;;  %v25172_v3 = vrot.slane %v21992_v38, 1 }
 0x77c   :  { %25165 = vst [vmem:[#allocation98_spill] sm:$0xff] %v22034_v8  ;;  %25166 = vst [vmem:[#allocation96_spill] sm:$0xff] %v22036_v61  ;;  %v13652_v58 = vunpack.i.h.bf16 %v13650_v33  ;;  %v13651_v52 = vunpack.i.l.bf16 %v13650_v33  ;;  %v13657_v29 = vunpack.i.h.bf16 %v22022_v22  ;;  %v9265_v40 = vsel %vm4199_vm2, %v25167_v23, %v13647_v36 }
 0x77d   :  { %v13656_v41 = vunpack.i.l.bf16 %v22022_v22  ;;  %v22044_v5 = vmax.f32 %v9671_v56, %v9756_v6  ;;  %v23987_v51 = vrot.slane %v22036_v61, 1  ;;  %v22048_v57 = vmax.f32 %v9091_v59, %v9265_v40  ;;  %25170 = vst [vmem:[#allocation93_spill] sm:$0xff] %v22050_v13 }
 0x77e   :  { %v8991_v33 = vsel %vm3718_vm1, %v13636_v34, %v13652_v58  ;;  %v8992_v7 = vsel %vm3718_vm1, %v13652_v58, %v13631_v31  ;;  %v9099_v23 = vmax.f32 %v21626_v48, %v13651_v52  ;;  %v9272_v9 = vsel %vm4199_vm2, %v13657_v29, %v13641_v18 }
 0x77f   :  { %25168 = vst [vmem:[#allocation4_spill] sm:$0xff] %v22044_v5  ;;  %25169 = vst [vmem:[#allocation45_spill] sm:$0xff] %v22048_v57  ;;  %v13665_v36 = vpop.permute.xlu0 %13664  ;;  %v23986_v22 = vrot.slane %v22048_v57, 1  ;;  %v22060_v40 = vpop.permute.xlu1 %13659  ;;  %v9100_v42 = vmax.f32 %v21597_v39, %v8991_v33  ;;  %v9101_v34 = vmax.f32 %v21621_v32, %v8992_v7  ;;  %v9271_v31 = vsel %vm4199_vm2, %v13646_v20, %v13657_v29  ;;  %v25179_v39 = vld [vmem:[#allocation46_spill] sm:$0xff] }
 0x780   :  { %v22065_v48 = vmax.f32 %v9099_v23, %v13656_v41  ;;  %v13667_v58 = vunpack.i.h.bf16 %v13665_v36  ;;  %v13666_v6 = vunpack.i.l.bf16 %v13665_v36  ;;  %v25175_v23 = vunpack.i.h.bf16 %v21976_v45 }
 0x781   :  { %v22072_v18 = vsel %vm6792_vm9, %v23986_v22, %v25172_v3  ;;  %v22077_v33 = vmax.f32 %v9100_v42, %v9271_v31  ;;  %v22079_v32 = vmax.f32 %v9101_v34, %v9272_v9  ;;  %v13661_v22 = vunpack.i.l.bf16 %v22060_v40 }
 0x782   :  { %25171 = vst [vmem:[#allocation79_spill] sm:$0xff] %v22065_v48  ;;  %25173 = vst [vmem:[#allocation53_spill] sm:$0xff] %v22072_v18  ;;  %v9523_v20 = vrot.slane %v22065_v48, 1  ;;  %v8989_v3 = vsel %vm3718_vm1, %v25175_v23, %v13667_v58  ;;  %v8990_v36 = vsel %vm3718_vm1, %v13667_v58, %v13651_v52  ;;  %v25176_v42 = vrot.slane %v21958_v10, 1 }
 0x783   :  { %25174 = vst [vmem:[#allocation20_spill] sm:$0xff] %v22077_v33  ;;  %v22082_v29 = vpop.permute.xlu0 %13669  ;;  %v13675_v56 = vpop.permute.xlu1 %13674  ;;  %v9097_v59 = vmax.f32 %v25179_v39, %v8989_v3  ;;  %v9108_v34 = vmax.f32 %v21638_v14, %v13661_v22  ;;  %v25180_v39 = vrot.slane %v22036_v61, 2  ;;  %v25183_v3 = vunpack.i.h.bf16 %v22002_v35 }
 0x784   :  { %v22093_v9 = vsel %vm6792_vm9, %v25176_v42, %v9523_v20  ;;  %v22100_v45 = vsel %vm6792_vm9, %v9523_v20, %v23987_v51  ;;  %v9098_v42 = vmax.f32 %v21643_v63, %v8990_v36  ;;  %v13671_v7 = vunpack.i.l.bf16 %v22082_v29 }
 0x785   :  { %25177 = vst [vmem:[#allocation97_spill] sm:$0xff] %v22093_v9  ;;  %25178 = vst [vmem:[#allocation69_spill] sm:$0xff] %v22100_v45  ;;  %v13677_v20 = vunpack.i.h.bf16 %v13675_v56  ;;  %v13676_v51 = vunpack.i.l.bf16 %v13675_v56  ;;  %v25181_v63 = vrot.slane %v22065_v48, 2 }
 0x786   :  { %v22111_v18 = vmax.f32 %v9108_v34, %v13671_v7 }
 0x787   :  { %v13680_v25 = vpop.permute.xlu0 %13679  ;;  %v13685_v52 = vpop.permute.xlu1 %13684  ;;  %v22118_v14 = vsel %vm8122_vm10, %v25181_v63, %v25180_v39  ;;  %v9269_v36 = vsel %vm4199_vm2, %v25183_v3, %v13677_v20  ;;  %v9270_v56 = vsel %vm4199_vm2, %v13677_v20, %v13656_v41 }
 0x788   :  { %v13682_v8 = vunpack.i.h.bf16 %v13680_v25  ;;  %v13681_v16 = vunpack.i.l.bf16 %v13680_v25  ;;  %v13687_v58 = vunpack.i.h.bf16 %v13685_v52  ;;  %v13686_v23 = vunpack.i.l.bf16 %v13685_v52  ;;  %25182 = vst [vmem:[#allocation63_spill] sm:$0xff] %v22118_v14 }
 0x789   :  { %v23996_v31 = vrot.slane %v22111_v18, 1  ;;  %v22128_v57 = vmax.f32 %v9097_v59, %v9269_v36  ;;  %v22130_v38 = vmax.f32 %v9098_v42, %v9270_v56  ;;  %v25188_v42 = vrot.slane %v22036_v61, 1 }
 0x78a   :  { %v8995_v25 = vsel %vm3718_vm1, %v13666_v6, %v13682_v8  ;;  %v8996_v34 = vsel %vm3718_vm1, %v13682_v8, %v13661_v22  ;;  %v9105_v63 = vmax.f32 %v21666_v62, %v13681_v16  ;;  %v9276_v41 = vsel %vm4199_vm2, %v13687_v58, %v13671_v7 }
 0x78b   :  { %25184 = vst [vmem:[#allocation13_spill] sm:$0xff] %v22128_v57  ;;  %v13695_v39 = vpop.permute.xlu0 %13694  ;;  %v9106_v35 = vmax.f32 %v21635_v44, %v8995_v25  ;;  %v9107_v3 = vmax.f32 %v21661_v0, %v8996_v34  ;;  %v22136_v6 = vpop.permute.xlu1 %13689  ;;  %v23995_v8 = vrot.slane %v22128_v57, 1  ;;  %v9275_v20 = vsel %vm4199_vm2, %v13676_v51, %v13687_v58 }
 0x78c   :  { %v22143_v36 = vmax.f32 %v9105_v63, %v13686_v23  ;;  %v13697_v44 = vunpack.i.h.bf16 %v13695_v39  ;;  %v25185_v0 = vrot.slane %v22077_v33, 1  ;;  %v13696_v25 = vunpack.i.l.bf16 %v13695_v39 }
 0x78d   :  { %v22145_v62 = vmax.f32 %v9107_v3, %v9276_v41  ;;  %v22154_v56 = vmax.f32 %v9106_v35, %v9275_v20  ;;  %v25187_v20 = vunpack.i.h.bf16 %v22060_v40 }
 0x78e   :  { %v22152_v7 = vsel %vm6792_vm9, %v23995_v8, %v25185_v0  ;;  %v9535_v58 = vrot.slane %v22143_v36, 1  ;;  %v8994_v3 = vsel %vm3718_vm1, %v13697_v44, %v13681_v16 }
 0x78f   :  { %25186 = vst [vmem:[#allocation24_spill] sm:$0xff] %v22152_v7  ;;  %v22157_v59 = vpop.permute.xlu0 %13699  ;;  %v13705_v41 = vpop.permute.xlu1 %13704  ;;  %v8993_v8 = vsel %vm3718_vm1, %v25187_v20, %v13697_v44  ;;  %v9104_v40 = vmax.f32 %v21685_v43, %v8994_v3  ;;  %v13691_v20 = vunpack.i.l.bf16 %v22136_v6  ;;  %v25189_v3 = vunpack.i.h.bf16 %v22082_v29  ;;  %v25190_v29 = vld [vmem:[#allocation58_spill] sm:$0xff] }
 0x790   :  { %v22173_v51 = vsel %vm6792_vm9, %v25188_v42, %v9535_v58  ;;  %v22178_v22 = vsel %vm6792_vm9, %v9535_v58, %v23996_v31  ;;  %v9103_v35 = vmax.f32 %v21648_v30, %v8993_v8  ;;  %v13701_v63 = vunpack.i.l.bf16 %v22157_v59 }
 0x791   :  { %v13707_v34 = vunpack.i.h.bf16 %v13705_v41  ;;  %v13706_v58 = vunpack.i.l.bf16 %v13705_v41  ;;  %v9114_v30 = vmax.f32 %v21679_v60, %v13691_v20 }
 0x793   :  { %v22187_v42 = vpop.permute.xlu0 %13709  ;;  %v22191_v16 = vpop.permute.xlu1 %13714  ;;  %v9273_v52 = vsel %vm4199_vm2, %v25189_v3, %v13707_v34  ;;  %v9274_v39 = vsel %vm4199_vm2, %v13707_v34, %v13686_v23  ;;  %v22203_v5 = vmax.f32 %v9114_v30, %v13701_v63 }
 0x794   :  { %v13712_v31 = vunpack.i.h.bf16 %v22187_v42  ;;  %v24002_v8 = vunpack.i.l.bf16 %v22187_v42  ;;  %v13717_v43 = vunpack.i.h.bf16 %v22191_v16  ;;  %v22205_v10 = vmax.f32 %v9103_v35, %v9273_v52 }
 0x795   :  { %v22207_v60 = vmax.f32 %v9104_v40, %v9274_v39  ;;  %v9553_v34 = vrot.slane %v22203_v5, 1 }
 0x796   :  { %v8999_v41 = vsel %vm3718_vm1, %v13696_v25, %v13712_v31  ;;  %v9000_v0 = vsel %vm3718_vm1, %v13712_v31, %v13691_v20  ;;  %v9111_v44 = vmax.f32 %v21710_v17, %v24002_v8  ;;  %v9280_v23 = vsel %vm4199_vm2, %v13717_v43, %v13701_v63 }
 0x797   :  { %v13720_v9 = vpop.permute.xlu0 %13719  ;;  %v9112_v13 = vmax.f32 %v25190_v29, %v8999_v41  ;;  %v9113_v3 = vmax.f32 %v21706_v2, %v9000_v0  ;;  %v9279_v25 = vsel %vm4199_vm2, %v13706_v58, %v13717_v43  ;;  %v13725_v31 = vpop.permute.xlu1 %13724  ;;  %v24001_v35 = vrot.slane %v22205_v10, 1 }
 0x798   :  { %v25191_v20 = vunpack.i.l.bf16 %v22191_v16  ;;  %v25192_v0 = vrot.slane %v22154_v56, 1  ;;  %v13722_v43 = vunpack.i.h.bf16 %v13720_v9  ;;  %v13721_v41 = vunpack.i.l.bf16 %v13720_v9 }
 0x799   :  { %v22226_v63 = vmax.f32 %v9112_v13, %v9279_v25  ;;  %v22235_v30 = vmax.f32 %v9113_v3, %v9280_v23  ;;  %v25193_v9 = vrot.slane %v22111_v18, 1  ;;  %v13727_v25 = vunpack.i.h.bf16 %v13725_v31  ;;  %v25194_v13 = vld [vmem:[#allocation68_spill] sm:$0xff] }
 0x79a   :  { %v22224_v2 = vmax.f32 %v9111_v44, %v25191_v20  ;;  %v22233_v58 = vsel %vm6792_vm9, %v24001_v35, %v25192_v0  ;;  %v9117_v23 = vmax.f32 %v21723_v55, %v13722_v43  ;;  %v9002_v39 = vsel %vm3718_vm1, %v13721_v41, %v13722_v43 }
 0x79b   :  { %v13735_v29 = vpop.permute.xlu0 %13734  ;;  %v13730_v20 = vpop.permute.xlu1 %13729  ;;  %v9116_v0 = vmax.f32 %v25194_v13, %v9002_v39  ;;  %v13726_v8 = vunpack.i.l.bf16 %v13725_v31  ;;  %v25195_v61 = vrot.slane %v22235_v30, 1 }
 0x79c   :  { %v9547_v44 = vrot.slane %v22224_v2, 1  ;;  %v13737_v3 = vunpack.i.h.bf16 %v13735_v29  ;;  %v22258_v55 = vmax.f32 %v9117_v23, %v13727_v25  ;;  %v13736_v53 = vunpack.i.l.bf16 %v13735_v29 }
 0x79d   :  { %v13732_v7 = vunpack.i.h.bf16 %v13730_v20 }
 0x79e   :  { %v22249_v35 = vsel %vm6792_vm9, %v25193_v9, %v9547_v44  ;;  %v22252_v17 = vsel %vm6792_vm9, %v9547_v44, %v9553_v34  ;;  %v13731_v9 = vunpack.i.l.bf16 %v13730_v20  ;;  %v9282_v44 = vsel %vm4199_vm2, %v13726_v8, %v13727_v25 }
 0x79f   :  { %v13745_v40 = vpop.permute.xlu0 %13744  ;;  %v13740_v57 = vpop.permute.xlu1 %13739  ;;  %v24016_v48 = vrot.slane %v22258_v55, 1  ;;  %v22263_v14 = vmax.f32 %v9116_v0, %v9282_v44  ;;  %v9281_v31 = vsel %vm4199_vm2, %v13736_v53, %v13726_v8 }
 0x7a0   :  { %v13747_v33 = vunpack.i.h.bf16 %v13745_v40  ;;  %v13746_v45 = vunpack.i.l.bf16 %v13745_v40  ;;  %v13742_v43 = vunpack.i.h.bf16 %v13740_v57  ;;  %v9001_v39 = vsel %vm3718_vm1, %v13731_v9, %v13721_v41 }
 0x7a1   :  { %v24015_v40 = vrot.slane %v22263_v14, 1  ;;  %v22274_v23 = vsel %vm6792_vm9, %v9553_v34, %v24016_v48  ;;  %v9115_v53 = vmax.f32 %v21734_v54, %v9001_v39  ;;  %v25197_v54 = vunpack.i.l.bf16 %v22187_v42 }
 0x7a2   :  { %v9283_v29 = vsel %vm4199_vm2, %v13737_v3, %v13746_v45  ;;  %v9284_v13 = vsel %vm4199_vm2, %v13746_v45, %v13747_v33  ;;  %v9120_v20 = vmax.f32 %v21748_v15, %v13742_v43  ;;  %v13741_v3 = vunpack.i.l.bf16 %v13740_v57 }
 0x7a3   :  { %v13750_v25 = vpop.permute.xlu0 %13749  ;;  %v13755_v8 = vpop.permute.xlu1 %13754  ;;  %v22280_v44 = vmax.f32 %v9115_v53, %v9281_v31  ;;  %v22287_v34 = vsel %vm6792_vm9, %v25195_v61, %v24015_v40  ;;  %v25196_v61 = vunpack.i.h.bf16 %v22136_v6  ;;  %v25199_v31 = vunpack.i.l.bf16 %v22191_v16 }
 0x7a4   :  { %v22278_v41 = vmax.f32 %v9120_v20, %v13747_v33  ;;  %v13752_v9 = vunpack.i.h.bf16 %v13750_v25  ;;  %v13751_v45 = vunpack.i.l.bf16 %v13750_v25  ;;  %v13757_v15 = vunpack.i.h.bf16 %v13755_v8 }
 0x7a5   :  { %v13756_v52 = vunpack.i.l.bf16 %v13755_v8  ;;  %v9003_v33 = vsel %vm3718_vm1, %v13732_v7, %v13741_v3  ;;  %v9004_v57 = vsel %vm3718_vm1, %v13741_v3, %v13742_v43  ;;  %v25198_v43 = vunpack.i.h.bf16 %v22157_v59 }
 0x7a6   :  { %v24021_v0 = vrot.slane %v22278_v41, 1  ;;  %v9118_v25 = vmax.f32 %v21730_v26, %v9003_v33  ;;  %v9119_v53 = vmax.f32 %v21742_v37, %v9004_v57  ;;  %v8997_v40 = vsel %vm3718_vm1, %v25196_v61, %v13752_v9  ;;  %v25200_v33 = vld [vmem:[#allocation94_spill] sm:$0xff] }
 0x7a7   :  { %v13760_v39 = vpop.permute.xlu0 %13759  ;;  %v13770_v8 = vpop.permute.xlu1 %13769  ;;  %v8998_v7 = vsel %vm3718_vm1, %v13752_v9, %v25197_v54  ;;  %v9277_v3 = vsel %vm4199_vm2, %v25198_v43, %v13757_v15  ;;  %v9278_v20 = vsel %vm4199_vm2, %v13757_v15, %v25199_v31  ;;  %v9109_v6 = vmax.f32 %v25200_v33, %v8997_v40 }
 0x7a8   :  { %v22309_v26 = vmax.f32 %v9118_v25, %v9283_v29  ;;  %v22311_v37 = vmax.f32 %v9119_v53, %v9284_v13  ;;  %v9110_v57 = vmax.f32 %v21759_v4, %v8998_v7  ;;  %v13762_v61 = vunpack.i.h.bf16 %v13760_v39  ;;  %v25222_v53 = vld [vmem:[#allocation14_spill] sm:$0xff] }
 0x7a9   :  { %v13761_v42 = vunpack.i.l.bf16 %v13760_v39  ;;  %v13772_v48 = vunpack.i.h.bf16 %v13770_v8  ;;  %v13771_v9 = vunpack.i.l.bf16 %v13770_v8  ;;  %v22320_v29 = vmax.f32 %v9109_v6, %v9277_v3 }
 0x7aa   :  { %v22322_v31 = vmax.f32 %v9110_v57, %v9278_v20  ;;  %v9123_v40 = vmax.f32 %v21771_v47, %v13762_v61  ;;  %v25205_v43 = vmax.f32 %v25141_v46, %v21891_v49  ;;  %v25213_v46 = vld [vmem:[#allocation103_spill] sm:$0xff] }
 0x7ab   :  { %v22315_v54 = vpop.permute.xlu0 %13764  ;;  %v13775_v13 = vpop.permute.xlu1 %13774  ;;  %v9005_v4 = vsel %vm3718_vm1, %v13751_v45, %v13761_v42  ;;  %v9006_v39 = vsel %vm3718_vm1, %v13761_v42, %v13762_v61  ;;  %v24017_v25 = vrot.slane %v22320_v29, 1  ;;  %v9285_v47 = vsel %vm4199_vm2, %v13756_v52, %v13771_v9 }
 0x7ac   :  { %v9121_v8 = vmax.f32 %v21755_v28, %v9005_v4  ;;  %v9122_v7 = vmax.f32 %v21768_v21, %v9006_v39  ;;  %v22333_v20 = vmax.f32 %v9123_v40, %v13772_v48  ;;  %v25201_v45 = vrot.slane %v22226_v63, 1 }
 0x7ad   :  { %v9286_v6 = vsel %vm4199_vm2, %v13771_v9, %v13772_v48  ;;  %v13777_v21 = vunpack.i.h.bf16 %v13775_v13  ;;  %v13776_v48 = vunpack.i.l.bf16 %v13775_v13  ;;  %v13767_v9 = vunpack.i.h.bf16 %v22315_v54 }
 0x7ae   :  { %v22341_v33 = vsel %vm6792_vm9, %v24017_v25, %v25201_v45  ;;  %v22344_v28 = vmax.f32 %v9121_v8, %v9285_v47  ;;  %v24018_v52 = vrot.slane %v22333_v20, 1  ;;  %v22352_v4 = vmax.f32 %v9122_v7, %v9286_v6 }
 0x7af   :  { %v22346_v57 = vpop.permute.xlu1 %13784  ;;  %v13780_v61 = vpop.permute.xlu0 %13779  ;;  %v13766_v7 = vunpack.i.l.bf16 %v22315_v54  ;;  %v25204_v6 = vunpack.i.h.bf16 %v21896_v1  ;;  %v22371_v13 = vmax.f32 %v21905_v50, %v13776_v48  ;;  %v25206_v25 = vunpack.i.h.bf16 %v21876_v11 }
 0x7b0   :  { %25202 = vst [vmem:[#allocation17_spill] sm:$0xff] %v22344_v28  ;;  %25203 = vst [vmem:[#allocation81_spill] sm:$0xff] %v22352_v4  ;;  %v22363_v47 = vsel %vm6792_vm9, %v24021_v0, %v24018_v52  ;;  %v13786_v3 = vunpack.i.l.bf16 %v22346_v57  ;;  %v13782_v45 = vunpack.i.h.bf16 %v13780_v61  ;;  %v13781_v15 = vunpack.i.l.bf16 %v13780_v61 }
 0x7b1   :  { %v9258_v42 = vsel %vm4199_vm2, %v25204_v6, %v13776_v48  ;;  %v8979_v54 = vsel %vm3718_vm1, %v13766_v7, %v25206_v25  ;;  %v24020_v6 = vrot.slane %v22371_v13, 1  ;;  %v25207_v11 = vunpack.i.h.bf16 %v21896_v1  ;;  %v25211_v7 = vld [vmem:[#allocation30_spill] sm:$0xff] }
 0x7b2   :  { %v22378_v52 = vmax.f32 %v25205_v43, %v9258_v42  ;;  %v9082_v48 = vmax.f32 %v21777_v24, %v8979_v54  ;;  %v9259_v39 = vsel %vm4199_vm2, %v13786_v3, %v13777_v21  ;;  %v9260_v43 = vsel %vm4199_vm2, %v13777_v21, %v13781_v15  ;;  %v25210_v3 = vld [vmem:[#allocation48_spill] sm:$0xff] }
 0x7b3   :  { %v22387_v59 = vpop.permute.xlu0 %13789  ;;  %v13795_v8 = vpop.permute.xlu1 %13794  ;;  %v9257_v25 = vsel %vm4199_vm2, %v13782_v45, %v25207_v11  ;;  %v25209_v24 = vmax.f32 %v25143_v12, %v21894_v19  ;;  %v25212_v54 = vmax.f32 %v25210_v3, %v25211_v7  ;;  %v22408_v49 = vmax.f32 %v25213_v46, %v13781_v15 }
 0x7b4   :  { %v22395_v61 = vmax.f32 %v9082_v48, %v9259_v39  ;;  %v24026_v1 = vunpack.i.h.bf16 %v22387_v59  ;;  %v13791_v45 = vunpack.i.l.bf16 %v22387_v59  ;;  %v13797_v21 = vunpack.i.h.bf16 %v13795_v8 }
 0x7b5   :  { %v22400_v42 = vmax.f32 %v25209_v24, %v9257_v25  ;;  %v22405_v50 = vmax.f32 %v25212_v54, %v9260_v43  ;;  %v13796_v39 = vunpack.i.l.bf16 %v13795_v8  ;;  %v9493_v43 = vrot.slane %v22408_v49, 1  ;;  %v25217_v54 = vld [vmem:[#allocation12_spill] sm:$0xff] }
 0x7b6   :  { %25208 = vst [vmem:[#allocation47_spill] sm:$0xff] %v22395_v61  ;;  %v9489_v48 = vrot.slane %v22395_v61, 1  ;;  %v25214_v24 = vrot.slane %v21962_v27, 1  ;;  %v8974_v7 = vsel %vm3718_vm1, %v13767_v9, %v13791_v45  ;;  %v9075_v11 = vmax.f32 %v25217_v54, %v13791_v45  ;;  %v25221_v54 = vld [vmem:[#allocation21_spill] sm:$0xff] }
 0x7b7   :  { %v24019_v19 = vrot.slane %v22400_v42, 1  ;;  %v13805_v12 = vpop.permute.xlu0 %13804  ;;  %v22437_v46 = vsel %vm6792_vm9, %v24020_v6, %v9493_v43  ;;  %v9074_v15 = vmax.f32 %v25221_v54, %v8974_v7  ;;  %v8973_v40 = vsel %vm3718_vm1, %v13797_v21, %v13767_v9 }
 0x7b8   :  { %v22423_v8 = vsel %vm6792_vm9, %v9489_v48, %v25214_v24  ;;  %25218 = vst [vmem:[#allocation34_spill] sm:$0xff] %v22437_v46  ;;  %v25219_v24 = vld [vmem:[#allocation88_spill] sm:$0xff]  ;;  %v8976_v6 = vsel %vm3718_vm1, %v24026_v1, %v13796_v39  ;;  %v9073_v0 = vmax.f32 %v25222_v53, %v8973_v40  ;;  %v25225_v7 = vrot.slane %v22278_v41, 1 }
 0x7b9   :  { %25215 = vst [vmem:[#allocation57_spill] sm:$0xff] %v22423_v8  ;;  %v22428_v3 = vsel %vm6792_vm9, %v24019_v19, %v9489_v48  ;;  %v25220_v25 = vrot.slane %v25219_v24, 1  ;;  %v22446_v19 = vpop.permute.xlu1 %13799  ;;  %v25224_v8 = vld [vmem:[#allocation27_spill] sm:$0xff]  ;;  %v13807_v48 = vunpack.i.h.bf16 %v13805_v12  ;;  %v25226_v9 = vrot.slane %v22258_v55, 1 }
 0x7ba   :  { %25216 = vst [vmem:[#allocation22_spill] sm:$0xff] %v22428_v3  ;;  %v9078_v61 = vmax.f32 %v25224_v8, %v13796_v39  ;;  %v13806_v3 = vunpack.i.l.bf16 %v13805_v12  ;;  %v24027_v46 = vunpack.i.h.bf16 %v22446_v19  ;;  %v13801_v45 = vunpack.i.l.bf16 %v22446_v19 }
 0x7bb   :  { %v22442_v16 = vsel %vm6792_vm9, %v9493_v43, %v25220_v25  ;;  %v25223_v25 = vld [vmem:[#allocation77_spill] sm:$0xff]  ;;  %v9566_v21 = vsel %vm6792_vm9, %v25226_v9, %v25225_v7  ;;  %v25227_v54 = vunpack.i.h.bf16 %v22346_v57  ;;  %v25228_v39 = vrot.slane %v22278_v41, 2 }
 0x7bc   :  { %v9077_v43 = vmax.f32 %v25223_v25, %v8976_v6  ;;  %v9695_v40 = vmax.f32 %v22258_v55, %v9566_v21  ;;  %v9698_v6 = vmax.f32 %v22278_v41, %v22363_v47  ;;  %v25229_v12 = vrot.slane %v22258_v55, 2 }
 0x7bd   :  { %v9253_v53 = vsel %vm4199_vm2, %v13807_v48, %v25227_v54  ;;  %v22478_v1 = vmax.f32 %v9078_v61, %v13806_v3  ;;  %v9256_v7 = vsel %vm4199_vm2, %v24027_v46, %v13806_v3  ;;  %v25232_v48 = vmov %v25227_v54  ;;  %v22555_v46 = vpop.permute.xlu1 %13814 }
 0x7be   :  { %v9804_v8 = vsel %vm8122_vm10, %v25229_v12, %v25228_v39  ;;  %v22476_v25 = vmax.f32 %v9073_v0, %v9253_v53  ;;  %v9254_v9 = vsel %vm4199_vm2, %v25232_v48, %v13801_v45  ;;  %v22488_v47 = vmax.f32 %v9075_v11, %v13801_v45 }
 0x7bf   :  { %25231 = vst [vmem:[#allocation99_spill] sm:$0xff] %v22478_v1  ;;  %v22486_v21 = vmax.f32 %v9074_v15, %v9254_v9  ;;  %v22490_v54 = vmax.f32 %v9077_v43, %v9256_v7  ;;  %v25234_v39 = vrot.slane %v22333_v20, 2  ;;  %v25235_v0 = vrot.slane %v22278_v41, 2 }
 0x7c0   :  { %25230 = vst [vmem:[#allocation55_spill] sm:$0xff] %v22476_v25  ;;  %25233 = vst [vmem:[#allocation83_spill] sm:$0xff] %v22488_v47  ;;  %v9481_v3 = vrot.slane %v22478_v1, 1  ;;  %v9480_v45 = vrot.slane %v22488_v47, 1  ;;  %v25236_v41 = vrot.slane %v22371_v13, 1  ;;  %v25239_v12 = vrot.slane %v22311_v37, 1 }
 0x7c1   :  { %v9810_v61 = vsel %vm8122_vm10, %v25235_v0, %v25234_v39  ;;  %v9933_v39 = vmax.f32 %v9695_v40, %v9804_v8  ;;  %v25240_v43 = vrot.slane %v22263_v14, 1  ;;  %v25241_v9 = vrot.slane %v22352_v4, 1 }
 0x7c2   :  { %v22508_v7 = vsel %vm6792_vm9, %v9481_v3, %v25236_v41  ;;  %v22515_v57 = vsel %vm6792_vm9, %v9480_v45, %v9481_v3  ;;  %v9936_v53 = vmax.f32 %v9698_v6, %v9810_v61  ;;  %v25242_v40 = vmov %v25239_v12 }
 0x7c3   :  { %25237 = vst [vmem:[#allocation25_spill] sm:$0xff] %v22508_v7  ;;  %25238 = vst [vmem:[#allocation16_spill] sm:$0xff] %v22515_v57  ;;  %v9564_v15 = vsel %vm6792_vm9, %v25240_v43, %v25239_v12  ;;  %v9993_v48 = vmax.f32 %v9933_v39, 0.0  ;;  %v9570_v8 = vsel %vm6792_vm9, %v25242_v40, %v25241_v9  ;;  %v9801_v61 = vrot.slane %v22311_v37, 2  ;;  %v22537_v39 = vpop.permute.xlu0 %13809 }
 0x7c4   :  { %v9694_v3 = vmax.f32 %v22263_v14, %v9564_v15  ;;  %v9996_v45 = vmax.f32 %v9936_v53, 0.0  ;;  %v9697_v6 = vmax.f32 %v22311_v37, %v9570_v8  ;;  %v25243_v0 = vrot.slane %v22309_v26, 1 }
 0x7c5   :  { %v25244_v12 = vrot.slane %v22280_v44, 1  ;;  %v25245_v41 = vrot.slane %v22344_v28, 1  ;;  %v25247_v15 = vrot.slane %v22309_v26, 2  ;;  %v25248_v37 = vrot.slane %v22280_v44, 2 }
 0x7c6   :  { %v25246_v11 = vmov %v25243_v0  ;;  %v25249_v8 = vrot.slane %v22344_v28, 2  ;;  %v10032_v25 = vpack.c.bf16 %v9996_v45, %v9993_v48  ;;  %v25251_v7 = vrot.slane %v22263_v14, 2 }
 0x7c7   :  { %v9562_v43 = vsel %vm6792_vm9, %v25244_v12, %v25243_v0  ;;  %v9568_v9 = vsel %vm6792_vm9, %v25246_v11, %v25245_v41  ;;  %v9800_v40 = vsel %vm8122_vm10, %v25248_v37, %v25247_v15  ;;  %v25250_v0 = vmov %v25247_v15 }
 0x7c8   :  { %v9693_v53 = vmax.f32 %v22280_v44, %v9562_v43  ;;  %v9806_v12 = vsel %vm8122_vm10, %v25250_v0, %v25249_v8  ;;  %v9802_v11 = vsel %vm8122_vm10, %v25251_v7, %v9801_v61  ;;  %v25252_v41 = vrot.slane %v22352_v4, 2  ;;  %10150 = vmatpush1.bf16.msra.mxu0 %v10032_v25 }
 0x7c9   :  { %v9696_v57 = vmax.f32 %v22309_v26, %v9568_v9  ;;  %v9932_v15 = vmax.f32 %v9694_v3, %v9802_v11  ;;  %v13812_v47 = vunpack.i.h.bf16 %v22537_v39  ;;  %v13811_v0 = vunpack.i.l.bf16 %v22537_v39 }
 0x7ca   :  { %v9808_v43 = vsel %vm8122_vm10, %v9801_v61, %v25252_v41  ;;  %v9931_v28 = vmax.f32 %v9693_v53, %v9800_v40  ;;  %v13817_v48 = vunpack.i.h.bf16 %v22555_v46  ;;  %v13816_v45 = vunpack.i.l.bf16 %v22555_v46  ;;  %v25258_v40 = vld [vmem:[#allocation84_spill] sm:$0xff] }
 0x7cb   :  { %v9935_v37 = vmax.f32 %v9697_v6, %v9808_v43  ;;  %v9934_v8 = vmax.f32 %v9696_v57, %v9806_v12  ;;  %v9992_v7 = vmax.f32 %v9932_v15, 0.0  ;;  %v25253_v61 = vrot.slane %v22235_v30, 1 }
 0x7cc   :  { %v9991_v4 = vmax.f32 %v9931_v28, 0.0  ;;  %v25254_v26 = vrot.slane %v22322_v31, 1  ;;  %v25255_v6 = vmov 0   ;;  %v25256_v25 = vunpack.i.h.bf16 %v22387_v59 }
 0x7cd   :  { %v9995_v1 = vmax.f32 %v9935_v37, 0.0  ;;  %10151 = vmatprep.subr.bf16.mxu0 %v25255_v6  ;;  %v9994_v9 = vmax.f32 %v9934_v8, 0.0  ;;  %v25257_v39 = vunpack.i.h.bf16 %v22446_v19  ;;  %v9691_v11 = vmax.f32 %v22235_v30, %v22287_v34 }
 0x7ce   :  { %v9552_v3 = vsel %vm6792_vm9, %v25254_v26, %v25253_v61  ;;  %v8975_v57 = vsel %vm3718_vm1, %v13811_v0, %v25256_v25  ;;  %v25259_v41 = vrot.slane %v22235_v30, 2  ;;  %v25260_v43 = vrot.slane %v22322_v31, 2 }
 0x7cf   :  { %v9255_v46 = vsel %vm4199_vm2, %v13816_v45, %v25257_v39  ;;  %v9688_v53 = vmax.f32 %v22322_v31, %v9552_v3  ;;  %v10031_v28 = vpack.c.bf16 %v9995_v1, %v9992_v7  ;;  %v9076_v12 = vmax.f32 %v25258_v40, %v8975_v57  ;;  %v13820_v40 = vpop.permute.xlu0 %13819 }
 0x7d0   :  { %v9790_v59 = vsel %vm8122_vm10, %v25260_v43, %v25259_v41  ;;  %v10030_v15 = vpack.c.bf16 %v9994_v9, %v9991_v4  ;;  %v25261_v37 = vrot.slane %v22263_v14, 2  ;;  %v25262_v19 = vmov %v25259_v41 }
 0x7d1   :  { %v9926_v0 = vmax.f32 %v9688_v53, %v9790_v59  ;;  %v9692_v1 = vmax.f32 %v22203_v5, %v22274_v23  ;;  %10088 = vmatprep.subr.bf16.mxu1 %v10031_v28  ;;  %v22596_v45 = vmax.f32 %v9076_v12, %v9255_v46  ;;  %v25263_v7 = vrot.slane %v22203_v5, 2 }
 0x7d2   :  { %v9796_v8 = vsel %vm8122_vm10, %v25262_v19, %v25261_v37  ;;  %v25264_v61 = vrot.slane %v22224_v2, 2  ;;  %v25265_v14 = vrot.slane %v22258_v55, 2  ;;  %10089 = vmatpush1.bf16.msra.mxu1 %v10030_v15  ;;  %v25267_v23 = vmax.f32 %v22224_v2, %v22252_v17  ;;  %v13825_v19 = vpop.permute.xlu1 %13824 }
 0x7d3   :  { %v9929_v34 = vmax.f32 %v9691_v11, %v9796_v8  ;;  %v25266_v30 = vmov %v25263_v7  ;;  %v9986_v3 = vmax.f32 %v9926_v0, 0.0  ;;  %v25268_v57 = vrot.slane %v22280_v44, 1 }
 0x7d4   :  { %v9792_v4 = vsel %vm8122_vm10, %v25264_v61, %v25263_v7  ;;  %v9798_v26 = vsel %vm8122_vm10, %v25266_v30, %v25265_v14  ;;  %v25269_v39 = vrot.slane %v22226_v63, 1  ;;  %v9475_v53 = vrot.slane %v22596_v45, 1 }
 0x7d5   :  { %v9927_v9 = vmax.f32 %v25267_v23, %v9792_v4  ;;  %v9930_v25 = vmax.f32 %v9692_v1, %v9798_v26  ;;  %v9713_v55 = vrot.slane %v22596_v45, 2  ;;  %v9989_v5 = vmax.f32 %v9929_v34, 0.0 }
 0x7d6   :  { %v9556_v46 = vsel %vm6792_vm9, %v25269_v39, %v25268_v57  ;;  %v25270_v17 = vrot.slane %v22226_v63, 2  ;;  %v25271_v41 = vrot.slane %v22320_v29, 2  ;;  %v25272_v59 = vrot.slane %v22280_v44, 2 }
 0x7d7   :  { %v9690_v28 = vmax.f32 %v22226_v63, %v9556_v46  ;;  %v9987_v12 = vmax.f32 %v9927_v9, 0.0  ;;  %v9990_v11 = vmax.f32 %v9930_v25, 0.0  ;;  %v25274_v8 = vrot.slane %v22400_v42, 1  ;;  %v25276_v25 = vld [vmem:[#allocation49_spill] sm:$0xff] }
 0x7d8   :  { %v9788_v43 = vsel %vm8122_vm10, %v25271_v41, %v25270_v17  ;;  %v25273_v15 = vmov %v25270_v17  ;;  %v10028_v1 = vpack.c.bf16 %v9989_v5, %v9986_v3  ;;  %v25275_v34 = vmax.f32 %v22320_v29, %v22341_v33 }
 0x7d9   :  { %v9794_v37 = vsel %vm8122_vm10, %v25273_v15, %v25272_v59  ;;  %v22634_v0 = vsel %vm6792_vm9, %v9475_v53, %v25274_v8  ;;  %v10029_v63 = vpack.c.bf16 %v9990_v11, %v9987_v12  ;;  %v13822_v4 = vunpack.i.h.bf16 %v13820_v40  ;;  %v25280_v11 = vld [vmem:[#allocation23_spill] sm:$0xff] }
 0x7da   :  { %v9925_v7 = vmax.f32 %v25275_v34, %v9788_v43  ;;  %v9928_v61 = vmax.f32 %v9690_v28, %v9794_v37  ;;  %v9654_v44 = vmax.f32 %v22596_v45, %v22634_v0  ;;  %v13821_v14 = vunpack.i.l.bf16 %v13820_v40  ;;  %10090 = vmatprep.subr.bf16.mxu1 %v10028_v1  ;;  %v25279_v40 = vld [vmem:[#allocation100_spill] sm:$0xff] }
 0x7db   :  { %v13827_v23 = vunpack.i.h.bf16 %v13825_v19  ;;  %v13826_v9 = vunpack.i.l.bf16 %v13825_v19  ;;  %10152 = vmatpush1.bf16.msra.mxu0 %v10029_v63  ;;  %v9129_v57 = vmax.f32 %v25276_v25, %v13822_v4  ;;  %v25277_v39 = vrot.slane %v22145_v62, 1 }
 0x7dc   :  { %v9985_v30 = vmax.f32 %v9925_v7, 0.0  ;;  %v9988_v26 = vmax.f32 %v9928_v61, 0.0  ;;  %v9009_v3 = vsel %vm3718_vm1, %v13812_v47, %v13821_v14  ;;  %v9010_v33 = vsel %vm3718_vm1, %v13821_v14, %v13822_v4  ;;  %10153 = vmatprep.subr.bf16.mxu0 %v25255_v6 }
 0x7dd   :  { %v25278_v46 = vrot.slane %v22207_v60, 1  ;;  %v9127_v12 = vmax.f32 %v25279_v40, %v9009_v3  ;;  %v9128_v17 = vmax.f32 %v25280_v11, %v9010_v33  ;;  %v9289_v41 = vsel %vm4199_vm2, %v13817_v48, %v13826_v9 }
 0x7de   :  { %v10027_v28 = vpack.c.bf16 %v9988_v26, %v9985_v30  ;;  %v22653_v43 = vmax.f32 %v9129_v57, %v13827_v23  ;;  %v9290_v47 = vsel %vm4199_vm2, %v13826_v9, %v13827_v23  ;;  %v25281_v59 = vrot.slane %v22322_v31, 1 }
 0x7df   :  { %v9540_v5 = vsel %vm6792_vm9, %v25278_v46, %v25277_v39  ;;  %v25282_v15 = vmov %v25277_v39  ;;  %v22662_v8 = vmax.f32 %v9127_v12, %v9289_v41  ;;  %v22664_v1 = vmax.f32 %v9128_v17, %v9290_v47 }
 0x7e0   :  { %v9546_v37 = vsel %vm6792_vm9, %v25282_v15, %v25281_v59  ;;  %v9682_v19 = vmax.f32 %v22207_v60, %v9540_v5  ;;  %10091 = vmatpush1.bf16.msra.mxu1 %v10027_v28  ;;  %v25283_v34 = vrot.slane %v22145_v62, 2  ;;  %v25284_v7 = vrot.slane %v22207_v60, 2  ;;  %v22690_v28 = vpop.permute.xlu0 %13829 }
 0x7e1   :  { %v9685_v48 = vmax.f32 %v22145_v62, %v9546_v37  ;;  %v9583_v63 = vrot.slane %v22653_v43, 1  ;;  %v9821_v4 = vrot.slane %v22653_v43, 2  ;;  %v25285_v14 = vrot.slane %v22322_v31, 2 }
 0x7e2   :  { %v9778_v61 = vsel %vm8122_vm10, %v25284_v7, %v25283_v34  ;;  %v25286_v30 = vmov %v25283_v34  ;;  %v24042_v9 = vrot.slane %v22662_v8, 1  ;;  %v9581_v25 = vrot.slane %v22664_v1, 1 }
 0x7e3   :  { %v9784_v26 = vsel %vm8122_vm10, %v25286_v30, %v25285_v14  ;;  %v9920_v23 = vmax.f32 %v9682_v19, %v9778_v61  ;;  %v9819_v3 = vrot.slane %v22664_v1, 2  ;;  %v9686_v46 = vmax.f32 %v22111_v18, %v22249_v35  ;;  %v13835_v19 = vpop.permute.xlu1 %13834 }
 0x7e4   :  { %v9923_v33 = vmax.f32 %v9685_v48, %v9784_v26  ;;  %v25287_v31 = vrot.slane %v22111_v18, 2  ;;  %v25288_v62 = vrot.slane %v22143_v36, 2  ;;  %v25289_v40 = vrot.slane %v22224_v2, 2 }
 0x7e5   :  { %v9980_v39 = vmax.f32 %v9920_v23, 0.0  ;;  %v25291_v17 = vmax.f32 %v22143_v36, %v22178_v22  ;;  %v25292_v35 = vrot.slane %v22320_v29, 1  ;;  %v25293_v47 = vrot.slane %v22154_v56, 1 }
 0x7e6   :  { %v9780_v5 = vsel %vm8122_vm10, %v25288_v62, %v25287_v31  ;;  %v25290_v12 = vmov %v25287_v31  ;;  %v25294_v15 = vrot.slane %v22154_v56, 2  ;;  %v25295_v37 = vrot.slane %v22205_v10, 2 }
 0x7e7   :  { %v9786_v11 = vsel %vm8122_vm10, %v25290_v12, %v25289_v40  ;;  %v9921_v41 = vmax.f32 %v25291_v17, %v9780_v5  ;;  %v9544_v59 = vsel %vm6792_vm9, %v25293_v47, %v25292_v35  ;;  %v9983_v18 = vmax.f32 %v9923_v33, 0.0  ;;  %v25299_v12 = vld [vmem:[#allocation60_spill] sm:$0xff] }
 0x7e8   :  { %v9776_v2 = vsel %vm8122_vm10, %v25295_v37, %v25294_v15  ;;  %v9924_v48 = vmax.f32 %v9686_v46, %v9786_v11  ;;  %v9684_v34 = vmax.f32 %v22154_v56, %v9544_v59  ;;  %v25296_v22 = vrot.slane %v22320_v29, 2  ;;  %v25304_v37 = vld [vmem:[#allocation26_spill] sm:$0xff] }
 0x7e9   :  { %v25297_v7 = vmov %v25294_v15  ;;  %v9981_v14 = vmax.f32 %v9921_v41, 0.0  ;;  %v25298_v30 = vmax.f32 %v22205_v10, %v22233_v58  ;;  %v13832_v23 = vunpack.i.h.bf16 %v22690_v28 }
 0x7ea   :  { %v9782_v61 = vsel %vm8122_vm10, %v25297_v7, %v25296_v22  ;;  %v13831_v31 = vunpack.i.l.bf16 %v22690_v28  ;;  %v10025_v62 = vpack.c.bf16 %v9983_v18, %v9980_v39  ;;  %v9984_v33 = vmax.f32 %v9924_v48, 0.0  ;;  %v25305_v22 = vld [vmem:[#allocation50_spill] sm:$0xff] }
 0x7eb   :  { %v9919_v26 = vmax.f32 %v25298_v30, %v9776_v2  ;;  %v9922_v46 = vmax.f32 %v9684_v34, %v9782_v61  ;;  %v13837_v5 = vunpack.i.h.bf16 %v13835_v19  ;;  %v13836_v11 = vunpack.i.l.bf16 %v13835_v19 }
 0x7ec   :  { %v9132_v29 = vmax.f32 %v25299_v12, %v13831_v31  ;;  %v25300_v56 = vrot.slane %v22079_v32, 1  ;;  %v25301_v17 = vrot.slane %v22130_v38, 1  ;;  %10092 = vmatprep.subr.bf16.mxu1 %v10025_v62  ;;  %v10026_v58 = vpack.c.bf16 %v9984_v33, %v9981_v14 }
 0x7ed   :  { %v9979_v40 = vmax.f32 %v9919_v26, 0.0  ;;  %v9982_v35 = vmax.f32 %v9922_v46, 0.0  ;;  %v9012_v47 = vsel %vm3718_vm1, %v13837_v5, %v13831_v31  ;;  %v25302_v39 = vrot.slane %v22207_v60, 1 }
 0x7ee   :  { %v9528_v41 = vsel %vm6792_vm9, %v25301_v17, %v25300_v56  ;;  %v25303_v59 = vmov %v25300_v56  ;;  %v9131_v2 = vmax.f32 %v25304_v37, %v9012_v47  ;;  %v9011_v19 = vsel %vm3718_vm1, %v13836_v11, %v13837_v5  ;;  %10154 = vmatpush1.bf16.msra.mxu0 %v10026_v58  ;;  %v25310_v5 = vld [vmem:[#allocation96_spill] sm:$0xff]  ;;  %v13845_v17 = vpop.permute.xlu0 %13844 }
 0x7ef   :  { %v9534_v15 = vsel %vm6792_vm9, %v25303_v59, %v25302_v39  ;;  %v9676_v18 = vmax.f32 %v22130_v38, %v9528_v41  ;;  %v10024_v34 = vpack.c.bf16 %v9982_v35, %v9979_v40  ;;  %v9130_v7 = vmax.f32 %v25305_v22, %v9011_v19  ;;  %10155 = vmatprep.subr.bf16.mxu0 %v25255_v6  ;;  %v25314_v41 = vld [vmem:[#allocation79_spill] sm:$0xff]  ;;  %v25318_v39 = vld [vmem:[#allocation20_spill] sm:$0xff]  ;;  %v22775_v22 = vpop.permute.xlu1 %13839 }
 0x7f0   :  { %v9679_v48 = vmax.f32 %v22079_v32, %v9534_v15  ;;  %v25306_v61 = vrot.slane %v22079_v32, 2  ;;  %v25307_v14 = vrot.slane %v22130_v38, 2  ;;  %v25308_v26 = vrot.slane %v22207_v60, 2  ;;  %v25313_v60 = vld [vmem:[#allocation63_spill] sm:$0xff]  ;;  %v25315_v32 = vld [vmem:[#allocation69_spill] sm:$0xff] }
 0x7f1   :  { %v9680_v40 = vmax.f32 %v25310_v5, %v22173_v51  ;;  %v25311_v12 = vrot.slane %v22143_v36, 2  ;;  %v25312_v11 = vrot.slane %v25310_v5, 2  ;;  %10093 = vmatpush1.bf16.msra.mxu1 %v10024_v34  ;;  %v25316_v58 = vmax.f32 %v25314_v41, %v25315_v32  ;;  %v25321_v36 = vld [vmem:[#allocation13_spill] sm:$0xff] }
 0x7f2   :  { %v9766_v30 = vsel %vm8122_vm10, %v25307_v14, %v25306_v61  ;;  %v25309_v31 = vmov %v25306_v61  ;;  %v25317_v47 = vrot.slane %v22205_v10, 1  ;;  %v25319_v59 = vrot.slane %v25318_v39, 1 }
 0x7f3   :  { %v9772_v62 = vsel %vm8122_vm10, %v25309_v31, %v25308_v26  ;;  %v9914_v33 = vmax.f32 %v9676_v18, %v9766_v30  ;;  %v9774_v56 = vsel %vm8122_vm10, %v25312_v11, %v25311_v12  ;;  %v9915_v35 = vmax.f32 %v25316_v58, %v25313_v60 }
 0x7f4   :  { %v9917_v46 = vmax.f32 %v9679_v48, %v9772_v62  ;;  %v9532_v15 = vsel %vm6792_vm9, %v25319_v59, %v25317_v47  ;;  %v25320_v51 = vrot.slane %v25318_v39, 2  ;;  %v25322_v37 = vrot.slane %v25321_v36, 2  ;;  %v25325_v62 = vld [vmem:[#allocation24_spill] sm:$0xff] }
 0x7f5   :  { %v25323_v18 = vrot.slane %v22205_v10, 2  ;;  %v9974_v61 = vmax.f32 %v9914_v33, 0.0  ;;  %v9918_v30 = vmax.f32 %v9680_v40, %v9774_v56  ;;  %v9678_v26 = vmax.f32 %v25318_v39, %v9532_v15  ;;  %v25329_v56 = vld [vmem:[#allocation93_spill] sm:$0xff] }
 0x7f6   :  { %v9764_v19 = vsel %vm8122_vm10, %v25322_v37, %v25320_v51  ;;  %v25324_v48 = vmov %v25320_v51  ;;  %v9977_v14 = vmax.f32 %v9917_v46, 0.0  ;;  %v9975_v31 = vmax.f32 %v9915_v35, 0.0  ;;  %v25327_v46 = vld [vmem:[#allocation5_spill] sm:$0xff] }
 0x7f7   :  { %v9770_v34 = vsel %vm8122_vm10, %v25324_v48, %v25323_v18  ;;  %v25326_v5 = vmax.f32 %v25321_v36, %v25325_v62  ;;  %v13847_v11 = vunpack.i.h.bf16 %v13845_v17  ;;  %v13846_v60 = vunpack.i.l.bf16 %v13845_v17 }
 0x7f8   :  { %v10022_v32 = vpack.c.bf16 %v9977_v14, %v9974_v61  ;;  %v9978_v10 = vmax.f32 %v9918_v30, 0.0  ;;  %v9916_v58 = vmax.f32 %v9678_v26, %v9770_v34  ;;  %v13842_v47 = vunpack.i.h.bf16 %v22775_v22 }
 0x7f9   :  { %v9913_v12 = vmax.f32 %v25326_v5, %v9764_v19  ;;  %v9291_v51 = vsel %vm4199_vm2, %v13846_v60, %v13847_v11  ;;  %v13841_v33 = vunpack.i.l.bf16 %v22775_v22  ;;  %v25328_v40 = vrot.slane %v25327_v46, 1 }
 0x7fa   :  { %v25330_v35 = vrot.slane %v25329_v56, 1  ;;  %10094 = vmatprep.subr.bf16.mxu1 %v10022_v32  ;;  %v10023_v15 = vpack.c.bf16 %v9978_v10, %v9975_v31  ;;  %v9976_v37 = vmax.f32 %v9916_v58, 0.0  ;;  %v22789_v17 = vmax.f32 %v9130_v7, %v9291_v51  ;;  %v25337_v51 = vld [vmem:[#allocation97_spill] sm:$0xff] }
 0x7fb   :  { %v9973_v59 = vmax.f32 %v9913_v12, 0.0  ;;  %v25331_v19 = vrot.slane %v22130_v38, 1  ;;  %v25332_v18 = vmov %v25328_v40  ;;  %v9292_v34 = vsel %vm4199_vm2, %v13847_v11, %v13841_v33 }
 0x7fc   :  { %v9516_v39 = vsel %vm6792_vm9, %v25330_v35, %v25328_v40  ;;  %v22797_v22 = vmax.f32 %v9132_v29, %v13841_v33  ;;  %10156 = vmatpush1.bf16.msra.mxu0 %v10023_v15  ;;  %v22802_v7 = vmax.f32 %v9131_v2, %v9292_v34  ;;  %v25333_v31 = vrot.slane %v25327_v46, 2  ;;  %v25338_v33 = vld [vmem:[#allocation64_spill] sm:$0xff]  ;;  %v13850_v35 = vpop.permute.xlu0 %13849 }
 0x7fd   :  { %v9522_v48 = vsel %vm6792_vm9, %v25332_v18, %v25331_v19  ;;  %v9670_v61 = vmax.f32 %v25329_v56, %v9516_v39  ;;  %v10021_v30 = vpack.c.bf16 %v9976_v37, %v9973_v59  ;;  %v25334_v62 = vrot.slane %v25329_v56, 2  ;;  %10157 = vmatprep.subr.bf16.mxu0 %v25255_v6  ;;  %v25341_v19 = vld [vmem:[#allocation4_spill] sm:$0xff] }
 0x7fe   :  { %v9673_v14 = vmax.f32 %v25327_v46, %v9522_v48  ;;  %v9589_v12 = vrot.slane %v22797_v22, 1  ;;  %v9827_v29 = vrot.slane %v22797_v22, 2  ;;  %v25335_v11 = vrot.slane %v22130_v38, 2 }
 0x7ff   :  { %v9754_v5 = vsel %vm8122_vm10, %v25334_v62, %v25333_v31  ;;  %v25336_v60 = vmov %v25333_v31  ;;  %10095 = vmatpush1.bf16.msra.mxu1 %v10021_v30  ;;  %v9587_v2 = vrot.slane %v22802_v7, 1  ;;  %v9825_v58 = vrot.slane %v22802_v7, 2  ;;  %v25343_v30 = vld [vmem:[#allocation15_spill] sm:$0xff] }
 0x800   :  { %v9760_v32 = vsel %vm8122_vm10, %v25336_v60, %v25335_v11  ;;  %v9908_v10 = vmax.f32 %v9670_v61, %v9754_v5  ;;  %v9674_v40 = vmax.f32 %v25338_v33, %v25337_v51  ;;  %v22824_v38 = vmax.f32 %v22797_v22, %v9589_v12  ;;  %v25346_v60 = vld [vmem:[#allocation45_spill] sm:$0xff] }
 0x801   :  { %v9911_v59 = vmax.f32 %v9673_v14, %v9760_v32  ;;  %v25339_v39 = vrot.slane %v25314_v41, 2  ;;  %v25340_v15 = vrot.slane %v25338_v33, 2  ;;  %v9969_v18 = vmax.f32 %v25341_v19, 0.0  ;;  %v13855_v41 = vpop.permute.xlu1 %13854 }
 0x802   :  { %v9968_v46 = vmax.f32 %v9908_v10, 0.0  ;;  %v22835_v48 = vmax.f32 %v22802_v7, %v9587_v2  ;;  %v25342_v14 = vrot.slane %v25321_v36, 1  ;;  %v25344_v31 = vrot.slane %v25343_v30, 1 }
 0x803   :  { %v9762_v37 = vsel %vm8122_vm10, %v25340_v15, %v25339_v39  ;;  %v9971_v34 = vmax.f32 %v9911_v59, 0.0  ;;  %v25345_v11 = vrot.slane %v25343_v30, 2  ;;  %v25347_v32 = vrot.slane %v25346_v60, 2 }
 0x804   :  { %v9912_v61 = vmax.f32 %v9674_v40, %v9762_v37  ;;  %v9520_v62 = vsel %vm6792_vm9, %v25344_v31, %v25342_v14  ;;  %v25348_v51 = vrot.slane %v25321_v36, 2  ;;  %v13852_v40 = vunpack.i.h.bf16 %v13850_v35  ;;  %v25350_v37 = vld [vmem:[#allocation53_spill] sm:$0xff] }
 0x805   :  { %v9672_v5 = vmax.f32 %v25343_v30, %v9520_v62  ;;  %v9752_v10 = vsel %vm8122_vm10, %v25347_v32, %v25345_v11  ;;  %v25349_v59 = vmov %v25345_v11  ;;  %v10019_v39 = vpack.c.bf16 %v9971_v34, %v9968_v46  ;;  %v25352_v34 = vld [vmem:[#allocation2_spill] sm:$0xff] }
 0x806   :  { %v9758_v33 = vsel %vm8122_vm10, %v25349_v59, %v25348_v51  ;;  %v9972_v15 = vmax.f32 %v9912_v61, 0.0  ;;  %v25351_v19 = vmax.f32 %v25346_v60, %v25350_v37  ;;  %v13851_v31 = vunpack.i.l.bf16 %v13850_v35  ;;  %v25353_v59 = vld [vmem:[#allocation18_spill] sm:$0xff]  ;;  %v25354_v35 = vld [vmem:[#allocation51_spill] sm:$0xff] }
 0x807   :  { %v9910_v62 = vmax.f32 %v9672_v5, %v9758_v33  ;;  %v9007_v57 = vsel %vm3718_vm1, %v13852_v40, %v13832_v23  ;;  %v13857_v11 = vunpack.i.h.bf16 %v13855_v41  ;;  %v13856_v32 = vunpack.i.l.bf16 %v13855_v41  ;;  %10096 = vmatprep.subr.bf16.mxu1 %v10019_v39  ;;  %v25356_v39 = vld [vmem:[#allocation52_spill] sm:$0xff] }
 0x808   :  { %v9907_v14 = vmax.f32 %v25351_v19, %v9752_v10  ;;  %v10020_v36 = vpack.c.bf16 %v9972_v15, %v9969_v18  ;;  %v9008_v46 = vsel %vm3718_vm1, %v13832_v23, %v13851_v31  ;;  %v9124_v61 = vmax.f32 %v25352_v34, %v9007_v57  ;;  %v25358_v15 = vld [vmem:[#allocation98_spill] sm:$0xff]  ;;  %v25359_v57 = vld [vmem:[#allocation3_spill] sm:$0xff] }
 0x809   :  { %v9970_v51 = vmax.f32 %v9910_v62, 0.0  ;;  %v9125_v10 = vmax.f32 %v25353_v59, %v9008_v46  ;;  %v9126_v5 = vmax.f32 %v25354_v35, %v13851_v31  ;;  %v9287_v33 = vsel %vm4199_vm2, %v13857_v11, %v13842_v47 }
 0x80a   :  { %v9967_v30 = vmax.f32 %v9907_v14, 0.0  ;;  %10158 = vmatpush1.bf16.msra.mxu0 %v10020_v36  ;;  %v9288_v40 = vsel %vm4199_vm2, %v13842_v47, %v13856_v32  ;;  %v22867_v41 = vmax.f32 %v9124_v61, %v9287_v33  ;;  %v25355_v18 = vrot.slane %v25329_v56, 1 }
 0x80b   :  { %v25357_v28 = vrot.slane %v25356_v39, 1  ;;  %v9664_v37 = vmax.f32 %v25359_v57, %v25358_v15  ;;  %v22876_v14 = vmax.f32 %v9125_v10, %v9288_v40  ;;  %v22878_v31 = vmax.f32 %v9126_v5, %v13856_v32  ;;  %10159 = vmatprep.subr.bf16.mxu0 %v25255_v6  ;;  %v25364_v40 = vld [vmem:[#allocation36_spill] sm:$0xff] }
 0x80c   :  { %v10018_v19 = vpack.c.bf16 %v9970_v51, %v9967_v30  ;;  %v24040_v47 = vrot.slane %v22867_v41, 1  ;;  %v25360_v36 = vrot.slane %v25356_v39, 2  ;;  %v25361_v46 = vrot.slane %v25359_v57, 2 }
 0x80d   :  { %v9510_v23 = vsel %vm6792_vm9, %v25357_v28, %v25355_v18  ;;  %v25362_v30 = vrot.slane %v25329_v56, 2  ;;  %v9577_v59 = vrot.slane %v22878_v31, 1  ;;  %v24041_v35 = vrot.slane %v22878_v31, 2  ;;  %v25365_v18 = vld [vmem:[#allocation87_spill] sm:$0xff] }
 0x80e   :  { %v9667_v62 = vmax.f32 %v25356_v39, %v9510_v23  ;;  %v9742_v34 = vsel %vm8122_vm10, %v25361_v46, %v25360_v36  ;;  %v25363_v61 = vmov %v25360_v36  ;;  %10097 = vmatpush1.bf16.msra.mxu1 %v10018_v19  ;;  %v22903_v5 = vsel %vm6792_vm9, %v24040_v47, %v24042_v9  ;;  %v25372_v19 = vld [vmem:[#allocation95_spill] sm:$0xff] }
 0x80f   :  { %v9748_v32 = vsel %vm8122_vm10, %v25363_v61, %v25362_v30  ;;  %v9902_v56 = vmax.f32 %v9664_v37, %v9742_v34  ;;  %v9668_v39 = vmax.f32 %v25365_v18, %v25364_v40  ;;  %v25366_v28 = vrot.slane %v22333_v20, 1 }
 0x810   :  { %v9905_v33 = vmax.f32 %v9667_v62, %v9748_v32  ;;  %v9584_v15 = vsel %vm6792_vm9, %v9577_v59, %v9583_v63  ;;  %v9822_v37 = vsel %vm8122_vm10, %v24041_v35, %v9821_v4  ;;  %v25367_v34 = vrot.slane %v25365_v18, 2  ;;  %v25369_v32 = vld [vmem:[#allocation42_spill] sm:$0xff] }
 0x811   :  { %v22910_v23 = vsel %vm6792_vm9, %v25366_v28, %v9577_v59  ;;  %v9704_v62 = vmax.f32 %v22878_v31, %v9584_v15  ;;  %v9962_v36 = vmax.f32 %v9902_v56, 0.0  ;;  %v25368_v30 = vrot.slane %v25219_v24, 2  ;;  %v25375_v56 = vld [vmem:[#allocation29_spill] sm:$0xff] }
 0x812   :  { %v9965_v46 = vmax.f32 %v9905_v33, 0.0  ;;  %v25370_v59 = vrot.slane %v25369_v32, 2  ;;  %v25371_v40 = vmov %v25367_v34  ;;  %v25373_v11 = vmax.f32 %v25219_v24, %v25372_v19 }
 0x813   :  { %v9744_v61 = vsel %vm8122_vm10, %v25368_v30, %v25367_v34  ;;  %v25374_v15 = vrot.slane %v25346_v60, 1  ;;  %v25376_v33 = vrot.slane %v25375_v56, 1  ;;  %v25377_v51 = vrot.slane %v25375_v56, 2 }
 0x814   :  { %v9750_v28 = vsel %vm8122_vm10, %v25371_v40, %v25370_v59  ;;  %v9903_v47 = vmax.f32 %v25373_v11, %v9744_v61  ;;  %v25378_v34 = vrot.slane %v21962_v27, 2  ;;  %v22946_v32 = vmax.f32 %v9704_v62, %v9822_v37 }
 0x815   :  { %v9508_v10 = vsel %vm6792_vm9, %v25376_v33, %v25374_v15  ;;  %v10016_v18 = vpack.c.bf16 %v9965_v46, %v9962_v36  ;;  %v9906_v59 = vmax.f32 %v9668_v39, %v9750_v28  ;;  %v25379_v11 = vrot.slane %v25346_v60, 2  ;;  %v25381_v15 = vld [vmem:[#allocation19_spill] sm:$0xff] }
 0x816   :  { %v9740_v30 = vsel %vm8122_vm10, %v25378_v34, %v25377_v51  ;;  %v9666_v40 = vmax.f32 %v25375_v56, %v9508_v10  ;;  %v9963_v19 = vmax.f32 %v9903_v47, 0.0  ;;  %v25380_v61 = vmov %v25377_v51 }
 0x817   :  { %v9746_v35 = vsel %vm8122_vm10, %v25380_v61, %v25379_v11  ;;  %v25382_v33 = vmax.f32 %v21962_v27, %v25381_v15  ;;  %v25383_v26 = vrot.slane %v22405_v50, 1  ;;  %v25384_v51 = vrot.slane %v22378_v52, 1  ;;  %10098 = vmatprep.subr.bf16.mxu1 %v10016_v18  ;;  %v25391_v61 = vld [vmem:[#allocation34_spill] sm:$0xff] }
 0x818   :  { %v9966_v39 = vmax.f32 %v9906_v59, 0.0  ;;  %v9904_v10 = vmax.f32 %v9666_v40, %v9746_v35  ;;  %v25385_v47 = vrot.slane %v25359_v57, 1  ;;  %v25387_v56 = vrot.slane %v22405_v50, 2 }
 0x819   :  { %v9901_v9 = vmax.f32 %v25382_v33, %v9740_v30  ;;  %v9492_v37 = vsel %vm6792_vm9, %v25384_v51, %v25383_v26  ;;  %v25386_v60 = vmov %v25383_v26  ;;  %v25388_v34 = vrot.slane %v22378_v52, 2 }
 0x81a   :  { %v9498_v62 = vsel %vm6792_vm9, %v25386_v60, %v25385_v47  ;;  %v9658_v36 = vmax.f32 %v22378_v52, %v9492_v37  ;;  %v25389_v30 = vrot.slane %v25359_v57, 2  ;;  %v25390_v35 = vmov %v25387_v56  ;;  %v25396_v60 = vld [vmem:[#allocation47_spill] sm:$0xff] }
 0x81b   :  { %v9961_v46 = vmax.f32 %v9901_v9, 0.0  ;;  %v9661_v28 = vmax.f32 %v22405_v50, %v9498_v62  ;;  %v9730_v26 = vsel %vm8122_vm10, %v25388_v34, %v25387_v56  ;;  %v10017_v59 = vpack.c.bf16 %v9966_v39, %v9963_v19 }
 0x81c   :  { %v9736_v18 = vsel %vm8122_vm10, %v25390_v35, %v25389_v30  ;;  %v9964_v40 = vmax.f32 %v9904_v10, 0.0  ;;  %v9896_v11 = vmax.f32 %v9658_v36, %v9730_v26  ;;  %v9659_v9 = vmax.f32 %v22371_v13, %v25391_v61 }
 0x81d   :  { %v9899_v15 = vmax.f32 %v9661_v28, %v9736_v18  ;;  %v25392_v33 = vrot.slane %v22408_v49, 2  ;;  %v25393_v51 = vrot.slane %v22371_v13, 2  ;;  %v25394_v47 = vrot.slane %v25219_v24, 2  ;;  %10160 = vmatpush1.bf16.msra.mxu0 %v10017_v59  ;;  %v25402_v18 = vld [vmem:[#allocation22_spill] sm:$0xff] }
 0x81e   :  { %v25397_v19 = vrot.slane %v25396_v60, 2  ;;  %v25398_v39 = vrot.slane %v22400_v42, 2  ;;  %v10015_v62 = vpack.c.bf16 %v9964_v40, %v9961_v46  ;;  %v9956_v36 = vmax.f32 %v9896_v11, 0.0  ;;  %10161 = vmatprep.subr.bf16.mxu0 %v25255_v6 }
 0x81f   :  { %v9732_v37 = vsel %vm8122_vm10, %v25393_v51, %v25392_v33  ;;  %v25395_v57 = vmov %v25392_v33  ;;  %v25399_v56 = vmax.f32 %v22408_v49, %v22442_v16  ;;  %v9959_v26 = vmax.f32 %v9899_v15, 0.0 }
 0x820   :  { %v9738_v50 = vsel %vm8122_vm10, %v25395_v57, %v25394_v47  ;;  %v9728_v10 = vsel %vm8122_vm10, %v25398_v39, %v25397_v19  ;;  %v9897_v28 = vmax.f32 %v9659_v9, %v9732_v37  ;;  %v25400_v24 = vrot.slane %v21962_v27, 2  ;;  %10099 = vmatpush1.bf16.msra.mxu1 %v10015_v62  ;;  %v25406_v9 = vld [vmem:[#allocation57_spill] sm:$0xff] }
 0x821   :  { %v9900_v34 = vmax.f32 %v25399_v56, %v9738_v50  ;;  %v25401_v30 = vmov %v25397_v19  ;;  %v25403_v61 = vmax.f32 %v22400_v42, %v25402_v18  ;;  %v25404_v46 = vrot.slane %v22490_v54, 1  ;;  %v25416_v18 = vld [vmem:[#allocation83_spill] sm:$0xff] }
 0x822   :  { %v9734_v35 = vsel %vm8122_vm10, %v25401_v30, %v25400_v24  ;;  %v25405_v40 = vrot.slane %v22486_v21, 1  ;;  %v9957_v49 = vmax.f32 %v9897_v28, 0.0  ;;  %v25407_v27 = vmax.f32 %v25396_v60, %v25406_v9  ;;  %v25414_v30 = vld [vmem:[#allocation99_spill] sm:$0xff] }
 0x823   :  { %v9895_v59 = vmax.f32 %v25403_v61, %v9728_v10  ;;  %v9960_v11 = vmax.f32 %v9900_v34, 0.0  ;;  %v25408_v33 = vrot.slane %v22378_v52, 1  ;;  %v25409_v51 = vmov %v25404_v46 }
 0x824   :  { %v9479_v16 = vsel %vm6792_vm9, %v25405_v40, %v25404_v46  ;;  %v9898_v15 = vmax.f32 %v25407_v27, %v9734_v35  ;;  %v10013_v47 = vpack.c.bf16 %v9959_v26, %v9956_v36  ;;  %v25410_v62 = vrot.slane %v22490_v54, 2 }
 0x825   :  { %v9486_v37 = vsel %vm6792_vm9, %v25409_v51, %v25408_v33  ;;  %v9955_v57 = vmax.f32 %v9895_v59, 0.0  ;;  %v9652_v50 = vmax.f32 %v22486_v21, %v9479_v16  ;;  %v10014_v39 = vpack.c.bf16 %v9960_v11, %v9957_v49  ;;  %v25422_v11 = vld [vmem:[#allocation25_spill] sm:$0xff] }
 0x826   :  { %v9655_v19 = vmax.f32 %v22490_v54, %v9486_v37  ;;  %v9958_v10 = vmax.f32 %v9898_v15, 0.0  ;;  %v25411_v28 = vrot.slane %v22486_v21, 2  ;;  %v25412_v56 = vrot.slane %v22378_v52, 2  ;;  %10100 = vmatprep.subr.bf16.mxu1 %v10013_v47  ;;  %v25420_v54 = vld [vmem:[#allocation16_spill] sm:$0xff]  ;;  %v25424_v15 = vld [vmem:[#allocation55_spill] sm:$0xff] }
 0x827   :  { %v25413_v34 = vmov %v25410_v62  ;;  %v25415_v35 = vrot.slane %v25414_v30, 2  ;;  %v25417_v61 = vrot.slane %v25416_v18, 2  ;;  %v25418_v46 = vrot.slane %v22371_v13, 2  ;;  %10162 = vmatpush1.bf16.msra.mxu0 %v10014_v39 }
 0x828   :  { %v9717_v60 = vsel %vm8122_vm10, %v25411_v28, %v25410_v62  ;;  %v9724_v24 = vsel %vm8122_vm10, %v25413_v34, %v25412_v56  ;;  %v10012_v52 = vpack.c.bf16 %v9958_v10, %v9955_v57  ;;  %v25421_v16 = vmax.f32 %v25416_v18, %v25420_v54  ;;  %10163 = vmatprep.subr.bf16.mxu0 %v25255_v6 }
 0x829   :  { %v9890_v36 = vmax.f32 %v9652_v50, %v9717_v60  ;;  %v9893_v26 = vmax.f32 %v9655_v19, %v9724_v24  ;;  %v9720_v59 = vsel %vm8122_vm10, %v25417_v61, %v25415_v35  ;;  %v25419_v21 = vmov %v25415_v35 }
 0x82a   :  { %v9726_v40 = vsel %vm8122_vm10, %v25419_v21, %v25418_v46  ;;  %v9891_v49 = vmax.f32 %v25421_v16, %v9720_v59  ;;  %v25423_v9 = vmax.f32 %v25414_v30, %v25422_v11  ;;  %v25425_v33 = vrot.slane %v25424_v15, 1  ;;  %10101 = vmatpush1.bf16.msra.mxu1 %v10012_v52 }
 0x82b   :  { %v9950_v51 = vmax.f32 %v9890_v36, 0.0  ;;  %v9953_v37 = vmax.f32 %v9893_v26, 0.0  ;;  %v25426_v57 = vrot.slane %v25424_v15, 2  ;;  %v25427_v10 = vrot.slane %v22400_v42, 2 }
 0x82c   :  { %v9894_v27 = vmax.f32 %v25423_v9, %v9726_v40  ;;  %v9476_v13 = vsel %vm6792_vm9, %v25425_v33, %v9475_v53  ;;  %v9951_v19 = vmax.f32 %v9891_v49, 0.0  ;;  %v9588_v62 = vsel %vm6792_vm9, %v9581_v25, %v9587_v2  ;;  %v25435_v9 = vld [vmem:[#allocation81_spill] sm:$0xff] }
 0x82d   :  { %v9651_v47 = vmax.f32 %v25424_v15, %v9476_v13  ;;  %v9714_v50 = vsel %vm8122_vm10, %v25426_v57, %v9713_v55  ;;  %v9722_v53 = vsel %vm8122_vm10, %v9713_v55, %v25427_v10  ;;  %v10010_v28 = vpack.c.bf16 %v9953_v37, %v9950_v51 }
 0x82e   :  { %v9954_v39 = vmax.f32 %v9894_v27, 0.0  ;;  %v9892_v56 = vmax.f32 %v9654_v44, %v9722_v53  ;;  %v9706_v34 = vmax.f32 %v22664_v1, %v9588_v62  ;;  %v9826_v42 = vsel %vm8122_vm10, %v9819_v3, %v9825_v58  ;;  %v14488_v62 = vld [vmem:[%s23606_s6 + $0x4] ss:$8 sps:$4 sm:$0xff]  }
 0x82f   :  { %v9889_v60 = vmax.f32 %v9651_v47, %v9714_v50  ;;  %v9947_v55 = vmax.f32 %v22835_v48, %v9825_v58  ;;  %10102 = vmatprep.subr.bf16.mxu1 %v10010_v28  ;;  %v9590_v45 = vsel %vm6792_vm9, %v9583_v63, %v9589_v12  ;;  %v9828_v7 = vsel %vm8122_vm10, %v9821_v4, %v9827_v29 }
 0x830   :  { %v10011_v24 = vpack.c.bf16 %v9954_v39, %v9951_v19  ;;  %v9952_v36 = vmax.f32 %v9892_v56, 0.0  ;;  %v9944_v26 = vmax.f32 %v9706_v34, %v9826_v42  ;;  %v9707_v44 = vmax.f32 %v22653_v43, %v9590_v45  ;;  %v25442_v34 = vld [vmem:[#allocation17_spill] sm:$0xff]  ;;  %12449 = vmatprep.mubr.msk.bf16.mxu1 %vm10068_vm12, %v14488_v62  ;;  %12452 = vmatprep.mubr.msk.bf16.mxu0 %vm10068_vm12, %v14488_v62  ;;  %v14531_v62 = vld [vmem:[%s23607_s7] sm:$0xff]  }
 0x831   :  { %v9949_v2 = vmax.f32 %v9889_v60, 0.0  ;;  %v10007_v0 = vmax.f32 %v9947_v55, 0.0  ;;  %v9948_v58 = vmax.f32 %v22824_v38, %v9827_v29  ;;  %v25428_v63 = vrot.slane %v22789_v17, 1 }
 0x832   :  { %10164 = vmatpush1.bf16.msra.mxu0 %v10011_v24  ;;  %v10004_v30 = vmax.f32 %v9944_v26, 0.0  ;;  %v25429_v12 = vrot.slane %v22662_v8, 1  ;;  %v9945_v61 = vmax.f32 %v9707_v44, %v9828_v7  ;;  %v9823_v29 = vrot.slane %v22789_v17, 2 }
 0x833   :  { %v10009_v48 = vpack.c.bf16 %v9952_v36, %v9949_v2  ;;  %10177 = vmatprep.subr.bf16.mxu0 %v25255_v6  ;;  %v25430_v18 = vmov %v25428_v63  ;;  %v10008_v4 = vmax.f32 %v9948_v58, 0.0  ;;  %v9701_v59 = vmax.f32 %v22333_v20, %v22910_v23 }
 0x834   :  { %v9586_v35 = vsel %vm6792_vm9, %v25429_v12, %v25428_v63  ;;  %v9708_v43 = vmax.f32 %v22789_v17, %v25430_v18  ;;  %v10037_v38 = vpack.c.bf16 %v10007_v0, %v10004_v30  ;;  %v25431_v46 = vrot.slane %v22878_v31, 2  ;;  %v14486_v18 = vld [vmem:[%s23606_s6] ss:$8 sps:$4 sm:$0xff]  }
 0x835   :  { %v9705_v22 = vmax.f32 %v22662_v8, %v9586_v35  ;;  %10103 = vmatpush1.bf16.msra.mxu1 %v10009_v48  ;;  %v25432_v21 = vrot.slane %v22333_v20, 2  ;;  %v10002_v52 = vmax.f32 %v22946_v32, 0.0  ;;  %v10005_v54 = vmax.f32 %v9945_v61, 0.0  ;;  %v14489_v35 = vld [vmem:[%s23606_s6 + $0x14] ss:$8 sps:$4 sm:$0xff]  }
 0x836   :  { %v25433_v16 = vrot.slane %v22662_v8, 2  ;;  %v9946_v11 = vmax.f32 %v9708_v43, %v9823_v29  ;;  %v25434_v17 = vrot.slane %v22876_v14, 1  ;;  %v25436_v27 = vrot.slane %v25435_v9, 1  ;;  %12448 = vmatprep.subr.msk.bf16.mxu1 %vm10078_vm11, %v10037_v38  ;;  %v14495_v43 = vld [vmem:[%s23607_s7 + $0xd8] sm:$0xff]   ;;  %v14496_v61 = vld [vmem:[%s23607_s7 + $0x110] sm:$0xff]   ;;  %v14498_v38 = vld [vmem:[%s23607_s7 + $0x108] sm:$0xff]  }
 0x837   :  { %v9816_v40 = vsel %vm8122_vm10, %v25432_v21, %v25431_v46  ;;  %v10038_v13 = vpack.c.bf16 %v10008_v4, %v10005_v54  ;;  %v25438_v47 = vrot.slane %v22876_v14, 2  ;;  %v25439_v57 = vrot.slane %v25435_v9, 2  ;;  %v14491_v4 = vld [vmem:[%s23606_s6 + $0x10] ss:$8 sps:$4 sm:$0xff]   ;;  %v14499_v46 = vld [vmem:[%s23607_s7 + $0xc8] sm:$0xff]   ;;  %v14500_v21 = vld [vmem:[%s23607_s7 + $0x100] sm:$0xff]  }
 0x838   :  { %v9824_v49 = vsel %vm8122_vm10, %v25433_v16, %v9823_v29  ;;  %v9576_v23 = vsel %vm6792_vm9, %v25436_v27, %v25434_v17  ;;  %v9939_v20 = vmax.f32 %v9701_v59, %v9816_v40  ;;  %v25437_v32 = vmov %v25434_v17  ;;  %v14497_v29 = vld [vmem:[%s23607_s7 + $0xd0] sm:$0xff]   ;;  %v14501_v40 = vld [vmem:[%s23607_s7 + $0xc0] sm:$0xff]   ;;  %v14502_v54 = vld [vmem:[%s23607_s7 + $0xf8] sm:$0xff]  }
 0x839   :  { %v9943_v31 = vmax.f32 %v9705_v22, %v9824_v49  ;;  %v9582_v15 = vsel %vm6792_vm9, %v25437_v32, %v9581_v25  ;;  %v9700_v33 = vmax.f32 %v25435_v9, %v9576_v23  ;;  %v10006_v51 = vmax.f32 %v9946_v11, 0.0  ;;  %v10043_v22 = vld [vmem:[%s23606_s6 + $0x20] sm:$0xff]  ;;  %v14504_v49 = vld [vmem:[%s23607_s7 + $0xf0] sm:$0xff]   ;;  %v14506_v17 = vld [vmem:[%s23607_s7 + $0xe8] sm:$0xff]  }
 0x83a   :  { %v9703_v37 = vmax.f32 %v22876_v14, %v9582_v15  ;;  %v9814_v50 = vsel %vm8122_vm10, %v25439_v57, %v25438_v47  ;;  %v9999_v39 = vmax.f32 %v9939_v20, 0.0  ;;  %v25440_v10 = vmov %v25438_v47  ;;  %v14505_v11 = vld [vmem:[%s23607_s7 + $0xb0] sm:$0xff]   ;;  %v14507_v9 = vld [vmem:[%s23607_s7 + $0xa8] sm:$0xff]   ;;  %v14508_v27 = vld [vmem:[%s23607_s7 + $0xe0] sm:$0xff]  }
 0x83b   :  { %v10003_v19 = vmax.f32 %v9943_v31, 0.0  ;;  %v9820_v25 = vsel %vm8122_vm10, %v25440_v10, %v9819_v3  ;;  %v9938_v53 = vmax.f32 %v9700_v33, %v9814_v50  ;;  %v10086_v28 = vsel %vm10078_vm11, %v10038_v13, 0  ;;  %v14509_v23 = vld [vmem:[%s23607_s7 + $0x78] sm:$0xff]   ;;  %v14510_v31 = vld [vmem:[%s23607_s7 + $0xa0] sm:$0xff]   ;;  %v14512_v32 = vld [vmem:[%s23607_s7 + $0x70] sm:$0xff]  }
 0x83c   :  { %v9941_v60 = vmax.f32 %v9703_v37, %v9820_v25  ;;  %v25441_v56 = vrot.slane %v22867_v41, 1  ;;  %v25443_v24 = vrot.slane %v25442_v34, 1  ;;  %10178 = vmatpush2.bf16.msra.mxu0 %v10086_v28  ;;  %v10035_v55 = vpack.c.bf16 %v10002_v52, %v9999_v39  ;;  %v14511_v20 = vld [vmem:[%s23607_s7 + $0x38] sm:$0xff]   ;;  %v14514_v33 = vld [vmem:[%s23607_s7 + $0x30] sm:$0xff]   ;;  %v14515_v13 = vld [vmem:[%s23607_s7 + $0x68] sm:$0xff]  }
 0x83d   :  { %v10036_v1 = vpack.c.bf16 %v10006_v51, %v10003_v19  ;;  %v9998_v14 = vmax.f32 %v9938_v53, 0.0  ;;  %10179 = vmatprep.subr.bf16.mxu0 %v25255_v6  ;;  %v25444_v36 = vrot.slane %v22867_v41, 2  ;;  %v25445_v26 = vrot.slane %v25442_v34, 2  ;;  %v14517_v51 = vld [vmem:[%s23607_s7 + $0x28] sm:$0xff]   ;;  %v14518_v37 = vld [vmem:[%s23607_s7 + $0x60] sm:$0xff]   ;;  %v14521_v57 = vld [vmem:[%s23607_s7 + $0x58] sm:$0xff]  }
 0x83e   :  { %v9574_v42 = vsel %vm6792_vm9, %v25443_v24, %v25441_v56  ;;  %v10001_v2 = vmax.f32 %v9941_v60, 0.0  ;;  %v25446_v0 = vmov %v25433_v16  ;;  %v25448_v6 = vmax.f32 %v22867_v41, %v22903_v5  ;;  %v14494_v41 = vld [vmem:[%s23607_s7 + $0x118] sm:$0xff]   ;;  %v14520_v47 = vld [vmem:[%s23607_s7 + $0x20] sm:$0xff]   ;;  %v14524_v19 = vld [vmem:[%s23607_s7 + $0x50] sm:$0xff]  }
 0x83f   :  { %v9699_v3 = vmax.f32 %v25442_v34, %v9574_v42  ;;  %v9812_v45 = vsel %vm8122_vm10, %v25445_v26, %v25444_v36  ;;  %v25447_v44 = vmov %v25444_v36  ;;  %v10080_v58 = vsel %vm10078_vm11, %v10036_v1, 0  ;;  %v14503_v16 = vld [vmem:[%s23607_s7 + $0xb8] sm:$0xff]   ;;  %v14525_v39 = vld [vmem:[%s23607_s7 + $0x10] sm:$0xff]   ;;  %v14527_v10 = vld [vmem:[%s23607_s7 + $0x48] sm:$0xff]  }
 0x840   :  { %v9818_v7 = vsel %vm8122_vm10, %v25447_v44, %v25446_v0  ;;  %10117 = vmatpush2.bf16.msra.mxu1 %v10080_v58  ;;  %v10034_v63 = vpack.c.bf16 %v10001_v2, %v9998_v14  ;;  %10180 = vmatpush2.bf16.msra.mxu0 %v10035_v55  ;;  %v12447_v59 = vcombine.high %v10043_v22, %v10043_v22  ;;  %v14716_v15 = vmov 0.0   ;;  %v14523_v50 = vld [vmem:[%s23607_s7 + $0x18] sm:$0xff]   ;;  %v14528_v25 = vld [vmem:[%s23607_s7 + $0x8] sm:$0xff]   ;;  %v14530_v53 = vld [vmem:[%s23607_s7 + $0x40] sm:$0xff]  }
 0x841   :  { %v9937_v48 = vmax.f32 %v9699_v3, %v9812_v45  ;;  %v9940_v30 = vmax.f32 %v25448_v6, %v9818_v7  ;;  %v12446_v52 = vcombine.low %v10043_v22, %v10043_v22  ;;  %12791 = vmatprep.subr.bf16.mxu0 %v14509_v23  ;;  %v14534_v24 = vld [vmem:[%s23607_s7 + $0x1d8] sm:$0x7f]   ;;  %v14551_v23 = vld [vmem:[%s23607_s7 + $0x210] sm:$0xff]   ;;  %vm11569_vm1 = vcmask 121856  }
 0x842   :  { %10118 = vmatprep.subr.bf16.mxu1 %v10034_v63  ;;  %v14513_v2 = vld [vmem:[%s23607_s7 + $0x138] sm:$0x7f]   ;;  %v10870_v36 = vsel %vm6792_vm9, %v14534_v24, 0  ;;  %v14570_v24 = vld [vmem:[%s23607_s7 + $0x220] sm:$0xff]  }
 0x843   :  { %v9997_v8 = vmax.f32 %v9937_v48, 0.0  ;;  %v10000_v12 = vmax.f32 %v9940_v30, 0.0  ;;  %10182 = vmatmul.mubr.bf16.vlgmr.msra.gmra.mxu0 %v14486_v18  ;;  %v10416_v58 = vsel %vm6792_vm9, %v14513_v2, 0  ;;  %v14537_v48 = vld [vmem:[%s23607_s7 + $0x1d0] sm:$0xff]  }
 0x844   :  { %12453 = vmatprep.mubr.msk.bf16.mxu0 %vm10068_vm12, %v14489_v35  ;;  %12792 = vmatpush3.bf16.msra.mxu0 %v14511_v20  ;;  %v14529_v20 = vld [vmem:[%s23607_s7 + $0x90] sm:$0xff]  }
 0x845   :  { %v10033_v5 = vpack.c.bf16 %v10000_v12, %v9997_v8  ;;  %12793 = vmatprep.subr.bf16.mxu0 %v14512_v32  ;;  %v14516_v12 = vld [vmem:[%s23607_s7 + $0x130] sm:$0xff]   ;;  %v14555_v32 = vld [vmem:[%s23607_s7 + $0x208] sm:$0xff]  }
 0x847   :  { %10119 = vmatpush2.bf16.msra.mxu1 %v10033_v5 }
 0x848   :  { %12764 = vmatprep.subr.bf16.mxu1 %v14494_v41  ;;  %12794 = vmatpush3.bf16.msra.mxu0 %v14514_v33  ;;  %v14557_v33 = vld [vmem:[%s23607_s7 + $0x240] sm:$0xff]  }
 0x849   :  { %12795 = vmatprep.subr.bf16.mxu0 %v14515_v13  ;;  %v14532_v13 = vld [vmem:[%s23607_s7 + $0x88] sm:$0xff]  }
 0x84a   :  { %10121 = vmatmul.mubr.bf16.vlgmr.msra.gmra.mxu1 %v14486_v18 }
 0x84b   :  { %12450 = vmatprep.mubr.msk.bf16.mxu1 %vm10068_vm12, %v14489_v35  ;;  %12765 = vmatpush3.bf16.msra.mxu1 %v14495_v43  ;;  %v14540_v35 = vld [vmem:[%s23607_s7 + $0x1c8] sm:$0xff]  }
 0x84c   :  { %12766 = vmatprep.subr.bf16.mxu1 %v14496_v61  ;;  %10190 = vmatmul.mubr.bf16.gmra.mxu0 %v14491_v4  ;;  %v14519_v61 = vld [vmem:[%s23607_s7 + $0x128] sm:$0xff]  }
 0x84d   :  { %12454 = vmatprep.mubr.msk.bf16.mxu0 %vm10068_vm12, %v12447_v59  ;;  %12796 = vmatpush3.bf16.msra.mxu0 %v14517_v51  ;;  %v14559_v51 = vld [vmem:[%s23607_s7 + $0x200] sm:$0xff]  }
 0x84e   :  { %12797 = vmatprep.subr.bf16.mxu0 %v14518_v37  ;;  %v14561_v37 = vld [vmem:[%s23607_s7 + $0x238] sm:$0xff]  }
 0x84f   :  { %12767 = vmatpush3.bf16.msra.mxu1 %v14497_v29 }
 0x850   :  { %12768 = vmatprep.subr.bf16.mxu1 %v14498_v38  ;;  %v14545_v38 = vld [vmem:[%s23607_s7 + $0x258] sm:$0xff]  }
 0x851   :  { %12798 = vmatpush3.bf16.msra.mxu0 %v14520_v47  ;;  %v14533_v47 = vld [vmem:[%s23607_s7 + $0x80] sm:$0xff]  }
 0x852   :  { %10131 = vmatmul.mubr.bf16.gmra.mxu1 %v14491_v4  ;;  %12799 = vmatprep.subr.bf16.mxu0 %v14521_v57  ;;  %v14543_v4 = vld [vmem:[%s23607_s7 + $0x1c0] sm:$0xff]   ;;  %v14535_v57 = vld [vmem:[%s23607_s7 + $0x1b8] sm:$0xff]  }
 0x853   :  { %12451 = vmatprep.mubr.msk.bf16.mxu1 %vm10068_vm12, %v12447_v59  ;;  %12769 = vmatpush3.bf16.msra.mxu1 %v14499_v46 }
 0x854   :  { %12770 = vmatprep.subr.bf16.mxu1 %v14500_v21  ;;  %10198 = vmatmul.mubr.bf16.gmra.mxu0 %v12446_v52  ;;  %v14522_v21 = vld [vmem:[%s23607_s7 + $0x120] sm:$0xff]  }
 0x855   :  { %12800 = vmatpush3.bf16.msra.mxu0 %v14523_v50  ;;  %v14563_v50 = vld [vmem:[%s23607_s7 + $0x1f8] sm:$0xff]  }
 0x856   :  { %12801 = vmatprep.subr.bf16.mxu0 %v14524_v19  ;;  %v14564_v19 = vld [vmem:[%s23607_s7 + $0x230] sm:$0xff]  }
 0x857   :  { %12771 = vmatpush3.bf16.msra.mxu1 %v14501_v40 }
 0x858   :  { %12772 = vmatprep.subr.bf16.mxu1 %v14502_v54  ;;  %v14547_v54 = vld [vmem:[%s23607_s7 + $0x218] sm:$0xff]  }
 0x859   :  { %12802 = vmatpush3.bf16.msra.mxu0 %v14525_v39  ;;  %v14536_v39 = vld [vmem:[%s23607_s7 + $0x178] sm:$0xff]  }
 0x85a   :  { %10141 = vmatmul.mubr.bf16.gmra.mxu1 %v12446_v52  ;;  %12803 = vmatprep.subr.bf16.mxu0 %v14527_v10  ;;  %v14526_v52 = vld [vmem:[%s23607_s7 + $0x98] sm:$0x7f]  }
 0x85b   :  { %12773 = vmatpush3.bf16.msra.mxu1 %v14503_v16 }
 0x85c   :  { %12774 = vmatprep.subr.bf16.mxu1 %v14504_v49  ;;  %v14549_v49 = vld [vmem:[%s23607_s7 + $0x250] sm:$0xff]  }
 0x85d   :  { %12804 = vmatpush3.bf16.msra.mxu0 %v14528_v25 }
 0x85e   :  { %12805 = vmatprep.subr.bf16.mxu0 %v14530_v53  ;;  %v14538_v53 = vld [vmem:[%s23607_s7 + $0x1b0] sm:$0xff]  }
 0x85f   :  { %12775 = vmatpush3.bf16.msra.mxu1 %v14505_v11 }
 0x860   :  { %12776 = vmatprep.subr.bf16.mxu1 %v14506_v17 }
 0x861   :  { %12806 = vmatpush3.bf16.msra.mxu0 %v14531_v62  ;;  %v14565_v62 = vld [vmem:[%s23607_s7 + $0x1f0] sm:$0xff]  }
 0x862   :  { %12999 = vmatprep.subr.bf16.mxu0 %v14716_v15 }
 0x863   :  { %12777 = vmatpush3.bf16.msra.mxu1 %v14507_v9 }
 0x864   :  { %12778 = vmatprep.subr.bf16.mxu1 %v14508_v27  ;;  %v10621_v27 = vsel %vm6792_vm9, %v14526_v52, 0  ;;  %v14577_v52 = vld [vmem:[%s23607_s7 + $0x2b0] sm:$0xff]  }
 0x867   :  { %12779 = vmatpush3.bf16.msra.mxu1 %v14510_v31  ;;  %v14553_v31 = vld [vmem:[%s23607_s7 + $0x248] sm:$0xff]  }
 0x868   :  { %12975 = vmatprep.subr.bf16.mxu1 %v14716_v15 }
 0x903   :  { %v23283_v28 = vpop.f32.mrf.mxu0 }
 0x904   :  { %v10207_v25 = vpack.c.bf16 %v23283_v28, %v23283_v28  ;;  %v14539_v28 = vld [vmem:[%s23607_s7 + $0x170] sm:$0xff]  }
 0x905   :  { %v10185_v60 = vpop.f32.mrf.mxu0 }
 0x906   :  { %v14567_v60 = vld [vmem:[%s23607_s7 + $0x228] sm:$0xff]  }
 0x907   :  { %v23285_v34 = vpop.f32.mrf.mxu0 }
 0x908   :  { %v10250_v9 = vpack.c.bf16 %v23285_v34, %v23285_v34  ;;  %v14568_v34 = vld [vmem:[%s23607_s7 + $0x1e8] sm:$0xff]  }
 0x909   :  { %v10188_v1 = vpop.f32.mrf.mxu0 }
 0x90a   :  { %v10122_v56 = vpop.f32.mrf.mxu1  ;;  %v14544_v1 = vld [vmem:[%s23607_s7 + $0x1a0] sm:$0xff]  }
 0x90b   :  { %v10205_v14 = vpack.c.bf16 %v10122_v56, %v10122_v56  ;;  %v14541_v56 = vld [vmem:[%s23607_s7 + $0x1a8] sm:$0xff]  }
 0x90c   :  { %v10124_v42 = vpop.f32.mrf.mxu1  ;;  %v10191_v26 = vpop.f32.mrf.mxu0 }
 0x90d   :  { %v10206_v55 = vpack.c.bf16 %v10124_v42, %v10124_v42  ;;  %v10705_v40 = vpack.c.bf16 %v10191_v26, %v10191_v26  ;;  %v14542_v42 = vld [vmem:[%s23607_s7 + $0x168] sm:$0xff]  }
 0x90e   :  { %v10126_v3 = vpop.f32.mrf.mxu1  ;;  %v10193_v0 = vpop.f32.mrf.mxu0 }
 0x90f   :  { %10655 = vmatprep.mubr.bf16.mxu0 %v10206_v55  ;;  %v10248_v7 = vpack.c.bf16 %v10126_v3, %v10126_v3  ;;  %v14571_v55 = vld [vmem:[%s23607_s7 + $0x1e0] sm:$0xff]   ;;  %v14552_v0 = vld [vmem:[%s23607_s7 + $0x190] sm:$0xff]  }
 0x910   :  { %v10128_v45 = vpop.f32.mrf.mxu1  ;;  %10656 = vmatmul.mubr.bf16.vlgmr.msra.gmra.mxu0 %v10205_v14  ;;  %v23303_v30 = vpop.f32.mrf.mxu0  ;;  %v14586_v14 = vld [vmem:[%s23607_s7 + $0x318] sm:$0x7f]   ;;  %v14546_v3 = vld [vmem:[%s23607_s7 + $0x160] sm:$0xff]  }
 0x911   :  { %v10249_v44 = vpack.c.bf16 %v10128_v45, %v10128_v45  ;;  %13000 = vmatpush3.bf16.msra.mxu0 %v10870_v36  ;;  %13007 = vmatprep.mubr.msk.bf16.mxu0 %vm14717_vm13, %v14716_v15  ;;  %v14548_v36 = vld [vmem:[%s23607_s7 + $0x198] sm:$0xff]   ;;  %v11370_v26 = vsel %vm6792_vm9, %v14586_v14, 0 }
 0x912   :  { %13001 = vmatprep.subr.bf16.mxu0 %v14716_v15  ;;  %v23301_v6 = vpop.f32.mrf.mxu1  ;;  %v10196_v8 = vpop.f32.mrf.mxu0  ;;  %v14550_v45 = vld [vmem:[%s23607_s7 + $0x158] sm:$0xff]  }
 0x913   :  { %10450 = vmatprep.mubr.bf16.mxu1 %v10249_v44  ;;  %v14589_v44 = vld [vmem:[%s23607_s7 + $0x310] sm:$0xff]   ;;  %v14560_v8 = vld [vmem:[%s23607_s7 + $0x180] sm:$0xff]  }
 0x914   :  { %10451 = vmatmul.mubr.bf16.vlgmr.msra.gmra.mxu1 %v10248_v7  ;;  %v23305_v63 = vpop.f32.mrf.mxu1  ;;  %v23318_v41 = vpop.f32.mrf.mxu0  ;;  %v14554_v7 = vld [vmem:[%s23607_s7 + $0x150] sm:$0xff]  }
 0x915   :  { %12976 = vmatpush3.bf16.msra.mxu1 %v10416_v58  ;;  %12983 = vmatprep.mubr.msk.bf16.mxu1 %vm14717_vm13, %v14716_v15  ;;  %v10704_v10 = vpack.c.bf16 %v23305_v63, %v23305_v63  ;;  %v14556_v58 = vld [vmem:[%s23607_s7 + $0x188] sm:$0xff]  }
 0x916   :  { %12977 = vmatprep.subr.bf16.mxu1 %v14716_v15  ;;  %13002 = vmatpush3.bf16.msra.mxu0 %v14537_v48  ;;  %v23316_v18 = vpop.f32.mrf.mxu1  ;;  %v10201_v43 = vpop.f32.mrf.mxu0  ;;  %v14592_v48 = vld [vmem:[%s23607_s7 + $0x308] sm:$0xff]  }
 0x917   :  { %13003 = vmatprep.subr.bf16.mxu0 %v14716_v15  ;;  %v10953_v2 = vpack.c.bf16 %v23316_v18, %v23316_v18  ;;  %v14558_v63 = vld [vmem:[%s23607_s7 + $0x148] sm:$0xff]   ;;  %v11205_v18 = vpack.c.bf16 %v23318_v41, %v23318_v41  ;;  %v10703_v43 = vpack.c.bf16 %v23301_v6, %v23301_v6  ;;  %v14569_v41 = vld [vmem:[%s23607_s7 + $0x270] sm:$0xff]  }
 0x918   :  { %v10138_v5 = vpop.f32.mrf.mxu1  ;;  %v10202_v29 = vpop.f32.mrf.mxu0  ;;  %v14572_v6 = vld [vmem:[%s23607_s7 + $0x268] sm:$0xff]  }
 0x919   :  { %12978 = vmatpush3.bf16.msra.mxu1 %v14516_v12  ;;  %v10954_v11 = vpack.c.bf16 %v10138_v5, %v10138_v5  ;;  %v14593_v12 = vld [vmem:[%s23607_s7 + $0x300] sm:$0xff]   ;;  %v14566_v5 = vld [vmem:[%s23607_s7 + $0x278] sm:$0x7f]  }
 0x91a   :  { %12979 = vmatprep.subr.bf16.mxu1 %v14716_v15  ;;  %13004 = vmatpush3.bf16.msra.mxu0 %v14540_v35  ;;  %v23328_v22 = vpop.f32.mrf.mxu1  ;;  %v10203_v46 = vpop.f32.mrf.mxu0  ;;  %v14562_v35 = vld [vmem:[%s23607_s7 + $0x140] sm:$0xff]   ;;  %v14574_v29 = vld [vmem:[%s23607_s7 + $0x2f8] sm:$0xff]  }
 0x91b   :  { %13005 = vmatprep.subr.bf16.mxu0 %v14716_v15 }
 0x91c   :  { %v23334_v59 = vpop.f32.mrf.mxu1 }
 0x91d   :  { %12980 = vmatpush3.bf16.msra.mxu1 %v14519_v61  ;;  %v11120_v61 = vsel %vm6792_vm9, %v14566_v5, 0  ;;  %v11204_v46 = vpack.c.bf16 %v23334_v59, %v23334_v59  ;;  %v14578_v59 = vld [vmem:[%s23607_s7 + $0x2e8] sm:$0xff]  }
 0x91e   :  { %12981 = vmatprep.subr.bf16.mxu1 %v14716_v15  ;;  %13006 = vmatpush3.bf16.msra.mxu0 %v14543_v4  ;;  %v10146_v16 = vpop.f32.mrf.mxu1  ;;  %v14573_v4 = vld [vmem:[%s23607_s7 + $0x260] sm:$0xff]  }
 0x91f   :  { %12845 = vmatprep.subr.bf16.mxu0 %v14545_v38  ;;  %v14575_v38 = vld [vmem:[%s23607_s7 + $0x2b8] sm:$0xff]   ;;  %v14581_v16 = vld [vmem:[%s23607_s7 + $0x2a0] sm:$0xff]  }
 0x920   :  { %v10147_v17 = vpop.f32.mrf.mxu1 }
 0x921   :  { %12982 = vmatpush3.bf16.msra.mxu1 %v14522_v21  ;;  %13008 = vmatmul.mubr.msk.bf16.vlgmr.msra.gmra.mxu0 %vm10411_vm14, %v10705_v40  ;;  %v10955_v21 = vpack.c.bf16 %v23303_v30, %v23303_v30  ;;  %v14576_v40 = vld [vmem:[%s23607_s7 + $0x2f0] sm:$0xff]   ;;  %v14579_v30 = vld [vmem:[%s23607_s7 + $0x2a8] sm:$0xff]  }
 0x922   :  { %12987 = vmatprep.subr.bf16.mxu1 %v14716_v15  ;;  %12846 = vmatpush3.bf16.msra.mxu0 %v14547_v54  ;;  %v14580_v54 = vld [vmem:[%s23607_s7 + $0x2e0] sm:$0xff]   ;;  %v14584_v17 = vld [vmem:[%s23607_s7 + $0x2d0] sm:$0xff]  }
 0x923   :  { %12847 = vmatprep.subr.bf16.mxu0 %v14549_v49  ;;  %11154 = vmatprep.mubr.bf16.mxu0 %v10954_v11  ;;  %v14582_v49 = vld [vmem:[%s23607_s7 + $0x2d8] sm:$0xff]  }
 0x924   :  { %12984 = vmatmul.mubr.msk.bf16.vlgmr.msra.gmra.mxu1 %vm10411_vm14, %v10250_v9  ;;  %v14583_v11 = vld [vmem:[%s23607_s7 + $0x298] sm:$0xff]   ;;  %v14585_v9 = vld [vmem:[%s23607_s7 + $0x290] sm:$0xff]  }
 0x925   :  { %12988 = vmatpush3.bf16.msra.mxu1 %v10621_v27  ;;  %12995 = vmatprep.mubr.msk.bf16.mxu1 %vm14717_vm13, %v14716_v15  ;;  %v14587_v27 = vld [vmem:[%s23607_s7 + $0x2c8] sm:$0xff]  }
 0x926   :  { %12989 = vmatprep.subr.bf16.mxu1 %v14716_v15  ;;  %12848 = vmatpush3.bf16.msra.mxu0 %v14551_v23  ;;  %v14588_v23 = vld [vmem:[%s23607_s7 + $0x288] sm:$0xff]  }
 0x927   :  { %12849 = vmatprep.subr.bf16.mxu0 %v14553_v31  ;;  %v14590_v31 = vld [vmem:[%s23607_s7 + $0x2c0] sm:$0xff]  }
 0x929   :  { %12990 = vmatpush3.bf16.msra.mxu1 %v14529_v20  ;;  %v14591_v20 = vld [vmem:[%s23607_s7 + $0x280] sm:$0xff]  }
 0x92a   :  { %12991 = vmatprep.subr.bf16.mxu1 %v14716_v15  ;;  %12850 = vmatpush3.bf16.msra.mxu0 %v14555_v32  ;;  %v11203_v32 = vpack.c.bf16 %v23328_v22, %v23328_v22  ;;  %v14597_v22 = vld [vmem:[%s23608_s9 + $0x18] sm:$0xff]  }
 0x92b   :  { %12851 = vmatprep.subr.bf16.mxu0 %v14557_v33  ;;  %v14594_v33 = vld [vmem:[%s23608_s9 + $0x30] ss:$0 sps:$4 sm:$0x33]  }
 0x92d   :  { %12992 = vmatpush3.bf16.msra.mxu1 %v14532_v13  ;;  %v11527_v13 = vsel %vm11525_vm15, %v14594_v33, 0 }
 0x92e   :  { %12993 = vmatprep.subr.bf16.mxu1 %v14716_v15  ;;  %12852 = vmatpush3.bf16.msra.mxu0 %v14559_v51  ;;  %v14595_v51 = vld [vmem:[%s23608_s9 + $0x28] sm:$0xff]  }
 0x92f   :  { %12853 = vmatprep.subr.bf16.mxu0 %v14561_v37  ;;  %v14596_v37 = vld [vmem:[%s23608_s9 + $0x20] sm:$0xff]  }
 0x931   :  { %12994 = vmatpush3.bf16.msra.mxu1 %v14533_v47  ;;  %v14598_v47 = vld [vmem:[%s23608_s9 + $0x10] sm:$0xff]  }
 0x932   :  { %12818 = vmatprep.subr.bf16.mxu1 %v14535_v57  ;;  %12854 = vmatpush3.bf16.msra.mxu0 %v14563_v50  ;;  %v14599_v57 = vld [vmem:[%s23608_s9 + $0x8] sm:$0xff]  }
 0x933   :  { %12855 = vmatprep.subr.bf16.mxu0 %v14564_v19  ;;  %v14600_v19 = vld [vmem:[%s23608_s9] sm:$0xff]  }
 0x934   :  { %12996 = vmatmul.mubr.msk.bf16.vlgmr.msra.gmra.mxu1 %vm10411_vm14, %v10207_v25 }
 0x935   :  { %12819 = vmatpush3.bf16.msra.mxu1 %v14536_v39  ;;  %10904 = vmatprep.mubr.bf16.mxu1 %v10704_v10 }
 0x936   :  { %12820 = vmatprep.subr.bf16.mxu1 %v14538_v53  ;;  %12856 = vmatpush3.bf16.msra.mxu0 %v14565_v62 }
 0x937   :  { %12857 = vmatprep.subr.bf16.mxu0 %v14567_v60 }
 0x939   :  { %12821 = vmatpush3.bf16.msra.mxu1 %v14539_v28 }
 0x93a   :  { %12822 = vmatprep.subr.bf16.mxu1 %v14541_v56  ;;  %12858 = vmatpush3.bf16.msra.mxu0 %v14568_v34 }
 0x93b   :  { %12859 = vmatprep.subr.bf16.mxu0 %v14570_v24 }
 0x93d   :  { %12823 = vmatpush3.bf16.msra.mxu1 %v14542_v42 }
 0x93e   :  { %12824 = vmatprep.subr.bf16.mxu1 %v14544_v1  ;;  %12860 = vmatpush3.bf16.msra.mxu0 %v14571_v55 }
 0x93f   :  { %13023 = vmatprep.subr.bf16.mxu0 %v14716_v15 }
 0x941   :  { %12825 = vmatpush3.bf16.msra.mxu1 %v14546_v3  ;;  %11155 = vmatmul.mubr.bf16.vlgmr.msra.gmra.mxu0 %v10953_v2 }
 0x942   :  { %12826 = vmatprep.subr.bf16.mxu1 %v14548_v36  ;;  %13024 = vmatpush3.bf16.msra.mxu0 %v11370_v26 }
 0x943   :  { %13025 = vmatprep.subr.bf16.mxu0 %v14716_v15  ;;  %13031 = vmatprep.mubr.msk.bf16.mxu0 %vm14717_vm13, %v14716_v15 }
 0x945   :  { %12827 = vmatpush3.bf16.msra.mxu1 %v14550_v45 }
 0x946   :  { %12828 = vmatprep.subr.bf16.mxu1 %v14552_v0  ;;  %13026 = vmatpush3.bf16.msra.mxu0 %v14589_v44 }
 0x947   :  { %13027 = vmatprep.subr.bf16.mxu0 %v14716_v15 }
 0x949   :  { %12829 = vmatpush3.bf16.msra.mxu1 %v14554_v7 }
 0x94a   :  { %12830 = vmatprep.subr.bf16.mxu1 %v14556_v58  ;;  %13028 = vmatpush3.bf16.msra.mxu0 %v14592_v48 }
 0x94b   :  { %13029 = vmatprep.subr.bf16.mxu0 %v14716_v15 }
 0x94d   :  { %12831 = vmatpush3.bf16.msra.mxu1 %v14558_v63 }
 0x94e   :  { %12832 = vmatprep.subr.bf16.mxu1 %v14560_v8  ;;  %13030 = vmatpush3.bf16.msra.mxu0 %v14593_v12 }
 0x94f   :  { %13035 = vmatprep.subr.bf16.mxu0 %v14716_v15 }
 0x951   :  { %12833 = vmatpush3.bf16.msra.mxu1 %v14562_v35  ;;  %13032 = vmatmul.mubr.msk.bf16.vlgmr.msra.gmra.mxu0 %vm10411_vm14, %v11205_v18 }
 0x952   :  { %13011 = vmatprep.subr.bf16.mxu1 %v14716_v15  ;;  %13049 = vmatprep.mubr.msk.bf16.mxu0 %vm14717_vm13, %v14716_v15 }
 0x953   :  { %13036 = vmatpush3.bf16.msra.mxu0 %v11527_v13  ;;  %v12721_v13 = vld [vmem:[%s23610_s10] ss:$0 sm:$0xff] }
 0x954   :  { %10905 = vmatmul.mubr.bf16.vlgmr.msra.gmra.mxu1 %v10703_v43  ;;  %13037 = vmatprep.subr.bf16.mxu0 %v14716_v15 }
 0x955   :  { %13012 = vmatpush3.bf16.msra.mxu1 %v11120_v61  ;;  %13019 = vmatprep.mubr.msk.bf16.mxu1 %vm14717_vm13, %v14716_v15 }
 0x956   :  { %13013 = vmatprep.subr.bf16.mxu1 %v14716_v15 }
 0x957   :  { %13038 = vmatpush3.bf16.msra.mxu0 %v14595_v51 }
 0x958   :  { %13039 = vmatprep.subr.bf16.mxu0 %v14716_v15 }
 0x959   :  { %13014 = vmatpush3.bf16.msra.mxu1 %v14569_v41 }
 0x95a   :  { %13015 = vmatprep.subr.bf16.mxu1 %v14716_v15 }
 0x95b   :  { %13040 = vmatpush3.bf16.msra.mxu0 %v14596_v37 }
 0x95c   :  { %13041 = vmatprep.subr.bf16.mxu0 %v14716_v15 }
 0x95d   :  { %13016 = vmatpush3.bf16.msra.mxu1 %v14572_v6 }
 0x95e   :  { %13017 = vmatprep.subr.bf16.mxu1 %v14716_v15 }
 0x95f   :  { %13042 = vmatpush3.bf16.msra.mxu0 %v14597_v22 }
 0x960   :  { %13043 = vmatprep.subr.bf16.mxu0 %v14716_v15 }
 0x961   :  { %13018 = vmatpush3.bf16.msra.mxu1 %v14573_v4 }
 0x962   :  { %12872 = vmatprep.subr.bf16.mxu1 %v14574_v29 }
 0x963   :  { %13044 = vmatpush3.bf16.msra.mxu0 %v14598_v47 }
 0x964   :  { %13020 = vmatmul.mubr.msk.bf16.vlgmr.msra.gmra.mxu1 %vm10411_vm14, %v10955_v21  ;;  %13045 = vmatprep.subr.bf16.mxu0 %v14716_v15 }
 0x965   :  { %12873 = vmatpush3.bf16.msra.mxu1 %v14575_v38  ;;  %11404 = vmatprep.mubr.bf16.mxu1 %v11204_v46 }
 0x966   :  { %12874 = vmatprep.subr.bf16.mxu1 %v14576_v40 }
 0x967   :  { %13046 = vmatpush3.bf16.msra.mxu0 %v14599_v57 }
 0x968   :  { %13047 = vmatprep.subr.bf16.mxu0 %v14716_v15 }
 0x969   :  { %12875 = vmatpush3.bf16.msra.mxu1 %v14577_v52 }
 0x96a   :  { %12876 = vmatprep.subr.bf16.mxu1 %v14578_v59 }
 0x96b   :  { %13048 = vmatpush3.bf16.msra.mxu0 %v14600_v19 }
 0x96d   :  { %12877 = vmatpush3.bf16.msra.mxu1 %v14579_v30 }
 0x96e   :  { %12878 = vmatprep.subr.bf16.mxu1 %v14580_v54 }
 0x971   :  { %12879 = vmatpush3.bf16.msra.mxu1 %v14581_v16 }
 0x972   :  { %12880 = vmatprep.subr.bf16.mxu1 %v14582_v49 }
 0x975   :  { %12881 = vmatpush3.bf16.msra.mxu1 %v14583_v11 }
 0x976   :  { %12882 = vmatprep.subr.bf16.mxu1 %v14584_v17 }
 0x979   :  { %12883 = vmatpush3.bf16.msra.mxu1 %v14585_v9 }
 0x97a   :  { %12884 = vmatprep.subr.bf16.mxu1 %v14587_v27 }
 0x97d   :  { %12885 = vmatpush3.bf16.msra.mxu1 %v14588_v23  ;;  %v12720_v23 = vld [vmem:[%s23609_s8] ss:$0 sm:$0xff] }
 0x97e   :  { %12886 = vmatprep.subr.bf16.mxu1 %v14590_v31 }
 0x981   :  { %12887 = vmatpush3.bf16.msra.mxu1 %v14591_v20 }
 0x984   :  { %11405 = vmatmul.mubr.bf16.vlgmr.msra.gmra.mxu1 %v11203_v32 }
 0x9d0   :  { %v12807_v50 = vpop.f32.mrf.mxu0 }
 0x9d2   :  { %v12808_v39 = vpop.f32.mrf.mxu0 }
 0x9d3   :  { %v12809_v10 = vadd.f32 %v12808_v39, %v12807_v50 }
 0x9d4   :  { %v12780_v25 = vpop.f32.mrf.mxu1  ;;  %v12810_v53 = vpop.f32.mrf.mxu0 }
 0x9d6   :  { %v12781_v62 = vpop.f32.mrf.mxu1  ;;  %v12811_v60 = vpop.f32.mrf.mxu0 }
 0x9d7   :  { %v12782_v28 = vadd.f32 %v12781_v62, %v12780_v25 }
 0x9d8   :  { %v12783_v56 = vpop.f32.mrf.mxu1 }
 0x9da   :  { %v12784_v34 = vpop.f32.mrf.mxu1 }
 0x9e1   :  { %v10946_v24 = vpop.f32.mrf.mxu0 }
 0x9e3   :  { %v13009_v42 = vpop.f32.mrf.mxu0 }
 0x9e4   :  { %v10492_v1 = vpop.f32.mrf.mxu1 }
 0x9e5   :  { %v10493_v55 = vadd.f32 %v12782_v28, %v10492_v1  ;;  %v10949_v14 = vpop.f32.mrf.mxu0 }
 0x9e6   :  { %v12985_v3 = vpop.f32.mrf.mxu1 }
 0x9e7   :  { %v10658_v2 = vadd.f32 %v12809_v10, %v10493_v55  ;;  %v13010_v36 = vpop.f32.mrf.mxu0 }
 0x9e8   :  { %v10495_v26 = vpop.f32.mrf.mxu1 }
 0x9ea   :  { %v12986_v45 = vpop.f32.mrf.mxu1 }
 0x9f4   :  { %v10697_v15 = vpop.f32.mrf.mxu1 }
 0x9f5   :  { %v10698_v0 = vadd.f32 %v10697_v15, %v10658_v2 }
 0x9f6   :  { %v12997_v44 = vpop.f32.mrf.mxu1 }
 0x9f8   :  { %v10700_v7 = vpop.f32.mrf.mxu1 }
 0x9fa   :  { %v12998_v58 = vpop.f32.mrf.mxu1 }
 0xa01   :  { %v12861_v48 = vpop.f32.mrf.mxu0 }
 0xa03   :  { %v12862_v63 = vpop.f32.mrf.mxu0 }
 0xa04   :  { %v12863_v8 = vadd.f32 %v12862_v63, %v12861_v48 }
 0xa05   :  { %v12864_v12 = vpop.f32.mrf.mxu0 }
 0xa07   :  { %v12865_v35 = vpop.f32.mrf.mxu0 }
 0xa11   :  { %v11446_v18 = vpop.f32.mrf.mxu0 }
 0xa13   :  { %v13033_v5 = vpop.f32.mrf.mxu0 }
 0xa14   :  { %v12834_v43 = vpop.f32.mrf.mxu1 }
 0xa15   :  { %v11449_v61 = vpop.f32.mrf.mxu0 }
 0xa16   :  { %v12835_v41 = vpop.f32.mrf.mxu1 }
 0xa17   :  { %v12836_v6 = vadd.f32 %v12835_v41, %v12834_v43  ;;  %v13034_v4 = vpop.f32.mrf.mxu0 }
 0xa18   :  { %v12837_v29 = vpop.f32.mrf.mxu1 }
 0xa19   :  { %v10947_v38 = vadd.f32 %v12836_v6, %v10946_v24 }
 0xa1a   :  { %v12838_v46 = vpop.f32.mrf.mxu1 }
 0xa1b   :  { %v10952_v21 = vadd.f32 %v10947_v38, %v10698_v0 }
 0xa24   :  { %v11196_v40 = vpop.f32.mrf.mxu1 }
 0xa25   :  { %v11197_v52 = vadd.f32 %v12863_v8, %v11196_v40 }
 0xa26   :  { %v13021_v59 = vpop.f32.mrf.mxu1 }
 0xa27   :  { %v11202_v30 = vadd.f32 %v11197_v52, %v10952_v21 }
 0xa28   :  { %v11199_v54 = vpop.f32.mrf.mxu1 }
 0xa2a   :  { %v13022_v16 = vpop.f32.mrf.mxu1 }
 0xa44   :  { %v12888_v49 = vpop.f32.mrf.mxu1 }
 0xa46   :  { %v12889_v11 = vpop.f32.mrf.mxu1 }
 0xa47   :  { %v12890_v17 = vadd.f32 %v12889_v11, %v12888_v49 }
 0xa48   :  { %v12891_v9 = vpop.f32.mrf.mxu1 }
 0xa49   :  { %v11447_v27 = vadd.f32 %v12890_v17, %v11446_v18 }
 0xa4a   :  { %v12892_v31 = vpop.f32.mrf.mxu1 }
 0xa4b   :  { %v11452_v20 = vadd.f32 %v11447_v27, %v11202_v30 }
 0xa4d   :  { %v11460_v32 = vadd.f32 %v12720_v23, %v11452_v20 }
 0xa4f   :  { %v11461_v33 = vpack.c.bf16 %v11460_v32, %v11460_v32 }
 0xa51   :  { %13050 = vmatmul.mubr.msk.bf16.vlgmr.msra.gmra.mxu0 %vm11521_vm0, %v11461_v33 }
 0xb11   :  { %v11563_v51 = vpop.f32.mrf.mxu0 }
 0xb12   :  { %v11564_v37 = vadd.f32 %v12721_v13, %v11563_v51 }
 0xb13   :  { %v13051_v22 = vpop.f32.mrf.mxu0 }
 0xb14   :  { %11570 = vst.msk [vmem:[%s23611_s11] sm:$0xff] %vm11569_vm1, %v11564_v37 }
 0xb15   :  { %v11566_v47 = vpop.f32.mrf.mxu0 }
 0xb17   :  { %v13052_v57 = vpop.f32.mrf.mxu0 }

</bundles_post_ra>
